<compile_context>
chip_gen: v7x
topology: tpu7x:2x2x1
jax: 0.10.0
libtpu: 0.0.40
codegen_flags: <defaults>
</compile_context>

<pallas_src>
import functools

import jax
import jax.numpy as jnp
from jax import lax
from jax.experimental import pallas as pl
from jax.experimental.pallas import tpu as pltpu


# Padded (lane/sublane friendly, but de-padded vs 128) channel sizes.
_K1 = 32    # conv1 im2col taps 25 -> 32
_C1 = 32    # conv1 out channels 20 -> 32
_C2 = 64    # conv2 out channels 50 -> 64
_F3 = 512   # fc3 out features 500 -> 512
_F4 = 128   # fc4 out features 10 -> 128


# ------------------------------ fused Pallas kernel ------------------------------

def _lenet_fused_kernel(x1_ref, w1_ref, b1_ref, w2_ref, b2_ref,
                        w3_hbm, b3_ref, w4_hbm, b4_ref,
                        out_ref,
                        pool1_ref, y2_ref, w3_vmem, w4_vmem, dma_sem,
                        *, n, last):
    """Whole LeNet-5 (Caffe) forward for a batch of `n` 28x28x1 images.

    x1_ref   : (4, n*192, 32) bf16  conv1 im2col patches, one slab per 2x2
                                    pool phase; rows = (img, ho, wo), wo padded
                                    12->16, taps padded 25->32.
    w1_ref   : (32, 32)       bf16  conv1 weights (taps x Cout, 20->32).
    w2_ref   : (25, 32, 64)   bf16  conv2 weights per 5x5 tap (Cin 20->32,
                                    Cout 50->64).
    w3_hbm   : (16, 64, 512)  bf16  fc3 weights per spatial position (HBM,
                                    DMA'd manually to overlap conv compute).
    w4_hbm   : (512, 128)     bf16  fc4 weights (HBM, DMA'd manually).
    b*_ref   : (1, lanes)     f32   zero-padded biases.
    out_ref  : (n, 128)       f32   log-softmax (or logits) in lanes [:10].
    pool1_ref: (n, 12, 16, 32) bf16 scratch, pooled conv1 activation
                                    (columns 12..15 never read by conv2).
    y2_ref   : (n, 8, 8, 64)  f32   scratch, conv2 activation (pre-pool).
    """
    f32 = jnp.float32
    bf16 = jnp.bfloat16

    # Kick off the big fc-weight DMAs right away; they overlap conv1/conv2.
    cp3 = pltpu.make_async_copy(w3_hbm, w3_vmem, dma_sem.at[0])
    cp4 = pltpu.make_async_copy(w4_hbm, w4_vmem, dma_sem.at[1])
    cp3.start()
    cp4.start()

    w1 = w1_ref[...]                                              # (32, 32)
    b1 = b1_ref[...]                                              # (1, 32)

    # ---- conv1 + bias + ReLU + 2x2 max-pool (elementwise max over 4 phases).
    # Per-image loop keeps the live f32 working set small (no spills).
    for img in range(n):
        r0 = img * 192
        pooled = None
        for ph in range(4):
            y = jnp.dot(x1_ref[ph, r0:r0 + 192, :], w1,
                        preferred_element_type=f32)                # (192, 32)
            pooled = y if pooled is None else jnp.maximum(pooled, y)
        pooled = jnp.maximum(pooled + b1, 0.0)                     # bias hoisted
        pool1_ref[img] = pooled.reshape(12, 16, _C1).astype(bf16)  # one store

    # ---- conv2 via 25 accumulating taps (kw sublane shifts hoisted) ----
    acc = jnp.zeros((n * 64, _C2), f32)
    for kw in range(5):
        shifted = pool1_ref[:, :, kw:kw + 8, :]                    # (n,12,8,32) bf16
        for kh in range(5):
            patch = shifted[:, kh:kh + 8].reshape(n * 64, _C1)     # rows (img,oh,ow)
            acc = acc + jnp.dot(patch, w2_ref[kh * 5 + kw],
                                preferred_element_type=f32)
    y2 = jnp.maximum(acc + b2_ref[...], 0.0)                       # (n*64, 64)
    y2_ref[...] = y2.reshape(n, 8, 8, _C2)                         # one store

    # ---- fc3: 2x2 max-pool folded in as elementwise max of 4 point loads ----
    cp3.wait()                                                     # fc3 weights ready
    acc3 = jnp.zeros((n, _F3), f32)
    for s in range(16):
        hh, ww = s // 4, s % 4
        a = y2_ref[:, 2 * hh,     2 * ww,     :]
        b = y2_ref[:, 2 * hh,     2 * ww + 1, :]
        c = y2_ref[:, 2 * hh + 1, 2 * ww,     :]
        d = y2_ref[:, 2 * hh + 1, 2 * ww + 1, :]
        xs = jnp.maximum(jnp.maximum(a, b), jnp.maximum(c, d)).astype(bf16)
        acc3 = acc3 + jnp.dot(xs, w3_vmem[s], preferred_element_type=f32)
    h3 = jnp.maximum(acc3 + b3_ref[...], 0.0)                      # (n, 512)

    # ---- fc4 (+ log-softmax over the 10 valid lanes) ----
    cp4.wait()
    logits = jnp.dot(h3.astype(bf16), w4_vmem[...], preferred_element_type=f32)
    logits = logits + b4_ref[...]                                  # (n, 128)
    if last == "logsoftmax":
        lane = lax.broadcasted_iota(jnp.int32, logits.shape, 1)
        neg = float(jnp.finfo(jnp.float32).min)
        z = jnp.where(lane < 10, logits, neg)                      # mask padded lanes
        z = z - jnp.max(z, axis=-1, keepdims=True)
        lse = jnp.log(jnp.sum(jnp.exp(z), axis=-1, keepdims=True))
        out_ref[...] = z - lse
    else:
        out_ref[...] = logits


# ------------------------------ wrappers / params ------------------------------

def _full_spec(shape):
    nd = len(shape)
    return pl.BlockSpec(shape, lambda i, _nd=nd: (0,) * _nd)


def _conv1_pool_phase_patches(x_img, i, j):
    """im2col patches for conv1 outputs feeding pool phase (i, j).

    x_img: (n, 28, 28) f32.  Returns (n*12*16, 32): row (img, ho, wo) holds the
    5x5 input patch of conv1 output pixel (2*ho+i, 2*wo+j); wo is zero-padded
    12->16 and the 25 taps are padded to 32.
    """
    n = x_img.shape[0]
    taps = []
    for kh in range(5):
        for kw in range(5):
            taps.append(x_img[:, i + kh::2, j + kw::2][:, :12, :12])   # (n,12,12)
    p = jnp.stack(taps, axis=-1)                       # (n, 12, 12, 25)
    p = jnp.pad(p, ((0, 0), (0, 0), (0, 4), (0, 7)))   # (n, 12, 16, 32)
    return p.reshape(n * 12 * 16, 32)


def init_params(key):
    ks = jax.random.split(key, 8)

    def rnd(k, shape, scale):
        return jax.random.normal(k, shape, jnp.float32) * scale

    # PyTorch layouts: conv (Cout, Cin, KH, KW), fc (out, in).
    return {
        "conv1_w": rnd(ks[0], (20, 1, 5, 5), 0.1),
        "conv1_b": rnd(ks[1], (20,), 0.1),
        "conv2_w": rnd(ks[2], (50, 20, 5, 5), 0.05),
        "conv2_b": rnd(ks[3], (50,), 0.05),
        "fc3_w":   rnd(ks[4], (500, 800), 0.03),
        "fc3_b":   rnd(ks[5], (500,), 0.03),
        "fc4_w":   rnd(ks[6], (10, 500), 0.03),
        "fc4_b":   rnd(ks[7], (10,), 0.03),
    }


def prepare_params(params):
    """One-time repack of PyTorch-layout weights into de-padded, lane-friendly
    bf16 kernel operands (biases stay f32).  All padded rows/cols are zero."""
    f32, bf16 = jnp.float32, jnp.bfloat16
    w1 = jnp.pad(params["conv1_w"].reshape(20, 25).T, ((0, 7), (0, 12)))        # (32,32)
    b1 = jnp.pad(params["conv1_b"], (0, 12)).reshape(1, _C1)
    w2 = jnp.transpose(params["conv2_w"], (2, 3, 1, 0)).reshape(25, 20, 50)
    w2 = jnp.pad(w2, ((0, 0), (0, 12), (0, 14)))                                 # (25,32,64)
    b2 = jnp.pad(params["conv2_b"], (0, 14)).reshape(1, _C2)
    w3 = jnp.transpose(params["fc3_w"].reshape(500, 50, 4, 4), (2, 3, 1, 0))
    w3 = jnp.pad(w3.reshape(16, 50, 500), ((0, 0), (0, 14), (0, 12)))            # (16,64,512)
    b3 = jnp.pad(params["fc3_b"], (0, 12)).reshape(1, _F3)
    w4 = jnp.pad(params["fc4_w"].T, ((0, 12), (0, 118)))                         # (512,128)
    b4 = jnp.pad(params["fc4_b"], (0, 118)).reshape(1, _F4)
    return {
        "w1": w1.astype(bf16), "b1": b1.astype(f32),
        "w2": w2.astype(bf16), "b2": b2.astype(f32),
        "w3": w3.astype(bf16), "b3": b3.astype(f32),
        "w4": w4.astype(bf16), "b4": b4.astype(f32),
    }


@functools.partial(jax.jit, static_argnames=("last",))
def lenet5_caffe_forward(prepared, x_nchw, last="logsoftmax"):
    if last not in ("logsoftmax", "logits"):
        raise ValueError("Unknown last operation")

    x = x_nchw.astype(jnp.float32)[:, 0]                      # (n, 28, 28), Cin = 1
    n = x.shape[0]
    # TODO(synk): for large n, build the im2col inside the kernel instead.
    x1 = jnp.stack(
        [_conv1_pool_phase_patches(x, i, j) for i in (0, 1) for j in (0, 1)],
        axis=0).astype(jnp.bfloat16)                           # (4, n*192, 32)

    args = (x1, prepared["w1"], prepared["b1"], prepared["w2"], prepared["b2"],
            prepared["w3"], prepared["b3"], prepared["w4"], prepared["b4"])

    in_specs = [
        _full_spec(x1.shape),
        _full_spec(prepared["w1"].shape),
        _full_spec(prepared["b1"].shape),
        _full_spec(prepared["w2"].shape),
        _full_spec(prepared["b2"].shape),
        pl.BlockSpec(memory_space=pl.ANY),     # w3 stays in HBM; manual overlapped DMA
        _full_spec(prepared["b3"].shape),
        pl.BlockSpec(memory_space=pl.ANY),     # w4 stays in HBM; manual overlapped DMA
        _full_spec(prepared["b4"].shape),
    ]

    weight_bytes = sum(int(prepared[k].size) * prepared[k].dtype.itemsize
                       for k in ("w1", "w2", "w3", "w4", "b1", "b2", "b3", "b4"))
    cost = pl.CostEstimate(
        flops=int(2 * n * (288_000 + 1_600_000 + 400_000 + 5_000)),
        transcendentals=int(n * 128),
        bytes_accessed=int(weight_bytes + x1.size * x1.dtype.itemsize + n * 128 * 4),
    )

    out = pl.pallas_call(
        functools.partial(_lenet_fused_kernel, n=n, last=last),
        grid=(1,),
        in_specs=in_specs,
        out_specs=pl.BlockSpec((n, _F4), lambda i: (0, 0)),
        out_shape=jax.ShapeDtypeStruct((n, _F4), jnp.float32),
        scratch_shapes=[
            pltpu.VMEM((n, 12, 16, _C1), jnp.bfloat16),   # pooled conv1 activation
            pltpu.VMEM((n, 8, 8, _C2), jnp.float32),      # conv2 activation (pre-pool)
            pltpu.VMEM((16, _C2, _F3), jnp.bfloat16),     # fc3 weight landing buffer
            pltpu.VMEM((_F3, _F4), jnp.bfloat16),         # fc4 weight landing buffer
            pltpu.SemaphoreType.DMA((2,)),
        ],
        compiler_params=pltpu.CompilerParams(
            dimension_semantics=("arbitrary",)),
        cost_estimate=cost,
    )(*args)
    return out[:, :10]


# --------------------------- pure-JAX reference (check) ---------------------------

def _reference_forward(params, x_nchw, last="logsoftmax"):
    x = x_nchw.astype(jnp.float32)
    dn = ("NCHW", "OIHW", "NCHW")
    y = lax.conv_general_dilated(x, params["conv1_w"], (1, 1), "VALID",
                                 dimension_numbers=dn)
    y = jax.nn.relu(y + params["conv1_b"][None, :, None, None])
    y = lax.reduce_window(y, -jnp.inf, lax.max, (1, 1, 2, 2), (1, 1, 2, 2), "VALID")
    y = lax.conv_general_dilated(y, params["conv2_w"], (1, 1), "VALID",
                                 dimension_numbers=dn)
    y = jax.nn.relu(y + params["conv2_b"][None, :, None, None])
    y = lax.reduce_window(y, -jnp.inf, lax.max, (1, 1, 2, 2), (1, 1, 2, 2), "VALID")
    y = y.reshape(y.shape[0], -1)
    y = jax.nn.relu(y @ params["fc3_w"].T + params["fc3_b"])
    y = y @ params["fc4_w"].T + params["fc4_b"]
    if last == "logsoftmax":
        y = jax.nn.log_softmax(y, axis=-1)
    return y


# --------------------------------------- main ---------------------------------------

if __name__ == "__main__":
    key = jax.random.PRNGKey(0)
    k_param, k_input = jax.random.split(key)

    params = init_params(k_param)
    prepared = prepare_params(params)
    # batch=2, 1 channel, 28x28 (spatial size is fixed by fc3 = 50*4*4)
    x = jax.random.normal(k_input, (2, 1, 28, 28), jnp.float32)

    out = lenet5_caffe_forward(prepared, x, last="logsoftmax")
    out = jax.block_until_ready(out)

    assert out.shape == (2, 10)
    assert bool(jnp.all(jnp.isfinite(out)))
    # log-softmax rows must sum to ~1 in probability space
    row_sums = jnp.exp(out).sum(axis=-1)
    assert bool(jnp.all(jnp.abs(row_sums - 1.0) < 1e-3))

    # Compare against a pure-JAX reference run with bf16-rounded weights/input
    # (the kernel uses bf16 matmul operands with f32 accumulation).
    ref_params = jax.tree_util.tree_map(
        lambda a: a.astype(jnp.bfloat16).astype(jnp.float32), params)
    x_ref = x.astype(jnp.bfloat16).astype(jnp.float32)
    ref = _reference_forward(ref_params, x_ref, last="logsoftmax")
    max_diff = float(jnp.max(jnp.abs(out - ref)))
    assert max_diff < 0.05, f"kernel/reference mismatch: {max_diff}"

    print("KERNEL_OK")
</pallas_src>

<mosaic_0001>
module attributes {stable_mosaic.version = 11 : i64} {
  func.func @_lenet_fused_kernel(%arg0: i32, %arg1: memref<4x384x32xbf16, #tpu.memory_space<vmem>>, %arg2: memref<32x32xbf16, #tpu.memory_space<vmem>>, %arg3: memref<1x32xf32, #tpu.memory_space<vmem>>, %arg4: memref<25x32x64xbf16, #tpu.memory_space<vmem>>, %arg5: memref<1x64xf32, #tpu.memory_space<vmem>>, %arg6: memref<16x64x512xbf16, #tpu.memory_space<any>>, %arg7: memref<1x512xf32, #tpu.memory_space<vmem>>, %arg8: memref<512x128xbf16, #tpu.memory_space<any>>, %arg9: memref<1x128xf32, #tpu.memory_space<vmem>>, %arg10: memref<2x128xf32, #tpu.memory_space<vmem>>, %arg11: memref<2x12x16x32xbf16, #tpu.memory_space<vmem>>, %arg12: memref<2x8x8x64xf32, #tpu.memory_space<vmem>>, %arg13: memref<16x64x512xbf16, #tpu.memory_space<vmem>>, %arg14: memref<512x128xbf16, #tpu.memory_space<vmem>>, %arg15: memref<2x!tpu.dma_semaphore, #tpu.memory_space<semaphore_mem>>) attributes {dimension_semantics = [#tpu.dimension_semantics<arbitrary>], iteration_bounds = array<i64: 1>, scalar_prefetch = 0 : i64, scratch_operands = 5 : i64, tpu.core_type = #tpu.core_type<tc>, window_params = [{pipeline_mode = #tpu.pipeline_mode<synchronous>, transform_indices = @transform_0, window_bounds = array<i64: 4, 384, 32>}, {pipeline_mode = #tpu.pipeline_mode<synchronous>, transform_indices = @transform_1, window_bounds = array<i64: 32, 32>}, {pipeline_mode = #tpu.pipeline_mode<synchronous>, transform_indices = @transform_2, window_bounds = array<i64: 1, 32>}, {pipeline_mode = #tpu.pipeline_mode<synchronous>, transform_indices = @transform_3, window_bounds = array<i64: 25, 32, 64>}, {pipeline_mode = #tpu.pipeline_mode<synchronous>, transform_indices = @transform_4, window_bounds = array<i64: 1, 64>}, {}, {pipeline_mode = #tpu.pipeline_mode<synchronous>, transform_indices = @transform_6, window_bounds = array<i64: 1, 512>}, {}, {pipeline_mode = #tpu.pipeline_mode<synchronous>, transform_indices = @transform_8, window_bounds = array<i64: 1, 128>}, {pipeline_mode = #tpu.pipeline_mode<synchronous>, transform_indices = @transform_9, window_bounds = array<i64: 2, 128>}]} {
    %c0_i32 = arith.constant 0 : i32
    %0 = tpu.memref_slice %arg15[%c0_i32] : memref<2x!tpu.dma_semaphore, #tpu.memory_space<semaphore_mem>> -> memref<1x!tpu.dma_semaphore, #tpu.memory_space<semaphore_mem>>
    %1 = tpu.memref_squeeze %0 : memref<1x!tpu.dma_semaphore, #tpu.memory_space<semaphore_mem>> -> memref<!tpu.dma_semaphore, #tpu.memory_space<semaphore_mem>>
    tpu.enqueue_dma source(%arg6 : memref<16x64x512xbf16, #tpu.memory_space<any>>) target(%arg13 : memref<16x64x512xbf16, #tpu.memory_space<vmem>>) target_semaphore(%1 : memref<!tpu.dma_semaphore, #tpu.memory_space<semaphore_mem>>)
    %c1_i32 = arith.constant 1 : i32
    %2 = tpu.memref_slice %arg15[%c1_i32] : memref<2x!tpu.dma_semaphore, #tpu.memory_space<semaphore_mem>> -> memref<1x!tpu.dma_semaphore, #tpu.memory_space<semaphore_mem>>
    %3 = tpu.memref_squeeze %2 : memref<1x!tpu.dma_semaphore, #tpu.memory_space<semaphore_mem>> -> memref<!tpu.dma_semaphore, #tpu.memory_space<semaphore_mem>>
    tpu.enqueue_dma source(%arg8 : memref<512x128xbf16, #tpu.memory_space<any>>) target(%arg14 : memref<512x128xbf16, #tpu.memory_space<vmem>>) target_semaphore(%3 : memref<!tpu.dma_semaphore, #tpu.memory_space<semaphore_mem>>)
    %c0 = arith.constant 0 : index
    %c0_0 = arith.constant 0 : index
    %4 = vector.load %arg2[%c0, %c0_0] : memref<32x32xbf16, #tpu.memory_space<vmem>>, vector<32x32xbf16>
    %c0_1 = arith.constant 0 : index
    %c0_2 = arith.constant 0 : index
    %5 = vector.load %arg3[%c0_1, %c0_2] : memref<1x32xf32, #tpu.memory_space<vmem>>, vector<1x32xf32>
    %c0_3 = arith.constant 0 : index
    %c0_4 = arith.constant 0 : index
    %c0_5 = arith.constant 0 : index
    %6 = vector.load %arg1[%c0_3, %c0_4, %c0_5] : memref<4x384x32xbf16, #tpu.memory_space<vmem>>, vector<1x192x32xbf16>
    %7 = vector.shape_cast %6 : vector<1x192x32xbf16> to vector<192x32xbf16>
    %cst = arith.constant dense<0.000000e+00> : vector<192x32xf32>
    %8 = tpu.matmul %7, %4, %cst {dimension_numbers = #tpu.dot_dimension_numbers<[1], [0], [0], [1], [0, 0, 1, 1], [], []>} : vector<192x32xbf16>, vector<32x32xbf16>, vector<192x32xf32> -> vector<192x32xf32>
    %c1 = arith.constant 1 : index
    %c0_6 = arith.constant 0 : index
    %c0_7 = arith.constant 0 : index
    %9 = vector.load %arg1[%c1, %c0_6, %c0_7] : memref<4x384x32xbf16, #tpu.memory_space<vmem>>, vector<1x192x32xbf16>
    %10 = vector.shape_cast %9 : vector<1x192x32xbf16> to vector<192x32xbf16>
    %cst_8 = arith.constant dense<0.000000e+00> : vector<192x32xf32>
    %11 = tpu.matmul %10, %4, %cst_8 {dimension_numbers = #tpu.dot_dimension_numbers<[1], [0], [0], [1], [0, 0, 1, 1], [], []>} : vector<192x32xbf16>, vector<32x32xbf16>, vector<192x32xf32> -> vector<192x32xf32>
    %12 = arith.maximumf %8, %11 : vector<192x32xf32>
    %c2 = arith.constant 2 : index
    %c0_9 = arith.constant 0 : index
    %c0_10 = arith.constant 0 : index
    %13 = vector.load %arg1[%c2, %c0_9, %c0_10] : memref<4x384x32xbf16, #tpu.memory_space<vmem>>, vector<1x192x32xbf16>
    %14 = vector.shape_cast %13 : vector<1x192x32xbf16> to vector<192x32xbf16>
    %cst_11 = arith.constant dense<0.000000e+00> : vector<192x32xf32>
    %15 = tpu.matmul %14, %4, %cst_11 {dimension_numbers = #tpu.dot_dimension_numbers<[1], [0], [0], [1], [0, 0, 1, 1], [], []>} : vector<192x32xbf16>, vector<32x32xbf16>, vector<192x32xf32> -> vector<192x32xf32>
    %16 = arith.maximumf %12, %15 : vector<192x32xf32>
    %c3 = arith.constant 3 : index
    %c0_12 = arith.constant 0 : index
    %c0_13 = arith.constant 0 : index
    %17 = vector.load %arg1[%c3, %c0_12, %c0_13] : memref<4x384x32xbf16, #tpu.memory_space<vmem>>, vector<1x192x32xbf16>
    %18 = vector.shape_cast %17 : vector<1x192x32xbf16> to vector<192x32xbf16>
    %cst_14 = arith.constant dense<0.000000e+00> : vector<192x32xf32>
    %19 = tpu.matmul %18, %4, %cst_14 {dimension_numbers = #tpu.dot_dimension_numbers<[1], [0], [0], [1], [0, 0, 1, 1], [], []>} : vector<192x32xbf16>, vector<32x32xbf16>, vector<192x32xf32> -> vector<192x32xf32>
    %20 = arith.maximumf %16, %19 : vector<192x32xf32>
    %21 = vector.broadcast %5 : vector<1x32xf32> to vector<192x32xf32>
    %22 = arith.addf %20, %21 : vector<192x32xf32>
    %cst_15 = arith.constant 0.000000e+00 : f32
    %23 = vector.broadcast %cst_15 : f32 to vector<192x32xf32>
    %24 = arith.maximumf %22, %23 : vector<192x32xf32>
    %25 = vector.shape_cast %24 : vector<192x32xf32> to vector<12x16x32xf32>
    %26 = arith.truncf %25 : vector<12x16x32xf32> to vector<12x16x32xbf16>
    %c0_16 = arith.constant 0 : index
    %c0_17 = arith.constant 0 : index
    %c0_18 = arith.constant 0 : index
    %c0_19 = arith.constant 0 : index
    %27 = vector.load %arg11[%c0_16, %c0_17, %c0_18, %c0_19] : memref<2x12x16x32xbf16, #tpu.memory_space<vmem>>, vector<1x12x16x32xbf16>
    %28 = vector.shape_cast %27 : vector<1x12x16x32xbf16> to vector<12x16x32xbf16>
    %29 = vector.shape_cast %26 : vector<12x16x32xbf16> to vector<1x12x16x32xbf16>
    tpu.vector_store %arg11[%c0_16, %c0_17, %c0_18, %c0_19], %29 {strides = array<i32>} : memref<2x12x16x32xbf16, #tpu.memory_space<vmem>>, vector<1x12x16x32xbf16>,
    %c0_20 = arith.constant 0 : index
    %c192 = arith.constant 192 : index
    %c0_21 = arith.constant 0 : index
    %30 = vector.load %arg1[%c0_20, %c192, %c0_21] : memref<4x384x32xbf16, #tpu.memory_space<vmem>>, vector<1x192x32xbf16>
    %31 = vector.shape_cast %30 : vector<1x192x32xbf16> to vector<192x32xbf16>
    %cst_22 = arith.constant dense<0.000000e+00> : vector<192x32xf32>
    %32 = tpu.matmul %31, %4, %cst_22 {dimension_numbers = #tpu.dot_dimension_numbers<[1], [0], [0], [1], [0, 0, 1, 1], [], []>} : vector<192x32xbf16>, vector<32x32xbf16>, vector<192x32xf32> -> vector<192x32xf32>
    %c1_23 = arith.constant 1 : index
    %c192_24 = arith.constant 192 : index
    %c0_25 = arith.constant 0 : index
    %33 = vector.load %arg1[%c1_23, %c192_24, %c0_25] : memref<4x384x32xbf16, #tpu.memory_space<vmem>>, vector<1x192x32xbf16>
    %34 = vector.shape_cast %33 : vector<1x192x32xbf16> to vector<192x32xbf16>
    %cst_26 = arith.constant dense<0.000000e+00> : vector<192x32xf32>
    %35 = tpu.matmul %34, %4, %cst_26 {dimension_numbers = #tpu.dot_dimension_numbers<[1], [0], [0], [1], [0, 0, 1, 1], [], []>} : vector<192x32xbf16>, vector<32x32xbf16>, vector<192x32xf32> -> vector<192x32xf32>
    %36 = arith.maximumf %32, %35 : vector<192x32xf32>
    %c2_27 = arith.constant 2 : index
    %c192_28 = arith.constant 192 : index
    %c0_29 = arith.constant 0 : index
    %37 = vector.load %arg1[%c2_27, %c192_28, %c0_29] : memref<4x384x32xbf16, #tpu.memory_space<vmem>>, vector<1x192x32xbf16>
    %38 = vector.shape_cast %37 : vector<1x192x32xbf16> to vector<192x32xbf16>
    %cst_30 = arith.constant dense<0.000000e+00> : vector<192x32xf32>
    %39 = tpu.matmul %38, %4, %cst_30 {dimension_numbers = #tpu.dot_dimension_numbers<[1], [0], [0], [1], [0, 0, 1, 1], [], []>} : vector<192x32xbf16>, vector<32x32xbf16>, vector<192x32xf32> -> vector<192x32xf32>
    %40 = arith.maximumf %36, %39 : vector<192x32xf32>
    %c3_31 = arith.constant 3 : index
    %c192_32 = arith.constant 192 : index
    %c0_33 = arith.constant 0 : index
    %41 = vector.load %arg1[%c3_31, %c192_32, %c0_33] : memref<4x384x32xbf16, #tpu.memory_space<vmem>>, vector<1x192x32xbf16>
    %42 = vector.shape_cast %41 : vector<1x192x32xbf16> to vector<192x32xbf16>
    %cst_34 = arith.constant dense<0.000000e+00> : vector<192x32xf32>
    %43 = tpu.matmul %42, %4, %cst_34 {dimension_numbers = #tpu.dot_dimension_numbers<[1], [0], [0], [1], [0, 0, 1, 1], [], []>} : vector<192x32xbf16>, vector<32x32xbf16>, vector<192x32xf32> -> vector<192x32xf32>
    %44 = arith.maximumf %40, %43 : vector<192x32xf32>
    %45 = vector.broadcast %5 : vector<1x32xf32> to vector<192x32xf32>
    %46 = arith.addf %44, %45 : vector<192x32xf32>
    %cst_35 = arith.constant 0.000000e+00 : f32
    %47 = vector.broadcast %cst_35 : f32 to vector<192x32xf32>
    %48 = arith.maximumf %46, %47 : vector<192x32xf32>
    %49 = vector.shape_cast %48 : vector<192x32xf32> to vector<12x16x32xf32>
    %50 = arith.truncf %49 : vector<12x16x32xf32> to vector<12x16x32xbf16>
    %c1_36 = arith.constant 1 : index
    %c0_37 = arith.constant 0 : index
    %c0_38 = arith.constant 0 : index
    %c0_39 = arith.constant 0 : index
    %51 = vector.load %arg11[%c1_36, %c0_37, %c0_38, %c0_39] : memref<2x12x16x32xbf16, #tpu.memory_space<vmem>>, vector<1x12x16x32xbf16>
    %52 = vector.shape_cast %51 : vector<1x12x16x32xbf16> to vector<12x16x32xbf16>
    %53 = vector.shape_cast %50 : vector<12x16x32xbf16> to vector<1x12x16x32xbf16>
    tpu.vector_store %arg11[%c1_36, %c0_37, %c0_38, %c0_39], %53 {strides = array<i32>} : memref<2x12x16x32xbf16, #tpu.memory_space<vmem>>, vector<1x12x16x32xbf16>,
    %cst_40 = arith.constant 0.000000e+00 : f32
    %54 = vector.broadcast %cst_40 : f32 to vector<128x64xf32>
    %c0_41 = arith.constant 0 : index
    %c0_42 = arith.constant 0 : index
    %c0_43 = arith.constant 0 : index
    %c0_44 = arith.constant 0 : index
    %55 = vector.load %arg11[%c0_41, %c0_42, %c0_43, %c0_44] : memref<2x12x16x32xbf16, #tpu.memory_space<vmem>>, vector<2x12x8x32xbf16>
    %56 = vector.extract_strided_slice %55 {offsets = [0, 0, 0, 0], sizes = [2, 8, 8, 32], strides = [1, 1, 1, 1]} : vector<2x12x8x32xbf16> to vector<2x8x8x32xbf16>
    %57 = vector.shape_cast %56 : vector<2x8x8x32xbf16> to vector<128x32xbf16>
    %c0_45 = arith.constant 0 : index
    %c0_46 = arith.constant 0 : index
    %c0_47 = arith.constant 0 : index
    %58 = vector.load %arg4[%c0_45, %c0_46, %c0_47] : memref<25x32x64xbf16, #tpu.memory_space<vmem>>, vector<1x32x64xbf16>
    %59 = vector.shape_cast %58 : vector<1x32x64xbf16> to vector<32x64xbf16>
    %cst_48 = arith.constant dense<0.000000e+00> : vector<128x64xf32>
    %60 = tpu.matmul %57, %59, %cst_48 {dimension_numbers = #tpu.dot_dimension_numbers<[1], [0], [0], [1], [0, 0, 1, 1], [], []>} : vector<128x32xbf16>, vector<32x64xbf16>, vector<128x64xf32> -> vector<128x64xf32>
    %61 = arith.addf %54, %60 : vector<128x64xf32>
    %62 = vector.extract_strided_slice %55 {offsets = [0, 1, 0, 0], sizes = [2, 8, 8, 32], strides = [1, 1, 1, 1]} : vector<2x12x8x32xbf16> to vector<2x8x8x32xbf16>
    %63 = vector.shape_cast %62 : vector<2x8x8x32xbf16> to vector<128x32xbf16>
    %c5 = arith.constant 5 : index
    %c0_49 = arith.constant 0 : index
    %c0_50 = arith.constant 0 : index
    %64 = vector.load %arg4[%c5, %c0_49, %c0_50] : memref<25x32x64xbf16, #tpu.memory_space<vmem>>, vector<1x32x64xbf16>
    %65 = vector.shape_cast %64 : vector<1x32x64xbf16> to vector<32x64xbf16>
    %cst_51 = arith.constant dense<0.000000e+00> : vector<128x64xf32>
    %66 = tpu.matmul %63, %65, %cst_51 {dimension_numbers = #tpu.dot_dimension_numbers<[1], [0], [0], [1], [0, 0, 1, 1], [], []>} : vector<128x32xbf16>, vector<32x64xbf16>, vector<128x64xf32> -> vector<128x64xf32>
    %67 = arith.addf %61, %66 : vector<128x64xf32>
    %68 = vector.extract_strided_slice %55 {offsets = [0, 2, 0, 0], sizes = [2, 8, 8, 32], strides = [1, 1, 1, 1]} : vector<2x12x8x32xbf16> to vector<2x8x8x32xbf16>
    %69 = vector.shape_cast %68 : vector<2x8x8x32xbf16> to vector<128x32xbf16>
    %c10 = arith.constant 10 : index
    %c0_52 = arith.constant 0 : index
    %c0_53 = arith.constant 0 : index
    %70 = vector.load %arg4[%c10, %c0_52, %c0_53] : memref<25x32x64xbf16, #tpu.memory_space<vmem>>, vector<1x32x64xbf16>
    %71 = vector.shape_cast %70 : vector<1x32x64xbf16> to vector<32x64xbf16>
    %cst_54 = arith.constant dense<0.000000e+00> : vector<128x64xf32>
    %72 = tpu.matmul %69, %71, %cst_54 {dimension_numbers = #tpu.dot_dimension_numbers<[1], [0], [0], [1], [0, 0, 1, 1], [], []>} : vector<128x32xbf16>, vector<32x64xbf16>, vector<128x64xf32> -> vector<128x64xf32>
    %73 = arith.addf %67, %72 : vector<128x64xf32>
    %74 = vector.extract_strided_slice %55 {offsets = [0, 3, 0, 0], sizes = [2, 8, 8, 32], strides = [1, 1, 1, 1]} : vector<2x12x8x32xbf16> to vector<2x8x8x32xbf16>
    %75 = vector.shape_cast %74 : vector<2x8x8x32xbf16> to vector<128x32xbf16>
    %c15 = arith.constant 15 : index
    %c0_55 = arith.constant 0 : index
    %c0_56 = arith.constant 0 : index
    %76 = vector.load %arg4[%c15, %c0_55, %c0_56] : memref<25x32x64xbf16, #tpu.memory_space<vmem>>, vector<1x32x64xbf16>
    %77 = vector.shape_cast %76 : vector<1x32x64xbf16> to vector<32x64xbf16>
    %cst_57 = arith.constant dense<0.000000e+00> : vector<128x64xf32>
    %78 = tpu.matmul %75, %77, %cst_57 {dimension_numbers = #tpu.dot_dimension_numbers<[1], [0], [0], [1], [0, 0, 1, 1], [], []>} : vector<128x32xbf16>, vector<32x64xbf16>, vector<128x64xf32> -> vector<128x64xf32>
    %79 = arith.addf %73, %78 : vector<128x64xf32>
    %80 = vector.extract_strided_slice %55 {offsets = [0, 4, 0, 0], sizes = [2, 8, 8, 32], strides = [1, 1, 1, 1]} : vector<2x12x8x32xbf16> to vector<2x8x8x32xbf16>
    %81 = vector.shape_cast %80 : vector<2x8x8x32xbf16> to vector<128x32xbf16>
    %c20 = arith.constant 20 : index
    %c0_58 = arith.constant 0 : index
    %c0_59 = arith.constant 0 : index
    %82 = vector.load %arg4[%c20, %c0_58, %c0_59] : memref<25x32x64xbf16, #tpu.memory_space<vmem>>, vector<1x32x64xbf16>
    %83 = vector.shape_cast %82 : vector<1x32x64xbf16> to vector<32x64xbf16>
    %cst_60 = arith.constant dense<0.000000e+00> : vector<128x64xf32>
    %84 = tpu.matmul %81, %83, %cst_60 {dimension_numbers = #tpu.dot_dimension_numbers<[1], [0], [0], [1], [0, 0, 1, 1], [], []>} : vector<128x32xbf16>, vector<32x64xbf16>, vector<128x64xf32> -> vector<128x64xf32>
    %85 = arith.addf %79, %84 : vector<128x64xf32>
    %c0_61 = arith.constant 0 : index
    %c0_62 = arith.constant 0 : index
    %c1_63 = arith.constant 1 : index
    %c0_64 = arith.constant 0 : index
    %86 = vector.load %arg11[%c0_61, %c0_62, %c1_63, %c0_64] : memref<2x12x16x32xbf16, #tpu.memory_space<vmem>>, vector<2x12x8x32xbf16>
    %87 = vector.extract_strided_slice %86 {offsets = [0, 0, 0, 0], sizes = [2, 8, 8, 32], strides = [1, 1, 1, 1]} : vector<2x12x8x32xbf16> to vector<2x8x8x32xbf16>
    %88 = vector.shape_cast %87 : vector<2x8x8x32xbf16> to vector<128x32xbf16>
    %c1_65 = arith.constant 1 : index
    %c0_66 = arith.constant 0 : index
    %c0_67 = arith.constant 0 : index
    %89 = vector.load %arg4[%c1_65, %c0_66, %c0_67] : memref<25x32x64xbf16, #tpu.memory_space<vmem>>, vector<1x32x64xbf16>
    %90 = vector.shape_cast %89 : vector<1x32x64xbf16> to vector<32x64xbf16>
    %cst_68 = arith.constant dense<0.000000e+00> : vector<128x64xf32>
    %91 = tpu.matmul %88, %90, %cst_68 {dimension_numbers = #tpu.dot_dimension_numbers<[1], [0], [0], [1], [0, 0, 1, 1], [], []>} : vector<128x32xbf16>, vector<32x64xbf16>, vector<128x64xf32> -> vector<128x64xf32>
    %92 = arith.addf %85, %91 : vector<128x64xf32>
    %93 = vector.extract_strided_slice %86 {offsets = [0, 1, 0, 0], sizes = [2, 8, 8, 32], strides = [1, 1, 1, 1]} : vector<2x12x8x32xbf16> to vector<2x8x8x32xbf16>
    %94 = vector.shape_cast %93 : vector<2x8x8x32xbf16> to vector<128x32xbf16>
    %c6 = arith.constant 6 : index
    %c0_69 = arith.constant 0 : index
    %c0_70 = arith.constant 0 : index
    %95 = vector.load %arg4[%c6, %c0_69, %c0_70] : memref<25x32x64xbf16, #tpu.memory_space<vmem>>, vector<1x32x64xbf16>
    %96 = vector.shape_cast %95 : vector<1x32x64xbf16> to vector<32x64xbf16>
    %cst_71 = arith.constant dense<0.000000e+00> : vector<128x64xf32>
    %97 = tpu.matmul %94, %96, %cst_71 {dimension_numbers = #tpu.dot_dimension_numbers<[1], [0], [0], [1], [0, 0, 1, 1], [], []>} : vector<128x32xbf16>, vector<32x64xbf16>, vector<128x64xf32> -> vector<128x64xf32>
    %98 = arith.addf %92, %97 : vector<128x64xf32>
    %99 = vector.extract_strided_slice %86 {offsets = [0, 2, 0, 0], sizes = [2, 8, 8, 32], strides = [1, 1, 1, 1]} : vector<2x12x8x32xbf16> to vector<2x8x8x32xbf16>
    %100 = vector.shape_cast %99 : vector<2x8x8x32xbf16> to vector<128x32xbf16>
    %c11 = arith.constant 11 : index
    %c0_72 = arith.constant 0 : index
    %c0_73 = arith.constant 0 : index
    %101 = vector.load %arg4[%c11, %c0_72, %c0_73] : memref<25x32x64xbf16, #tpu.memory_space<vmem>>, vector<1x32x64xbf16>
    %102 = vector.shape_cast %101 : vector<1x32x64xbf16> to vector<32x64xbf16>
    %cst_74 = arith.constant dense<0.000000e+00> : vector<128x64xf32>
    %103 = tpu.matmul %100, %102, %cst_74 {dimension_numbers = #tpu.dot_dimension_numbers<[1], [0], [0], [1], [0, 0, 1, 1], [], []>} : vector<128x32xbf16>, vector<32x64xbf16>, vector<128x64xf32> -> vector<128x64xf32>
    %104 = arith.addf %98, %103 : vector<128x64xf32>
    %105 = vector.extract_strided_slice %86 {offsets = [0, 3, 0, 0], sizes = [2, 8, 8, 32], strides = [1, 1, 1, 1]} : vector<2x12x8x32xbf16> to vector<2x8x8x32xbf16>
    %106 = vector.shape_cast %105 : vector<2x8x8x32xbf16> to vector<128x32xbf16>
    %c16 = arith.constant 16 : index
    %c0_75 = arith.constant 0 : index
    %c0_76 = arith.constant 0 : index
    %107 = vector.load %arg4[%c16, %c0_75, %c0_76] : memref<25x32x64xbf16, #tpu.memory_space<vmem>>, vector<1x32x64xbf16>
    %108 = vector.shape_cast %107 : vector<1x32x64xbf16> to vector<32x64xbf16>
    %cst_77 = arith.constant dense<0.000000e+00> : vector<128x64xf32>
    %109 = tpu.matmul %106, %108, %cst_77 {dimension_numbers = #tpu.dot_dimension_numbers<[1], [0], [0], [1], [0, 0, 1, 1], [], []>} : vector<128x32xbf16>, vector<32x64xbf16>, vector<128x64xf32> -> vector<128x64xf32>
    %110 = arith.addf %104, %109 : vector<128x64xf32>
    %111 = vector.extract_strided_slice %86 {offsets = [0, 4, 0, 0], sizes = [2, 8, 8, 32], strides = [1, 1, 1, 1]} : vector<2x12x8x32xbf16> to vector<2x8x8x32xbf16>
    %112 = vector.shape_cast %111 : vector<2x8x8x32xbf16> to vector<128x32xbf16>
    %c21 = arith.constant 21 : index
    %c0_78 = arith.constant 0 : index
    %c0_79 = arith.constant 0 : index
    %113 = vector.load %arg4[%c21, %c0_78, %c0_79] : memref<25x32x64xbf16, #tpu.memory_space<vmem>>, vector<1x32x64xbf16>
    %114 = vector.shape_cast %113 : vector<1x32x64xbf16> to vector<32x64xbf16>
    %cst_80 = arith.constant dense<0.000000e+00> : vector<128x64xf32>
    %115 = tpu.matmul %112, %114, %cst_80 {dimension_numbers = #tpu.dot_dimension_numbers<[1], [0], [0], [1], [0, 0, 1, 1], [], []>} : vector<128x32xbf16>, vector<32x64xbf16>, vector<128x64xf32> -> vector<128x64xf32>
    %116 = arith.addf %110, %115 : vector<128x64xf32>
    %c0_81 = arith.constant 0 : index
    %c0_82 = arith.constant 0 : index
    %c2_83 = arith.constant 2 : index
    %c0_84 = arith.constant 0 : index
    %117 = vector.load %arg11[%c0_81, %c0_82, %c2_83, %c0_84] : memref<2x12x16x32xbf16, #tpu.memory_space<vmem>>, vector<2x12x8x32xbf16>
    %118 = vector.extract_strided_slice %117 {offsets = [0, 0, 0, 0], sizes = [2, 8, 8, 32], strides = [1, 1, 1, 1]} : vector<2x12x8x32xbf16> to vector<2x8x8x32xbf16>
    %119 = vector.shape_cast %118 : vector<2x8x8x32xbf16> to vector<128x32xbf16>
    %c2_85 = arith.constant 2 : index
    %c0_86 = arith.constant 0 : index
    %c0_87 = arith.constant 0 : index
    %120 = vector.load %arg4[%c2_85, %c0_86, %c0_87] : memref<25x32x64xbf16, #tpu.memory_space<vmem>>, vector<1x32x64xbf16>
    %121 = vector.shape_cast %120 : vector<1x32x64xbf16> to vector<32x64xbf16>
    %cst_88 = arith.constant dense<0.000000e+00> : vector<128x64xf32>
    %122 = tpu.matmul %119, %121, %cst_88 {dimension_numbers = #tpu.dot_dimension_numbers<[1], [0], [0], [1], [0, 0, 1, 1], [], []>} : vector<128x32xbf16>, vector<32x64xbf16>, vector<128x64xf32> -> vector<128x64xf32>
    %123 = arith.addf %116, %122 : vector<128x64xf32>
    %124 = vector.extract_strided_slice %117 {offsets = [0, 1, 0, 0], sizes = [2, 8, 8, 32], strides = [1, 1, 1, 1]} : vector<2x12x8x32xbf16> to vector<2x8x8x32xbf16>
    %125 = vector.shape_cast %124 : vector<2x8x8x32xbf16> to vector<128x32xbf16>
    %c7 = arith.constant 7 : index
    %c0_89 = arith.constant 0 : index
    %c0_90 = arith.constant 0 : index
    %126 = vector.load %arg4[%c7, %c0_89, %c0_90] : memref<25x32x64xbf16, #tpu.memory_space<vmem>>, vector<1x32x64xbf16>
    %127 = vector.shape_cast %126 : vector<1x32x64xbf16> to vector<32x64xbf16>
    %cst_91 = arith.constant dense<0.000000e+00> : vector<128x64xf32>
    %128 = tpu.matmul %125, %127, %cst_91 {dimension_numbers = #tpu.dot_dimension_numbers<[1], [0], [0], [1], [0, 0, 1, 1], [], []>} : vector<128x32xbf16>, vector<32x64xbf16>, vector<128x64xf32> -> vector<128x64xf32>
    %129 = arith.addf %123, %128 : vector<128x64xf32>
    %130 = vector.extract_strided_slice %117 {offsets = [0, 2, 0, 0], sizes = [2, 8, 8, 32], strides = [1, 1, 1, 1]} : vector<2x12x8x32xbf16> to vector<2x8x8x32xbf16>
    %131 = vector.shape_cast %130 : vector<2x8x8x32xbf16> to vector<128x32xbf16>
    %c12 = arith.constant 12 : index
    %c0_92 = arith.constant 0 : index
    %c0_93 = arith.constant 0 : index
    %132 = vector.load %arg4[%c12, %c0_92, %c0_93] : memref<25x32x64xbf16, #tpu.memory_space<vmem>>, vector<1x32x64xbf16>
    %133 = vector.shape_cast %132 : vector<1x32x64xbf16> to vector<32x64xbf16>
    %cst_94 = arith.constant dense<0.000000e+00> : vector<128x64xf32>
    %134 = tpu.matmul %131, %133, %cst_94 {dimension_numbers = #tpu.dot_dimension_numbers<[1], [0], [0], [1], [0, 0, 1, 1], [], []>} : vector<128x32xbf16>, vector<32x64xbf16>, vector<128x64xf32> -> vector<128x64xf32>
    %135 = arith.addf %129, %134 : vector<128x64xf32>
    %136 = vector.extract_strided_slice %117 {offsets = [0, 3, 0, 0], sizes = [2, 8, 8, 32], strides = [1, 1, 1, 1]} : vector<2x12x8x32xbf16> to vector<2x8x8x32xbf16>
    %137 = vector.shape_cast %136 : vector<2x8x8x32xbf16> to vector<128x32xbf16>
    %c17 = arith.constant 17 : index
    %c0_95 = arith.constant 0 : index
    %c0_96 = arith.constant 0 : index
    %138 = vector.load %arg4[%c17, %c0_95, %c0_96] : memref<25x32x64xbf16, #tpu.memory_space<vmem>>, vector<1x32x64xbf16>
    %139 = vector.shape_cast %138 : vector<1x32x64xbf16> to vector<32x64xbf16>
    %cst_97 = arith.constant dense<0.000000e+00> : vector<128x64xf32>
    %140 = tpu.matmul %137, %139, %cst_97 {dimension_numbers = #tpu.dot_dimension_numbers<[1], [0], [0], [1], [0, 0, 1, 1], [], []>} : vector<128x32xbf16>, vector<32x64xbf16>, vector<128x64xf32> -> vector<128x64xf32>
    %141 = arith.addf %135, %140 : vector<128x64xf32>
    %142 = vector.extract_strided_slice %117 {offsets = [0, 4, 0, 0], sizes = [2, 8, 8, 32], strides = [1, 1, 1, 1]} : vector<2x12x8x32xbf16> to vector<2x8x8x32xbf16>
    %143 = vector.shape_cast %142 : vector<2x8x8x32xbf16> to vector<128x32xbf16>
    %c22 = arith.constant 22 : index
    %c0_98 = arith.constant 0 : index
    %c0_99 = arith.constant 0 : index
    %144 = vector.load %arg4[%c22, %c0_98, %c0_99] : memref<25x32x64xbf16, #tpu.memory_space<vmem>>, vector<1x32x64xbf16>
    %145 = vector.shape_cast %144 : vector<1x32x64xbf16> to vector<32x64xbf16>
    %cst_100 = arith.constant dense<0.000000e+00> : vector<128x64xf32>
    %146 = tpu.matmul %143, %145, %cst_100 {dimension_numbers = #tpu.dot_dimension_numbers<[1], [0], [0], [1], [0, 0, 1, 1], [], []>} : vector<128x32xbf16>, vector<32x64xbf16>, vector<128x64xf32> -> vector<128x64xf32>
    %147 = arith.addf %141, %146 : vector<128x64xf32>
    %c0_101 = arith.constant 0 : index
    %c0_102 = arith.constant 0 : index
    %c3_103 = arith.constant 3 : index
    %c0_104 = arith.constant 0 : index
    %148 = vector.load %arg11[%c0_101, %c0_102, %c3_103, %c0_104] : memref<2x12x16x32xbf16, #tpu.memory_space<vmem>>, vector<2x12x8x32xbf16>
    %149 = vector.extract_strided_slice %148 {offsets = [0, 0, 0, 0], sizes = [2, 8, 8, 32], strides = [1, 1, 1, 1]} : vector<2x12x8x32xbf16> to vector<2x8x8x32xbf16>
    %150 = vector.shape_cast %149 : vector<2x8x8x32xbf16> to vector<128x32xbf16>
    %c3_105 = arith.constant 3 : index
    %c0_106 = arith.constant 0 : index
    %c0_107 = arith.constant 0 : index
    %151 = vector.load %arg4[%c3_105, %c0_106, %c0_107] : memref<25x32x64xbf16, #tpu.memory_space<vmem>>, vector<1x32x64xbf16>
    %152 = vector.shape_cast %151 : vector<1x32x64xbf16> to vector<32x64xbf16>
    %cst_108 = arith.constant dense<0.000000e+00> : vector<128x64xf32>
    %153 = tpu.matmul %150, %152, %cst_108 {dimension_numbers = #tpu.dot_dimension_numbers<[1], [0], [0], [1], [0, 0, 1, 1], [], []>} : vector<128x32xbf16>, vector<32x64xbf16>, vector<128x64xf32> -> vector<128x64xf32>
    %154 = arith.addf %147, %153 : vector<128x64xf32>
    %155 = vector.extract_strided_slice %148 {offsets = [0, 1, 0, 0], sizes = [2, 8, 8, 32], strides = [1, 1, 1, 1]} : vector<2x12x8x32xbf16> to vector<2x8x8x32xbf16>
    %156 = vector.shape_cast %155 : vector<2x8x8x32xbf16> to vector<128x32xbf16>
    %c8 = arith.constant 8 : index
    %c0_109 = arith.constant 0 : index
    %c0_110 = arith.constant 0 : index
    %157 = vector.load %arg4[%c8, %c0_109, %c0_110] : memref<25x32x64xbf16, #tpu.memory_space<vmem>>, vector<1x32x64xbf16>
    %158 = vector.shape_cast %157 : vector<1x32x64xbf16> to vector<32x64xbf16>
    %cst_111 = arith.constant dense<0.000000e+00> : vector<128x64xf32>
    %159 = tpu.matmul %156, %158, %cst_111 {dimension_numbers = #tpu.dot_dimension_numbers<[1], [0], [0], [1], [0, 0, 1, 1], [], []>} : vector<128x32xbf16>, vector<32x64xbf16>, vector<128x64xf32> -> vector<128x64xf32>
    %160 = arith.addf %154, %159 : vector<128x64xf32>
    %161 = vector.extract_strided_slice %148 {offsets = [0, 2, 0, 0], sizes = [2, 8, 8, 32], strides = [1, 1, 1, 1]} : vector<2x12x8x32xbf16> to vector<2x8x8x32xbf16>
    %162 = vector.shape_cast %161 : vector<2x8x8x32xbf16> to vector<128x32xbf16>
    %c13 = arith.constant 13 : index
    %c0_112 = arith.constant 0 : index
    %c0_113 = arith.constant 0 : index
    %163 = vector.load %arg4[%c13, %c0_112, %c0_113] : memref<25x32x64xbf16, #tpu.memory_space<vmem>>, vector<1x32x64xbf16>
    %164 = vector.shape_cast %163 : vector<1x32x64xbf16> to vector<32x64xbf16>
    %cst_114 = arith.constant dense<0.000000e+00> : vector<128x64xf32>
    %165 = tpu.matmul %162, %164, %cst_114 {dimension_numbers = #tpu.dot_dimension_numbers<[1], [0], [0], [1], [0, 0, 1, 1], [], []>} : vector<128x32xbf16>, vector<32x64xbf16>, vector<128x64xf32> -> vector<128x64xf32>
    %166 = arith.addf %160, %165 : vector<128x64xf32>
    %167 = vector.extract_strided_slice %148 {offsets = [0, 3, 0, 0], sizes = [2, 8, 8, 32], strides = [1, 1, 1, 1]} : vector<2x12x8x32xbf16> to vector<2x8x8x32xbf16>
    %168 = vector.shape_cast %167 : vector<2x8x8x32xbf16> to vector<128x32xbf16>
    %c18 = arith.constant 18 : index
    %c0_115 = arith.constant 0 : index
    %c0_116 = arith.constant 0 : index
    %169 = vector.load %arg4[%c18, %c0_115, %c0_116] : memref<25x32x64xbf16, #tpu.memory_space<vmem>>, vector<1x32x64xbf16>
    %170 = vector.shape_cast %169 : vector<1x32x64xbf16> to vector<32x64xbf16>
    %cst_117 = arith.constant dense<0.000000e+00> : vector<128x64xf32>
    %171 = tpu.matmul %168, %170, %cst_117 {dimension_numbers = #tpu.dot_dimension_numbers<[1], [0], [0], [1], [0, 0, 1, 1], [], []>} : vector<128x32xbf16>, vector<32x64xbf16>, vector<128x64xf32> -> vector<128x64xf32>
    %172 = arith.addf %166, %171 : vector<128x64xf32>
    %173 = vector.extract_strided_slice %148 {offsets = [0, 4, 0, 0], sizes = [2, 8, 8, 32], strides = [1, 1, 1, 1]} : vector<2x12x8x32xbf16> to vector<2x8x8x32xbf16>
    %174 = vector.shape_cast %173 : vector<2x8x8x32xbf16> to vector<128x32xbf16>
    %c23 = arith.constant 23 : index
    %c0_118 = arith.constant 0 : index
    %c0_119 = arith.constant 0 : index
    %175 = vector.load %arg4[%c23, %c0_118, %c0_119] : memref<25x32x64xbf16, #tpu.memory_space<vmem>>, vector<1x32x64xbf16>
    %176 = vector.shape_cast %175 : vector<1x32x64xbf16> to vector<32x64xbf16>
    %cst_120 = arith.constant dense<0.000000e+00> : vector<128x64xf32>
    %177 = tpu.matmul %174, %176, %cst_120 {dimension_numbers = #tpu.dot_dimension_numbers<[1], [0], [0], [1], [0, 0, 1, 1], [], []>} : vector<128x32xbf16>, vector<32x64xbf16>, vector<128x64xf32> -> vector<128x64xf32>
    %178 = arith.addf %172, %177 : vector<128x64xf32>
    %c0_121 = arith.constant 0 : index
    %c0_122 = arith.constant 0 : index
    %c4 = arith.constant 4 : index
    %c0_123 = arith.constant 0 : index
    %179 = vector.load %arg11[%c0_121, %c0_122, %c4, %c0_123] : memref<2x12x16x32xbf16, #tpu.memory_space<vmem>>, vector<2x12x8x32xbf16>
    %180 = vector.extract_strided_slice %179 {offsets = [0, 0, 0, 0], sizes = [2, 8, 8, 32], strides = [1, 1, 1, 1]} : vector<2x12x8x32xbf16> to vector<2x8x8x32xbf16>
    %181 = vector.shape_cast %180 : vector<2x8x8x32xbf16> to vector<128x32xbf16>
    %c4_124 = arith.constant 4 : index
    %c0_125 = arith.constant 0 : index
    %c0_126 = arith.constant 0 : index
    %182 = vector.load %arg4[%c4_124, %c0_125, %c0_126] : memref<25x32x64xbf16, #tpu.memory_space<vmem>>, vector<1x32x64xbf16>
    %183 = vector.shape_cast %182 : vector<1x32x64xbf16> to vector<32x64xbf16>
    %cst_127 = arith.constant dense<0.000000e+00> : vector<128x64xf32>
    %184 = tpu.matmul %181, %183, %cst_127 {dimension_numbers = #tpu.dot_dimension_numbers<[1], [0], [0], [1], [0, 0, 1, 1], [], []>} : vector<128x32xbf16>, vector<32x64xbf16>, vector<128x64xf32> -> vector<128x64xf32>
    %185 = arith.addf %178, %184 : vector<128x64xf32>
    %186 = vector.extract_strided_slice %179 {offsets = [0, 1, 0, 0], sizes = [2, 8, 8, 32], strides = [1, 1, 1, 1]} : vector<2x12x8x32xbf16> to vector<2x8x8x32xbf16>
    %187 = vector.shape_cast %186 : vector<2x8x8x32xbf16> to vector<128x32xbf16>
    %c9 = arith.constant 9 : index
    %c0_128 = arith.constant 0 : index
    %c0_129 = arith.constant 0 : index
    %188 = vector.load %arg4[%c9, %c0_128, %c0_129] : memref<25x32x64xbf16, #tpu.memory_space<vmem>>, vector<1x32x64xbf16>
    %189 = vector.shape_cast %188 : vector<1x32x64xbf16> to vector<32x64xbf16>
    %cst_130 = arith.constant dense<0.000000e+00> : vector<128x64xf32>
    %190 = tpu.matmul %187, %189, %cst_130 {dimension_numbers = #tpu.dot_dimension_numbers<[1], [0], [0], [1], [0, 0, 1, 1], [], []>} : vector<128x32xbf16>, vector<32x64xbf16>, vector<128x64xf32> -> vector<128x64xf32>
    %191 = arith.addf %185, %190 : vector<128x64xf32>
    %192 = vector.extract_strided_slice %179 {offsets = [0, 2, 0, 0], sizes = [2, 8, 8, 32], strides = [1, 1, 1, 1]} : vector<2x12x8x32xbf16> to vector<2x8x8x32xbf16>
    %193 = vector.shape_cast %192 : vector<2x8x8x32xbf16> to vector<128x32xbf16>
    %c14 = arith.constant 14 : index
    %c0_131 = arith.constant 0 : index
    %c0_132 = arith.constant 0 : index
    %194 = vector.load %arg4[%c14, %c0_131, %c0_132] : memref<25x32x64xbf16, #tpu.memory_space<vmem>>, vector<1x32x64xbf16>
    %195 = vector.shape_cast %194 : vector<1x32x64xbf16> to vector<32x64xbf16>
    %cst_133 = arith.constant dense<0.000000e+00> : vector<128x64xf32>
    %196 = tpu.matmul %193, %195, %cst_133 {dimension_numbers = #tpu.dot_dimension_numbers<[1], [0], [0], [1], [0, 0, 1, 1], [], []>} : vector<128x32xbf16>, vector<32x64xbf16>, vector<128x64xf32> -> vector<128x64xf32>
    %197 = arith.addf %191, %196 : vector<128x64xf32>
    %198 = vector.extract_strided_slice %179 {offsets = [0, 3, 0, 0], sizes = [2, 8, 8, 32], strides = [1, 1, 1, 1]} : vector<2x12x8x32xbf16> to vector<2x8x8x32xbf16>
    %199 = vector.shape_cast %198 : vector<2x8x8x32xbf16> to vector<128x32xbf16>
    %c19 = arith.constant 19 : index
    %c0_134 = arith.constant 0 : index
    %c0_135 = arith.constant 0 : index
    %200 = vector.load %arg4[%c19, %c0_134, %c0_135] : memref<25x32x64xbf16, #tpu.memory_space<vmem>>, vector<1x32x64xbf16>
    %201 = vector.shape_cast %200 : vector<1x32x64xbf16> to vector<32x64xbf16>
    %cst_136 = arith.constant dense<0.000000e+00> : vector<128x64xf32>
    %202 = tpu.matmul %199, %201, %cst_136 {dimension_numbers = #tpu.dot_dimension_numbers<[1], [0], [0], [1], [0, 0, 1, 1], [], []>} : vector<128x32xbf16>, vector<32x64xbf16>, vector<128x64xf32> -> vector<128x64xf32>
    %203 = arith.addf %197, %202 : vector<128x64xf32>
    %204 = vector.extract_strided_slice %179 {offsets = [0, 4, 0, 0], sizes = [2, 8, 8, 32], strides = [1, 1, 1, 1]} : vector<2x12x8x32xbf16> to vector<2x8x8x32xbf16>
    %205 = vector.shape_cast %204 : vector<2x8x8x32xbf16> to vector<128x32xbf16>
    %c24 = arith.constant 24 : index
    %c0_137 = arith.constant 0 : index
    %c0_138 = arith.constant 0 : index
    %206 = vector.load %arg4[%c24, %c0_137, %c0_138] : memref<25x32x64xbf16, #tpu.memory_space<vmem>>, vector<1x32x64xbf16>
    %207 = vector.shape_cast %206 : vector<1x32x64xbf16> to vector<32x64xbf16>
    %cst_139 = arith.constant dense<0.000000e+00> : vector<128x64xf32>
    %208 = tpu.matmul %205, %207, %cst_139 {dimension_numbers = #tpu.dot_dimension_numbers<[1], [0], [0], [1], [0, 0, 1, 1], [], []>} : vector<128x32xbf16>, vector<32x64xbf16>, vector<128x64xf32> -> vector<128x64xf32>
    %209 = arith.addf %203, %208 : vector<128x64xf32>
    %c0_140 = arith.constant 0 : index
    %c0_141 = arith.constant 0 : index
    %210 = vector.load %arg5[%c0_140, %c0_141] : memref<1x64xf32, #tpu.memory_space<vmem>>, vector<1x64xf32>
    %211 = vector.broadcast %210 : vector<1x64xf32> to vector<128x64xf32>
    %212 = arith.addf %209, %211 : vector<128x64xf32>
    %cst_142 = arith.constant 0.000000e+00 : f32
    %213 = vector.broadcast %cst_142 : f32 to vector<128x64xf32>
    %214 = arith.maximumf %212, %213 : vector<128x64xf32>
    %215 = vector.shape_cast %214 : vector<128x64xf32> to vector<2x8x8x64xf32>
    %c0_143 = arith.constant 0 : index
    %c0_144 = arith.constant 0 : index
    %c0_145 = arith.constant 0 : index
    %c0_146 = arith.constant 0 : index
    %216 = vector.load %arg12[%c0_143, %c0_144, %c0_145, %c0_146] : memref<2x8x8x64xf32, #tpu.memory_space<vmem>>, vector<2x8x8x64xf32>
    tpu.vector_store %arg12[%c0_143, %c0_144, %c0_145, %c0_146], %215 {strides = array<i32>} : memref<2x8x8x64xf32, #tpu.memory_space<vmem>>, vector<2x8x8x64xf32>,
    %c0_i32_147 = arith.constant 0 : i32
    %217 = tpu.memref_slice %arg15[%c0_i32_147] : memref<2x!tpu.dma_semaphore, #tpu.memory_space<semaphore_mem>> -> memref<1x!tpu.dma_semaphore, #tpu.memory_space<semaphore_mem>>
    %218 = tpu.memref_squeeze %217 : memref<1x!tpu.dma_semaphore, #tpu.memory_space<semaphore_mem>> -> memref<!tpu.dma_semaphore, #tpu.memory_space<semaphore_mem>>
    tpu.wait_dma2 semaphore(%218 : memref<!tpu.dma_semaphore, #tpu.memory_space<semaphore_mem>>) src(%arg6 : memref<16x64x512xbf16, #tpu.memory_space<any>>) dst(%arg13 : memref<16x64x512xbf16, #tpu.memory_space<vmem>>)
    %cst_148 = arith.constant 0.000000e+00 : f32
    %219 = vector.broadcast %cst_148 : f32 to vector<2x512xf32>
    %c0_149 = arith.constant 0 : index
    %c0_150 = arith.constant 0 : index
    %c0_151 = arith.constant 0 : index
    %c0_152 = arith.constant 0 : index
    %220 = vector.load %arg12[%c0_149, %c0_150, %c0_151, %c0_152] : memref<2x8x8x64xf32, #tpu.memory_space<vmem>>, vector<2x1x1x64xf32>
    %221 = vector.shape_cast %220 : vector<2x1x1x64xf32> to vector<2x64xf32>
    %c0_153 = arith.constant 0 : index
    %c0_154 = arith.constant 0 : index
    %c1_155 = arith.constant 1 : index
    %c0_156 = arith.constant 0 : index
    %222 = vector.load %arg12[%c0_153, %c0_154, %c1_155, %c0_156] : memref<2x8x8x64xf32, #tpu.memory_space<vmem>>, vector<2x1x1x64xf32>
    %223 = vector.shape_cast %222 : vector<2x1x1x64xf32> to vector<2x64xf32>
    %c0_157 = arith.constant 0 : index
    %c1_158 = arith.constant 1 : index
    %c0_159 = arith.constant 0 : index
    %c0_160 = arith.constant 0 : index
    %224 = vector.load %arg12[%c0_157, %c1_158, %c0_159, %c0_160] : memref<2x8x8x64xf32, #tpu.memory_space<vmem>>, vector<2x1x1x64xf32>
    %225 = vector.shape_cast %224 : vector<2x1x1x64xf32> to vector<2x64xf32>
    %c0_161 = arith.constant 0 : index
    %c1_162 = arith.constant 1 : index
    %c1_163 = arith.constant 1 : index
    %c0_164 = arith.constant 0 : index
    %226 = vector.load %arg12[%c0_161, %c1_162, %c1_163, %c0_164] : memref<2x8x8x64xf32, #tpu.memory_space<vmem>>, vector<2x1x1x64xf32>
    %227 = vector.shape_cast %226 : vector<2x1x1x64xf32> to vector<2x64xf32>
    %228 = arith.maximumf %221, %223 : vector<2x64xf32>
    %229 = arith.maximumf %225, %227 : vector<2x64xf32>
    %230 = arith.maximumf %228, %229 : vector<2x64xf32>
    %231 = arith.truncf %230 : vector<2x64xf32> to vector<2x64xbf16>
    %c0_165 = arith.constant 0 : index
    %c0_166 = arith.constant 0 : index
    %c0_167 = arith.constant 0 : index
    %232 = vector.load %arg13[%c0_165, %c0_166, %c0_167] : memref<16x64x512xbf16, #tpu.memory_space<vmem>>, vector<1x64x512xbf16>
    %233 = vector.shape_cast %232 : vector<1x64x512xbf16> to vector<64x512xbf16>
    %cst_168 = arith.constant dense<0.000000e+00> : vector<2x512xf32>
    %234 = tpu.matmul %231, %233, %cst_168 {dimension_numbers = #tpu.dot_dimension_numbers<[1], [0], [0], [1], [0, 0, 1, 1], [], []>} : vector<2x64xbf16>, vector<64x512xbf16>, vector<2x512xf32> -> vector<2x512xf32>
    %235 = arith.addf %219, %234 : vector<2x512xf32>
    %c0_169 = arith.constant 0 : index
    %c0_170 = arith.constant 0 : index
    %c2_171 = arith.constant 2 : index
    %c0_172 = arith.constant 0 : index
    %236 = vector.load %arg12[%c0_169, %c0_170, %c2_171, %c0_172] : memref<2x8x8x64xf32, #tpu.memory_space<vmem>>, vector<2x1x1x64xf32>
    %237 = vector.shape_cast %236 : vector<2x1x1x64xf32> to vector<2x64xf32>
    %c0_173 = arith.constant 0 : index
    %c0_174 = arith.constant 0 : index
    %c3_175 = arith.constant 3 : index
    %c0_176 = arith.constant 0 : index
    %238 = vector.load %arg12[%c0_173, %c0_174, %c3_175, %c0_176] : memref<2x8x8x64xf32, #tpu.memory_space<vmem>>, vector<2x1x1x64xf32>
    %239 = vector.shape_cast %238 : vector<2x1x1x64xf32> to vector<2x64xf32>
    %c0_177 = arith.constant 0 : index
    %c1_178 = arith.constant 1 : index
    %c2_179 = arith.constant 2 : index
    %c0_180 = arith.constant 0 : index
    %240 = vector.load %arg12[%c0_177, %c1_178, %c2_179, %c0_180] : memref<2x8x8x64xf32, #tpu.memory_space<vmem>>, vector<2x1x1x64xf32>
    %241 = vector.shape_cast %240 : vector<2x1x1x64xf32> to vector<2x64xf32>
    %c0_181 = arith.constant 0 : index
    %c1_182 = arith.constant 1 : index
    %c3_183 = arith.constant 3 : index
    %c0_184 = arith.constant 0 : index
    %242 = vector.load %arg12[%c0_181, %c1_182, %c3_183, %c0_184] : memref<2x8x8x64xf32, #tpu.memory_space<vmem>>, vector<2x1x1x64xf32>
    %243 = vector.shape_cast %242 : vector<2x1x1x64xf32> to vector<2x64xf32>
    %244 = arith.maximumf %237, %239 : vector<2x64xf32>
    %245 = arith.maximumf %241, %243 : vector<2x64xf32>
    %246 = arith.maximumf %244, %245 : vector<2x64xf32>
    %247 = arith.truncf %246 : vector<2x64xf32> to vector<2x64xbf16>
    %c1_185 = arith.constant 1 : index
    %c0_186 = arith.constant 0 : index
    %c0_187 = arith.constant 0 : index
    %248 = vector.load %arg13[%c1_185, %c0_186, %c0_187] : memref<16x64x512xbf16, #tpu.memory_space<vmem>>, vector<1x64x512xbf16>
    %249 = vector.shape_cast %248 : vector<1x64x512xbf16> to vector<64x512xbf16>
    %cst_188 = arith.constant dense<0.000000e+00> : vector<2x512xf32>
    %250 = tpu.matmul %247, %249, %cst_188 {dimension_numbers = #tpu.dot_dimension_numbers<[1], [0], [0], [1], [0, 0, 1, 1], [], []>} : vector<2x64xbf16>, vector<64x512xbf16>, vector<2x512xf32> -> vector<2x512xf32>
    %251 = arith.addf %235, %250 : vector<2x512xf32>
    %c0_189 = arith.constant 0 : index
    %c0_190 = arith.constant 0 : index
    %c4_191 = arith.constant 4 : index
    %c0_192 = arith.constant 0 : index
    %252 = vector.load %arg12[%c0_189, %c0_190, %c4_191, %c0_192] : memref<2x8x8x64xf32, #tpu.memory_space<vmem>>, vector<2x1x1x64xf32>
    %253 = vector.shape_cast %252 : vector<2x1x1x64xf32> to vector<2x64xf32>
    %c0_193 = arith.constant 0 : index
    %c0_194 = arith.constant 0 : index
    %c5_195 = arith.constant 5 : index
    %c0_196 = arith.constant 0 : index
    %254 = vector.load %arg12[%c0_193, %c0_194, %c5_195, %c0_196] : memref<2x8x8x64xf32, #tpu.memory_space<vmem>>, vector<2x1x1x64xf32>
    %255 = vector.shape_cast %254 : vector<2x1x1x64xf32> to vector<2x64xf32>
    %c0_197 = arith.constant 0 : index
    %c1_198 = arith.constant 1 : index
    %c4_199 = arith.constant 4 : index
    %c0_200 = arith.constant 0 : index
    %256 = vector.load %arg12[%c0_197, %c1_198, %c4_199, %c0_200] : memref<2x8x8x64xf32, #tpu.memory_space<vmem>>, vector<2x1x1x64xf32>
    %257 = vector.shape_cast %256 : vector<2x1x1x64xf32> to vector<2x64xf32>
    %c0_201 = arith.constant 0 : index
    %c1_202 = arith.constant 1 : index
    %c5_203 = arith.constant 5 : index
    %c0_204 = arith.constant 0 : index
    %258 = vector.load %arg12[%c0_201, %c1_202, %c5_203, %c0_204] : memref<2x8x8x64xf32, #tpu.memory_space<vmem>>, vector<2x1x1x64xf32>
    %259 = vector.shape_cast %258 : vector<2x1x1x64xf32> to vector<2x64xf32>
    %260 = arith.maximumf %253, %255 : vector<2x64xf32>
    %261 = arith.maximumf %257, %259 : vector<2x64xf32>
    %262 = arith.maximumf %260, %261 : vector<2x64xf32>
    %263 = arith.truncf %262 : vector<2x64xf32> to vector<2x64xbf16>
    %c2_205 = arith.constant 2 : index
    %c0_206 = arith.constant 0 : index
    %c0_207 = arith.constant 0 : index
    %264 = vector.load %arg13[%c2_205, %c0_206, %c0_207] : memref<16x64x512xbf16, #tpu.memory_space<vmem>>, vector<1x64x512xbf16>
    %265 = vector.shape_cast %264 : vector<1x64x512xbf16> to vector<64x512xbf16>
    %cst_208 = arith.constant dense<0.000000e+00> : vector<2x512xf32>
    %266 = tpu.matmul %263, %265, %cst_208 {dimension_numbers = #tpu.dot_dimension_numbers<[1], [0], [0], [1], [0, 0, 1, 1], [], []>} : vector<2x64xbf16>, vector<64x512xbf16>, vector<2x512xf32> -> vector<2x512xf32>
    %267 = arith.addf %251, %266 : vector<2x512xf32>
    %c0_209 = arith.constant 0 : index
    %c0_210 = arith.constant 0 : index
    %c6_211 = arith.constant 6 : index
    %c0_212 = arith.constant 0 : index
    %268 = vector.load %arg12[%c0_209, %c0_210, %c6_211, %c0_212] : memref<2x8x8x64xf32, #tpu.memory_space<vmem>>, vector<2x1x1x64xf32>
    %269 = vector.shape_cast %268 : vector<2x1x1x64xf32> to vector<2x64xf32>
    %c0_213 = arith.constant 0 : index
    %c0_214 = arith.constant 0 : index
    %c7_215 = arith.constant 7 : index
    %c0_216 = arith.constant 0 : index
    %270 = vector.load %arg12[%c0_213, %c0_214, %c7_215, %c0_216] : memref<2x8x8x64xf32, #tpu.memory_space<vmem>>, vector<2x1x1x64xf32>
    %271 = vector.shape_cast %270 : vector<2x1x1x64xf32> to vector<2x64xf32>
    %c0_217 = arith.constant 0 : index
    %c1_218 = arith.constant 1 : index
    %c6_219 = arith.constant 6 : index
    %c0_220 = arith.constant 0 : index
    %272 = vector.load %arg12[%c0_217, %c1_218, %c6_219, %c0_220] : memref<2x8x8x64xf32, #tpu.memory_space<vmem>>, vector<2x1x1x64xf32>
    %273 = vector.shape_cast %272 : vector<2x1x1x64xf32> to vector<2x64xf32>
    %c0_221 = arith.constant 0 : index
    %c1_222 = arith.constant 1 : index
    %c7_223 = arith.constant 7 : index
    %c0_224 = arith.constant 0 : index
    %274 = vector.load %arg12[%c0_221, %c1_222, %c7_223, %c0_224] : memref<2x8x8x64xf32, #tpu.memory_space<vmem>>, vector<2x1x1x64xf32>
    %275 = vector.shape_cast %274 : vector<2x1x1x64xf32> to vector<2x64xf32>
    %276 = arith.maximumf %269, %271 : vector<2x64xf32>
    %277 = arith.maximumf %273, %275 : vector<2x64xf32>
    %278 = arith.maximumf %276, %277 : vector<2x64xf32>
    %279 = arith.truncf %278 : vector<2x64xf32> to vector<2x64xbf16>
    %c3_225 = arith.constant 3 : index
    %c0_226 = arith.constant 0 : index
    %c0_227 = arith.constant 0 : index
    %280 = vector.load %arg13[%c3_225, %c0_226, %c0_227] : memref<16x64x512xbf16, #tpu.memory_space<vmem>>, vector<1x64x512xbf16>
    %281 = vector.shape_cast %280 : vector<1x64x512xbf16> to vector<64x512xbf16>
    %cst_228 = arith.constant dense<0.000000e+00> : vector<2x512xf32>
    %282 = tpu.matmul %279, %281, %cst_228 {dimension_numbers = #tpu.dot_dimension_numbers<[1], [0], [0], [1], [0, 0, 1, 1], [], []>} : vector<2x64xbf16>, vector<64x512xbf16>, vector<2x512xf32> -> vector<2x512xf32>
    %283 = arith.addf %267, %282 : vector<2x512xf32>
    %c0_229 = arith.constant 0 : index
    %c2_230 = arith.constant 2 : index
    %c0_231 = arith.constant 0 : index
    %c0_232 = arith.constant 0 : index
    %284 = vector.load %arg12[%c0_229, %c2_230, %c0_231, %c0_232] : memref<2x8x8x64xf32, #tpu.memory_space<vmem>>, vector<2x1x1x64xf32>
    %285 = vector.shape_cast %284 : vector<2x1x1x64xf32> to vector<2x64xf32>
    %c0_233 = arith.constant 0 : index
    %c2_234 = arith.constant 2 : index
    %c1_235 = arith.constant 1 : index
    %c0_236 = arith.constant 0 : index
    %286 = vector.load %arg12[%c0_233, %c2_234, %c1_235, %c0_236] : memref<2x8x8x64xf32, #tpu.memory_space<vmem>>, vector<2x1x1x64xf32>
    %287 = vector.shape_cast %286 : vector<2x1x1x64xf32> to vector<2x64xf32>
    %c0_237 = arith.constant 0 : index
    %c3_238 = arith.constant 3 : index
    %c0_239 = arith.constant 0 : index
    %c0_240 = arith.constant 0 : index
    %288 = vector.load %arg12[%c0_237, %c3_238, %c0_239, %c0_240] : memref<2x8x8x64xf32, #tpu.memory_space<vmem>>, vector<2x1x1x64xf32>
    %289 = vector.shape_cast %288 : vector<2x1x1x64xf32> to vector<2x64xf32>
    %c0_241 = arith.constant 0 : index
    %c3_242 = arith.constant 3 : index
    %c1_243 = arith.constant 1 : index
    %c0_244 = arith.constant 0 : index
    %290 = vector.load %arg12[%c0_241, %c3_242, %c1_243, %c0_244] : memref<2x8x8x64xf32, #tpu.memory_space<vmem>>, vector<2x1x1x64xf32>
    %291 = vector.shape_cast %290 : vector<2x1x1x64xf32> to vector<2x64xf32>
    %292 = arith.maximumf %285, %287 : vector<2x64xf32>
    %293 = arith.maximumf %289, %291 : vector<2x64xf32>
    %294 = arith.maximumf %292, %293 : vector<2x64xf32>
    %295 = arith.truncf %294 : vector<2x64xf32> to vector<2x64xbf16>
    %c4_245 = arith.constant 4 : index
    %c0_246 = arith.constant 0 : index
    %c0_247 = arith.constant 0 : index
    %296 = vector.load %arg13[%c4_245, %c0_246, %c0_247] : memref<16x64x512xbf16, #tpu.memory_space<vmem>>, vector<1x64x512xbf16>
    %297 = vector.shape_cast %296 : vector<1x64x512xbf16> to vector<64x512xbf16>
    %cst_248 = arith.constant dense<0.000000e+00> : vector<2x512xf32>
    %298 = tpu.matmul %295, %297, %cst_248 {dimension_numbers = #tpu.dot_dimension_numbers<[1], [0], [0], [1], [0, 0, 1, 1], [], []>} : vector<2x64xbf16>, vector<64x512xbf16>, vector<2x512xf32> -> vector<2x512xf32>
    %299 = arith.addf %283, %298 : vector<2x512xf32>
    %c0_249 = arith.constant 0 : index
    %c2_250 = arith.constant 2 : index
    %c2_251 = arith.constant 2 : index
    %c0_252 = arith.constant 0 : index
    %300 = vector.load %arg12[%c0_249, %c2_250, %c2_251, %c0_252] : memref<2x8x8x64xf32, #tpu.memory_space<vmem>>, vector<2x1x1x64xf32>
    %301 = vector.shape_cast %300 : vector<2x1x1x64xf32> to vector<2x64xf32>
    %c0_253 = arith.constant 0 : index
    %c2_254 = arith.constant 2 : index
    %c3_255 = arith.constant 3 : index
    %c0_256 = arith.constant 0 : index
    %302 = vector.load %arg12[%c0_253, %c2_254, %c3_255, %c0_256] : memref<2x8x8x64xf32, #tpu.memory_space<vmem>>, vector<2x1x1x64xf32>
    %303 = vector.shape_cast %302 : vector<2x1x1x64xf32> to vector<2x64xf32>
    %c0_257 = arith.constant 0 : index
    %c3_258 = arith.constant 3 : index
    %c2_259 = arith.constant 2 : index
    %c0_260 = arith.constant 0 : index
    %304 = vector.load %arg12[%c0_257, %c3_258, %c2_259, %c0_260] : memref<2x8x8x64xf32, #tpu.memory_space<vmem>>, vector<2x1x1x64xf32>
    %305 = vector.shape_cast %304 : vector<2x1x1x64xf32> to vector<2x64xf32>
    %c0_261 = arith.constant 0 : index
    %c3_262 = arith.constant 3 : index
    %c3_263 = arith.constant 3 : index
    %c0_264 = arith.constant 0 : index
    %306 = vector.load %arg12[%c0_261, %c3_262, %c3_263, %c0_264] : memref<2x8x8x64xf32, #tpu.memory_space<vmem>>, vector<2x1x1x64xf32>
    %307 = vector.shape_cast %306 : vector<2x1x1x64xf32> to vector<2x64xf32>
    %308 = arith.maximumf %301, %303 : vector<2x64xf32>
    %309 = arith.maximumf %305, %307 : vector<2x64xf32>
    %310 = arith.maximumf %308, %309 : vector<2x64xf32>
    %311 = arith.truncf %310 : vector<2x64xf32> to vector<2x64xbf16>
    %c5_265 = arith.constant 5 : index
    %c0_266 = arith.constant 0 : index
    %c0_267 = arith.constant 0 : index
    %312 = vector.load %arg13[%c5_265, %c0_266, %c0_267] : memref<16x64x512xbf16, #tpu.memory_space<vmem>>, vector<1x64x512xbf16>
    %313 = vector.shape_cast %312 : vector<1x64x512xbf16> to vector<64x512xbf16>
    %cst_268 = arith.constant dense<0.000000e+00> : vector<2x512xf32>
    %314 = tpu.matmul %311, %313, %cst_268 {dimension_numbers = #tpu.dot_dimension_numbers<[1], [0], [0], [1], [0, 0, 1, 1], [], []>} : vector<2x64xbf16>, vector<64x512xbf16>, vector<2x512xf32> -> vector<2x512xf32>
    %315 = arith.addf %299, %314 : vector<2x512xf32>
    %c0_269 = arith.constant 0 : index
    %c2_270 = arith.constant 2 : index
    %c4_271 = arith.constant 4 : index
    %c0_272 = arith.constant 0 : index
    %316 = vector.load %arg12[%c0_269, %c2_270, %c4_271, %c0_272] : memref<2x8x8x64xf32, #tpu.memory_space<vmem>>, vector<2x1x1x64xf32>
    %317 = vector.shape_cast %316 : vector<2x1x1x64xf32> to vector<2x64xf32>
    %c0_273 = arith.constant 0 : index
    %c2_274 = arith.constant 2 : index
    %c5_275 = arith.constant 5 : index
    %c0_276 = arith.constant 0 : index
    %318 = vector.load %arg12[%c0_273, %c2_274, %c5_275, %c0_276] : memref<2x8x8x64xf32, #tpu.memory_space<vmem>>, vector<2x1x1x64xf32>
    %319 = vector.shape_cast %318 : vector<2x1x1x64xf32> to vector<2x64xf32>
    %c0_277 = arith.constant 0 : index
    %c3_278 = arith.constant 3 : index
    %c4_279 = arith.constant 4 : index
    %c0_280 = arith.constant 0 : index
    %320 = vector.load %arg12[%c0_277, %c3_278, %c4_279, %c0_280] : memref<2x8x8x64xf32, #tpu.memory_space<vmem>>, vector<2x1x1x64xf32>
    %321 = vector.shape_cast %320 : vector<2x1x1x64xf32> to vector<2x64xf32>
    %c0_281 = arith.constant 0 : index
    %c3_282 = arith.constant 3 : index
    %c5_283 = arith.constant 5 : index
    %c0_284 = arith.constant 0 : index
    %322 = vector.load %arg12[%c0_281, %c3_282, %c5_283, %c0_284] : memref<2x8x8x64xf32, #tpu.memory_space<vmem>>, vector<2x1x1x64xf32>
    %323 = vector.shape_cast %322 : vector<2x1x1x64xf32> to vector<2x64xf32>
    %324 = arith.maximumf %317, %319 : vector<2x64xf32>
    %325 = arith.maximumf %321, %323 : vector<2x64xf32>
    %326 = arith.maximumf %324, %325 : vector<2x64xf32>
    %327 = arith.truncf %326 : vector<2x64xf32> to vector<2x64xbf16>
    %c6_285 = arith.constant 6 : index
    %c0_286 = arith.constant 0 : index
    %c0_287 = arith.constant 0 : index
    %328 = vector.load %arg13[%c6_285, %c0_286, %c0_287] : memref<16x64x512xbf16, #tpu.memory_space<vmem>>, vector<1x64x512xbf16>
    %329 = vector.shape_cast %328 : vector<1x64x512xbf16> to vector<64x512xbf16>
    %cst_288 = arith.constant dense<0.000000e+00> : vector<2x512xf32>
    %330 = tpu.matmul %327, %329, %cst_288 {dimension_numbers = #tpu.dot_dimension_numbers<[1], [0], [0], [1], [0, 0, 1, 1], [], []>} : vector<2x64xbf16>, vector<64x512xbf16>, vector<2x512xf32> -> vector<2x512xf32>
    %331 = arith.addf %315, %330 : vector<2x512xf32>
    %c0_289 = arith.constant 0 : index
    %c2_290 = arith.constant 2 : index
    %c6_291 = arith.constant 6 : index
    %c0_292 = arith.constant 0 : index
    %332 = vector.load %arg12[%c0_289, %c2_290, %c6_291, %c0_292] : memref<2x8x8x64xf32, #tpu.memory_space<vmem>>, vector<2x1x1x64xf32>
    %333 = vector.shape_cast %332 : vector<2x1x1x64xf32> to vector<2x64xf32>
    %c0_293 = arith.constant 0 : index
    %c2_294 = arith.constant 2 : index
    %c7_295 = arith.constant 7 : index
    %c0_296 = arith.constant 0 : index
    %334 = vector.load %arg12[%c0_293, %c2_294, %c7_295, %c0_296] : memref<2x8x8x64xf32, #tpu.memory_space<vmem>>, vector<2x1x1x64xf32>
    %335 = vector.shape_cast %334 : vector<2x1x1x64xf32> to vector<2x64xf32>
    %c0_297 = arith.constant 0 : index
    %c3_298 = arith.constant 3 : index
    %c6_299 = arith.constant 6 : index
    %c0_300 = arith.constant 0 : index
    %336 = vector.load %arg12[%c0_297, %c3_298, %c6_299, %c0_300] : memref<2x8x8x64xf32, #tpu.memory_space<vmem>>, vector<2x1x1x64xf32>
    %337 = vector.shape_cast %336 : vector<2x1x1x64xf32> to vector<2x64xf32>
    %c0_301 = arith.constant 0 : index
    %c3_302 = arith.constant 3 : index
    %c7_303 = arith.constant 7 : index
    %c0_304 = arith.constant 0 : index
    %338 = vector.load %arg12[%c0_301, %c3_302, %c7_303, %c0_304] : memref<2x8x8x64xf32, #tpu.memory_space<vmem>>, vector<2x1x1x64xf32>
    %339 = vector.shape_cast %338 : vector<2x1x1x64xf32> to vector<2x64xf32>
    %340 = arith.maximumf %333, %335 : vector<2x64xf32>
    %341 = arith.maximumf %337, %339 : vector<2x64xf32>
    %342 = arith.maximumf %340, %341 : vector<2x64xf32>
    %343 = arith.truncf %342 : vector<2x64xf32> to vector<2x64xbf16>
    %c7_305 = arith.constant 7 : index
    %c0_306 = arith.constant 0 : index
    %c0_307 = arith.constant 0 : index
    %344 = vector.load %arg13[%c7_305, %c0_306, %c0_307] : memref<16x64x512xbf16, #tpu.memory_space<vmem>>, vector<1x64x512xbf16>
    %345 = vector.shape_cast %344 : vector<1x64x512xbf16> to vector<64x512xbf16>
    %cst_308 = arith.constant dense<0.000000e+00> : vector<2x512xf32>
    %346 = tpu.matmul %343, %345, %cst_308 {dimension_numbers = #tpu.dot_dimension_numbers<[1], [0], [0], [1], [0, 0, 1, 1], [], []>} : vector<2x64xbf16>, vector<64x512xbf16>, vector<2x512xf32> -> vector<2x512xf32>
    %347 = arith.addf %331, %346 : vector<2x512xf32>
    %c0_309 = arith.constant 0 : index
    %c4_310 = arith.constant 4 : index
    %c0_311 = arith.constant 0 : index
    %c0_312 = arith.constant 0 : index
    %348 = vector.load %arg12[%c0_309, %c4_310, %c0_311, %c0_312] : memref<2x8x8x64xf32, #tpu.memory_space<vmem>>, vector<2x1x1x64xf32>
    %349 = vector.shape_cast %348 : vector<2x1x1x64xf32> to vector<2x64xf32>
    %c0_313 = arith.constant 0 : index
    %c4_314 = arith.constant 4 : index
    %c1_315 = arith.constant 1 : index
    %c0_316 = arith.constant 0 : index
    %350 = vector.load %arg12[%c0_313, %c4_314, %c1_315, %c0_316] : memref<2x8x8x64xf32, #tpu.memory_space<vmem>>, vector<2x1x1x64xf32>
    %351 = vector.shape_cast %350 : vector<2x1x1x64xf32> to vector<2x64xf32>
    %c0_317 = arith.constant 0 : index
    %c5_318 = arith.constant 5 : index
    %c0_319 = arith.constant 0 : index
    %c0_320 = arith.constant 0 : index
    %352 = vector.load %arg12[%c0_317, %c5_318, %c0_319, %c0_320] : memref<2x8x8x64xf32, #tpu.memory_space<vmem>>, vector<2x1x1x64xf32>
    %353 = vector.shape_cast %352 : vector<2x1x1x64xf32> to vector<2x64xf32>
    %c0_321 = arith.constant 0 : index
    %c5_322 = arith.constant 5 : index
    %c1_323 = arith.constant 1 : index
    %c0_324 = arith.constant 0 : index
    %354 = vector.load %arg12[%c0_321, %c5_322, %c1_323, %c0_324] : memref<2x8x8x64xf32, #tpu.memory_space<vmem>>, vector<2x1x1x64xf32>
    %355 = vector.shape_cast %354 : vector<2x1x1x64xf32> to vector<2x64xf32>
    %356 = arith.maximumf %349, %351 : vector<2x64xf32>
    %357 = arith.maximumf %353, %355 : vector<2x64xf32>
    %358 = arith.maximumf %356, %357 : vector<2x64xf32>
    %359 = arith.truncf %358 : vector<2x64xf32> to vector<2x64xbf16>
    %c8_325 = arith.constant 8 : index
    %c0_326 = arith.constant 0 : index
    %c0_327 = arith.constant 0 : index
    %360 = vector.load %arg13[%c8_325, %c0_326, %c0_327] : memref<16x64x512xbf16, #tpu.memory_space<vmem>>, vector<1x64x512xbf16>
    %361 = vector.shape_cast %360 : vector<1x64x512xbf16> to vector<64x512xbf16>
    %cst_328 = arith.constant dense<0.000000e+00> : vector<2x512xf32>
    %362 = tpu.matmul %359, %361, %cst_328 {dimension_numbers = #tpu.dot_dimension_numbers<[1], [0], [0], [1], [0, 0, 1, 1], [], []>} : vector<2x64xbf16>, vector<64x512xbf16>, vector<2x512xf32> -> vector<2x512xf32>
    %363 = arith.addf %347, %362 : vector<2x512xf32>
    %c0_329 = arith.constant 0 : index
    %c4_330 = arith.constant 4 : index
    %c2_331 = arith.constant 2 : index
    %c0_332 = arith.constant 0 : index
    %364 = vector.load %arg12[%c0_329, %c4_330, %c2_331, %c0_332] : memref<2x8x8x64xf32, #tpu.memory_space<vmem>>, vector<2x1x1x64xf32>
    %365 = vector.shape_cast %364 : vector<2x1x1x64xf32> to vector<2x64xf32>
    %c0_333 = arith.constant 0 : index
    %c4_334 = arith.constant 4 : index
    %c3_335 = arith.constant 3 : index
    %c0_336 = arith.constant 0 : index
    %366 = vector.load %arg12[%c0_333, %c4_334, %c3_335, %c0_336] : memref<2x8x8x64xf32, #tpu.memory_space<vmem>>, vector<2x1x1x64xf32>
    %367 = vector.shape_cast %366 : vector<2x1x1x64xf32> to vector<2x64xf32>
    %c0_337 = arith.constant 0 : index
    %c5_338 = arith.constant 5 : index
    %c2_339 = arith.constant 2 : index
    %c0_340 = arith.constant 0 : index
    %368 = vector.load %arg12[%c0_337, %c5_338, %c2_339, %c0_340] : memref<2x8x8x64xf32, #tpu.memory_space<vmem>>, vector<2x1x1x64xf32>
    %369 = vector.shape_cast %368 : vector<2x1x1x64xf32> to vector<2x64xf32>
    %c0_341 = arith.constant 0 : index
    %c5_342 = arith.constant 5 : index
    %c3_343 = arith.constant 3 : index
    %c0_344 = arith.constant 0 : index
    %370 = vector.load %arg12[%c0_341, %c5_342, %c3_343, %c0_344] : memref<2x8x8x64xf32, #tpu.memory_space<vmem>>, vector<2x1x1x64xf32>
    %371 = vector.shape_cast %370 : vector<2x1x1x64xf32> to vector<2x64xf32>
    %372 = arith.maximumf %365, %367 : vector<2x64xf32>
    %373 = arith.maximumf %369, %371 : vector<2x64xf32>
    %374 = arith.maximumf %372, %373 : vector<2x64xf32>
    %375 = arith.truncf %374 : vector<2x64xf32> to vector<2x64xbf16>
    %c9_345 = arith.constant 9 : index
    %c0_346 = arith.constant 0 : index
    %c0_347 = arith.constant 0 : index
    %376 = vector.load %arg13[%c9_345, %c0_346, %c0_347] : memref<16x64x512xbf16, #tpu.memory_space<vmem>>, vector<1x64x512xbf16>
    %377 = vector.shape_cast %376 : vector<1x64x512xbf16> to vector<64x512xbf16>
    %cst_348 = arith.constant dense<0.000000e+00> : vector<2x512xf32>
    %378 = tpu.matmul %375, %377, %cst_348 {dimension_numbers = #tpu.dot_dimension_numbers<[1], [0], [0], [1], [0, 0, 1, 1], [], []>} : vector<2x64xbf16>, vector<64x512xbf16>, vector<2x512xf32> -> vector<2x512xf32>
    %379 = arith.addf %363, %378 : vector<2x512xf32>
    %c0_349 = arith.constant 0 : index
    %c4_350 = arith.constant 4 : index
    %c4_351 = arith.constant 4 : index
    %c0_352 = arith.constant 0 : index
    %380 = vector.load %arg12[%c0_349, %c4_350, %c4_351, %c0_352] : memref<2x8x8x64xf32, #tpu.memory_space<vmem>>, vector<2x1x1x64xf32>
    %381 = vector.shape_cast %380 : vector<2x1x1x64xf32> to vector<2x64xf32>
    %c0_353 = arith.constant 0 : index
    %c4_354 = arith.constant 4 : index
    %c5_355 = arith.constant 5 : index
    %c0_356 = arith.constant 0 : index
    %382 = vector.load %arg12[%c0_353, %c4_354, %c5_355, %c0_356] : memref<2x8x8x64xf32, #tpu.memory_space<vmem>>, vector<2x1x1x64xf32>
    %383 = vector.shape_cast %382 : vector<2x1x1x64xf32> to vector<2x64xf32>
    %c0_357 = arith.constant 0 : index
    %c5_358 = arith.constant 5 : index
    %c4_359 = arith.constant 4 : index
    %c0_360 = arith.constant 0 : index
    %384 = vector.load %arg12[%c0_357, %c5_358, %c4_359, %c0_360] : memref<2x8x8x64xf32, #tpu.memory_space<vmem>>, vector<2x1x1x64xf32>
    %385 = vector.shape_cast %384 : vector<2x1x1x64xf32> to vector<2x64xf32>
    %c0_361 = arith.constant 0 : index
    %c5_362 = arith.constant 5 : index
    %c5_363 = arith.constant 5 : index
    %c0_364 = arith.constant 0 : index
    %386 = vector.load %arg12[%c0_361, %c5_362, %c5_363, %c0_364] : memref<2x8x8x64xf32, #tpu.memory_space<vmem>>, vector<2x1x1x64xf32>
    %387 = vector.shape_cast %386 : vector<2x1x1x64xf32> to vector<2x64xf32>
    %388 = arith.maximumf %381, %383 : vector<2x64xf32>
    %389 = arith.maximumf %385, %387 : vector<2x64xf32>
    %390 = arith.maximumf %388, %389 : vector<2x64xf32>
    %391 = arith.truncf %390 : vector<2x64xf32> to vector<2x64xbf16>
    %c10_365 = arith.constant 10 : index
    %c0_366 = arith.constant 0 : index
    %c0_367 = arith.constant 0 : index
    %392 = vector.load %arg13[%c10_365, %c0_366, %c0_367] : memref<16x64x512xbf16, #tpu.memory_space<vmem>>, vector<1x64x512xbf16>
    %393 = vector.shape_cast %392 : vector<1x64x512xbf16> to vector<64x512xbf16>
    %cst_368 = arith.constant dense<0.000000e+00> : vector<2x512xf32>
    %394 = tpu.matmul %391, %393, %cst_368 {dimension_numbers = #tpu.dot_dimension_numbers<[1], [0], [0], [1], [0, 0, 1, 1], [], []>} : vector<2x64xbf16>, vector<64x512xbf16>, vector<2x512xf32> -> vector<2x512xf32>
    %395 = arith.addf %379, %394 : vector<2x512xf32>
    %c0_369 = arith.constant 0 : index
    %c4_370 = arith.constant 4 : index
    %c6_371 = arith.constant 6 : index
    %c0_372 = arith.constant 0 : index
    %396 = vector.load %arg12[%c0_369, %c4_370, %c6_371, %c0_372] : memref<2x8x8x64xf32, #tpu.memory_space<vmem>>, vector<2x1x1x64xf32>
    %397 = vector.shape_cast %396 : vector<2x1x1x64xf32> to vector<2x64xf32>
    %c0_373 = arith.constant 0 : index
    %c4_374 = arith.constant 4 : index
    %c7_375 = arith.constant 7 : index
    %c0_376 = arith.constant 0 : index
    %398 = vector.load %arg12[%c0_373, %c4_374, %c7_375, %c0_376] : memref<2x8x8x64xf32, #tpu.memory_space<vmem>>, vector<2x1x1x64xf32>
    %399 = vector.shape_cast %398 : vector<2x1x1x64xf32> to vector<2x64xf32>
    %c0_377 = arith.constant 0 : index
    %c5_378 = arith.constant 5 : index
    %c6_379 = arith.constant 6 : index
    %c0_380 = arith.constant 0 : index
    %400 = vector.load %arg12[%c0_377, %c5_378, %c6_379, %c0_380] : memref<2x8x8x64xf32, #tpu.memory_space<vmem>>, vector<2x1x1x64xf32>
    %401 = vector.shape_cast %400 : vector<2x1x1x64xf32> to vector<2x64xf32>
    %c0_381 = arith.constant 0 : index
    %c5_382 = arith.constant 5 : index
    %c7_383 = arith.constant 7 : index
    %c0_384 = arith.constant 0 : index
    %402 = vector.load %arg12[%c0_381, %c5_382, %c7_383, %c0_384] : memref<2x8x8x64xf32, #tpu.memory_space<vmem>>, vector<2x1x1x64xf32>
    %403 = vector.shape_cast %402 : vector<2x1x1x64xf32> to vector<2x64xf32>
    %404 = arith.maximumf %397, %399 : vector<2x64xf32>
    %405 = arith.maximumf %401, %403 : vector<2x64xf32>
    %406 = arith.maximumf %404, %405 : vector<2x64xf32>
    %407 = arith.truncf %406 : vector<2x64xf32> to vector<2x64xbf16>
    %c11_385 = arith.constant 11 : index
    %c0_386 = arith.constant 0 : index
    %c0_387 = arith.constant 0 : index
    %408 = vector.load %arg13[%c11_385, %c0_386, %c0_387] : memref<16x64x512xbf16, #tpu.memory_space<vmem>>, vector<1x64x512xbf16>
    %409 = vector.shape_cast %408 : vector<1x64x512xbf16> to vector<64x512xbf16>
    %cst_388 = arith.constant dense<0.000000e+00> : vector<2x512xf32>
    %410 = tpu.matmul %407, %409, %cst_388 {dimension_numbers = #tpu.dot_dimension_numbers<[1], [0], [0], [1], [0, 0, 1, 1], [], []>} : vector<2x64xbf16>, vector<64x512xbf16>, vector<2x512xf32> -> vector<2x512xf32>
    %411 = arith.addf %395, %410 : vector<2x512xf32>
    %c0_389 = arith.constant 0 : index
    %c6_390 = arith.constant 6 : index
    %c0_391 = arith.constant 0 : index
    %c0_392 = arith.constant 0 : index
    %412 = vector.load %arg12[%c0_389, %c6_390, %c0_391, %c0_392] : memref<2x8x8x64xf32, #tpu.memory_space<vmem>>, vector<2x1x1x64xf32>
    %413 = vector.shape_cast %412 : vector<2x1x1x64xf32> to vector<2x64xf32>
    %c0_393 = arith.constant 0 : index
    %c6_394 = arith.constant 6 : index
    %c1_395 = arith.constant 1 : index
    %c0_396 = arith.constant 0 : index
    %414 = vector.load %arg12[%c0_393, %c6_394, %c1_395, %c0_396] : memref<2x8x8x64xf32, #tpu.memory_space<vmem>>, vector<2x1x1x64xf32>
    %415 = vector.shape_cast %414 : vector<2x1x1x64xf32> to vector<2x64xf32>
    %c0_397 = arith.constant 0 : index
    %c7_398 = arith.constant 7 : index
    %c0_399 = arith.constant 0 : index
    %c0_400 = arith.constant 0 : index
    %416 = vector.load %arg12[%c0_397, %c7_398, %c0_399, %c0_400] : memref<2x8x8x64xf32, #tpu.memory_space<vmem>>, vector<2x1x1x64xf32>
    %417 = vector.shape_cast %416 : vector<2x1x1x64xf32> to vector<2x64xf32>
    %c0_401 = arith.constant 0 : index
    %c7_402 = arith.constant 7 : index
    %c1_403 = arith.constant 1 : index
    %c0_404 = arith.constant 0 : index
    %418 = vector.load %arg12[%c0_401, %c7_402, %c1_403, %c0_404] : memref<2x8x8x64xf32, #tpu.memory_space<vmem>>, vector<2x1x1x64xf32>
    %419 = vector.shape_cast %418 : vector<2x1x1x64xf32> to vector<2x64xf32>
    %420 = arith.maximumf %413, %415 : vector<2x64xf32>
    %421 = arith.maximumf %417, %419 : vector<2x64xf32>
    %422 = arith.maximumf %420, %421 : vector<2x64xf32>
    %423 = arith.truncf %422 : vector<2x64xf32> to vector<2x64xbf16>
    %c12_405 = arith.constant 12 : index
    %c0_406 = arith.constant 0 : index
    %c0_407 = arith.constant 0 : index
    %424 = vector.load %arg13[%c12_405, %c0_406, %c0_407] : memref<16x64x512xbf16, #tpu.memory_space<vmem>>, vector<1x64x512xbf16>
    %425 = vector.shape_cast %424 : vector<1x64x512xbf16> to vector<64x512xbf16>
    %cst_408 = arith.constant dense<0.000000e+00> : vector<2x512xf32>
    %426 = tpu.matmul %423, %425, %cst_408 {dimension_numbers = #tpu.dot_dimension_numbers<[1], [0], [0], [1], [0, 0, 1, 1], [], []>} : vector<2x64xbf16>, vector<64x512xbf16>, vector<2x512xf32> -> vector<2x512xf32>
    %427 = arith.addf %411, %426 : vector<2x512xf32>
    %c0_409 = arith.constant 0 : index
    %c6_410 = arith.constant 6 : index
    %c2_411 = arith.constant 2 : index
    %c0_412 = arith.constant 0 : index
    %428 = vector.load %arg12[%c0_409, %c6_410, %c2_411, %c0_412] : memref<2x8x8x64xf32, #tpu.memory_space<vmem>>, vector<2x1x1x64xf32>
    %429 = vector.shape_cast %428 : vector<2x1x1x64xf32> to vector<2x64xf32>
    %c0_413 = arith.constant 0 : index
    %c6_414 = arith.constant 6 : index
    %c3_415 = arith.constant 3 : index
    %c0_416 = arith.constant 0 : index
    %430 = vector.load %arg12[%c0_413, %c6_414, %c3_415, %c0_416] : memref<2x8x8x64xf32, #tpu.memory_space<vmem>>, vector<2x1x1x64xf32>
    %431 = vector.shape_cast %430 : vector<2x1x1x64xf32> to vector<2x64xf32>
    %c0_417 = arith.constant 0 : index
    %c7_418 = arith.constant 7 : index
    %c2_419 = arith.constant 2 : index
    %c0_420 = arith.constant 0 : index
    %432 = vector.load %arg12[%c0_417, %c7_418, %c2_419, %c0_420] : memref<2x8x8x64xf32, #tpu.memory_space<vmem>>, vector<2x1x1x64xf32>
    %433 = vector.shape_cast %432 : vector<2x1x1x64xf32> to vector<2x64xf32>
    %c0_421 = arith.constant 0 : index
    %c7_422 = arith.constant 7 : index
    %c3_423 = arith.constant 3 : index
    %c0_424 = arith.constant 0 : index
    %434 = vector.load %arg12[%c0_421, %c7_422, %c3_423, %c0_424] : memref<2x8x8x64xf32, #tpu.memory_space<vmem>>, vector<2x1x1x64xf32>
    %435 = vector.shape_cast %434 : vector<2x1x1x64xf32> to vector<2x64xf32>
    %436 = arith.maximumf %429, %431 : vector<2x64xf32>
    %437 = arith.maximumf %433, %435 : vector<2x64xf32>
    %438 = arith.maximumf %436, %437 : vector<2x64xf32>
    %439 = arith.truncf %438 : vector<2x64xf32> to vector<2x64xbf16>
    %c13_425 = arith.constant 13 : index
    %c0_426 = arith.constant 0 : index
    %c0_427 = arith.constant 0 : index
    %440 = vector.load %arg13[%c13_425, %c0_426, %c0_427] : memref<16x64x512xbf16, #tpu.memory_space<vmem>>, vector<1x64x512xbf16>
    %441 = vector.shape_cast %440 : vector<1x64x512xbf16> to vector<64x512xbf16>
    %cst_428 = arith.constant dense<0.000000e+00> : vector<2x512xf32>
    %442 = tpu.matmul %439, %441, %cst_428 {dimension_numbers = #tpu.dot_dimension_numbers<[1], [0], [0], [1], [0, 0, 1, 1], [], []>} : vector<2x64xbf16>, vector<64x512xbf16>, vector<2x512xf32> -> vector<2x512xf32>
    %443 = arith.addf %427, %442 : vector<2x512xf32>
    %c0_429 = arith.constant 0 : index
    %c6_430 = arith.constant 6 : index
    %c4_431 = arith.constant 4 : index
    %c0_432 = arith.constant 0 : index
    %444 = vector.load %arg12[%c0_429, %c6_430, %c4_431, %c0_432] : memref<2x8x8x64xf32, #tpu.memory_space<vmem>>, vector<2x1x1x64xf32>
    %445 = vector.shape_cast %444 : vector<2x1x1x64xf32> to vector<2x64xf32>
    %c0_433 = arith.constant 0 : index
    %c6_434 = arith.constant 6 : index
    %c5_435 = arith.constant 5 : index
    %c0_436 = arith.constant 0 : index
    %446 = vector.load %arg12[%c0_433, %c6_434, %c5_435, %c0_436] : memref<2x8x8x64xf32, #tpu.memory_space<vmem>>, vector<2x1x1x64xf32>
    %447 = vector.shape_cast %446 : vector<2x1x1x64xf32> to vector<2x64xf32>
    %c0_437 = arith.constant 0 : index
    %c7_438 = arith.constant 7 : index
    %c4_439 = arith.constant 4 : index
    %c0_440 = arith.constant 0 : index
    %448 = vector.load %arg12[%c0_437, %c7_438, %c4_439, %c0_440] : memref<2x8x8x64xf32, #tpu.memory_space<vmem>>, vector<2x1x1x64xf32>
    %449 = vector.shape_cast %448 : vector<2x1x1x64xf32> to vector<2x64xf32>
    %c0_441 = arith.constant 0 : index
    %c7_442 = arith.constant 7 : index
    %c5_443 = arith.constant 5 : index
    %c0_444 = arith.constant 0 : index
    %450 = vector.load %arg12[%c0_441, %c7_442, %c5_443, %c0_444] : memref<2x8x8x64xf32, #tpu.memory_space<vmem>>, vector<2x1x1x64xf32>
    %451 = vector.shape_cast %450 : vector<2x1x1x64xf32> to vector<2x64xf32>
    %452 = arith.maximumf %445, %447 : vector<2x64xf32>
    %453 = arith.maximumf %449, %451 : vector<2x64xf32>
    %454 = arith.maximumf %452, %453 : vector<2x64xf32>
    %455 = arith.truncf %454 : vector<2x64xf32> to vector<2x64xbf16>
    %c14_445 = arith.constant 14 : index
    %c0_446 = arith.constant 0 : index
    %c0_447 = arith.constant 0 : index
    %456 = vector.load %arg13[%c14_445, %c0_446, %c0_447] : memref<16x64x512xbf16, #tpu.memory_space<vmem>>, vector<1x64x512xbf16>
    %457 = vector.shape_cast %456 : vector<1x64x512xbf16> to vector<64x512xbf16>
    %cst_448 = arith.constant dense<0.000000e+00> : vector<2x512xf32>
    %458 = tpu.matmul %455, %457, %cst_448 {dimension_numbers = #tpu.dot_dimension_numbers<[1], [0], [0], [1], [0, 0, 1, 1], [], []>} : vector<2x64xbf16>, vector<64x512xbf16>, vector<2x512xf32> -> vector<2x512xf32>
    %459 = arith.addf %443, %458 : vector<2x512xf32>
    %c0_449 = arith.constant 0 : index
    %c6_450 = arith.constant 6 : index
    %c6_451 = arith.constant 6 : index
    %c0_452 = arith.constant 0 : index
    %460 = vector.load %arg12[%c0_449, %c6_450, %c6_451, %c0_452] : memref<2x8x8x64xf32, #tpu.memory_space<vmem>>, vector<2x1x1x64xf32>
    %461 = vector.shape_cast %460 : vector<2x1x1x64xf32> to vector<2x64xf32>
    %c0_453 = arith.constant 0 : index
    %c6_454 = arith.constant 6 : index
    %c7_455 = arith.constant 7 : index
    %c0_456 = arith.constant 0 : index
    %462 = vector.load %arg12[%c0_453, %c6_454, %c7_455, %c0_456] : memref<2x8x8x64xf32, #tpu.memory_space<vmem>>, vector<2x1x1x64xf32>
    %463 = vector.shape_cast %462 : vector<2x1x1x64xf32> to vector<2x64xf32>
    %c0_457 = arith.constant 0 : index
    %c7_458 = arith.constant 7 : index
    %c6_459 = arith.constant 6 : index
    %c0_460 = arith.constant 0 : index
    %464 = vector.load %arg12[%c0_457, %c7_458, %c6_459, %c0_460] : memref<2x8x8x64xf32, #tpu.memory_space<vmem>>, vector<2x1x1x64xf32>
    %465 = vector.shape_cast %464 : vector<2x1x1x64xf32> to vector<2x64xf32>
    %c0_461 = arith.constant 0 : index
    %c7_462 = arith.constant 7 : index
    %c7_463 = arith.constant 7 : index
    %c0_464 = arith.constant 0 : index
    %466 = vector.load %arg12[%c0_461, %c7_462, %c7_463, %c0_464] : memref<2x8x8x64xf32, #tpu.memory_space<vmem>>, vector<2x1x1x64xf32>
    %467 = vector.shape_cast %466 : vector<2x1x1x64xf32> to vector<2x64xf32>
    %468 = arith.maximumf %461, %463 : vector<2x64xf32>
    %469 = arith.maximumf %465, %467 : vector<2x64xf32>
    %470 = arith.maximumf %468, %469 : vector<2x64xf32>
    %471 = arith.truncf %470 : vector<2x64xf32> to vector<2x64xbf16>
    %c15_465 = arith.constant 15 : index
    %c0_466 = arith.constant 0 : index
    %c0_467 = arith.constant 0 : index
    %472 = vector.load %arg13[%c15_465, %c0_466, %c0_467] : memref<16x64x512xbf16, #tpu.memory_space<vmem>>, vector<1x64x512xbf16>
    %473 = vector.shape_cast %472 : vector<1x64x512xbf16> to vector<64x512xbf16>
    %cst_468 = arith.constant dense<0.000000e+00> : vector<2x512xf32>
    %474 = tpu.matmul %471, %473, %cst_468 {dimension_numbers = #tpu.dot_dimension_numbers<[1], [0], [0], [1], [0, 0, 1, 1], [], []>} : vector<2x64xbf16>, vector<64x512xbf16>, vector<2x512xf32> -> vector<2x512xf32>
    %475 = arith.addf %459, %474 : vector<2x512xf32>
    %c0_469 = arith.constant 0 : index
    %c0_470 = arith.constant 0 : index
    %476 = vector.load %arg7[%c0_469, %c0_470] : memref<1x512xf32, #tpu.memory_space<vmem>>, vector<1x512xf32>
    %477 = vector.broadcast %476 : vector<1x512xf32> to vector<2x512xf32>
    %478 = arith.addf %475, %477 : vector<2x512xf32>
    %cst_471 = arith.constant 0.000000e+00 : f32
    %479 = vector.broadcast %cst_471 : f32 to vector<2x512xf32>
    %480 = arith.maximumf %478, %479 : vector<2x512xf32>
    %c1_i32_472 = arith.constant 1 : i32
    %481 = tpu.memref_slice %arg15[%c1_i32_472] : memref<2x!tpu.dma_semaphore, #tpu.memory_space<semaphore_mem>> -> memref<1x!tpu.dma_semaphore, #tpu.memory_space<semaphore_mem>>
    %482 = tpu.memref_squeeze %481 : memref<1x!tpu.dma_semaphore, #tpu.memory_space<semaphore_mem>> -> memref<!tpu.dma_semaphore, #tpu.memory_space<semaphore_mem>>
    tpu.wait_dma2 semaphore(%482 : memref<!tpu.dma_semaphore, #tpu.memory_space<semaphore_mem>>) src(%arg8 : memref<512x128xbf16, #tpu.memory_space<any>>) dst(%arg14 : memref<512x128xbf16, #tpu.memory_space<vmem>>)
    %483 = arith.truncf %480 : vector<2x512xf32> to vector<2x512xbf16>
    %c0_473 = arith.constant 0 : index
    %c0_474 = arith.constant 0 : index
    %484 = vector.load %arg14[%c0_473, %c0_474] : memref<512x128xbf16, #tpu.memory_space<vmem>>, vector<512x128xbf16>
    %cst_475 = arith.constant dense<0.000000e+00> : vector<2x128xf32>
    %485 = tpu.matmul %483, %484, %cst_475 {dimension_numbers = #tpu.dot_dimension_numbers<[1], [0], [0], [1], [0, 0, 1, 1], [], []>} : vector<2x512xbf16>, vector<512x128xbf16>, vector<2x128xf32> -> vector<2x128xf32>
    %c0_476 = arith.constant 0 : index
    %c0_477 = arith.constant 0 : index
    %486 = vector.load %arg9[%c0_476, %c0_477] : memref<1x128xf32, #tpu.memory_space<vmem>>, vector<1x128xf32>
    %487 = vector.broadcast %486 : vector<1x128xf32> to vector<2x128xf32>
    %488 = arith.addf %485, %487 : vector<2x128xf32>
    %489 = tpu.iota {dimensions = array<i32: 1>} : vector<2x128xi32>
    %c10_i32 = arith.constant 10 : i32
    %490 = vector.broadcast %c10_i32 : i32 to vector<2x128xi32>
    %491 = arith.cmpi slt, %489, %490 : vector<2x128xi32>
    %cst_478 = arith.constant -3.40282347E+38 : f32
    %492 = vector.broadcast %cst_478 : f32 to vector<2x128xf32>
    %493 = arith.select %491, %488, %492 : vector<2x128xi1>, vector<2x128xf32>
    %cst_479 = arith.constant dense<0xFF800000> : vector<2xf32>
    %494 = vector.multi_reduction <maximumf>, %493, %cst_479 [1] : vector<2x128xf32> to vector<2xf32>
    %495 = vector.shape_cast %494 : vector<2xf32> to vector<2x1xf32>
    %496 = vector.broadcast %495 : vector<2x1xf32> to vector<2x128xf32>
    %497 = arith.subf %493, %496 : vector<2x128xf32>
    %498 = math.exp %497 : vector<2x128xf32>
    %cst_480 = arith.constant dense<0.000000e+00> : vector<2xf32>
    %499 = vector.multi_reduction <add>, %498, %cst_480 [1] : vector<2x128xf32> to vector<2xf32>
    %500 = vector.shape_cast %499 : vector<2xf32> to vector<2x1xf32>
    %501 = math.log %500 : vector<2x1xf32>
    %502 = vector.broadcast %501 : vector<2x1xf32> to vector<2x128xf32>
    %503 = arith.subf %497, %502 : vector<2x128xf32>
    %c0_481 = arith.constant 0 : index
    %c0_482 = arith.constant 0 : index
    %504 = vector.load %arg10[%c0_481, %c0_482] : memref<2x128xf32, #tpu.memory_space<vmem>>, vector<2x128xf32>
    tpu.vector_store %arg10[%c0_481, %c0_482], %503 {strides = array<i32>} : memref<2x128xf32, #tpu.memory_space<vmem>>, vector<2x128xf32>,
    return
  }
  func.func @transform_0(%arg0: i32) -> (i32, i32, i32) {
    %c0_i32 = arith.constant 0 : i32
    %c0_i32_0 = arith.constant 0 : i32
    %c0_i32_1 = arith.constant 0 : i32
    %c0_i32_2 = arith.constant 0 : i32
    return %c0_i32, %c0_i32_0, %c0_i32_1 : i32, i32, i32
  }
  func.func @transform_1(%arg0: i32) -> (i32, i32) {
    %c0_i32 = arith.constant 0 : i32
    %c0_i32_0 = arith.constant 0 : i32
    %c0_i32_1 = arith.constant 0 : i32
    return %c0_i32, %c0_i32_0 : i32, i32
  }
  func.func @transform_2(%arg0: i32) -> (i32, i32) {
    %c0_i32 = arith.constant 0 : i32
    %c0_i32_0 = arith.constant 0 : i32
    %c0_i32_1 = arith.constant 0 : i32
    return %c0_i32, %c0_i32_0 : i32, i32
  }
  func.func @transform_3(%arg0: i32) -> (i32, i32, i32) {
    %c0_i32 = arith.constant 0 : i32
    %c0_i32_0 = arith.constant 0 : i32
    %c0_i32_1 = arith.constant 0 : i32
    %c0_i32_2 = arith.constant 0 : i32
    return %c0_i32, %c0_i32_0, %c0_i32_1 : i32, i32, i32
  }
  func.func @transform_4(%arg0: i32) -> (i32, i32) {
    %c0_i32 = arith.constant 0 : i32
    %c0_i32_0 = arith.constant 0 : i32
    %c0_i32_1 = arith.constant 0 : i32
    return %c0_i32, %c0_i32_0 : i32, i32
  }
  func.func @transform_6(%arg0: i32) -> (i32, i32) {
    %c0_i32 = arith.constant 0 : i32
    %c0_i32_0 = arith.constant 0 : i32
    %c0_i32_1 = arith.constant 0 : i32
    return %c0_i32, %c0_i32_0 : i32, i32
  }
  func.func @transform_8(%arg0: i32) -> (i32, i32) {
    %c0_i32 = arith.constant 0 : i32
    %c0_i32_0 = arith.constant 0 : i32
    %c0_i32_1 = arith.constant 0 : i32
    return %c0_i32, %c0_i32_0 : i32, i32
  }
  func.func @transform_9(%arg0: i32) -> (i32, i32) {
    %c0_i32 = arith.constant 0 : i32
    %c0_i32_0 = arith.constant 0 : i32
    %c0_i32_1 = arith.constant 0 : i32
    return %c0_i32, %c0_i32_0 : i32, i32
  }
}

</mosaic_0001>

<bundles_post_ra>
// kernel: lenet5_caffe_forward.1
= control target key start
LH: loop header
LB: loop body
LE: loop exit
PB: predicated region body
PF: predicated region fallthrough
CT: control target
= control target key end

     0   :  { %14 = vsyncpa [#allocation8], 0  ;;  %s21265_s0 = inlined_call_operand.vmem [shape: bf16[4,384,32], index: 0, kind: input, shape index: {}]   ;;  %s21266_s1 = inlined_call_operand.vmem [shape: bf16[32,32], index: 1, kind: input, shape index: {}]   ;;  %s21267_s2 = inlined_call_operand.vmem [shape: f32[1,32], index: 2, kind: input, shape index: {}]   ;;  %s21268_s3 = inlined_call_operand.vmem [shape: bf16[25,32,64], index: 3, kind: input, shape index: {}]   ;;  %s21269_s4 = inlined_call_operand.vmem [shape: f32[1,64], index: 4, kind: input, shape index: {}]   ;;  %s21270_s5 = inlined_call_operand.vmem [shape: bf16[16,64,512], index: 5, kind: input, shape index: {}]   ;;  %s21271_s6 = inlined_call_operand.vmem [shape: f32[1,512], index: 6, kind: input, shape index: {}]   ;;  %s21272_s7 = inlined_call_operand.vmem [shape: bf16[512,128], index: 7, kind: input, shape index: {}]   ;;  %s21273_s8 = inlined_call_operand.vmem [shape: f32[1,128], index: 8, kind: input, shape index: {}]   ;;  %s21274_s9 = inlined_call_operand.hbm [shape: f32[2,128], index: 9, kind: output, shape index: {}]  }
   0x1   :  { %v47_v0 = vld [vmem:[%s21270_s5] sm:$0xf]  ;;  %v49_v1 = vld [vmem:[%s21270_s5 + $0x10] sm:$0xf]  ;;  %v51_v2 = vld [vmem:[%s21270_s5 + $0x4] sm:$0xf] }
   0x2   :  { %48 = vst [vmem:[#allocation4] sm:$0xf] %v47_v0  ;;  %50 = vst [vmem:[#allocation4 + $0x4] sm:$0xf] %v49_v1  ;;  %v53_v3 = vld [vmem:[%s21270_s5 + $0x14] sm:$0xf] }
   0x3   :  { %v55_v4 = vld [vmem:[%s21270_s5 + $0x8] sm:$0xf]  ;;  %52 = vst [vmem:[#allocation4 + $0x8] sm:$0xf] %v51_v2  ;;  %54 = vst [vmem:[#allocation4 + $0xc] sm:$0xf] %v53_v3 }
   0x4   :  { %56 = vst [vmem:[#allocation4 + $0x10] sm:$0xf] %v55_v4  ;;  %v57_v5 = vld [vmem:[%s21270_s5 + $0x18] sm:$0xf]  ;;  %v59_v6 = vld [vmem:[%s21270_s5 + $0xc] sm:$0xf] }
   0x5   :  { %v61_v7 = vld [vmem:[%s21270_s5 + $0x1c] sm:$0xff]   ;;  %58 = vst [vmem:[#allocation4 + $0x14] sm:$0xf] %v57_v5  ;;  %60 = vst [vmem:[#allocation4 + $0x18] sm:$0xf] %v59_v6 }
   0x6   :  { %62 = vst [vmem:[#allocation4 + $0x1c] sm:$0xff] %v61_v7   ;;  %v65_v8 = vld [vmem:[%s21270_s5 + $0x30] sm:$0xf]  ;;  %v67_v9 = vld [vmem:[%s21270_s5 + $0x24] sm:$0xf]  ;;  %v77_v14 = vld [vmem:[%s21270_s5 + $0x3c] sm:$0xff]  }
   0x7   :  { %v69_v10 = vld [vmem:[%s21270_s5 + $0x34] sm:$0xf]  ;;  %66 = vst [vmem:[#allocation4 + $0x24] sm:$0xf] %v65_v8  ;;  %68 = vst [vmem:[#allocation4 + $0x28] sm:$0xf] %v67_v9 }
   0x8   :  { %70 = vst [vmem:[#allocation4 + $0x2c] sm:$0xf] %v69_v10  ;;  %v71_v11 = vld [vmem:[%s21270_s5 + $0x28] sm:$0xf]  ;;  %v73_v12 = vld [vmem:[%s21270_s5 + $0x38] sm:$0xf] }
   0x9   :  { %v75_v13 = vld [vmem:[%s21270_s5 + $0x2c] sm:$0xf]  ;;  %72 = vst [vmem:[#allocation4 + $0x30] sm:$0xf] %v71_v11  ;;  %74 = vst [vmem:[#allocation4 + $0x34] sm:$0xf] %v73_v12 }
   0xa   :  { %76 = vst [vmem:[#allocation4 + $0x38] sm:$0xf] %v75_v13  ;;  %v81_v15 = vld [vmem:[%s21270_s5 + $0x50] sm:$0xf]  ;;  %v83_v16 = vld [vmem:[%s21270_s5 + $0x44] sm:$0xf] }
   0xb   :  { %78 = vst [vmem:[#allocation4 + $0x3c] sm:$0xff] %v77_v14   ;;  %82 = vst [vmem:[#allocation4 + $0x44] sm:$0xf] %v81_v15  ;;  %v85_v17 = vld [vmem:[%s21270_s5 + $0x54] sm:$0xf]  ;;  %v93_v21 = vld [vmem:[%s21270_s5 + $0x5c] sm:$0xff]  }
   0xc   :  { %84 = vst [vmem:[#allocation4 + $0x48] sm:$0xf] %v83_v16  ;;  %v87_v18 = vld [vmem:[%s21270_s5 + $0x48] sm:$0xf]  ;;  %v89_v19 = vld [vmem:[%s21270_s5 + $0x58] sm:$0xf] }
   0xd   :  { %86 = vst [vmem:[#allocation4 + $0x4c] sm:$0xf] %v85_v17  ;;  %88 = vst [vmem:[#allocation4 + $0x50] sm:$0xf] %v87_v18  ;;  %v91_v20 = vld [vmem:[%s21270_s5 + $0x4c] sm:$0xf] }
   0xe   :  { %90 = vst [vmem:[#allocation4 + $0x54] sm:$0xf] %v89_v19  ;;  %v97_v22 = vld [vmem:[%s21270_s5 + $0x70] sm:$0xf]  ;;  %92 = vst [vmem:[#allocation4 + $0x58] sm:$0xf] %v91_v20 }
   0xf   :  { %94 = vst [vmem:[#allocation4 + $0x5c] sm:$0xff] %v93_v21   ;;  %98 = vst [vmem:[#allocation4 + $0x64] sm:$0xf] %v97_v22  ;;  %v99_v23 = vld [vmem:[%s21270_s5 + $0x64] sm:$0xf]  ;;  %v109_v28 = vld [vmem:[%s21270_s5 + $0x7c] sm:$0xff]  }
  0x10   :  { %v101_v24 = vld [vmem:[%s21270_s5 + $0x74] sm:$0xf]  ;;  %v103_v25 = vld [vmem:[%s21270_s5 + $0x68] sm:$0xf]  ;;  %100 = vst [vmem:[#allocation4 + $0x68] sm:$0xf] %v99_v23 }
  0x11   :  { %102 = vst [vmem:[#allocation4 + $0x6c] sm:$0xf] %v101_v24  ;;  %104 = vst [vmem:[#allocation4 + $0x70] sm:$0xf] %v103_v25  ;;  %v105_v26 = vld [vmem:[%s21270_s5 + $0x78] sm:$0xf] }
  0x12   :  { %v107_v27 = vld [vmem:[%s21270_s5 + $0x6c] sm:$0xf]  ;;  %106 = vst [vmem:[#allocation4 + $0x74] sm:$0xf] %v105_v26  ;;  %110 = vst [vmem:[#allocation4 + $0x7c] sm:$0xff] %v109_v28   ;;  %v125_v35 = vld [vmem:[%s21270_s5 + $0x9c] sm:$0xff]  }
  0x13   :  { %108 = vst [vmem:[#allocation4 + $0x78] sm:$0xf] %v107_v27  ;;  %v113_v29 = vld [vmem:[%s21270_s5 + $0x90] sm:$0xf]  ;;  %v115_v30 = vld [vmem:[%s21270_s5 + $0x84] sm:$0xf] }
  0x14   :  { %v117_v31 = vld [vmem:[%s21270_s5 + $0x94] sm:$0xf]  ;;  %114 = vst [vmem:[#allocation4 + $0x84] sm:$0xf] %v113_v29  ;;  %116 = vst [vmem:[#allocation4 + $0x88] sm:$0xf] %v115_v30 }
  0x15   :  { %118 = vst [vmem:[#allocation4 + $0x8c] sm:$0xf] %v117_v31  ;;  %v119_v32 = vld [vmem:[%s21270_s5 + $0x88] sm:$0xf]  ;;  %v121_v33 = vld [vmem:[%s21270_s5 + $0x98] sm:$0xf] }
  0x16   :  { %v123_v34 = vld [vmem:[%s21270_s5 + $0x8c] sm:$0xf]  ;;  %120 = vst [vmem:[#allocation4 + $0x90] sm:$0xf] %v119_v32  ;;  %122 = vst [vmem:[#allocation4 + $0x94] sm:$0xf] %v121_v33 }
  0x17   :  { %124 = vst [vmem:[#allocation4 + $0x98] sm:$0xf] %v123_v34  ;;  %v129_v36 = vld [vmem:[%s21270_s5 + $0xb0] sm:$0xf]  ;;  %v131_v37 = vld [vmem:[%s21270_s5 + $0xa4] sm:$0xf] }
  0x18   :  { %126 = vst [vmem:[#allocation4 + $0x9c] sm:$0xff] %v125_v35   ;;  %130 = vst [vmem:[#allocation4 + $0xa4] sm:$0xf] %v129_v36  ;;  %v133_v38 = vld [vmem:[%s21270_s5 + $0xb4] sm:$0xf]  ;;  %v141_v42 = vld [vmem:[%s21270_s5 + $0xbc] sm:$0xff]  }
  0x19   :  { %132 = vst [vmem:[#allocation4 + $0xa8] sm:$0xf] %v131_v37  ;;  %v135_v39 = vld [vmem:[%s21270_s5 + $0xa8] sm:$0xf]  ;;  %v137_v40 = vld [vmem:[%s21270_s5 + $0xb8] sm:$0xf] }
  0x1a   :  { %134 = vst [vmem:[#allocation4 + $0xac] sm:$0xf] %v133_v38  ;;  %136 = vst [vmem:[#allocation4 + $0xb0] sm:$0xf] %v135_v39  ;;  %v139_v41 = vld [vmem:[%s21270_s5 + $0xac] sm:$0xf] }
  0x1b   :  { %138 = vst [vmem:[#allocation4 + $0xb4] sm:$0xf] %v137_v40  ;;  %v145_v43 = vld [vmem:[%s21270_s5 + $0xd0] sm:$0xf]  ;;  %140 = vst [vmem:[#allocation4 + $0xb8] sm:$0xf] %v139_v41 }
  0x1c   :  { %142 = vst [vmem:[#allocation4 + $0xbc] sm:$0xff] %v141_v42   ;;  %146 = vst [vmem:[#allocation4 + $0xc4] sm:$0xf] %v145_v43  ;;  %v147_v44 = vld [vmem:[%s21270_s5 + $0xc4] sm:$0xf]  ;;  %v157_v49 = vld [vmem:[%s21270_s5 + $0xdc] sm:$0xff]  }
  0x1d   :  { %v149_v45 = vld [vmem:[%s21270_s5 + $0xd4] sm:$0xf]  ;;  %v151_v46 = vld [vmem:[%s21270_s5 + $0xc8] sm:$0xf]  ;;  %148 = vst [vmem:[#allocation4 + $0xc8] sm:$0xf] %v147_v44 }
  0x1e   :  { %150 = vst [vmem:[#allocation4 + $0xcc] sm:$0xf] %v149_v45  ;;  %152 = vst [vmem:[#allocation4 + $0xd0] sm:$0xf] %v151_v46  ;;  %v153_v47 = vld [vmem:[%s21270_s5 + $0xd8] sm:$0xf] }
  0x1f   :  { %v155_v48 = vld [vmem:[%s21270_s5 + $0xcc] sm:$0xf]  ;;  %154 = vst [vmem:[#allocation4 + $0xd4] sm:$0xf] %v153_v47  ;;  %158 = vst [vmem:[#allocation4 + $0xdc] sm:$0xff] %v157_v49   ;;  %v173_v56 = vld [vmem:[%s21270_s5 + $0xfc] sm:$0xff]  }
  0x20   :  { %156 = vst [vmem:[#allocation4 + $0xd8] sm:$0xf] %v155_v48  ;;  %v161_v50 = vld [vmem:[%s21270_s5 + $0xf0] sm:$0xf]  ;;  %v163_v51 = vld [vmem:[%s21270_s5 + $0xe4] sm:$0xf] }
  0x21   :  { %v165_v52 = vld [vmem:[%s21270_s5 + $0xf4] sm:$0xf]  ;;  %162 = vst [vmem:[#allocation4 + $0xe4] sm:$0xf] %v161_v50  ;;  %164 = vst [vmem:[#allocation4 + $0xe8] sm:$0xf] %v163_v51 }
  0x22   :  { %166 = vst [vmem:[#allocation4 + $0xec] sm:$0xf] %v165_v52  ;;  %v167_v53 = vld [vmem:[%s21270_s5 + $0xe8] sm:$0xf]  ;;  %v169_v54 = vld [vmem:[%s21270_s5 + $0xf8] sm:$0xf] }
  0x23   :  { %v171_v55 = vld [vmem:[%s21270_s5 + $0xec] sm:$0xf]  ;;  %168 = vst [vmem:[#allocation4 + $0xf0] sm:$0xf] %v167_v53  ;;  %170 = vst [vmem:[#allocation4 + $0xf4] sm:$0xf] %v169_v54 }
  0x24   :  { %172 = vst [vmem:[#allocation4 + $0xf8] sm:$0xf] %v171_v55  ;;  %v177_v57 = vld [vmem:[%s21270_s5 + $0x110] sm:$0xf]  ;;  %v179_v58 = vld [vmem:[%s21270_s5 + $0x104] sm:$0xf] }
  0x25   :  { %174 = vst [vmem:[#allocation4 + $0xfc] sm:$0xff] %v173_v56   ;;  %178 = vst [vmem:[#allocation4 + $0x104] sm:$0xf] %v177_v57  ;;  %v181_v59 = vld [vmem:[%s21270_s5 + $0x114] sm:$0xf]  ;;  %v189_v63 = vld [vmem:[%s21270_s5 + $0x11c] sm:$0xff]  }
  0x26   :  { %180 = vst [vmem:[#allocation4 + $0x108] sm:$0xf] %v179_v58  ;;  %v183_v60 = vld [vmem:[%s21270_s5 + $0x108] sm:$0xf]  ;;  %v185_v61 = vld [vmem:[%s21270_s5 + $0x118] sm:$0xf] }
  0x27   :  { %182 = vst [vmem:[#allocation4 + $0x10c] sm:$0xf] %v181_v59  ;;  %184 = vst [vmem:[#allocation4 + $0x110] sm:$0xf] %v183_v60  ;;  %v187_v62 = vld [vmem:[%s21270_s5 + $0x10c] sm:$0xf] }
  0x28   :  { %186 = vst [vmem:[#allocation4 + $0x114] sm:$0xf] %v185_v61  ;;  %v193_v0 = vld [vmem:[%s21270_s5 + $0x130] sm:$0xf]  ;;  %188 = vst [vmem:[#allocation4 + $0x118] sm:$0xf] %v187_v62 }
  0x29   :  { %190 = vst [vmem:[#allocation4 + $0x11c] sm:$0xff] %v189_v63   ;;  %194 = vst [vmem:[#allocation4 + $0x124] sm:$0xf] %v193_v0  ;;  %v195_v1 = vld [vmem:[%s21270_s5 + $0x124] sm:$0xf]  ;;  %v205_v6 = vld [vmem:[%s21270_s5 + $0x13c] sm:$0xff]  }
  0x2a   :  { %v197_v2 = vld [vmem:[%s21270_s5 + $0x134] sm:$0xf]  ;;  %v199_v3 = vld [vmem:[%s21270_s5 + $0x128] sm:$0xf]  ;;  %196 = vst [vmem:[#allocation4 + $0x128] sm:$0xf] %v195_v1 }
  0x2b   :  { %198 = vst [vmem:[#allocation4 + $0x12c] sm:$0xf] %v197_v2  ;;  %200 = vst [vmem:[#allocation4 + $0x130] sm:$0xf] %v199_v3  ;;  %v201_v4 = vld [vmem:[%s21270_s5 + $0x138] sm:$0xf] }
  0x2c   :  { %v203_v5 = vld [vmem:[%s21270_s5 + $0x12c] sm:$0xf]  ;;  %202 = vst [vmem:[#allocation4 + $0x134] sm:$0xf] %v201_v4  ;;  %206 = vst [vmem:[#allocation4 + $0x13c] sm:$0xff] %v205_v6   ;;  %v221_v13 = vld [vmem:[%s21270_s5 + $0x15c] sm:$0xff]  }
  0x2d   :  { %204 = vst [vmem:[#allocation4 + $0x138] sm:$0xf] %v203_v5  ;;  %v209_v7 = vld [vmem:[%s21270_s5 + $0x150] sm:$0xf]  ;;  %v211_v8 = vld [vmem:[%s21270_s5 + $0x144] sm:$0xf] }
  0x2e   :  { %v213_v9 = vld [vmem:[%s21270_s5 + $0x154] sm:$0xf]  ;;  %210 = vst [vmem:[#allocation4 + $0x144] sm:$0xf] %v209_v7  ;;  %212 = vst [vmem:[#allocation4 + $0x148] sm:$0xf] %v211_v8 }
  0x2f   :  { %214 = vst [vmem:[#allocation4 + $0x14c] sm:$0xf] %v213_v9  ;;  %v215_v10 = vld [vmem:[%s21270_s5 + $0x148] sm:$0xf]  ;;  %v217_v11 = vld [vmem:[%s21270_s5 + $0x158] sm:$0xf] }
  0x30   :  { %v219_v12 = vld [vmem:[%s21270_s5 + $0x14c] sm:$0xf]  ;;  %216 = vst [vmem:[#allocation4 + $0x150] sm:$0xf] %v215_v10  ;;  %218 = vst [vmem:[#allocation4 + $0x154] sm:$0xf] %v217_v11 }
  0x31   :  { %220 = vst [vmem:[#allocation4 + $0x158] sm:$0xf] %v219_v12  ;;  %v225_v14 = vld [vmem:[%s21270_s5 + $0x170] sm:$0xf]  ;;  %v227_v15 = vld [vmem:[%s21270_s5 + $0x164] sm:$0xf] }
  0x32   :  { %222 = vst [vmem:[#allocation4 + $0x15c] sm:$0xff] %v221_v13   ;;  %226 = vst [vmem:[#allocation4 + $0x164] sm:$0xf] %v225_v14  ;;  %v229_v16 = vld [vmem:[%s21270_s5 + $0x174] sm:$0xf]  ;;  %v237_v20 = vld [vmem:[%s21270_s5 + $0x17c] sm:$0xff]  }
  0x33   :  { %228 = vst [vmem:[#allocation4 + $0x168] sm:$0xf] %v227_v15  ;;  %v231_v17 = vld [vmem:[%s21270_s5 + $0x168] sm:$0xf]  ;;  %v233_v18 = vld [vmem:[%s21270_s5 + $0x178] sm:$0xf] }
  0x34   :  { %230 = vst [vmem:[#allocation4 + $0x16c] sm:$0xf] %v229_v16  ;;  %232 = vst [vmem:[#allocation4 + $0x170] sm:$0xf] %v231_v17  ;;  %v235_v19 = vld [vmem:[%s21270_s5 + $0x16c] sm:$0xf] }
  0x35   :  { %234 = vst [vmem:[#allocation4 + $0x174] sm:$0xf] %v233_v18  ;;  %v241_v21 = vld [vmem:[%s21270_s5 + $0x190] sm:$0xf]  ;;  %236 = vst [vmem:[#allocation4 + $0x178] sm:$0xf] %v235_v19 }
  0x36   :  { %238 = vst [vmem:[#allocation4 + $0x17c] sm:$0xff] %v237_v20   ;;  %242 = vst [vmem:[#allocation4 + $0x184] sm:$0xf] %v241_v21  ;;  %v243_v22 = vld [vmem:[%s21270_s5 + $0x184] sm:$0xf]  ;;  %v253_v27 = vld [vmem:[%s21270_s5 + $0x19c] sm:$0xff]  }
  0x37   :  { %v245_v23 = vld [vmem:[%s21270_s5 + $0x194] sm:$0xf]  ;;  %v247_v24 = vld [vmem:[%s21270_s5 + $0x188] sm:$0xf]  ;;  %244 = vst [vmem:[#allocation4 + $0x188] sm:$0xf] %v243_v22 }
  0x38   :  { %246 = vst [vmem:[#allocation4 + $0x18c] sm:$0xf] %v245_v23  ;;  %248 = vst [vmem:[#allocation4 + $0x190] sm:$0xf] %v247_v24  ;;  %v249_v25 = vld [vmem:[%s21270_s5 + $0x198] sm:$0xf] }
  0x39   :  { %v251_v26 = vld [vmem:[%s21270_s5 + $0x18c] sm:$0xf]  ;;  %250 = vst [vmem:[#allocation4 + $0x194] sm:$0xf] %v249_v25  ;;  %254 = vst [vmem:[#allocation4 + $0x19c] sm:$0xff] %v253_v27   ;;  %v269_v34 = vld [vmem:[%s21270_s5 + $0x1bc] sm:$0xff]  }
  0x3a   :  { %252 = vst [vmem:[#allocation4 + $0x198] sm:$0xf] %v251_v26  ;;  %v257_v28 = vld [vmem:[%s21270_s5 + $0x1b0] sm:$0xf]  ;;  %v259_v29 = vld [vmem:[%s21270_s5 + $0x1a4] sm:$0xf] }
  0x3b   :  { %v261_v30 = vld [vmem:[%s21270_s5 + $0x1b4] sm:$0xf]  ;;  %258 = vst [vmem:[#allocation4 + $0x1a4] sm:$0xf] %v257_v28  ;;  %260 = vst [vmem:[#allocation4 + $0x1a8] sm:$0xf] %v259_v29 }
  0x3c   :  { %262 = vst [vmem:[#allocation4 + $0x1ac] sm:$0xf] %v261_v30  ;;  %v263_v31 = vld [vmem:[%s21270_s5 + $0x1a8] sm:$0xf]  ;;  %v265_v32 = vld [vmem:[%s21270_s5 + $0x1b8] sm:$0xf] }
  0x3d   :  { %v267_v33 = vld [vmem:[%s21270_s5 + $0x1ac] sm:$0xf]  ;;  %264 = vst [vmem:[#allocation4 + $0x1b0] sm:$0xf] %v263_v31  ;;  %266 = vst [vmem:[#allocation4 + $0x1b4] sm:$0xf] %v265_v32 }
  0x3e   :  { %268 = vst [vmem:[#allocation4 + $0x1b8] sm:$0xf] %v267_v33  ;;  %v273_v35 = vld [vmem:[%s21270_s5 + $0x1d0] sm:$0xf]  ;;  %v275_v36 = vld [vmem:[%s21270_s5 + $0x1c4] sm:$0xf] }
  0x3f   :  { %270 = vst [vmem:[#allocation4 + $0x1bc] sm:$0xff] %v269_v34   ;;  %274 = vst [vmem:[#allocation4 + $0x1c4] sm:$0xf] %v273_v35  ;;  %v277_v37 = vld [vmem:[%s21270_s5 + $0x1d4] sm:$0xf]  ;;  %v285_v41 = vld [vmem:[%s21270_s5 + $0x1dc] sm:$0xff]  }
  0x40   :  { %276 = vst [vmem:[#allocation4 + $0x1c8] sm:$0xf] %v275_v36  ;;  %v279_v38 = vld [vmem:[%s21270_s5 + $0x1c8] sm:$0xf]  ;;  %v281_v39 = vld [vmem:[%s21270_s5 + $0x1d8] sm:$0xf] }
  0x41   :  { %278 = vst [vmem:[#allocation4 + $0x1cc] sm:$0xf] %v277_v37  ;;  %280 = vst [vmem:[#allocation4 + $0x1d0] sm:$0xf] %v279_v38  ;;  %v283_v40 = vld [vmem:[%s21270_s5 + $0x1cc] sm:$0xf] }
  0x42   :  { %282 = vst [vmem:[#allocation4 + $0x1d4] sm:$0xf] %v281_v39  ;;  %v289_v42 = vld [vmem:[%s21270_s5 + $0x1f0] sm:$0xf]  ;;  %284 = vst [vmem:[#allocation4 + $0x1d8] sm:$0xf] %v283_v40 }
  0x43   :  { %286 = vst [vmem:[#allocation4 + $0x1dc] sm:$0xff] %v285_v41   ;;  %290 = vst [vmem:[#allocation4 + $0x1e4] sm:$0xf] %v289_v42  ;;  %v291_v43 = vld [vmem:[%s21270_s5 + $0x1e4] sm:$0xf]  ;;  %v301_v48 = vld [vmem:[%s21270_s5 + $0x1fc] sm:$0xff]  }
  0x44   :  { %v293_v44 = vld [vmem:[%s21270_s5 + $0x1f4] sm:$0xf]  ;;  %v295_v45 = vld [vmem:[%s21270_s5 + $0x1e8] sm:$0xf]  ;;  %292 = vst [vmem:[#allocation4 + $0x1e8] sm:$0xf] %v291_v43 }
  0x45   :  { %294 = vst [vmem:[#allocation4 + $0x1ec] sm:$0xf] %v293_v44  ;;  %296 = vst [vmem:[#allocation4 + $0x1f0] sm:$0xf] %v295_v45  ;;  %v297_v46 = vld [vmem:[%s21270_s5 + $0x1f8] sm:$0xf] }
  0x46   :  { %v299_v47 = vld [vmem:[%s21270_s5 + $0x1ec] sm:$0xf]  ;;  %298 = vst [vmem:[#allocation4 + $0x1f4] sm:$0xf] %v297_v46  ;;  %302 = vst [vmem:[#allocation4 + $0x1fc] sm:$0xff] %v301_v48   ;;  %v317_v55 = vld [vmem:[%s21270_s5 + $0x21c] sm:$0xff]  }
  0x47   :  { %300 = vst [vmem:[#allocation4 + $0x1f8] sm:$0xf] %v299_v47  ;;  %v305_v49 = vld [vmem:[%s21270_s5 + $0x210] sm:$0xf]  ;;  %v307_v50 = vld [vmem:[%s21270_s5 + $0x204] sm:$0xf] }
  0x48   :  { %v309_v51 = vld [vmem:[%s21270_s5 + $0x214] sm:$0xf]  ;;  %306 = vst [vmem:[#allocation4 + $0x204] sm:$0xf] %v305_v49  ;;  %308 = vst [vmem:[#allocation4 + $0x208] sm:$0xf] %v307_v50 }
  0x49   :  { %310 = vst [vmem:[#allocation4 + $0x20c] sm:$0xf] %v309_v51  ;;  %v311_v52 = vld [vmem:[%s21270_s5 + $0x208] sm:$0xf]  ;;  %v313_v53 = vld [vmem:[%s21270_s5 + $0x218] sm:$0xf] }
  0x4a   :  { %v315_v54 = vld [vmem:[%s21270_s5 + $0x20c] sm:$0xf]  ;;  %312 = vst [vmem:[#allocation4 + $0x210] sm:$0xf] %v311_v52  ;;  %314 = vst [vmem:[#allocation4 + $0x214] sm:$0xf] %v313_v53 }
  0x4b   :  { %316 = vst [vmem:[#allocation4 + $0x218] sm:$0xf] %v315_v54  ;;  %v321_v56 = vld [vmem:[%s21270_s5 + $0x230] sm:$0xf]  ;;  %v323_v57 = vld [vmem:[%s21270_s5 + $0x224] sm:$0xf] }
  0x4c   :  { %318 = vst [vmem:[#allocation4 + $0x21c] sm:$0xff] %v317_v55   ;;  %322 = vst [vmem:[#allocation4 + $0x224] sm:$0xf] %v321_v56  ;;  %v325_v58 = vld [vmem:[%s21270_s5 + $0x234] sm:$0xf]  ;;  %v333_v62 = vld [vmem:[%s21270_s5 + $0x23c] sm:$0xff]  }
  0x4d   :  { %324 = vst [vmem:[#allocation4 + $0x228] sm:$0xf] %v323_v57  ;;  %v327_v59 = vld [vmem:[%s21270_s5 + $0x228] sm:$0xf]  ;;  %v329_v60 = vld [vmem:[%s21270_s5 + $0x238] sm:$0xf] }
  0x4e   :  { %326 = vst [vmem:[#allocation4 + $0x22c] sm:$0xf] %v325_v58  ;;  %328 = vst [vmem:[#allocation4 + $0x230] sm:$0xf] %v327_v59  ;;  %v331_v61 = vld [vmem:[%s21270_s5 + $0x22c] sm:$0xf] }
  0x4f   :  { %330 = vst [vmem:[#allocation4 + $0x234] sm:$0xf] %v329_v60  ;;  %v337_v63 = vld [vmem:[%s21270_s5 + $0x250] sm:$0xf]  ;;  %332 = vst [vmem:[#allocation4 + $0x238] sm:$0xf] %v331_v61 }
  0x50   :  { %334 = vst [vmem:[#allocation4 + $0x23c] sm:$0xff] %v333_v62   ;;  %338 = vst [vmem:[#allocation4 + $0x244] sm:$0xf] %v337_v63  ;;  %v339_v0 = vld [vmem:[%s21270_s5 + $0x244] sm:$0xf]  ;;  %v349_v5 = vld [vmem:[%s21270_s5 + $0x25c] sm:$0xff]  }
  0x51   :  { %v341_v1 = vld [vmem:[%s21270_s5 + $0x254] sm:$0xf]  ;;  %v343_v2 = vld [vmem:[%s21270_s5 + $0x248] sm:$0xf]  ;;  %340 = vst [vmem:[#allocation4 + $0x248] sm:$0xf] %v339_v0 }
  0x52   :  { %342 = vst [vmem:[#allocation4 + $0x24c] sm:$0xf] %v341_v1  ;;  %344 = vst [vmem:[#allocation4 + $0x250] sm:$0xf] %v343_v2  ;;  %v345_v3 = vld [vmem:[%s21270_s5 + $0x258] sm:$0xf] }
  0x53   :  { %v347_v4 = vld [vmem:[%s21270_s5 + $0x24c] sm:$0xf]  ;;  %346 = vst [vmem:[#allocation4 + $0x254] sm:$0xf] %v345_v3  ;;  %350 = vst [vmem:[#allocation4 + $0x25c] sm:$0xff] %v349_v5   ;;  %v365_v12 = vld [vmem:[%s21270_s5 + $0x27c] sm:$0xff]  }
  0x54   :  { %348 = vst [vmem:[#allocation4 + $0x258] sm:$0xf] %v347_v4  ;;  %v353_v6 = vld [vmem:[%s21270_s5 + $0x270] sm:$0xf]  ;;  %v355_v7 = vld [vmem:[%s21270_s5 + $0x264] sm:$0xf] }
  0x55   :  { %v357_v8 = vld [vmem:[%s21270_s5 + $0x274] sm:$0xf]  ;;  %354 = vst [vmem:[#allocation4 + $0x264] sm:$0xf] %v353_v6  ;;  %356 = vst [vmem:[#allocation4 + $0x268] sm:$0xf] %v355_v7 }
  0x56   :  { %358 = vst [vmem:[#allocation4 + $0x26c] sm:$0xf] %v357_v8  ;;  %v359_v9 = vld [vmem:[%s21270_s5 + $0x268] sm:$0xf]  ;;  %v361_v10 = vld [vmem:[%s21270_s5 + $0x278] sm:$0xf] }
  0x57   :  { %v363_v11 = vld [vmem:[%s21270_s5 + $0x26c] sm:$0xf]  ;;  %360 = vst [vmem:[#allocation4 + $0x270] sm:$0xf] %v359_v9  ;;  %362 = vst [vmem:[#allocation4 + $0x274] sm:$0xf] %v361_v10 }
  0x58   :  { %364 = vst [vmem:[#allocation4 + $0x278] sm:$0xf] %v363_v11  ;;  %v369_v13 = vld [vmem:[%s21270_s5 + $0x290] sm:$0xf]  ;;  %v371_v14 = vld [vmem:[%s21270_s5 + $0x284] sm:$0xf] }
  0x59   :  { %366 = vst [vmem:[#allocation4 + $0x27c] sm:$0xff] %v365_v12   ;;  %370 = vst [vmem:[#allocation4 + $0x284] sm:$0xf] %v369_v13  ;;  %v373_v15 = vld [vmem:[%s21270_s5 + $0x294] sm:$0xf]  ;;  %v381_v19 = vld [vmem:[%s21270_s5 + $0x29c] sm:$0xff]  }
  0x5a   :  { %372 = vst [vmem:[#allocation4 + $0x288] sm:$0xf] %v371_v14  ;;  %v375_v16 = vld [vmem:[%s21270_s5 + $0x288] sm:$0xf]  ;;  %v377_v17 = vld [vmem:[%s21270_s5 + $0x298] sm:$0xf] }
  0x5b   :  { %374 = vst [vmem:[#allocation4 + $0x28c] sm:$0xf] %v373_v15  ;;  %376 = vst [vmem:[#allocation4 + $0x290] sm:$0xf] %v375_v16  ;;  %v379_v18 = vld [vmem:[%s21270_s5 + $0x28c] sm:$0xf] }
  0x5c   :  { %378 = vst [vmem:[#allocation4 + $0x294] sm:$0xf] %v377_v17  ;;  %v385_v20 = vld [vmem:[%s21270_s5 + $0x2b0] sm:$0xf]  ;;  %380 = vst [vmem:[#allocation4 + $0x298] sm:$0xf] %v379_v18 }
  0x5d   :  { %382 = vst [vmem:[#allocation4 + $0x29c] sm:$0xff] %v381_v19   ;;  %386 = vst [vmem:[#allocation4 + $0x2a4] sm:$0xf] %v385_v20  ;;  %v387_v21 = vld [vmem:[%s21270_s5 + $0x2a4] sm:$0xf]  ;;  %v397_v26 = vld [vmem:[%s21270_s5 + $0x2bc] sm:$0xff]  }
  0x5e   :  { %v389_v22 = vld [vmem:[%s21270_s5 + $0x2b4] sm:$0xf]  ;;  %v391_v23 = vld [vmem:[%s21270_s5 + $0x2a8] sm:$0xf]  ;;  %388 = vst [vmem:[#allocation4 + $0x2a8] sm:$0xf] %v387_v21 }
  0x5f   :  { %390 = vst [vmem:[#allocation4 + $0x2ac] sm:$0xf] %v389_v22  ;;  %392 = vst [vmem:[#allocation4 + $0x2b0] sm:$0xf] %v391_v23  ;;  %v393_v24 = vld [vmem:[%s21270_s5 + $0x2b8] sm:$0xf] }
  0x60   :  { %v395_v25 = vld [vmem:[%s21270_s5 + $0x2ac] sm:$0xf]  ;;  %394 = vst [vmem:[#allocation4 + $0x2b4] sm:$0xf] %v393_v24  ;;  %398 = vst [vmem:[#allocation4 + $0x2bc] sm:$0xff] %v397_v26   ;;  %v413_v33 = vld [vmem:[%s21270_s5 + $0x2dc] sm:$0xff]  }
  0x61   :  { %396 = vst [vmem:[#allocation4 + $0x2b8] sm:$0xf] %v395_v25  ;;  %v401_v27 = vld [vmem:[%s21270_s5 + $0x2d0] sm:$0xf]  ;;  %v403_v28 = vld [vmem:[%s21270_s5 + $0x2c4] sm:$0xf] }
  0x62   :  { %v405_v29 = vld [vmem:[%s21270_s5 + $0x2d4] sm:$0xf]  ;;  %402 = vst [vmem:[#allocation4 + $0x2c4] sm:$0xf] %v401_v27  ;;  %404 = vst [vmem:[#allocation4 + $0x2c8] sm:$0xf] %v403_v28 }
  0x63   :  { %406 = vst [vmem:[#allocation4 + $0x2cc] sm:$0xf] %v405_v29  ;;  %v407_v30 = vld [vmem:[%s21270_s5 + $0x2c8] sm:$0xf]  ;;  %v409_v31 = vld [vmem:[%s21270_s5 + $0x2d8] sm:$0xf] }
  0x64   :  { %v411_v32 = vld [vmem:[%s21270_s5 + $0x2cc] sm:$0xf]  ;;  %408 = vst [vmem:[#allocation4 + $0x2d0] sm:$0xf] %v407_v30  ;;  %410 = vst [vmem:[#allocation4 + $0x2d4] sm:$0xf] %v409_v31 }
  0x65   :  { %412 = vst [vmem:[#allocation4 + $0x2d8] sm:$0xf] %v411_v32  ;;  %v417_v34 = vld [vmem:[%s21270_s5 + $0x2f0] sm:$0xf]  ;;  %v419_v35 = vld [vmem:[%s21270_s5 + $0x2e4] sm:$0xf] }
  0x66   :  { %414 = vst [vmem:[#allocation4 + $0x2dc] sm:$0xff] %v413_v33   ;;  %418 = vst [vmem:[#allocation4 + $0x2e4] sm:$0xf] %v417_v34  ;;  %v421_v36 = vld [vmem:[%s21270_s5 + $0x2f4] sm:$0xf]  ;;  %v429_v40 = vld [vmem:[%s21270_s5 + $0x2fc] sm:$0xff]  }
  0x67   :  { %420 = vst [vmem:[#allocation4 + $0x2e8] sm:$0xf] %v419_v35  ;;  %v423_v37 = vld [vmem:[%s21270_s5 + $0x2e8] sm:$0xf]  ;;  %v425_v38 = vld [vmem:[%s21270_s5 + $0x2f8] sm:$0xf] }
  0x68   :  { %422 = vst [vmem:[#allocation4 + $0x2ec] sm:$0xf] %v421_v36  ;;  %424 = vst [vmem:[#allocation4 + $0x2f0] sm:$0xf] %v423_v37  ;;  %v427_v39 = vld [vmem:[%s21270_s5 + $0x2ec] sm:$0xf] }
  0x69   :  { %426 = vst [vmem:[#allocation4 + $0x2f4] sm:$0xf] %v425_v38  ;;  %v433_v41 = vld [vmem:[%s21270_s5 + $0x310] sm:$0xf]  ;;  %428 = vst [vmem:[#allocation4 + $0x2f8] sm:$0xf] %v427_v39 }
  0x6a   :  { %430 = vst [vmem:[#allocation4 + $0x2fc] sm:$0xff] %v429_v40   ;;  %434 = vst [vmem:[#allocation4 + $0x304] sm:$0xf] %v433_v41  ;;  %v435_v42 = vld [vmem:[%s21270_s5 + $0x304] sm:$0xf]  ;;  %v445_v47 = vld [vmem:[%s21270_s5 + $0x31c] sm:$0xff]  }
  0x6b   :  { %v437_v43 = vld [vmem:[%s21270_s5 + $0x314] sm:$0xf]  ;;  %v439_v44 = vld [vmem:[%s21270_s5 + $0x308] sm:$0xf]  ;;  %436 = vst [vmem:[#allocation4 + $0x308] sm:$0xf] %v435_v42 }
  0x6c   :  { %438 = vst [vmem:[#allocation4 + $0x30c] sm:$0xf] %v437_v43  ;;  %440 = vst [vmem:[#allocation4 + $0x310] sm:$0xf] %v439_v44  ;;  %v441_v45 = vld [vmem:[%s21270_s5 + $0x318] sm:$0xf] }
  0x6d   :  { %v443_v46 = vld [vmem:[%s21270_s5 + $0x30c] sm:$0xf]  ;;  %442 = vst [vmem:[#allocation4 + $0x314] sm:$0xf] %v441_v45  ;;  %446 = vst [vmem:[#allocation4 + $0x31c] sm:$0xff] %v445_v47   ;;  %v461_v54 = vld [vmem:[%s21270_s5 + $0x33c] sm:$0xff]  }
  0x6e   :  { %444 = vst [vmem:[#allocation4 + $0x318] sm:$0xf] %v443_v46  ;;  %v449_v48 = vld [vmem:[%s21270_s5 + $0x330] sm:$0xf]  ;;  %v451_v49 = vld [vmem:[%s21270_s5 + $0x324] sm:$0xf] }
  0x6f   :  { %v453_v50 = vld [vmem:[%s21270_s5 + $0x334] sm:$0xf]  ;;  %450 = vst [vmem:[#allocation4 + $0x324] sm:$0xf] %v449_v48  ;;  %452 = vst [vmem:[#allocation4 + $0x328] sm:$0xf] %v451_v49 }
  0x70   :  { %454 = vst [vmem:[#allocation4 + $0x32c] sm:$0xf] %v453_v50  ;;  %v455_v51 = vld [vmem:[%s21270_s5 + $0x328] sm:$0xf]  ;;  %v457_v52 = vld [vmem:[%s21270_s5 + $0x338] sm:$0xf] }
  0x71   :  { %v459_v53 = vld [vmem:[%s21270_s5 + $0x32c] sm:$0xf]  ;;  %456 = vst [vmem:[#allocation4 + $0x330] sm:$0xf] %v455_v51  ;;  %458 = vst [vmem:[#allocation4 + $0x334] sm:$0xf] %v457_v52 }
  0x72   :  { %460 = vst [vmem:[#allocation4 + $0x338] sm:$0xf] %v459_v53  ;;  %v465_v55 = vld [vmem:[%s21270_s5 + $0x350] sm:$0xf]  ;;  %v467_v56 = vld [vmem:[%s21270_s5 + $0x344] sm:$0xf] }
  0x73   :  { %462 = vst [vmem:[#allocation4 + $0x33c] sm:$0xff] %v461_v54   ;;  %466 = vst [vmem:[#allocation4 + $0x344] sm:$0xf] %v465_v55  ;;  %v469_v57 = vld [vmem:[%s21270_s5 + $0x354] sm:$0xf]  ;;  %v477_v61 = vld [vmem:[%s21270_s5 + $0x35c] sm:$0xff]  }
  0x74   :  { %468 = vst [vmem:[#allocation4 + $0x348] sm:$0xf] %v467_v56  ;;  %v471_v58 = vld [vmem:[%s21270_s5 + $0x348] sm:$0xf]  ;;  %v473_v59 = vld [vmem:[%s21270_s5 + $0x358] sm:$0xf] }
  0x75   :  { %470 = vst [vmem:[#allocation4 + $0x34c] sm:$0xf] %v469_v57  ;;  %472 = vst [vmem:[#allocation4 + $0x350] sm:$0xf] %v471_v58  ;;  %v475_v60 = vld [vmem:[%s21270_s5 + $0x34c] sm:$0xf] }
  0x76   :  { %474 = vst [vmem:[#allocation4 + $0x354] sm:$0xf] %v473_v59  ;;  %v481_v62 = vld [vmem:[%s21270_s5 + $0x370] sm:$0xf]  ;;  %476 = vst [vmem:[#allocation4 + $0x358] sm:$0xf] %v475_v60 }
  0x77   :  { %478 = vst [vmem:[#allocation4 + $0x35c] sm:$0xff] %v477_v61   ;;  %482 = vst [vmem:[#allocation4 + $0x364] sm:$0xf] %v481_v62  ;;  %v483_v63 = vld [vmem:[%s21270_s5 + $0x364] sm:$0xf]  ;;  %v493_v4 = vld [vmem:[%s21270_s5 + $0x37c] sm:$0xff]  }
  0x78   :  { %v485_v0 = vld [vmem:[%s21270_s5 + $0x374] sm:$0xf]  ;;  %v487_v1 = vld [vmem:[%s21270_s5 + $0x368] sm:$0xf]  ;;  %484 = vst [vmem:[#allocation4 + $0x368] sm:$0xf] %v483_v63 }
  0x79   :  { %486 = vst [vmem:[#allocation4 + $0x36c] sm:$0xf] %v485_v0  ;;  %488 = vst [vmem:[#allocation4 + $0x370] sm:$0xf] %v487_v1  ;;  %v489_v2 = vld [vmem:[%s21270_s5 + $0x378] sm:$0xf] }
  0x7a   :  { %v491_v3 = vld [vmem:[%s21270_s5 + $0x36c] sm:$0xf]  ;;  %490 = vst [vmem:[#allocation4 + $0x374] sm:$0xf] %v489_v2  ;;  %494 = vst [vmem:[#allocation4 + $0x37c] sm:$0xff] %v493_v4   ;;  %v509_v11 = vld [vmem:[%s21270_s5 + $0x39c] sm:$0xff]  }
  0x7b   :  { %492 = vst [vmem:[#allocation4 + $0x378] sm:$0xf] %v491_v3  ;;  %v497_v5 = vld [vmem:[%s21270_s5 + $0x390] sm:$0xf]  ;;  %v499_v6 = vld [vmem:[%s21270_s5 + $0x384] sm:$0xf] }
  0x7c   :  { %v501_v7 = vld [vmem:[%s21270_s5 + $0x394] sm:$0xf]  ;;  %498 = vst [vmem:[#allocation4 + $0x384] sm:$0xf] %v497_v5  ;;  %500 = vst [vmem:[#allocation4 + $0x388] sm:$0xf] %v499_v6 }
  0x7d   :  { %502 = vst [vmem:[#allocation4 + $0x38c] sm:$0xf] %v501_v7  ;;  %v503_v8 = vld [vmem:[%s21270_s5 + $0x388] sm:$0xf]  ;;  %v505_v9 = vld [vmem:[%s21270_s5 + $0x398] sm:$0xf] }
  0x7e   :  { %v507_v10 = vld [vmem:[%s21270_s5 + $0x38c] sm:$0xf]  ;;  %504 = vst [vmem:[#allocation4 + $0x390] sm:$0xf] %v503_v8  ;;  %506 = vst [vmem:[#allocation4 + $0x394] sm:$0xf] %v505_v9 }
  0x7f   :  { %508 = vst [vmem:[#allocation4 + $0x398] sm:$0xf] %v507_v10  ;;  %v513_v12 = vld [vmem:[%s21270_s5 + $0x3b0] sm:$0xf]  ;;  %v515_v13 = vld [vmem:[%s21270_s5 + $0x3a4] sm:$0xf] }
  0x80   :  { %510 = vst [vmem:[#allocation4 + $0x39c] sm:$0xff] %v509_v11   ;;  %514 = vst [vmem:[#allocation4 + $0x3a4] sm:$0xf] %v513_v12  ;;  %v517_v14 = vld [vmem:[%s21270_s5 + $0x3b4] sm:$0xf]  ;;  %v525_v18 = vld [vmem:[%s21270_s5 + $0x3bc] sm:$0xff]  }
  0x81   :  { %516 = vst [vmem:[#allocation4 + $0x3a8] sm:$0xf] %v515_v13  ;;  %v519_v15 = vld [vmem:[%s21270_s5 + $0x3a8] sm:$0xf]  ;;  %v521_v16 = vld [vmem:[%s21270_s5 + $0x3b8] sm:$0xf] }
  0x82   :  { %518 = vst [vmem:[#allocation4 + $0x3ac] sm:$0xf] %v517_v14  ;;  %520 = vst [vmem:[#allocation4 + $0x3b0] sm:$0xf] %v519_v15  ;;  %v523_v17 = vld [vmem:[%s21270_s5 + $0x3ac] sm:$0xf] }
  0x83   :  { %522 = vst [vmem:[#allocation4 + $0x3b4] sm:$0xf] %v521_v16  ;;  %v529_v19 = vld [vmem:[%s21270_s5 + $0x3d0] sm:$0xf]  ;;  %524 = vst [vmem:[#allocation4 + $0x3b8] sm:$0xf] %v523_v17 }
  0x84   :  { %526 = vst [vmem:[#allocation4 + $0x3bc] sm:$0xff] %v525_v18   ;;  %530 = vst [vmem:[#allocation4 + $0x3c4] sm:$0xf] %v529_v19  ;;  %v531_v20 = vld [vmem:[%s21270_s5 + $0x3c4] sm:$0xf]  ;;  %v541_v25 = vld [vmem:[%s21270_s5 + $0x3dc] sm:$0xff]  }
  0x85   :  { %v533_v21 = vld [vmem:[%s21270_s5 + $0x3d4] sm:$0xf]  ;;  %v535_v22 = vld [vmem:[%s21270_s5 + $0x3c8] sm:$0xf]  ;;  %532 = vst [vmem:[#allocation4 + $0x3c8] sm:$0xf] %v531_v20 }
  0x86   :  { %534 = vst [vmem:[#allocation4 + $0x3cc] sm:$0xf] %v533_v21  ;;  %536 = vst [vmem:[#allocation4 + $0x3d0] sm:$0xf] %v535_v22  ;;  %v537_v23 = vld [vmem:[%s21270_s5 + $0x3d8] sm:$0xf] }
  0x87   :  { %v539_v24 = vld [vmem:[%s21270_s5 + $0x3cc] sm:$0xf]  ;;  %538 = vst [vmem:[#allocation4 + $0x3d4] sm:$0xf] %v537_v23  ;;  %542 = vst [vmem:[#allocation4 + $0x3dc] sm:$0xff] %v541_v25   ;;  %v557_v32 = vld [vmem:[%s21270_s5 + $0x3fc] sm:$0xff]  }
  0x88   :  { %540 = vst [vmem:[#allocation4 + $0x3d8] sm:$0xf] %v539_v24  ;;  %v545_v26 = vld [vmem:[%s21270_s5 + $0x3f0] sm:$0xf]  ;;  %v547_v27 = vld [vmem:[%s21270_s5 + $0x3e4] sm:$0xf] }
  0x89   :  { %v549_v28 = vld [vmem:[%s21270_s5 + $0x3f4] sm:$0xf]  ;;  %546 = vst [vmem:[#allocation4 + $0x3e4] sm:$0xf] %v545_v26  ;;  %548 = vst [vmem:[#allocation4 + $0x3e8] sm:$0xf] %v547_v27 }
  0x8a   :  { %550 = vst [vmem:[#allocation4 + $0x3ec] sm:$0xf] %v549_v28  ;;  %v551_v29 = vld [vmem:[%s21270_s5 + $0x3e8] sm:$0xf]  ;;  %v553_v30 = vld [vmem:[%s21270_s5 + $0x3f8] sm:$0xf] }
  0x8b   :  { %v555_v31 = vld [vmem:[%s21270_s5 + $0x3ec] sm:$0xf]  ;;  %552 = vst [vmem:[#allocation4 + $0x3f0] sm:$0xf] %v551_v29  ;;  %554 = vst [vmem:[#allocation4 + $0x3f4] sm:$0xf] %v553_v30 }
  0x8c   :  { %556 = vst [vmem:[#allocation4 + $0x3f8] sm:$0xf] %v555_v31  ;;  %v561_v33 = vld [vmem:[%s21270_s5 + $0x410] sm:$0xf]  ;;  %v563_v34 = vld [vmem:[%s21270_s5 + $0x404] sm:$0xf] }
  0x8d   :  { %558 = vst [vmem:[#allocation4 + $0x3fc] sm:$0xff] %v557_v32   ;;  %562 = vst [vmem:[#allocation4 + $0x404] sm:$0xf] %v561_v33  ;;  %v565_v35 = vld [vmem:[%s21270_s5 + $0x414] sm:$0xf]  ;;  %v573_v39 = vld [vmem:[%s21270_s5 + $0x41c] sm:$0xff]  }
  0x8e   :  { %564 = vst [vmem:[#allocation4 + $0x408] sm:$0xf] %v563_v34  ;;  %v567_v36 = vld [vmem:[%s21270_s5 + $0x408] sm:$0xf]  ;;  %v569_v37 = vld [vmem:[%s21270_s5 + $0x418] sm:$0xf] }
  0x8f   :  { %566 = vst [vmem:[#allocation4 + $0x40c] sm:$0xf] %v565_v35  ;;  %568 = vst [vmem:[#allocation4 + $0x410] sm:$0xf] %v567_v36  ;;  %v571_v38 = vld [vmem:[%s21270_s5 + $0x40c] sm:$0xf] }
  0x90   :  { %570 = vst [vmem:[#allocation4 + $0x414] sm:$0xf] %v569_v37  ;;  %v577_v40 = vld [vmem:[%s21270_s5 + $0x430] sm:$0xf]  ;;  %572 = vst [vmem:[#allocation4 + $0x418] sm:$0xf] %v571_v38 }
  0x91   :  { %574 = vst [vmem:[#allocation4 + $0x41c] sm:$0xff] %v573_v39   ;;  %578 = vst [vmem:[#allocation4 + $0x424] sm:$0xf] %v577_v40  ;;  %v579_v41 = vld [vmem:[%s21270_s5 + $0x424] sm:$0xf]  ;;  %v589_v46 = vld [vmem:[%s21270_s5 + $0x43c] sm:$0xff]  }
  0x92   :  { %v581_v42 = vld [vmem:[%s21270_s5 + $0x434] sm:$0xf]  ;;  %v583_v43 = vld [vmem:[%s21270_s5 + $0x428] sm:$0xf]  ;;  %580 = vst [vmem:[#allocation4 + $0x428] sm:$0xf] %v579_v41 }
  0x93   :  { %582 = vst [vmem:[#allocation4 + $0x42c] sm:$0xf] %v581_v42  ;;  %584 = vst [vmem:[#allocation4 + $0x430] sm:$0xf] %v583_v43  ;;  %v585_v44 = vld [vmem:[%s21270_s5 + $0x438] sm:$0xf] }
  0x94   :  { %v587_v45 = vld [vmem:[%s21270_s5 + $0x42c] sm:$0xf]  ;;  %586 = vst [vmem:[#allocation4 + $0x434] sm:$0xf] %v585_v44  ;;  %590 = vst [vmem:[#allocation4 + $0x43c] sm:$0xff] %v589_v46   ;;  %v605_v53 = vld [vmem:[%s21270_s5 + $0x45c] sm:$0xff]  }
  0x95   :  { %588 = vst [vmem:[#allocation4 + $0x438] sm:$0xf] %v587_v45  ;;  %v593_v47 = vld [vmem:[%s21270_s5 + $0x450] sm:$0xf]  ;;  %v595_v48 = vld [vmem:[%s21270_s5 + $0x444] sm:$0xf] }
  0x96   :  { %v597_v49 = vld [vmem:[%s21270_s5 + $0x454] sm:$0xf]  ;;  %594 = vst [vmem:[#allocation4 + $0x444] sm:$0xf] %v593_v47  ;;  %596 = vst [vmem:[#allocation4 + $0x448] sm:$0xf] %v595_v48 }
  0x97   :  { %598 = vst [vmem:[#allocation4 + $0x44c] sm:$0xf] %v597_v49  ;;  %v599_v50 = vld [vmem:[%s21270_s5 + $0x448] sm:$0xf]  ;;  %v601_v51 = vld [vmem:[%s21270_s5 + $0x458] sm:$0xf] }
  0x98   :  { %v603_v52 = vld [vmem:[%s21270_s5 + $0x44c] sm:$0xf]  ;;  %600 = vst [vmem:[#allocation4 + $0x450] sm:$0xf] %v599_v50  ;;  %602 = vst [vmem:[#allocation4 + $0x454] sm:$0xf] %v601_v51 }
  0x99   :  { %604 = vst [vmem:[#allocation4 + $0x458] sm:$0xf] %v603_v52  ;;  %v609_v54 = vld [vmem:[%s21270_s5 + $0x470] sm:$0xf]  ;;  %v611_v55 = vld [vmem:[%s21270_s5 + $0x464] sm:$0xf] }
  0x9a   :  { %606 = vst [vmem:[#allocation4 + $0x45c] sm:$0xff] %v605_v53   ;;  %610 = vst [vmem:[#allocation4 + $0x464] sm:$0xf] %v609_v54  ;;  %v613_v56 = vld [vmem:[%s21270_s5 + $0x474] sm:$0xf]  ;;  %v621_v60 = vld [vmem:[%s21270_s5 + $0x47c] sm:$0xff]  }
  0x9b   :  { %612 = vst [vmem:[#allocation4 + $0x468] sm:$0xf] %v611_v55  ;;  %v615_v57 = vld [vmem:[%s21270_s5 + $0x468] sm:$0xf]  ;;  %v617_v58 = vld [vmem:[%s21270_s5 + $0x478] sm:$0xf] }
  0x9c   :  { %614 = vst [vmem:[#allocation4 + $0x46c] sm:$0xf] %v613_v56  ;;  %616 = vst [vmem:[#allocation4 + $0x470] sm:$0xf] %v615_v57  ;;  %v619_v59 = vld [vmem:[%s21270_s5 + $0x46c] sm:$0xf] }
  0x9d   :  { %618 = vst [vmem:[#allocation4 + $0x474] sm:$0xf] %v617_v58  ;;  %v625_v61 = vld [vmem:[%s21270_s5 + $0x490] sm:$0xf]  ;;  %620 = vst [vmem:[#allocation4 + $0x478] sm:$0xf] %v619_v59 }
  0x9e   :  { %622 = vst [vmem:[#allocation4 + $0x47c] sm:$0xff] %v621_v60   ;;  %626 = vst [vmem:[#allocation4 + $0x484] sm:$0xf] %v625_v61  ;;  %v627_v62 = vld [vmem:[%s21270_s5 + $0x484] sm:$0xf]  ;;  %v637_v3 = vld [vmem:[%s21270_s5 + $0x49c] sm:$0xff]  }
  0x9f   :  { %v629_v63 = vld [vmem:[%s21270_s5 + $0x494] sm:$0xf]  ;;  %v631_v0 = vld [vmem:[%s21270_s5 + $0x488] sm:$0xf]  ;;  %628 = vst [vmem:[#allocation4 + $0x488] sm:$0xf] %v627_v62 }
  0xa0   :  { %630 = vst [vmem:[#allocation4 + $0x48c] sm:$0xf] %v629_v63  ;;  %632 = vst [vmem:[#allocation4 + $0x490] sm:$0xf] %v631_v0  ;;  %v633_v1 = vld [vmem:[%s21270_s5 + $0x498] sm:$0xf] }
  0xa1   :  { %v635_v2 = vld [vmem:[%s21270_s5 + $0x48c] sm:$0xf]  ;;  %634 = vst [vmem:[#allocation4 + $0x494] sm:$0xf] %v633_v1  ;;  %638 = vst [vmem:[#allocation4 + $0x49c] sm:$0xff] %v637_v3   ;;  %v653_v10 = vld [vmem:[%s21270_s5 + $0x4bc] sm:$0xff]  }
  0xa2   :  { %636 = vst [vmem:[#allocation4 + $0x498] sm:$0xf] %v635_v2  ;;  %v641_v4 = vld [vmem:[%s21270_s5 + $0x4b0] sm:$0xf]  ;;  %v643_v5 = vld [vmem:[%s21270_s5 + $0x4a4] sm:$0xf] }
  0xa3   :  { %v645_v6 = vld [vmem:[%s21270_s5 + $0x4b4] sm:$0xf]  ;;  %642 = vst [vmem:[#allocation4 + $0x4a4] sm:$0xf] %v641_v4  ;;  %644 = vst [vmem:[#allocation4 + $0x4a8] sm:$0xf] %v643_v5 }
  0xa4   :  { %646 = vst [vmem:[#allocation4 + $0x4ac] sm:$0xf] %v645_v6  ;;  %v647_v7 = vld [vmem:[%s21270_s5 + $0x4a8] sm:$0xf]  ;;  %v649_v8 = vld [vmem:[%s21270_s5 + $0x4b8] sm:$0xf] }
  0xa5   :  { %v651_v9 = vld [vmem:[%s21270_s5 + $0x4ac] sm:$0xf]  ;;  %648 = vst [vmem:[#allocation4 + $0x4b0] sm:$0xf] %v647_v7  ;;  %650 = vst [vmem:[#allocation4 + $0x4b4] sm:$0xf] %v649_v8 }
  0xa6   :  { %652 = vst [vmem:[#allocation4 + $0x4b8] sm:$0xf] %v651_v9  ;;  %v657_v11 = vld [vmem:[%s21270_s5 + $0x4d0] sm:$0xf]  ;;  %v659_v12 = vld [vmem:[%s21270_s5 + $0x4c4] sm:$0xf] }
  0xa7   :  { %654 = vst [vmem:[#allocation4 + $0x4bc] sm:$0xff] %v653_v10   ;;  %658 = vst [vmem:[#allocation4 + $0x4c4] sm:$0xf] %v657_v11  ;;  %v661_v13 = vld [vmem:[%s21270_s5 + $0x4d4] sm:$0xf]  ;;  %v669_v17 = vld [vmem:[%s21270_s5 + $0x4dc] sm:$0xff]  }
  0xa8   :  { %660 = vst [vmem:[#allocation4 + $0x4c8] sm:$0xf] %v659_v12  ;;  %v663_v14 = vld [vmem:[%s21270_s5 + $0x4c8] sm:$0xf]  ;;  %v665_v15 = vld [vmem:[%s21270_s5 + $0x4d8] sm:$0xf] }
  0xa9   :  { %662 = vst [vmem:[#allocation4 + $0x4cc] sm:$0xf] %v661_v13  ;;  %664 = vst [vmem:[#allocation4 + $0x4d0] sm:$0xf] %v663_v14  ;;  %v667_v16 = vld [vmem:[%s21270_s5 + $0x4cc] sm:$0xf] }
  0xaa   :  { %666 = vst [vmem:[#allocation4 + $0x4d4] sm:$0xf] %v665_v15  ;;  %v673_v18 = vld [vmem:[%s21270_s5 + $0x4f0] sm:$0xf]  ;;  %668 = vst [vmem:[#allocation4 + $0x4d8] sm:$0xf] %v667_v16 }
  0xab   :  { %670 = vst [vmem:[#allocation4 + $0x4dc] sm:$0xff] %v669_v17   ;;  %674 = vst [vmem:[#allocation4 + $0x4e4] sm:$0xf] %v673_v18  ;;  %v675_v19 = vld [vmem:[%s21270_s5 + $0x4e4] sm:$0xf]  ;;  %v685_v24 = vld [vmem:[%s21270_s5 + $0x4fc] sm:$0xff]  }
  0xac   :  { %v677_v20 = vld [vmem:[%s21270_s5 + $0x4f4] sm:$0xf]  ;;  %v679_v21 = vld [vmem:[%s21270_s5 + $0x4e8] sm:$0xf]  ;;  %676 = vst [vmem:[#allocation4 + $0x4e8] sm:$0xf] %v675_v19 }
  0xad   :  { %678 = vst [vmem:[#allocation4 + $0x4ec] sm:$0xf] %v677_v20  ;;  %680 = vst [vmem:[#allocation4 + $0x4f0] sm:$0xf] %v679_v21  ;;  %v681_v22 = vld [vmem:[%s21270_s5 + $0x4f8] sm:$0xf] }
  0xae   :  { %v683_v23 = vld [vmem:[%s21270_s5 + $0x4ec] sm:$0xf]  ;;  %682 = vst [vmem:[#allocation4 + $0x4f4] sm:$0xf] %v681_v22  ;;  %686 = vst [vmem:[#allocation4 + $0x4fc] sm:$0xff] %v685_v24   ;;  %v701_v31 = vld [vmem:[%s21270_s5 + $0x51c] sm:$0xff]  }
  0xaf   :  { %684 = vst [vmem:[#allocation4 + $0x4f8] sm:$0xf] %v683_v23  ;;  %v689_v25 = vld [vmem:[%s21270_s5 + $0x510] sm:$0xf]  ;;  %v691_v26 = vld [vmem:[%s21270_s5 + $0x504] sm:$0xf] }
  0xb0   :  { %v693_v27 = vld [vmem:[%s21270_s5 + $0x514] sm:$0xf]  ;;  %690 = vst [vmem:[#allocation4 + $0x504] sm:$0xf] %v689_v25  ;;  %692 = vst [vmem:[#allocation4 + $0x508] sm:$0xf] %v691_v26 }
  0xb1   :  { %694 = vst [vmem:[#allocation4 + $0x50c] sm:$0xf] %v693_v27  ;;  %v695_v28 = vld [vmem:[%s21270_s5 + $0x508] sm:$0xf]  ;;  %v697_v29 = vld [vmem:[%s21270_s5 + $0x518] sm:$0xf] }
  0xb2   :  { %v699_v30 = vld [vmem:[%s21270_s5 + $0x50c] sm:$0xf]  ;;  %696 = vst [vmem:[#allocation4 + $0x510] sm:$0xf] %v695_v28  ;;  %698 = vst [vmem:[#allocation4 + $0x514] sm:$0xf] %v697_v29 }
  0xb3   :  { %700 = vst [vmem:[#allocation4 + $0x518] sm:$0xf] %v699_v30  ;;  %v705_v32 = vld [vmem:[%s21270_s5 + $0x530] sm:$0xf]  ;;  %v707_v33 = vld [vmem:[%s21270_s5 + $0x524] sm:$0xf] }
  0xb4   :  { %702 = vst [vmem:[#allocation4 + $0x51c] sm:$0xff] %v701_v31   ;;  %706 = vst [vmem:[#allocation4 + $0x524] sm:$0xf] %v705_v32  ;;  %v709_v34 = vld [vmem:[%s21270_s5 + $0x534] sm:$0xf]  ;;  %v717_v38 = vld [vmem:[%s21270_s5 + $0x53c] sm:$0xff]  }
  0xb5   :  { %708 = vst [vmem:[#allocation4 + $0x528] sm:$0xf] %v707_v33  ;;  %v711_v35 = vld [vmem:[%s21270_s5 + $0x528] sm:$0xf]  ;;  %v713_v36 = vld [vmem:[%s21270_s5 + $0x538] sm:$0xf] }
  0xb6   :  { %710 = vst [vmem:[#allocation4 + $0x52c] sm:$0xf] %v709_v34  ;;  %712 = vst [vmem:[#allocation4 + $0x530] sm:$0xf] %v711_v35  ;;  %v715_v37 = vld [vmem:[%s21270_s5 + $0x52c] sm:$0xf] }
  0xb7   :  { %714 = vst [vmem:[#allocation4 + $0x534] sm:$0xf] %v713_v36  ;;  %v721_v39 = vld [vmem:[%s21270_s5 + $0x550] sm:$0xf]  ;;  %716 = vst [vmem:[#allocation4 + $0x538] sm:$0xf] %v715_v37 }
  0xb8   :  { %718 = vst [vmem:[#allocation4 + $0x53c] sm:$0xff] %v717_v38   ;;  %722 = vst [vmem:[#allocation4 + $0x544] sm:$0xf] %v721_v39  ;;  %v723_v40 = vld [vmem:[%s21270_s5 + $0x544] sm:$0xf]  ;;  %v733_v45 = vld [vmem:[%s21270_s5 + $0x55c] sm:$0xff]  }
  0xb9   :  { %v725_v41 = vld [vmem:[%s21270_s5 + $0x554] sm:$0xf]  ;;  %v727_v42 = vld [vmem:[%s21270_s5 + $0x548] sm:$0xf]  ;;  %724 = vst [vmem:[#allocation4 + $0x548] sm:$0xf] %v723_v40 }
  0xba   :  { %726 = vst [vmem:[#allocation4 + $0x54c] sm:$0xf] %v725_v41  ;;  %728 = vst [vmem:[#allocation4 + $0x550] sm:$0xf] %v727_v42  ;;  %v729_v43 = vld [vmem:[%s21270_s5 + $0x558] sm:$0xf] }
  0xbb   :  { %v731_v44 = vld [vmem:[%s21270_s5 + $0x54c] sm:$0xf]  ;;  %730 = vst [vmem:[#allocation4 + $0x554] sm:$0xf] %v729_v43  ;;  %734 = vst [vmem:[#allocation4 + $0x55c] sm:$0xff] %v733_v45   ;;  %v749_v52 = vld [vmem:[%s21270_s5 + $0x57c] sm:$0xff]  }
  0xbc   :  { %732 = vst [vmem:[#allocation4 + $0x558] sm:$0xf] %v731_v44  ;;  %v737_v46 = vld [vmem:[%s21270_s5 + $0x570] sm:$0xf]  ;;  %v739_v47 = vld [vmem:[%s21270_s5 + $0x564] sm:$0xf] }
  0xbd   :  { %v741_v48 = vld [vmem:[%s21270_s5 + $0x574] sm:$0xf]  ;;  %738 = vst [vmem:[#allocation4 + $0x564] sm:$0xf] %v737_v46  ;;  %740 = vst [vmem:[#allocation4 + $0x568] sm:$0xf] %v739_v47 }
  0xbe   :  { %742 = vst [vmem:[#allocation4 + $0x56c] sm:$0xf] %v741_v48  ;;  %v743_v49 = vld [vmem:[%s21270_s5 + $0x568] sm:$0xf]  ;;  %v745_v50 = vld [vmem:[%s21270_s5 + $0x578] sm:$0xf] }
  0xbf   :  { %v747_v51 = vld [vmem:[%s21270_s5 + $0x56c] sm:$0xf]  ;;  %744 = vst [vmem:[#allocation4 + $0x570] sm:$0xf] %v743_v49  ;;  %746 = vst [vmem:[#allocation4 + $0x574] sm:$0xf] %v745_v50 }
  0xc0   :  { %748 = vst [vmem:[#allocation4 + $0x578] sm:$0xf] %v747_v51  ;;  %v753_v53 = vld [vmem:[%s21270_s5 + $0x590] sm:$0xf]  ;;  %v755_v54 = vld [vmem:[%s21270_s5 + $0x584] sm:$0xf] }
  0xc1   :  { %750 = vst [vmem:[#allocation4 + $0x57c] sm:$0xff] %v749_v52   ;;  %754 = vst [vmem:[#allocation4 + $0x584] sm:$0xf] %v753_v53  ;;  %v757_v55 = vld [vmem:[%s21270_s5 + $0x594] sm:$0xf]  ;;  %v765_v59 = vld [vmem:[%s21270_s5 + $0x59c] sm:$0xff]  }
  0xc2   :  { %756 = vst [vmem:[#allocation4 + $0x588] sm:$0xf] %v755_v54  ;;  %v759_v56 = vld [vmem:[%s21270_s5 + $0x588] sm:$0xf]  ;;  %v761_v57 = vld [vmem:[%s21270_s5 + $0x598] sm:$0xf] }
  0xc3   :  { %758 = vst [vmem:[#allocation4 + $0x58c] sm:$0xf] %v757_v55  ;;  %760 = vst [vmem:[#allocation4 + $0x590] sm:$0xf] %v759_v56  ;;  %v763_v58 = vld [vmem:[%s21270_s5 + $0x58c] sm:$0xf] }
  0xc4   :  { %762 = vst [vmem:[#allocation4 + $0x594] sm:$0xf] %v761_v57  ;;  %v769_v60 = vld [vmem:[%s21270_s5 + $0x5b0] sm:$0xf]  ;;  %764 = vst [vmem:[#allocation4 + $0x598] sm:$0xf] %v763_v58 }
  0xc5   :  { %766 = vst [vmem:[#allocation4 + $0x59c] sm:$0xff] %v765_v59   ;;  %770 = vst [vmem:[#allocation4 + $0x5a4] sm:$0xf] %v769_v60  ;;  %v771_v61 = vld [vmem:[%s21270_s5 + $0x5a4] sm:$0xf]  ;;  %v781_v2 = vld [vmem:[%s21270_s5 + $0x5bc] sm:$0xff]  }
  0xc6   :  { %v773_v62 = vld [vmem:[%s21270_s5 + $0x5b4] sm:$0xf]  ;;  %v775_v63 = vld [vmem:[%s21270_s5 + $0x5a8] sm:$0xf]  ;;  %772 = vst [vmem:[#allocation4 + $0x5a8] sm:$0xf] %v771_v61 }
  0xc7   :  { %774 = vst [vmem:[#allocation4 + $0x5ac] sm:$0xf] %v773_v62  ;;  %776 = vst [vmem:[#allocation4 + $0x5b0] sm:$0xf] %v775_v63  ;;  %v777_v0 = vld [vmem:[%s21270_s5 + $0x5b8] sm:$0xf] }
  0xc8   :  { %v779_v1 = vld [vmem:[%s21270_s5 + $0x5ac] sm:$0xf]  ;;  %778 = vst [vmem:[#allocation4 + $0x5b4] sm:$0xf] %v777_v0  ;;  %782 = vst [vmem:[#allocation4 + $0x5bc] sm:$0xff] %v781_v2   ;;  %v797_v9 = vld [vmem:[%s21270_s5 + $0x5dc] sm:$0xff]  }
  0xc9   :  { %780 = vst [vmem:[#allocation4 + $0x5b8] sm:$0xf] %v779_v1  ;;  %v785_v3 = vld [vmem:[%s21270_s5 + $0x5d0] sm:$0xf]  ;;  %v787_v4 = vld [vmem:[%s21270_s5 + $0x5c4] sm:$0xf] }
  0xca   :  { %v789_v5 = vld [vmem:[%s21270_s5 + $0x5d4] sm:$0xf]  ;;  %786 = vst [vmem:[#allocation4 + $0x5c4] sm:$0xf] %v785_v3  ;;  %788 = vst [vmem:[#allocation4 + $0x5c8] sm:$0xf] %v787_v4 }
  0xcb   :  { %790 = vst [vmem:[#allocation4 + $0x5cc] sm:$0xf] %v789_v5  ;;  %v791_v6 = vld [vmem:[%s21270_s5 + $0x5c8] sm:$0xf]  ;;  %v793_v7 = vld [vmem:[%s21270_s5 + $0x5d8] sm:$0xf] }
  0xcc   :  { %v795_v8 = vld [vmem:[%s21270_s5 + $0x5cc] sm:$0xf]  ;;  %792 = vst [vmem:[#allocation4 + $0x5d0] sm:$0xf] %v791_v6  ;;  %794 = vst [vmem:[#allocation4 + $0x5d4] sm:$0xf] %v793_v7 }
  0xcd   :  { %796 = vst [vmem:[#allocation4 + $0x5d8] sm:$0xf] %v795_v8  ;;  %v801_v10 = vld [vmem:[%s21270_s5 + $0x5f0] sm:$0xf]  ;;  %v803_v11 = vld [vmem:[%s21270_s5 + $0x5e4] sm:$0xf] }
  0xce   :  { %798 = vst [vmem:[#allocation4 + $0x5dc] sm:$0xff] %v797_v9   ;;  %802 = vst [vmem:[#allocation4 + $0x5e4] sm:$0xf] %v801_v10  ;;  %v805_v12 = vld [vmem:[%s21270_s5 + $0x5f4] sm:$0xf]  ;;  %v813_v16 = vld [vmem:[%s21270_s5 + $0x5fc] sm:$0xff]  }
  0xcf   :  { %804 = vst [vmem:[#allocation4 + $0x5e8] sm:$0xf] %v803_v11  ;;  %v807_v13 = vld [vmem:[%s21270_s5 + $0x5e8] sm:$0xf]  ;;  %v809_v14 = vld [vmem:[%s21270_s5 + $0x5f8] sm:$0xf] }
  0xd0   :  { %806 = vst [vmem:[#allocation4 + $0x5ec] sm:$0xf] %v805_v12  ;;  %808 = vst [vmem:[#allocation4 + $0x5f0] sm:$0xf] %v807_v13  ;;  %v811_v15 = vld [vmem:[%s21270_s5 + $0x5ec] sm:$0xf] }
  0xd1   :  { %810 = vst [vmem:[#allocation4 + $0x5f4] sm:$0xf] %v809_v14  ;;  %v817_v17 = vld [vmem:[%s21270_s5 + $0x610] sm:$0xf]  ;;  %812 = vst [vmem:[#allocation4 + $0x5f8] sm:$0xf] %v811_v15 }
  0xd2   :  { %814 = vst [vmem:[#allocation4 + $0x5fc] sm:$0xff] %v813_v16   ;;  %818 = vst [vmem:[#allocation4 + $0x604] sm:$0xf] %v817_v17  ;;  %v819_v18 = vld [vmem:[%s21270_s5 + $0x604] sm:$0xf]  ;;  %v829_v23 = vld [vmem:[%s21270_s5 + $0x61c] sm:$0xff]  }
  0xd3   :  { %v821_v19 = vld [vmem:[%s21270_s5 + $0x614] sm:$0xf]  ;;  %v823_v20 = vld [vmem:[%s21270_s5 + $0x608] sm:$0xf]  ;;  %820 = vst [vmem:[#allocation4 + $0x608] sm:$0xf] %v819_v18 }
  0xd4   :  { %822 = vst [vmem:[#allocation4 + $0x60c] sm:$0xf] %v821_v19  ;;  %824 = vst [vmem:[#allocation4 + $0x610] sm:$0xf] %v823_v20  ;;  %v825_v21 = vld [vmem:[%s21270_s5 + $0x618] sm:$0xf] }
  0xd5   :  { %v827_v22 = vld [vmem:[%s21270_s5 + $0x60c] sm:$0xf]  ;;  %826 = vst [vmem:[#allocation4 + $0x614] sm:$0xf] %v825_v21  ;;  %830 = vst [vmem:[#allocation4 + $0x61c] sm:$0xff] %v829_v23   ;;  %v845_v30 = vld [vmem:[%s21270_s5 + $0x63c] sm:$0xff]  }
  0xd6   :  { %828 = vst [vmem:[#allocation4 + $0x618] sm:$0xf] %v827_v22  ;;  %v833_v24 = vld [vmem:[%s21270_s5 + $0x630] sm:$0xf]  ;;  %v835_v25 = vld [vmem:[%s21270_s5 + $0x624] sm:$0xf] }
  0xd7   :  { %v837_v26 = vld [vmem:[%s21270_s5 + $0x634] sm:$0xf]  ;;  %834 = vst [vmem:[#allocation4 + $0x624] sm:$0xf] %v833_v24  ;;  %836 = vst [vmem:[#allocation4 + $0x628] sm:$0xf] %v835_v25 }
  0xd8   :  { %838 = vst [vmem:[#allocation4 + $0x62c] sm:$0xf] %v837_v26  ;;  %v839_v27 = vld [vmem:[%s21270_s5 + $0x628] sm:$0xf]  ;;  %v841_v28 = vld [vmem:[%s21270_s5 + $0x638] sm:$0xf] }
  0xd9   :  { %v843_v29 = vld [vmem:[%s21270_s5 + $0x62c] sm:$0xf]  ;;  %840 = vst [vmem:[#allocation4 + $0x630] sm:$0xf] %v839_v27  ;;  %842 = vst [vmem:[#allocation4 + $0x634] sm:$0xf] %v841_v28 }
  0xda   :  { %844 = vst [vmem:[#allocation4 + $0x638] sm:$0xf] %v843_v29  ;;  %v849_v31 = vld [vmem:[%s21270_s5 + $0x650] sm:$0xf]  ;;  %v851_v32 = vld [vmem:[%s21270_s5 + $0x644] sm:$0xf] }
  0xdb   :  { %846 = vst [vmem:[#allocation4 + $0x63c] sm:$0xff] %v845_v30   ;;  %850 = vst [vmem:[#allocation4 + $0x644] sm:$0xf] %v849_v31  ;;  %v853_v33 = vld [vmem:[%s21270_s5 + $0x654] sm:$0xf]  ;;  %v861_v37 = vld [vmem:[%s21270_s5 + $0x65c] sm:$0xff]  }
  0xdc   :  { %852 = vst [vmem:[#allocation4 + $0x648] sm:$0xf] %v851_v32  ;;  %v855_v34 = vld [vmem:[%s21270_s5 + $0x648] sm:$0xf]  ;;  %v857_v35 = vld [vmem:[%s21270_s5 + $0x658] sm:$0xf] }
  0xdd   :  { %854 = vst [vmem:[#allocation4 + $0x64c] sm:$0xf] %v853_v33  ;;  %856 = vst [vmem:[#allocation4 + $0x650] sm:$0xf] %v855_v34  ;;  %v859_v36 = vld [vmem:[%s21270_s5 + $0x64c] sm:$0xf] }
  0xde   :  { %858 = vst [vmem:[#allocation4 + $0x654] sm:$0xf] %v857_v35  ;;  %v865_v38 = vld [vmem:[%s21270_s5 + $0x670] sm:$0xf]  ;;  %860 = vst [vmem:[#allocation4 + $0x658] sm:$0xf] %v859_v36 }
  0xdf   :  { %862 = vst [vmem:[#allocation4 + $0x65c] sm:$0xff] %v861_v37   ;;  %866 = vst [vmem:[#allocation4 + $0x664] sm:$0xf] %v865_v38  ;;  %v867_v39 = vld [vmem:[%s21270_s5 + $0x664] sm:$0xf]  ;;  %v877_v44 = vld [vmem:[%s21270_s5 + $0x67c] sm:$0xff]  }
  0xe0   :  { %v869_v40 = vld [vmem:[%s21270_s5 + $0x674] sm:$0xf]  ;;  %v871_v41 = vld [vmem:[%s21270_s5 + $0x668] sm:$0xf]  ;;  %868 = vst [vmem:[#allocation4 + $0x668] sm:$0xf] %v867_v39 }
  0xe1   :  { %870 = vst [vmem:[#allocation4 + $0x66c] sm:$0xf] %v869_v40  ;;  %872 = vst [vmem:[#allocation4 + $0x670] sm:$0xf] %v871_v41  ;;  %v873_v42 = vld [vmem:[%s21270_s5 + $0x678] sm:$0xf] }
  0xe2   :  { %v875_v43 = vld [vmem:[%s21270_s5 + $0x66c] sm:$0xf]  ;;  %874 = vst [vmem:[#allocation4 + $0x674] sm:$0xf] %v873_v42  ;;  %878 = vst [vmem:[#allocation4 + $0x67c] sm:$0xff] %v877_v44   ;;  %v893_v51 = vld [vmem:[%s21270_s5 + $0x69c] sm:$0xff]  }
  0xe3   :  { %876 = vst [vmem:[#allocation4 + $0x678] sm:$0xf] %v875_v43  ;;  %v881_v45 = vld [vmem:[%s21270_s5 + $0x690] sm:$0xf]  ;;  %v883_v46 = vld [vmem:[%s21270_s5 + $0x684] sm:$0xf] }
  0xe4   :  { %v885_v47 = vld [vmem:[%s21270_s5 + $0x694] sm:$0xf]  ;;  %882 = vst [vmem:[#allocation4 + $0x684] sm:$0xf] %v881_v45  ;;  %884 = vst [vmem:[#allocation4 + $0x688] sm:$0xf] %v883_v46 }
  0xe5   :  { %886 = vst [vmem:[#allocation4 + $0x68c] sm:$0xf] %v885_v47  ;;  %v887_v48 = vld [vmem:[%s21270_s5 + $0x688] sm:$0xf]  ;;  %v889_v49 = vld [vmem:[%s21270_s5 + $0x698] sm:$0xf] }
  0xe6   :  { %v891_v50 = vld [vmem:[%s21270_s5 + $0x68c] sm:$0xf]  ;;  %888 = vst [vmem:[#allocation4 + $0x690] sm:$0xf] %v887_v48  ;;  %890 = vst [vmem:[#allocation4 + $0x694] sm:$0xf] %v889_v49 }
  0xe7   :  { %892 = vst [vmem:[#allocation4 + $0x698] sm:$0xf] %v891_v50  ;;  %v897_v52 = vld [vmem:[%s21270_s5 + $0x6b0] sm:$0xf]  ;;  %v899_v53 = vld [vmem:[%s21270_s5 + $0x6a4] sm:$0xf] }
  0xe8   :  { %894 = vst [vmem:[#allocation4 + $0x69c] sm:$0xff] %v893_v51   ;;  %898 = vst [vmem:[#allocation4 + $0x6a4] sm:$0xf] %v897_v52  ;;  %v901_v54 = vld [vmem:[%s21270_s5 + $0x6b4] sm:$0xf]  ;;  %v909_v58 = vld [vmem:[%s21270_s5 + $0x6bc] sm:$0xff]  }
  0xe9   :  { %900 = vst [vmem:[#allocation4 + $0x6a8] sm:$0xf] %v899_v53  ;;  %v903_v55 = vld [vmem:[%s21270_s5 + $0x6a8] sm:$0xf]  ;;  %v905_v56 = vld [vmem:[%s21270_s5 + $0x6b8] sm:$0xf] }
  0xea   :  { %902 = vst [vmem:[#allocation4 + $0x6ac] sm:$0xf] %v901_v54  ;;  %904 = vst [vmem:[#allocation4 + $0x6b0] sm:$0xf] %v903_v55  ;;  %v907_v57 = vld [vmem:[%s21270_s5 + $0x6ac] sm:$0xf] }
  0xeb   :  { %906 = vst [vmem:[#allocation4 + $0x6b4] sm:$0xf] %v905_v56  ;;  %v913_v59 = vld [vmem:[%s21270_s5 + $0x6d0] sm:$0xf]  ;;  %908 = vst [vmem:[#allocation4 + $0x6b8] sm:$0xf] %v907_v57 }
  0xec   :  { %910 = vst [vmem:[#allocation4 + $0x6bc] sm:$0xff] %v909_v58   ;;  %914 = vst [vmem:[#allocation4 + $0x6c4] sm:$0xf] %v913_v59  ;;  %v915_v60 = vld [vmem:[%s21270_s5 + $0x6c4] sm:$0xf]  ;;  %v925_v1 = vld [vmem:[%s21270_s5 + $0x6dc] sm:$0xff]  }
  0xed   :  { %v917_v61 = vld [vmem:[%s21270_s5 + $0x6d4] sm:$0xf]  ;;  %v919_v62 = vld [vmem:[%s21270_s5 + $0x6c8] sm:$0xf]  ;;  %916 = vst [vmem:[#allocation4 + $0x6c8] sm:$0xf] %v915_v60 }
  0xee   :  { %918 = vst [vmem:[#allocation4 + $0x6cc] sm:$0xf] %v917_v61  ;;  %920 = vst [vmem:[#allocation4 + $0x6d0] sm:$0xf] %v919_v62  ;;  %v921_v63 = vld [vmem:[%s21270_s5 + $0x6d8] sm:$0xf] }
  0xef   :  { %v923_v0 = vld [vmem:[%s21270_s5 + $0x6cc] sm:$0xf]  ;;  %922 = vst [vmem:[#allocation4 + $0x6d4] sm:$0xf] %v921_v63  ;;  %926 = vst [vmem:[#allocation4 + $0x6dc] sm:$0xff] %v925_v1   ;;  %v941_v8 = vld [vmem:[%s21270_s5 + $0x6fc] sm:$0xff]  }
  0xf0   :  { %924 = vst [vmem:[#allocation4 + $0x6d8] sm:$0xf] %v923_v0  ;;  %v929_v2 = vld [vmem:[%s21270_s5 + $0x6f0] sm:$0xf]  ;;  %v931_v3 = vld [vmem:[%s21270_s5 + $0x6e4] sm:$0xf] }
  0xf1   :  { %v933_v4 = vld [vmem:[%s21270_s5 + $0x6f4] sm:$0xf]  ;;  %930 = vst [vmem:[#allocation4 + $0x6e4] sm:$0xf] %v929_v2  ;;  %932 = vst [vmem:[#allocation4 + $0x6e8] sm:$0xf] %v931_v3 }
  0xf2   :  { %934 = vst [vmem:[#allocation4 + $0x6ec] sm:$0xf] %v933_v4  ;;  %v935_v5 = vld [vmem:[%s21270_s5 + $0x6e8] sm:$0xf]  ;;  %v937_v6 = vld [vmem:[%s21270_s5 + $0x6f8] sm:$0xf] }
  0xf3   :  { %v939_v7 = vld [vmem:[%s21270_s5 + $0x6ec] sm:$0xf]  ;;  %936 = vst [vmem:[#allocation4 + $0x6f0] sm:$0xf] %v935_v5  ;;  %938 = vst [vmem:[#allocation4 + $0x6f4] sm:$0xf] %v937_v6 }
  0xf4   :  { %940 = vst [vmem:[#allocation4 + $0x6f8] sm:$0xf] %v939_v7  ;;  %v945_v9 = vld [vmem:[%s21270_s5 + $0x710] sm:$0xf]  ;;  %v947_v10 = vld [vmem:[%s21270_s5 + $0x704] sm:$0xf] }
  0xf5   :  { %942 = vst [vmem:[#allocation4 + $0x6fc] sm:$0xff] %v941_v8   ;;  %946 = vst [vmem:[#allocation4 + $0x704] sm:$0xf] %v945_v9  ;;  %v949_v11 = vld [vmem:[%s21270_s5 + $0x714] sm:$0xf]  ;;  %v957_v15 = vld [vmem:[%s21270_s5 + $0x71c] sm:$0xff]  }
  0xf6   :  { %948 = vst [vmem:[#allocation4 + $0x708] sm:$0xf] %v947_v10  ;;  %v951_v12 = vld [vmem:[%s21270_s5 + $0x708] sm:$0xf]  ;;  %v953_v13 = vld [vmem:[%s21270_s5 + $0x718] sm:$0xf] }
  0xf7   :  { %950 = vst [vmem:[#allocation4 + $0x70c] sm:$0xf] %v949_v11  ;;  %952 = vst [vmem:[#allocation4 + $0x710] sm:$0xf] %v951_v12  ;;  %v955_v14 = vld [vmem:[%s21270_s5 + $0x70c] sm:$0xf] }
  0xf8   :  { %954 = vst [vmem:[#allocation4 + $0x714] sm:$0xf] %v953_v13  ;;  %v961_v16 = vld [vmem:[%s21270_s5 + $0x730] sm:$0xf]  ;;  %956 = vst [vmem:[#allocation4 + $0x718] sm:$0xf] %v955_v14 }
  0xf9   :  { %958 = vst [vmem:[#allocation4 + $0x71c] sm:$0xff] %v957_v15   ;;  %962 = vst [vmem:[#allocation4 + $0x724] sm:$0xf] %v961_v16  ;;  %v963_v17 = vld [vmem:[%s21270_s5 + $0x724] sm:$0xf]  ;;  %v973_v22 = vld [vmem:[%s21270_s5 + $0x73c] sm:$0xff]  }
  0xfa   :  { %v965_v18 = vld [vmem:[%s21270_s5 + $0x734] sm:$0xf]  ;;  %v967_v19 = vld [vmem:[%s21270_s5 + $0x728] sm:$0xf]  ;;  %964 = vst [vmem:[#allocation4 + $0x728] sm:$0xf] %v963_v17 }
  0xfb   :  { %966 = vst [vmem:[#allocation4 + $0x72c] sm:$0xf] %v965_v18  ;;  %968 = vst [vmem:[#allocation4 + $0x730] sm:$0xf] %v967_v19  ;;  %v969_v20 = vld [vmem:[%s21270_s5 + $0x738] sm:$0xf] }
  0xfc   :  { %v971_v21 = vld [vmem:[%s21270_s5 + $0x72c] sm:$0xf]  ;;  %970 = vst [vmem:[#allocation4 + $0x734] sm:$0xf] %v969_v20  ;;  %974 = vst [vmem:[#allocation4 + $0x73c] sm:$0xff] %v973_v22   ;;  %v989_v29 = vld [vmem:[%s21270_s5 + $0x75c] sm:$0xff]  }
  0xfd   :  { %972 = vst [vmem:[#allocation4 + $0x738] sm:$0xf] %v971_v21  ;;  %v977_v23 = vld [vmem:[%s21270_s5 + $0x750] sm:$0xf]  ;;  %v979_v24 = vld [vmem:[%s21270_s5 + $0x744] sm:$0xf] }
  0xfe   :  { %v981_v25 = vld [vmem:[%s21270_s5 + $0x754] sm:$0xf]  ;;  %978 = vst [vmem:[#allocation4 + $0x744] sm:$0xf] %v977_v23  ;;  %980 = vst [vmem:[#allocation4 + $0x748] sm:$0xf] %v979_v24 }
  0xff   :  { %982 = vst [vmem:[#allocation4 + $0x74c] sm:$0xf] %v981_v25  ;;  %v983_v26 = vld [vmem:[%s21270_s5 + $0x748] sm:$0xf]  ;;  %v985_v27 = vld [vmem:[%s21270_s5 + $0x758] sm:$0xf] }
 0x100   :  { %v987_v28 = vld [vmem:[%s21270_s5 + $0x74c] sm:$0xf]  ;;  %984 = vst [vmem:[#allocation4 + $0x750] sm:$0xf] %v983_v26  ;;  %986 = vst [vmem:[#allocation4 + $0x754] sm:$0xf] %v985_v27 }
 0x101   :  { %988 = vst [vmem:[#allocation4 + $0x758] sm:$0xf] %v987_v28  ;;  %v993_v30 = vld [vmem:[%s21270_s5 + $0x770] sm:$0xf]  ;;  %v995_v31 = vld [vmem:[%s21270_s5 + $0x764] sm:$0xf] }
 0x102   :  { %990 = vst [vmem:[#allocation4 + $0x75c] sm:$0xff] %v989_v29   ;;  %994 = vst [vmem:[#allocation4 + $0x764] sm:$0xf] %v993_v30  ;;  %v997_v32 = vld [vmem:[%s21270_s5 + $0x774] sm:$0xf]  ;;  %v1005_v36 = vld [vmem:[%s21270_s5 + $0x77c] sm:$0xff]  }
 0x103   :  { %996 = vst [vmem:[#allocation4 + $0x768] sm:$0xf] %v995_v31  ;;  %v999_v33 = vld [vmem:[%s21270_s5 + $0x768] sm:$0xf]  ;;  %v1001_v34 = vld [vmem:[%s21270_s5 + $0x778] sm:$0xf] }
 0x104   :  { %998 = vst [vmem:[#allocation4 + $0x76c] sm:$0xf] %v997_v32  ;;  %1000 = vst [vmem:[#allocation4 + $0x770] sm:$0xf] %v999_v33  ;;  %v1003_v35 = vld [vmem:[%s21270_s5 + $0x76c] sm:$0xf] }
 0x105   :  { %1002 = vst [vmem:[#allocation4 + $0x774] sm:$0xf] %v1001_v34  ;;  %v1009_v37 = vld [vmem:[%s21270_s5 + $0x790] sm:$0xf]  ;;  %1004 = vst [vmem:[#allocation4 + $0x778] sm:$0xf] %v1003_v35 }
 0x106   :  { %1006 = vst [vmem:[#allocation4 + $0x77c] sm:$0xff] %v1005_v36   ;;  %1010 = vst [vmem:[#allocation4 + $0x784] sm:$0xf] %v1009_v37  ;;  %v1011_v38 = vld [vmem:[%s21270_s5 + $0x784] sm:$0xf]  ;;  %v1021_v43 = vld [vmem:[%s21270_s5 + $0x79c] sm:$0xff]  }
 0x107   :  { %v1013_v39 = vld [vmem:[%s21270_s5 + $0x794] sm:$0xf]  ;;  %v1015_v40 = vld [vmem:[%s21270_s5 + $0x788] sm:$0xf]  ;;  %1012 = vst [vmem:[#allocation4 + $0x788] sm:$0xf] %v1011_v38 }
 0x108   :  { %1014 = vst [vmem:[#allocation4 + $0x78c] sm:$0xf] %v1013_v39  ;;  %1016 = vst [vmem:[#allocation4 + $0x790] sm:$0xf] %v1015_v40  ;;  %v1017_v41 = vld [vmem:[%s21270_s5 + $0x798] sm:$0xf] }
 0x109   :  { %v1019_v42 = vld [vmem:[%s21270_s5 + $0x78c] sm:$0xf]  ;;  %1018 = vst [vmem:[#allocation4 + $0x794] sm:$0xf] %v1017_v41  ;;  %1022 = vst [vmem:[#allocation4 + $0x79c] sm:$0xff] %v1021_v43   ;;  %v1037_v50 = vld [vmem:[%s21270_s5 + $0x7bc] sm:$0xff]  }
 0x10a   :  { %1020 = vst [vmem:[#allocation4 + $0x798] sm:$0xf] %v1019_v42  ;;  %v1025_v44 = vld [vmem:[%s21270_s5 + $0x7b0] sm:$0xf]  ;;  %v1027_v45 = vld [vmem:[%s21270_s5 + $0x7a4] sm:$0xf] }
 0x10b   :  { %v1029_v46 = vld [vmem:[%s21270_s5 + $0x7b4] sm:$0xf]  ;;  %1026 = vst [vmem:[#allocation4 + $0x7a4] sm:$0xf] %v1025_v44  ;;  %1028 = vst [vmem:[#allocation4 + $0x7a8] sm:$0xf] %v1027_v45 }
 0x10c   :  { %1030 = vst [vmem:[#allocation4 + $0x7ac] sm:$0xf] %v1029_v46  ;;  %v1031_v47 = vld [vmem:[%s21270_s5 + $0x7a8] sm:$0xf]  ;;  %v1033_v48 = vld [vmem:[%s21270_s5 + $0x7b8] sm:$0xf] }
 0x10d   :  { %v1035_v49 = vld [vmem:[%s21270_s5 + $0x7ac] sm:$0xf]  ;;  %1032 = vst [vmem:[#allocation4 + $0x7b0] sm:$0xf] %v1031_v47  ;;  %1034 = vst [vmem:[#allocation4 + $0x7b4] sm:$0xf] %v1033_v48 }
 0x10e   :  { %1036 = vst [vmem:[#allocation4 + $0x7b8] sm:$0xf] %v1035_v49  ;;  %v1041_v51 = vld [vmem:[%s21270_s5 + $0x7d0] sm:$0xf]  ;;  %v1043_v52 = vld [vmem:[%s21270_s5 + $0x7c4] sm:$0xf] }
 0x10f   :  { %1038 = vst [vmem:[#allocation4 + $0x7bc] sm:$0xff] %v1037_v50   ;;  %1042 = vst [vmem:[#allocation4 + $0x7c4] sm:$0xf] %v1041_v51  ;;  %v1045_v53 = vld [vmem:[%s21270_s5 + $0x7d4] sm:$0xf]  ;;  %v1053_v57 = vld [vmem:[%s21270_s5 + $0x7dc] sm:$0xff]  }
 0x110   :  { %1044 = vst [vmem:[#allocation4 + $0x7c8] sm:$0xf] %v1043_v52  ;;  %v1047_v54 = vld [vmem:[%s21270_s5 + $0x7c8] sm:$0xf]  ;;  %v1049_v55 = vld [vmem:[%s21270_s5 + $0x7d8] sm:$0xf] }
 0x111   :  { %1046 = vst [vmem:[#allocation4 + $0x7cc] sm:$0xf] %v1045_v53  ;;  %1048 = vst [vmem:[#allocation4 + $0x7d0] sm:$0xf] %v1047_v54  ;;  %v1051_v56 = vld [vmem:[%s21270_s5 + $0x7cc] sm:$0xf] }
 0x112   :  { %1050 = vst [vmem:[#allocation4 + $0x7d4] sm:$0xf] %v1049_v55  ;;  %v1057_v58 = vld [vmem:[%s21270_s5 + $0x7f0] sm:$0xf]  ;;  %1052 = vst [vmem:[#allocation4 + $0x7d8] sm:$0xf] %v1051_v56 }
 0x113   :  { %1054 = vst [vmem:[#allocation4 + $0x7dc] sm:$0xff] %v1053_v57   ;;  %1058 = vst [vmem:[#allocation4 + $0x7e4] sm:$0xf] %v1057_v58  ;;  %v1059_v59 = vld [vmem:[%s21270_s5 + $0x7e4] sm:$0xf] }
 0x114   :  { %v1061_v60 = vld [vmem:[%s21270_s5 + $0x7f4] sm:$0xf]  ;;  %v1063_v61 = vld [vmem:[%s21270_s5 + $0x7e8] sm:$0xf]  ;;  %1060 = vst [vmem:[#allocation4 + $0x7e8] sm:$0xf] %v1059_v59 }
 0x115   :  { %1062 = vst [vmem:[#allocation4 + $0x7ec] sm:$0xf] %v1061_v60  ;;  %1064 = vst [vmem:[#allocation4 + $0x7f0] sm:$0xf] %v1063_v61  ;;  %v1065_v62 = vld [vmem:[%s21270_s5 + $0x7f8] sm:$0xf] }
 0x116   :  { %v1067_v63 = vld [vmem:[%s21270_s5 + $0x7ec] sm:$0xf]  ;;  %v1069_v0 = vld [vmem:[%s21270_s5 + $0x7fc] sm:$0xf]  ;;  %1066 = vst [vmem:[#allocation4 + $0x7f4] sm:$0xf] %v1065_v62 }
 0x117   :  { %1068 = vst [vmem:[#allocation4 + $0x7f8] sm:$0xf] %v1067_v63  ;;  %1070 = vst [vmem:[#allocation4 + $0x7fc] sm:$0xf] %v1069_v0 }
 0x118   :  { %4206 = vsyncadd [#allocation6], 32768  ;;  %v18757_v1 = vld [vmem:[%s21272_s7] sm:$0xff]  ;;  %v18762_v2 = vld [vmem:[%s21272_s7 + $0x8] sm:$0xff] }
 0x119   :  { %21275 = vst [vmem:[#allocation14_spill] sm:$0xff] %v18757_v1  ;;  %21276 = vst [vmem:[#allocation15_spill] sm:$0xff] %v18762_v2  ;;  %v18767_v3 = vld [vmem:[%s21272_s7 + $0x10] sm:$0xff]  ;;  %v18772_v4 = vld [vmem:[%s21272_s7 + $0x18] sm:$0xff] }
 0x11a   :  { %21277 = vst [vmem:[#allocation16_spill] sm:$0xff] %v18767_v3  ;;  %21278 = vst [vmem:[#allocation17_spill] sm:$0xff] %v18772_v4  ;;  %v18777_v5 = vld [vmem:[%s21272_s7 + $0x20] sm:$0xff]  ;;  %v18782_v6 = vld [vmem:[%s21272_s7 + $0x28] sm:$0xff] }
 0x11b   :  { %21279 = vst [vmem:[#allocation18_spill] sm:$0xff] %v18777_v5  ;;  %21280 = vst [vmem:[#allocation19_spill] sm:$0xff] %v18782_v6  ;;  %v18787_v7 = vld [vmem:[%s21272_s7 + $0x30] sm:$0xff]  ;;  %v18792_v8 = vld [vmem:[%s21272_s7 + $0x38] sm:$0xff] }
 0x11c   :  { %21281 = vst [vmem:[#allocation20_spill] sm:$0xff] %v18787_v7  ;;  %21282 = vst [vmem:[#allocation21_spill] sm:$0xff] %v18792_v8  ;;  %v18797_v9 = vld [vmem:[%s21272_s7 + $0x40] sm:$0xff]  ;;  %v18802_v10 = vld [vmem:[%s21272_s7 + $0x48] sm:$0xff] }
 0x11d   :  { %21283 = vst [vmem:[#allocation22_spill] sm:$0xff] %v18797_v9  ;;  %21284 = vst [vmem:[#allocation23_spill] sm:$0xff] %v18802_v10  ;;  %v18807_v11 = vld [vmem:[%s21272_s7 + $0x50] sm:$0xff]  ;;  %v18812_v12 = vld [vmem:[%s21272_s7 + $0x58] sm:$0xff] }
 0x11e   :  { %21285 = vst [vmem:[#allocation24_spill] sm:$0xff] %v18807_v11  ;;  %21286 = vst [vmem:[#allocation25_spill] sm:$0xff] %v18812_v12  ;;  %v18817_v13 = vld [vmem:[%s21272_s7 + $0x60] sm:$0xff]  ;;  %v18822_v14 = vld [vmem:[%s21272_s7 + $0x68] sm:$0xff] }
 0x11f   :  { %21287 = vst [vmem:[#allocation26_spill] sm:$0xff] %v18817_v13  ;;  %21288 = vst [vmem:[#allocation27_spill] sm:$0xff] %v18822_v14  ;;  %v18827_v15 = vld [vmem:[%s21272_s7 + $0x70] sm:$0xff]  ;;  %v18832_v16 = vld [vmem:[%s21272_s7 + $0x78] sm:$0xff] }
 0x120   :  { %21289 = vst [vmem:[#allocation28_spill] sm:$0xff] %v18827_v15  ;;  %21290 = vst [vmem:[#allocation29_spill] sm:$0xff] %v18832_v16  ;;  %v18837_v17 = vld [vmem:[%s21272_s7 + $0x80] sm:$0xff]  ;;  %v18842_v18 = vld [vmem:[%s21272_s7 + $0x88] sm:$0xff] }
 0x121   :  { %21291 = vst [vmem:[#allocation30_spill] sm:$0xff] %v18837_v17  ;;  %21292 = vst [vmem:[#allocation31_spill] sm:$0xff] %v18842_v18  ;;  %v18847_v19 = vld [vmem:[%s21272_s7 + $0x90] sm:$0xff]  ;;  %v18852_v20 = vld [vmem:[%s21272_s7 + $0x98] sm:$0xff] }
 0x122   :  { %21293 = vst [vmem:[#allocation32_spill] sm:$0xff] %v18847_v19  ;;  %21294 = vst [vmem:[#allocation33_spill] sm:$0xff] %v18852_v20  ;;  %v18857_v21 = vld [vmem:[%s21272_s7 + $0xa0] sm:$0xff]  ;;  %v18862_v22 = vld [vmem:[%s21272_s7 + $0xa8] sm:$0xff] }
 0x123   :  { %21295 = vst [vmem:[#allocation34_spill] sm:$0xff] %v18857_v21  ;;  %21296 = vst [vmem:[#allocation35_spill] sm:$0xff] %v18862_v22  ;;  %v18867_v23 = vld [vmem:[%s21272_s7 + $0xb0] sm:$0xff]  ;;  %v18872_v24 = vld [vmem:[%s21272_s7 + $0xb8] sm:$0xff] }
 0x124   :  { %21297 = vst [vmem:[#allocation36_spill] sm:$0xff] %v18867_v23  ;;  %21298 = vst [vmem:[#allocation37_spill] sm:$0xff] %v18872_v24  ;;  %v18877_v25 = vld [vmem:[%s21272_s7 + $0xc0] sm:$0xff]  ;;  %v18882_v26 = vld [vmem:[%s21272_s7 + $0xc8] sm:$0xff] }
 0x125   :  { %21299 = vst [vmem:[#allocation38_spill] sm:$0xff] %v18877_v25  ;;  %21300 = vst [vmem:[#allocation39_spill] sm:$0xff] %v18882_v26  ;;  %v18887_v27 = vld [vmem:[%s21272_s7 + $0xd0] sm:$0xff]  ;;  %v18892_v28 = vld [vmem:[%s21272_s7 + $0xd8] sm:$0xff] }
 0x126   :  { %21301 = vst [vmem:[#allocation40_spill] sm:$0xff] %v18887_v27  ;;  %21302 = vst [vmem:[#allocation41_spill] sm:$0xff] %v18892_v28  ;;  %v18897_v29 = vld [vmem:[%s21272_s7 + $0xe0] sm:$0xff]  ;;  %v18902_v30 = vld [vmem:[%s21272_s7 + $0xe8] sm:$0xff] }
 0x127   :  { %21303 = vst [vmem:[#allocation42_spill] sm:$0xff] %v18897_v29  ;;  %21304 = vst [vmem:[#allocation43_spill] sm:$0xff] %v18902_v30  ;;  %v18907_v31 = vld [vmem:[%s21272_s7 + $0xf0] sm:$0xff]  ;;  %v18912_v32 = vld [vmem:[%s21272_s7 + $0xf8] sm:$0xff] }
 0x128   :  { %21305 = vst [vmem:[#allocation44_spill] sm:$0xff] %v18907_v31  ;;  %21306 = vst [vmem:[#allocation45_spill] sm:$0xff] %v18912_v32 }
 0x129   :  { %4311 = vsyncadd [#allocation6 + $0x1], 4096  ;;  %v18917_v33 = vld [vmem:[%s21266_s1] sm:$0xff]   ;;  %v18922_v34 = vld [vmem:[%s21266_s1 + $0x8] sm:$0xff]   ;;  %vm4413_vm0 = vcmask 261120   ;;  %vm8746_vm4 = vcmask 1042432  }
 0x12a   :  { %15854 = vmatprep.subr.bf16.mxu1 %v18917_v33  ;;  %v16970_v35 = vld [vmem:[%s21265_s0] sm:$0xff]   ;;  %15966 = vmatprep.subr.bf16.mxu0 %v18917_v33  ;;  %v16971_v36 = vld [vmem:[%s21265_s0 + $0x8] sm:$0xff]   ;;  %v16972_v37 = vld [vmem:[%s21265_s0 + $0x10] sm:$0xff]   ;;  %vm7501_vm1 = vsmask.f32 3328  ;;  %vm8747_vm5 = vcmask 1046532  }
 0x12b   :  { %15855 = vmatpush3.bf16.msra.mxu1 %v18917_v33  ;;  %15967 = vmatpush3.bf16.msra.mxu0 %v18917_v33  ;;  %v16973_v38 = vld [vmem:[%s21265_s0 + $0x18] sm:$0xff]   ;;  %v16974_v39 = vld [vmem:[%s21265_s0 + $0x20] sm:$0xff]   ;;  %v16975_v40 = vld [vmem:[%s21265_s0 + $0x28] sm:$0xff]   ;;  %vm7502_vm2 = vsmask.f32 7440  ;;  %vm11092_vm10 = vcmask 1041408  }
 0x12c   :  { %15856 = vmatprep.subr.bf16.mxu1 %v18922_v34  ;;  %15858 = vmatprep.mubr.msk.bf16.mxu1 %vm4413_vm0, %v16970_v35  ;;  %v16976_v41 = vld [vmem:[%s21265_s0 + $0x30] sm:$0xff]   ;;  %v16977_v42 = vld [vmem:[%s21265_s0 + $0x38] sm:$0xff]   ;;  %v16978_v43 = vld [vmem:[%s21265_s0 + $0x40] sm:$0xff]   ;;  %vm9751_vm7 = vsmask.f32 2304  ;;  %vm11093_vm11 = vcmask 1045508  }
 0x12d   :  { %15968 = vmatprep.subr.bf16.mxu0 %v18922_v34  ;;  %v16979_v44 = vld [vmem:[%s21265_s0 + $0x48] sm:$0xff]   ;;  %v16980_v45 = vld [vmem:[%s21265_s0 + $0x50] sm:$0xff]   ;;  %v16981_v46 = vld [vmem:[%s21265_s0 + $0x58] sm:$0xff]   ;;  %vm9752_vm8 = vsmask.f32 6416  ;;  %vm12032_vm13 = vcmask 523264  }
 0x12e   :  { %v16982_v47 = vld [vmem:[%s21265_s0 + $0xc0] sm:$0xff]   ;;  %v16983_v48 = vld [vmem:[%s21265_s0 + $0xc8] sm:$0xff]   ;;  %v16984_v49 = vld [vmem:[%s21265_s0 + $0xd0] sm:$0xff]  }
 0x12f   :  { %15857 = vmatpush3.bf16.msra.mxu1 %v18922_v34  ;;  %15969 = vmatpush3.bf16.msra.mxu0 %v18922_v34  ;;  %v17016_v50 = vld [vmem:[%s21265_s0 + $0x60] sm:$0xff]   ;;  %v17017_v51 = vld [vmem:[%s21265_s0 + $0x68] sm:$0xff]   ;;  %v16985_v52 = vld [vmem:[%s21265_s0 + $0xd8] sm:$0xff]  }
 0x130   :  { %15882 = vmatprep.subr.bf16.mxu1 %v18917_v33  ;;  %16022 = vmatprep.subr.bf16.mxu0 %v18917_v33  ;;  %v16986_v53 = vld [vmem:[%s21265_s0 + $0xe0] sm:$0xff]   ;;  %v17020_v54 = vld [vmem:[%s21265_s0 + $0x70] sm:$0xff]   ;;  %v17021_v55 = vld [vmem:[%s21265_s0 + $0x78] sm:$0xff]  }
 0x131   :  { %15970 = vmatprep.mubr.msk.bf16.mxu0 %vm4413_vm0, %v17016_v50  ;;  %v16987_v56 = vld [vmem:[%s21265_s0 + $0xe8] sm:$0xff]   ;;  %v16988_v57 = vld [vmem:[%s21265_s0 + $0xf0] sm:$0xff]   ;;  %v17024_v58 = vld [vmem:[%s21265_s0 + $0x80] sm:$0xff]  }
 0x132   :  { %15859 = vmatmul.mubr.msk.bf16.vlgmr.msra.gmra.mrb[0].mxu1 %vm4413_vm0, %v16971_v36  ;;  %15971 = vmatmul.mubr.msk.bf16.vlgmr.msra.gmra.mrb[0].mxu0 %vm4413_vm0, %v17017_v51  ;;  %v17025_v59 = vld [vmem:[%s21265_s0 + $0x88] sm:$0xff]   ;;  %v16989_v60 = vld [vmem:[%s21265_s0 + $0xf8] sm:$0xff]   ;;  %v16990_v61 = vld [vmem:[%s21265_s0 + $0x100] sm:$0xff]  }
 0x133   :  { %15883 = vmatpush3.bf16.msra.mxu1 %v18917_v33  ;;  %15862 = vmatprep.mubr.msk.bf16.mxu1 %vm4413_vm0, %v16972_v37  ;;  %v17028_v62 = vld [vmem:[%s21265_s0 + $0x90] sm:$0xff]   ;;  %v17029_v63 = vld [vmem:[%s21265_s0 + $0x98] sm:$0xff]   ;;  %v16991_v0 = vld [vmem:[%s21265_s0 + $0x108] sm:$0xff]  }
 0x134   :  { %15884 = vmatprep.subr.bf16.mxu1 %v18922_v34  ;;  %16023 = vmatpush3.bf16.msra.mxu0 %v18917_v33  ;;  %v16992_v35 = vld [vmem:[%s21265_s0 + $0x110] sm:$0xff]   ;;  %v17032_v36 = vld [vmem:[%s21265_s0 + $0x1e0] sm:$0xff]   ;;  %v17033_v37 = vld [vmem:[%s21265_s0 + $0x1e8] sm:$0xff]  }
 0x135   :  { %16024 = vmatprep.subr.bf16.mxu0 %v18922_v34  ;;  %15974 = vmatprep.mubr.msk.bf16.mxu0 %vm4413_vm0, %v17020_v54  ;;  %v16999_v50 = vld [vmem:[%s21265_s0 + $0x1a8] sm:$0xff]   ;;  %v17000_v51 = vld [vmem:[%s21265_s0 + $0x1b0] sm:$0xff]   ;;  %v17001_v54 = vld [vmem:[%s21265_s0 + $0x1b8] sm:$0xff]  }
 0x136   :  { %v17059_v24 = vld [vmem:[%s21265_s0 + $0x2c8] sm:$0xff]   ;;  %v17064_v7 = vld [vmem:[%s21265_s0 + $0x2f0] sm:$0xff]   ;;  %vm20097_vm3 = vmor %vm7501_vm1, %vm7502_vm2 }
 0x137   :  { %15885 = vmatpush3.bf16.msra.mxu1 %v18922_v34  ;;  %vm20388_vm6 = vmor %vm8746_vm4, %vm8747_vm5 }
 0x138   :  { %15910 = vmatprep.subr.bf16.mxu1 %v18917_v33  ;;  %16025 = vmatpush3.bf16.msra.mxu0 %v18922_v34  ;;  %vm20579_vm9 = vmor %vm9751_vm7, %vm9752_vm8 }
 0x139   :  { %vm20848_vm12 = vmor %vm11092_vm10, %vm11093_vm11 }
 0x13a   :  { %15863 = vmatmul.mubr.msk.bf16.gmra.mrb[4].mxu1 %vm4413_vm0, %v16973_v38  ;;  %15975 = vmatmul.mubr.msk.bf16.gmra.mrb[4].mxu0 %vm4413_vm0, %v17021_v55  ;;  %v16993_v38 = vld [vmem:[%s21265_s0 + $0x118] sm:$0xff]   ;;  %v17002_v55 = vld [vmem:[%s21265_s0 + $0x1c0] sm:$0xff]  }
 0x13b   :  { %15866 = vmatprep.mubr.msk.bf16.mxu1 %vm4413_vm0, %v16974_v39  ;;  %15978 = vmatprep.mubr.msk.bf16.mxu0 %vm4413_vm0, %v17024_v58  ;;  %v16994_v39 = vld [vmem:[%s21265_s0 + $0x180] sm:$0xff]   ;;  %v17003_v58 = vld [vmem:[%s21265_s0 + $0x1c8] sm:$0xff]  }
 0x142   :  { %15867 = vmatmul.mubr.msk.bf16.gmra.mrb[8].mxu1 %vm4413_vm0, %v16975_v40  ;;  %15979 = vmatmul.mubr.msk.bf16.gmra.mrb[8].mxu0 %vm4413_vm0, %v17025_v59  ;;  %v17036_v40 = vld [vmem:[%s21265_s0 + $0x1f0] sm:$0xff]  }
 0x143   :  { %15870 = vmatprep.mubr.msk.bf16.mxu1 %vm4413_vm0, %v16976_v41  ;;  %15982 = vmatprep.mubr.msk.bf16.mxu0 %vm4413_vm0, %v17028_v62  ;;  %v17037_v41 = vld [vmem:[%s21265_s0 + $0x1f8] sm:$0xff]   ;;  %v17004_v59 = vld [vmem:[%s21265_s0 + $0x1d0] sm:$0xff]   ;;  %v17007_v62 = vld [vmem:[%s21265_s0 + $0x248] sm:$0xff]  }
 0x14a   :  { %15871 = vmatmul.mubr.msk.bf16.gmra.mrb[12].mxu1 %vm4413_vm0, %v16977_v42  ;;  %15983 = vmatmul.mubr.msk.bf16.gmra.mrb[12].mxu0 %vm4413_vm0, %v17029_v63  ;;  %v16995_v42 = vld [vmem:[%s21265_s0 + $0x188] sm:$0xff]   ;;  %v17008_v63 = vld [vmem:[%s21265_s0 + $0x250] sm:$0xff]  }
 0x14b   :  { %15874 = vmatprep.mubr.msk.bf16.mxu1 %vm4413_vm0, %v16978_v43  ;;  %16026 = vmatprep.mubr.msk.bf16.mxu0 %vm4413_vm0, %v17032_v36  ;;  %v16996_v43 = vld [vmem:[%s21265_s0 + $0x190] sm:$0xff]   ;;  %v17011_v36 = vld [vmem:[%s21265_s0 + $0x268] sm:$0xff]  }
 0x152   :  { %15875 = vmatmul.mubr.msk.bf16.gmra.mrb[16].mxu1 %vm4413_vm0, %v16979_v44  ;;  %16027 = vmatmul.mubr.msk.bf16.vlgmr.msra.gmra.mrb[16].mxu0 %vm4413_vm0, %v17033_v37  ;;  %v17040_v44 = vld [vmem:[%s21265_s0 + $0x200] sm:$0xff]   ;;  %v17012_v37 = vld [vmem:[%s21265_s0 + $0x270] sm:$0xff]  }
 0x153   :  { %15878 = vmatprep.mubr.msk.bf16.mxu1 %vm4413_vm0, %v16980_v45  ;;  %16030 = vmatprep.mubr.msk.bf16.mxu0 %vm4413_vm0, %v17036_v40  ;;  %v17041_v45 = vld [vmem:[%s21265_s0 + $0x208] sm:$0xff]  }
 0x154   :  { %v17015_v40 = vld [vmem:[%s21265_s0 + $0x288] sm:$0xff]  }
 0x15a   :  { %15879 = vmatmul.mubr.msk.bf16.gmra.mrb[20].mxu1 %vm4413_vm0, %v16981_v46  ;;  %16031 = vmatmul.mubr.msk.bf16.gmra.mrb[20].mxu0 %vm4413_vm0, %v17037_v41  ;;  %v16997_v46 = vld [vmem:[%s21265_s0 + $0x198] sm:$0xff]   ;;  %v17018_v41 = vld [vmem:[%s21265_s0 + $0x290] sm:$0xff]  }
 0x15b   :  { %15886 = vmatprep.mubr.msk.bf16.mxu1 %vm4413_vm0, %v16982_v47  ;;  %16034 = vmatprep.mubr.msk.bf16.mxu0 %vm4413_vm0, %v17040_v44  ;;  %v16998_v47 = vld [vmem:[%s21265_s0 + $0x1a0] sm:$0xff]   ;;  %v17023_v44 = vld [vmem:[%s21265_s0 + $0xa8] sm:$0xff]  }
 0x162   :  { %15887 = vmatmul.mubr.msk.bf16.vlgmr.msra.gmra.mrb[24].mxu1 %vm4413_vm0, %v16983_v48  ;;  %16035 = vmatmul.mubr.msk.bf16.gmra.mrb[24].mxu0 %vm4413_vm0, %v17041_v45  ;;  %v17044_v48 = vld [vmem:[%s21265_s0 + $0x210] sm:$0xff]  }
 0x163   :  { %15911 = vmatpush3.bf16.msra.mxu1 %v18917_v33  ;;  %15890 = vmatprep.mubr.msk.bf16.mxu1 %vm4413_vm0, %v16984_v49  ;;  %v17045_v49 = vld [vmem:[%s21265_s0 + $0x218] sm:$0xff]   ;;  %v17026_v45 = vld [vmem:[%s21265_s0 + $0xb0] sm:$0xff]  }
 0x164   :  { %15912 = vmatprep.subr.bf16.mxu1 %v18922_v34  ;;  %16038 = vmatprep.mubr.msk.bf16.mxu0 %vm4413_vm0, %v17044_v48  ;;  %v17031_v48 = vld [vmem:[%s21265_s0 + $0x128] sm:$0xff]  }
 0x167   :  { %15913 = vmatpush3.bf16.msra.mxu1 %v18922_v34 }
 0x168   :  { %15938 = vmatprep.subr.bf16.mxu1 %v18917_v33 }
 0x16a   :  { %15891 = vmatmul.mubr.msk.bf16.gmra.mrb[28].mxu1 %vm4413_vm0, %v16985_v52  ;;  %16039 = vmatmul.mubr.msk.bf16.gmra.mrb[28].mxu0 %vm4413_vm0, %v17045_v49  ;;  %v17048_v52 = vld [vmem:[%s21265_s0 + $0x220] sm:$0xff]   ;;  %v17034_v49 = vld [vmem:[%s21265_s0 + $0x130] sm:$0xff]  }
 0x16b   :  { %15894 = vmatprep.mubr.msk.bf16.mxu1 %vm4413_vm0, %v16986_v53  ;;  %v17049_v53 = vld [vmem:[%s21265_s0 + $0x228] sm:$0xff]   ;;  %16042 = vmatprep.mubr.msk.bf16.mxu0 %vm4413_vm0, %v17048_v52  ;;  %v17035_v52 = vld [vmem:[%s21265_s0 + $0x138] sm:$0xff]  }
 0x172   :  { %15895 = vmatmul.mubr.msk.bf16.gmra.mrb[32].mxu1 %vm4413_vm0, %v16987_v56  ;;  %16043 = vmatmul.mubr.msk.bf16.gmra.mrb[32].mxu0 %vm4413_vm0, %v17049_v53  ;;  %v17052_v56 = vld [vmem:[%s21265_s0 + $0x230] sm:$0xff]  }
 0x173   :  { %15898 = vmatprep.mubr.msk.bf16.mxu1 %vm4413_vm0, %v16988_v57  ;;  %v17053_v57 = vld [vmem:[%s21265_s0 + $0x238] sm:$0xff]   ;;  %16046 = vmatprep.mubr.msk.bf16.mxu0 %vm4413_vm0, %v17052_v56 }
 0x17a   :  { %15899 = vmatmul.mubr.msk.bf16.gmra.mrb[36].mxu1 %vm4413_vm0, %v16989_v60  ;;  %16047 = vmatmul.mubr.msk.bf16.gmra.mrb[36].mxu0 %vm4413_vm0, %v17053_v57  ;;  %v17005_v60 = vld [vmem:[%s21265_s0 + $0x1d8] sm:$0xff]   ;;  %v17039_v57 = vld [vmem:[%s21265_s0 + $0x148] sm:$0xff]  }
 0x17b   :  { %15902 = vmatprep.mubr.msk.bf16.mxu1 %vm4413_vm0, %v16990_v61  ;;  %v17006_v61 = vld [vmem:[%s21265_s0 + $0x240] sm:$0xff]  }
 0x182   :  { %15903 = vmatmul.mubr.msk.bf16.gmra.mrb[40].mxu1 %vm4413_vm0, %v16991_v0  ;;  %v17009_v0 = vld [vmem:[%s21265_s0 + $0x258] sm:$0xff]  }
 0x183   :  { %15906 = vmatprep.mubr.msk.bf16.mxu1 %vm4413_vm0, %v16992_v35  ;;  %v17010_v35 = vld [vmem:[%s21265_s0 + $0x260] sm:$0xff]  }
 0x18a   :  { %15907 = vmatmul.mubr.msk.bf16.gmra.mrb[44].mxu1 %vm4413_vm0, %v16993_v38  ;;  %v17013_v38 = vld [vmem:[%s21265_s0 + $0x278] sm:$0xff]  }
 0x18b   :  { %15914 = vmatprep.mubr.msk.bf16.mxu1 %vm4413_vm0, %v16994_v39  ;;  %v17014_v39 = vld [vmem:[%s21265_s0 + $0x280] sm:$0xff]  }
 0x192   :  { %15915 = vmatmul.mubr.msk.bf16.vlgmr.msra.gmra.mrb[48].mxu1 %vm4413_vm0, %v16995_v42  ;;  %v17019_v42 = vld [vmem:[%s21265_s0 + $0x298] sm:$0xff]  }
 0x193   :  { %15939 = vmatpush3.bf16.msra.mxu1 %v18917_v33  ;;  %15918 = vmatprep.mubr.msk.bf16.mxu1 %vm4413_vm0, %v16996_v43  ;;  %v17022_v43 = vld [vmem:[%s21265_s0 + $0xa0] sm:$0xff]  }
 0x194   :  { %15940 = vmatprep.subr.bf16.mxu1 %v18922_v34 }
 0x197   :  { %15941 = vmatpush3.bf16.msra.mxu1 %v18922_v34 }
 0x198   :  { %16578 = vmatprep.subr.bf16.mxu1 %v18917_v33 }
 0x19a   :  { %15919 = vmatmul.mubr.msk.bf16.gmra.mrb[52].mxu1 %vm4413_vm0, %v16997_v46  ;;  %v17027_v46 = vld [vmem:[%s21265_s0 + $0xb8] sm:$0xff]  }
 0x19b   :  { %15922 = vmatprep.mubr.msk.bf16.mxu1 %vm4413_vm0, %v16998_v47  ;;  %v17030_v47 = vld [vmem:[%s21265_s0 + $0x120] sm:$0xff]  }
 0x1a2   :  { %15923 = vmatmul.mubr.msk.bf16.gmra.mrb[56].mxu1 %vm4413_vm0, %v16999_v50 }
 0x1a3   :  { %15926 = vmatprep.mubr.msk.bf16.mxu1 %vm4413_vm0, %v17000_v51 }
 0x1aa   :  { %15927 = vmatmul.mubr.msk.bf16.gmra.mrb[60].mxu1 %vm4413_vm0, %v17001_v54  ;;  %v17038_v54 = vld [vmem:[%s21265_s0 + $0x140] sm:$0xff]  }
 0x1ab   :  { %15930 = vmatprep.mubr.msk.bf16.mxu1 %vm4413_vm0, %v17002_v55 }
 0x1b2   :  { %15931 = vmatmul.mubr.msk.bf16.gmra.mrb[64].mxu1 %vm4413_vm0, %v17003_v58 }
 0x1b3   :  { %15934 = vmatprep.mubr.msk.bf16.mxu1 %vm4413_vm0, %v17004_v59 }
 0x1ba   :  { %15935 = vmatmul.mubr.msk.bf16.gmra.mrb[68].mxu1 %vm4413_vm0, %v17005_v60 }
 0x1bb   :  { %15942 = vmatprep.mubr.msk.bf16.mxu1 %vm4413_vm0, %v17006_v61 }
 0x1c2   :  { %15943 = vmatmul.mubr.msk.bf16.vlgmr.msra.gmra.mrb[72].mxu1 %vm4413_vm0, %v17007_v62  ;;  %v17043_v62 = vld [vmem:[%s21265_s0 + $0x158] sm:$0xff]  }
 0x1c3   :  { %16580 = vmatpush3.bf16.msra.mxu1 %v18917_v33  ;;  %15946 = vmatprep.mubr.msk.bf16.mxu1 %vm4413_vm0, %v17008_v63 }
 0x1c4   :  { %16579 = vmatprep.subr.bf16.mxu1 %v18922_v34 }
 0x1c7   :  { %16581 = vmatpush3.bf16.msra.mxu1 %v18922_v34 }
 0x1c8   :  { %15994 = vmatprep.subr.bf16.mxu1 %v18917_v33 }
 0x1ca   :  { %15947 = vmatmul.mubr.msk.bf16.gmra.mrb[76].mxu1 %vm4413_vm0, %v17009_v0  ;;  %v17046_v0 = vld [vmem:[%s21265_s0 + $0x160] sm:$0xff]  }
 0x1cb   :  { %15950 = vmatprep.mubr.msk.bf16.mxu1 %vm4413_vm0, %v17010_v35 }
 0x1d2   :  { %15951 = vmatmul.mubr.msk.bf16.gmra.mrb[80].mxu1 %vm4413_vm0, %v17011_v36 }
 0x1d3   :  { %15954 = vmatprep.mubr.msk.bf16.mxu1 %vm4413_vm0, %v17012_v37 }
 0x1da   :  { %15955 = vmatmul.mubr.msk.bf16.gmra.mrb[84].mxu1 %vm4413_vm0, %v17013_v38  ;;  %v17047_v38 = vld [vmem:[%s21265_s0 + $0x168] sm:$0xff]  }
 0x1db   :  { %15958 = vmatprep.mubr.msk.bf16.mxu1 %vm4413_vm0, %v17014_v39 }
 0x1e2   :  { %15959 = vmatmul.mubr.msk.bf16.gmra.mrb[88].mxu1 %vm4413_vm0, %v17015_v40  ;;  %v17050_v40 = vld [vmem:[%s21265_s0 + $0x170] sm:$0xff]  }
 0x1e3   :  { %15962 = vmatprep.mubr.msk.bf16.mxu1 %vm4413_vm0, %v17018_v41 }
 0x1ea   :  { %15963 = vmatmul.mubr.msk.bf16.gmra.mrb[92].mxu1 %vm4413_vm0, %v17019_v42 }
 0x1eb   :  { %15986 = vmatprep.mubr.msk.bf16.mxu1 %vm4413_vm0, %v17022_v43 }
 0x1f2   :  { %15987 = vmatmul.mubr.msk.bf16.vlgmr.msra.gmra.mrb[96].mxu1 %vm4413_vm0, %v17023_v44  ;;  %v17051_v44 = vld [vmem:[%s21265_s0 + $0x178] sm:$0xff]  }
 0x1f3   :  { %15995 = vmatpush3.bf16.msra.mxu1 %v18917_v33  ;;  %15990 = vmatprep.mubr.msk.bf16.mxu1 %vm4413_vm0, %v17026_v45 }
 0x1f4   :  { %15996 = vmatprep.subr.bf16.mxu1 %v18922_v34 }
 0x1f7   :  { %15997 = vmatpush3.bf16.msra.mxu1 %v18922_v34 }
 0x1f8   :  { %16050 = vmatprep.subr.bf16.mxu1 %v18917_v33 }
 0x1fa   :  { %15991 = vmatmul.mubr.msk.bf16.gmra.mrb[100].mxu1 %vm4413_vm0, %v17027_v46  ;;  %v17054_v46 = vld [vmem:[%s21265_s0 + $0x2a0] sm:$0xff]  }
 0x1fb   :  { %15998 = vmatprep.mubr.msk.bf16.mxu1 %vm4413_vm0, %v17030_v47 }
 0x202   :  { %15999 = vmatmul.mubr.msk.bf16.vlgmr.msra.gmra.mrb[104].mxu1 %vm4413_vm0, %v17031_v48 }
 0x203   :  { %16051 = vmatpush3.bf16.msra.mxu1 %v18917_v33  ;;  %16002 = vmatprep.mubr.msk.bf16.mxu1 %vm4413_vm0, %v17034_v49 }
 0x204   :  { %16052 = vmatprep.subr.bf16.mxu1 %v18922_v34 }
 0x205   :  { %v19259_v50 = vpop.f32.mrb[0].mxu1 }
 0x206   :  { %v19261_v51 = vpop.f32.mrb[1].mxu1 }
 0x207   :  { %v19266_v53 = vpop.f32.mrb[2].mxu1  ;;  %16053 = vmatpush3.bf16.msra.mxu1 %v18922_v34  ;;  %v17042_v34 = vld [vmem:[%s21265_s0 + $0x150] sm:$0xff]  }
 0x208   :  { %v19272_v33 = vpop.f32.mrb[3].mxu1 }
 0x20a   :  { %16003 = vmatmul.mubr.msk.bf16.gmra.mrb[108].mxu1 %vm4413_vm0, %v17035_v52  ;;  %v17055_v52 = vld [vmem:[%s21265_s0 + $0x2a8] sm:$0xff]  }
 0x20b   :  { %16006 = vmatprep.mubr.msk.bf16.mxu1 %vm4413_vm0, %v17038_v54 }
 0x20d   :  { %v19276_v55 = vpop.f32.mrb[4].mxu1 }
 0x20e   :  { %v19278_v56 = vpop.f32.mrb[5].mxu1 }
 0x20f   :  { %v19283_v58 = vpop.f32.mrb[6].mxu1 }
 0x210   :  { %v19288_v59 = vpop.f32.mrb[7].mxu1 }
 0x212   :  { %16007 = vmatmul.mubr.msk.bf16.gmra.mrb[112].mxu1 %vm4413_vm0, %v17039_v57  ;;  %v17056_v57 = vld [vmem:[%s21265_s0 + $0x2b0] sm:$0xff]  }
 0x213   :  { %16010 = vmatprep.mubr.msk.bf16.mxu1 %vm4413_vm0, %v17042_v34 }
 0x215   :  { %v19292_v60 = vpop.f32.mrb[8].mxu1 }
 0x216   :  { %v19294_v61 = vpop.f32.mrb[9].mxu1 }
 0x217   :  { %v19299_v63 = vpop.f32.mrb[10].mxu1 }
 0x218   :  { %v19304_v35 = vpop.f32.mrb[11].mxu1 }
 0x21a   :  { %16011 = vmatmul.mubr.msk.bf16.gmra.mrb[116].mxu1 %vm4413_vm0, %v17043_v62  ;;  %v17066_v62 = vld [vmem:[%s21268_s3 + $0x50] sm:$0xff]  }
 0x21b   :  { %16014 = vmatprep.mubr.msk.bf16.mxu1 %vm4413_vm0, %v17046_v0  ;;  %16078 = vmatprep.subr.bf16.mxu0 %v17066_v62 }
 0x21c   :  { %16079 = vmatpush3.bf16.msra.mxu0 %v17066_v62  ;;  %v17058_v62 = vld [vmem:[%s21265_s0 + $0x2c0] sm:$0xff]  }
 0x21d   :  { %v19308_v36 = vpop.f32.mrb[12].mxu1 }
 0x21e   :  { %v19310_v37 = vpop.f32.mrb[13].mxu1 }
 0x21f   :  { %v19315_v39 = vpop.f32.mrb[14].mxu1 }
 0x220   :  { %v19320_v41 = vpop.f32.mrb[15].mxu1 }
 0x222   :  { %16015 = vmatmul.mubr.msk.bf16.gmra.mrb[120].mxu1 %vm4413_vm0, %v17047_v38  ;;  %v17070_v38 = vld [vmem:[%s21268_s3 + $0x58] sm:$0xff]  }
 0x223   :  { %16018 = vmatprep.mubr.msk.bf16.mxu1 %vm4413_vm0, %v17050_v40  ;;  %16080 = vmatprep.subr.bf16.mxu0 %v17070_v38 }
 0x224   :  { %16081 = vmatpush3.bf16.msra.mxu0 %v17070_v38 }
 0x225   :  { %v19324_v42 = vpop.f32.mrb[16].mxu1 }
 0x226   :  { %v19326_v43 = vpop.f32.mrb[17].mxu1 }
 0x227   :  { %v19331_v45 = vpop.f32.mrb[18].mxu1 }
 0x228   :  { %v19336_v47 = vpop.f32.mrb[19].mxu1 }
 0x22a   :  { %16019 = vmatmul.mubr.msk.bf16.gmra.mrb[124].mxu1 %vm4413_vm0, %v17051_v44 }
 0x22b   :  { %16054 = vmatprep.mubr.msk.bf16.mxu1 %vm4413_vm0, %v17054_v46  ;;  %v17057_v46 = vld [vmem:[%s21265_s0 + $0x2b8] sm:$0xff]  }
 0x22d   :  { %v19340_v48 = vpop.f32.mrb[20].mxu1 }
 0x22e   :  { %v19342_v49 = vpop.f32.mrb[21].mxu1 }
 0x22f   :  { %v19347_v54 = vpop.f32.mrb[22].mxu1 }
 0x230   :  { %v19352_v34 = vpop.f32.mrb[23].mxu1 }
 0x232   :  { %16055 = vmatmul.mubr.msk.bf16.vlgmr.msra.gmra.mrb[128].mxu1 %vm4413_vm0, %v17055_v52 }
 0x233   :  { %16058 = vmatprep.mubr.msk.bf16.mxu1 %vm4413_vm0, %v17056_v57 }
 0x235   :  { %v19359_v0 = vpop.f32.mrb[24].mxu1 }
 0x236   :  { %v19366_v44 = vpop.f32.mrb[25].mxu1 }
 0x237   :  { %v19373_v57 = vpop.f32.mrb[26].mxu1 }
 0x238   :  { %v19380_v40 = vpop.f32.mrb[27].mxu1 }
 0x23a   :  { %16059 = vmatmul.mubr.msk.bf16.gmra.mrb[132].mxu1 %vm4413_vm0, %v17057_v46  ;;  %v17060_v46 = vld [vmem:[%s21265_s0 + $0x2d0] sm:$0xff]  }
 0x23b   :  { %16062 = vmatprep.mubr.msk.bf16.mxu1 %vm4413_vm0, %v17058_v62  ;;  %v17061_v62 = vld [vmem:[%s21265_s0 + $0x2d8] sm:$0xff]  }
 0x23d   :  { %v19386_v52 = vpop.f32.mrb[28].mxu1 }
 0x23e   :  { %v19390_v31 = vpop.f32.mrb[29].mxu1 }
 0x23f   :  { %v19397_v22 = vpop.f32.mrb[30].mxu1 }
 0x240   :  { %v19404_v32 = vpop.f32.mrb[31].mxu1 }
 0x242   :  { %16063 = vmatmul.mubr.msk.bf16.gmra.mrb[136].mxu1 %vm4413_vm0, %v17059_v24  ;;  %v17062_v24 = vld [vmem:[%s21265_s0 + $0x2e0] sm:$0xff]  }
 0x243   :  { %16066 = vmatprep.mubr.msk.bf16.mxu1 %vm4413_vm0, %v17060_v46  ;;  %v19426_v46 = vpop.f32.mrb[0].mxu0 }
 0x244   :  { %v19432_v28 = vpop.f32.mrb[1].mxu0 }
 0x245   :  { %v19410_v30 = vpop.f32.mrb[32].mxu1  ;;  %v19436_v27 = vpop.f32.mrb[2].mxu0 }
 0x246   :  { %v19414_v21 = vpop.f32.mrb[33].mxu1  ;;  %v19439_v29 = vpop.f32.mrb[3].mxu0 }
 0x247   :  { %v19421_v20 = vpop.f32.mrb[34].mxu1  ;;  %v19442_v18 = vpop.f32.mrb[4].mxu0 }
 0x248   :  { %v19430_v23 = vpop.f32.mrb[35].mxu1  ;;  %21307 = vst [vmem:[#allocation46_spill] sm:$0xff] %v19442_v18  ;;  %v19444_v26 = vpop.f32.mrb[5].mxu0 }
 0x249   :  { %21308 = vst [vmem:[#allocation47_spill] sm:$0xff] %v19444_v26  ;;  %v19448_v17 = vpop.f32.mrb[6].mxu0 }
 0x24a   :  { %16067 = vmatmul.mubr.msk.bf16.gmra.mrb[140].mxu1 %vm4413_vm0, %v17061_v62  ;;  %21309 = vst [vmem:[#allocation48_spill] sm:$0xff] %v19448_v17  ;;  %v17063_v62 = vld [vmem:[%s21265_s0 + $0x2e8] sm:$0xff]   ;;  %v19457_v8 = vpop.f32.mrb[7].mxu0 }
 0x24b   :  { %16070 = vmatprep.mubr.msk.bf16.mxu1 %vm4413_vm0, %v17062_v24  ;;  %21310 = vst [vmem:[#allocation49_spill] sm:$0xff] %v19457_v8  ;;  %v19466_v15 = vpop.f32.mrb[8].mxu0  ;;  %v21328_v8 = vmax.f32 %v19266_v53, %v19373_v57  ;;  %v21331_v53 = vmax.f32 %v19278_v56, %v19390_v31 }
 0x24c   :  { %21311 = vst [vmem:[#allocation50_spill] sm:$0xff] %v19466_v15  ;;  %v19472_v14 = vpop.f32.mrb[9].mxu0 }
 0x24d   :  { %v19446_v38 = vpop.f32.mrb[36].mxu1  ;;  %21312 = vst [vmem:[#allocation51_spill] sm:$0xff] %v19472_v14  ;;  %v19476_v13 = vpop.f32.mrb[10].mxu0 }
 0x24e   :  { %v19452_v19 = vpop.f32.mrb[37].mxu1  ;;  %21313 = vst [vmem:[#allocation52_spill] sm:$0xff] %v19476_v13  ;;  %v19479_v24 = vpop.f32.mrb[11].mxu0  ;;  %v21326_v13 = vmax.f32 %v19259_v50, %v19359_v0  ;;  %v21329_v50 = vmax.f32 %v19272_v33, %v19380_v40  ;;  %v21332_v33 = vmax.f32 %v19283_v58, %v19397_v22  ;;  %v21334_v22 = vmax.f32 %v19292_v60, %v19410_v30 }
 0x24f   :  { %v19461_v16 = vpop.f32.mrb[38].mxu1  ;;  %21314 = vst [vmem:[#allocation53_spill] sm:$0xff] %v19479_v24  ;;  %v19482_v4 = vpop.f32.mrb[12].mxu0  ;;  %v21337_v30 = vmax.f32 %v19304_v35, %v19430_v23 }
 0x250   :  { %v19470_v6 = vpop.f32.mrb[39].mxu1  ;;  %21315 = vst [vmem:[#allocation54_spill] sm:$0xff] %v19482_v4  ;;  %v19484_v12 = vpop.f32.mrb[13].mxu0  ;;  %v21340_v35 = vmax.f32 %v19315_v39, %v19461_v16 }
 0x251   :  { %21316 = vst [vmem:[#allocation55_spill] sm:$0xff] %v19484_v12  ;;  %v19488_v3 = vpop.f32.mrb[14].mxu0 }
 0x252   :  { %16071 = vmatmul.mubr.msk.bf16.gmra.mrb[144].mxu1 %vm4413_vm0, %v17063_v62  ;;  %21317 = vst [vmem:[#allocation56_spill] sm:$0xff] %v19488_v3  ;;  %v17065_v62 = vld [vmem:[%s21265_s0 + $0x2f8] sm:$0xff]   ;;  %v19497_v2 = vpop.f32.mrb[15].mxu0 }
 0x253   :  { %16074 = vmatprep.mubr.msk.bf16.mxu1 %vm4413_vm0, %v17064_v7  ;;  %21318 = vst [vmem:[#allocation57_spill] sm:$0xff] %v19497_v2  ;;  %v19507_v3 = vpop.f32.mrb[16].mxu0 }
 0x254   :  { %v19511_v12 = vpop.f32.mrb[17].mxu0 }
 0x255   :  { %v19486_v25 = vpop.f32.mrb[40].mxu1  ;;  %21319 = vst [vmem:[#allocation58_spill] sm:$0xff] %v19511_v12  ;;  %v19514_v2 = vpop.f32.mrb[18].mxu0 }
 0x256   :  { %v19492_v5 = vpop.f32.mrb[41].mxu1  ;;  %21320 = vst [vmem:[#allocation59_spill] sm:$0xff] %v19514_v2  ;;  %v19516_v4 = vpop.f32.mrb[19].mxu0  ;;  %v21327_v2 = vmax.f32 %v19261_v51, %v19366_v44  ;;  %v21330_v51 = vmax.f32 %v19276_v55, %v19386_v52  ;;  %v21333_v55 = vmax.f32 %v19288_v59, %v19404_v32  ;;  %v21336_v59 = vmax.f32 %v19299_v63, %v19421_v20 }
 0x257   :  { %v19501_v10 = vpop.f32.mrb[42].mxu1  ;;  %21321 = vst [vmem:[#allocation60_spill] sm:$0xff] %v19516_v4  ;;  %v19532_v15 = vpop.f32.mrb[20].mxu0  ;;  %v21338_v20 = vmax.f32 %v19308_v36, %v19446_v38  ;;  %v21341_v36 = vmax.f32 %v19320_v41, %v19470_v6  ;;  %v21343_v16 = vmax.f32 %v19324_v42, %v19486_v25 }
 0x258   :  { %v19505_v9 = vpop.f32.mrb[43].mxu1  ;;  %21322 = vst [vmem:[#allocation61_spill] sm:$0xff] %v19532_v15  ;;  %v19536_v17 = vpop.f32.mrb[21].mxu0  ;;  %v21345_v41 = vmax.f32 %v19331_v45, %v19501_v10 }
 0x259   :  { %21323 = vst [vmem:[#allocation62_spill] sm:$0xff] %v19536_v17  ;;  %v19538_v1 = vpop.f32.mrb[22].mxu0 }
 0x25a   :  { %16075 = vmatmul.mubr.msk.bf16.gmra.mrb[148].mxu1 %vm4413_vm0, %v17065_v62  ;;  %21324 = vst [vmem:[#allocation63_spill] sm:$0xff] %v19538_v1  ;;  %v19540_v26 = vpop.f32.mrb[23].mxu0 }
 0x25b   :  { %21325 = vst [vmem:[#allocation64_spill] sm:$0xff] %v19540_v26  ;;  %v19557_v26 = vpop.f32.mrb[24].mxu0 }
 0x25d   :  { %v19518_v7 = vpop.f32.mrb[44].mxu1 }
 0x25e   :  { %v19522_v24 = vpop.f32.mrb[45].mxu1  ;;  %v21347_v42 = vmax.f32 %v19340_v48, %v19518_v7  ;;  %v19697_v48 = vld [vmem:[%s21267_s2] ss:$0 sm:$0xff] }
 0x25f   :  { %v19526_v14 = vpop.f32.mrb[46].mxu1 }
 0x260   :  { %v19530_v62 = vpop.f32.mrb[47].mxu1  ;;  %v21349_v45 = vmax.f32 %v19347_v54, %v19526_v14 }
 0x265   :  { %v15916_v18 = vpop.f32.mrb[48].mxu1 }
 0x266   :  { %v19545_v4 = vmax.f32 %v21326_v13, %v15916_v18  ;;  %v5008_v11 = vpop.f32.mrb[49].mxu1  ;;  %v19564_v18 = vpop.f32.mrb[25].mxu0 }
 0x267   :  { %v19550_v15 = vmax.f32 %v21327_v2, %v5008_v11  ;;  %v15917_v12 = vpop.f32.mrb[50].mxu1  ;;  %v19566_v0 = vpop.f32.mrb[26].mxu0 }
 0x268   :  { %v19555_v17 = vmax.f32 %v21328_v8, %v15917_v12  ;;  %v5011_v1 = vpop.f32.mrb[51].mxu1  ;;  %v19568_v2 = vpop.f32.mrb[27].mxu0 }
 0x269   :  { %v19562_v13 = vmax.f32 %v21329_v50, %v5011_v1  ;;  %v19585_v50 = vpop.f32.mrb[28].mxu0 }
 0x26d   :  { %v15920_v11 = vpop.f32.mrb[52].mxu1 }
 0x26e   :  { %v19573_v8 = vmax.f32 %v21330_v51, %v15920_v11  ;;  %v5024_v12 = vpop.f32.mrb[53].mxu1  ;;  %v19592_v11 = vpop.f32.mrb[29].mxu0 }
 0x26f   :  { %v19578_v44 = vmax.f32 %v21331_v53, %v5024_v12  ;;  %v15921_v1 = vpop.f32.mrb[54].mxu1  ;;  %v19594_v51 = vpop.f32.mrb[30].mxu0  ;;  %v21335_v53 = vmax.f32 %v19294_v61, %v19414_v21 }
 0x270   :  { %v19583_v40 = vmax.f32 %v21332_v33, %v15921_v1  ;;  %v5027_v57 = vpop.f32.mrb[55].mxu1  ;;  %v19596_v31 = vpop.f32.mrb[31].mxu0 }
 0x271   :  { %v19590_v52 = vmax.f32 %v21333_v55, %v5027_v57  ;;  %v19613_v55 = vpop.f32.mrb[32].mxu0 }
 0x275   :  { %v15924_v56 = vpop.f32.mrb[56].mxu1 }
 0x276   :  { %v19601_v58 = vmax.f32 %v21334_v22, %v15924_v56  ;;  %v5040_v12 = vpop.f32.mrb[57].mxu1  ;;  %v19620_v56 = vpop.f32.mrb[33].mxu0 }
 0x277   :  { %v19606_v1 = vmax.f32 %v21335_v53, %v5040_v12  ;;  %v15925_v32 = vpop.f32.mrb[58].mxu1  ;;  %v19622_v22 = vpop.f32.mrb[34].mxu0  ;;  %v21339_v53 = vmax.f32 %v19310_v37, %v19452_v19 }
 0x278   :  { %v19611_v33 = vmax.f32 %v21336_v59, %v15925_v32  ;;  %v5043_v57 = vpop.f32.mrb[59].mxu1  ;;  %v19624_v21 = vpop.f32.mrb[35].mxu0 }
 0x279   :  { %v19618_v60 = vmax.f32 %v21337_v30, %v5043_v57  ;;  %v19641_v30 = vpop.f32.mrb[36].mxu0 }
 0x27d   :  { %v15928_v61 = vpop.f32.mrb[60].mxu1 }
 0x27e   :  { %v19629_v63 = vmax.f32 %v21338_v20, %v15928_v61  ;;  %v5056_v12 = vpop.f32.mrb[61].mxu1  ;;  %v19648_v61 = vpop.f32.mrb[37].mxu0 }
 0x27f   :  { %v19634_v32 = vmax.f32 %v21339_v53, %v5056_v12  ;;  %v15929_v23 = vpop.f32.mrb[62].mxu1  ;;  %v19650_v20 = vpop.f32.mrb[38].mxu0  ;;  %v21344_v53 = vmax.f32 %v19326_v43, %v19492_v5  ;;  %v21348_v43 = vmax.f32 %v19342_v49, %v19522_v24 }
 0x280   :  { %v19639_v59 = vmax.f32 %v21340_v35, %v15929_v23  ;;  %v5059_v57 = vpop.f32.mrb[63].mxu1  ;;  %v19652_v19 = vpop.f32.mrb[39].mxu0 }
 0x281   :  { %v19646_v38 = vmax.f32 %v21341_v36, %v5059_v57  ;;  %21342 = vst [vmem:[#allocation65_spill] sm:$0xff] %v19652_v19  ;;  %v21346_v36 = vmax.f32 %v19336_v47, %v19505_v9  ;;  %v21350_v47 = vmax.f32 %v19352_v34, %v19530_v62 }
 0x285   :  { %v15932_v37 = vpop.f32.mrb[64].mxu1 }
 0x286   :  { %v19657_v39 = vmax.f32 %v21343_v16, %v15932_v37  ;;  %v5072_v12 = vpop.f32.mrb[65].mxu1 }
 0x287   :  { %v19662_v23 = vmax.f32 %v21344_v53, %v5072_v12  ;;  %v15933_v6 = vpop.f32.mrb[66].mxu1 }
 0x288   :  { %v19667_v35 = vmax.f32 %v21345_v41, %v15933_v6  ;;  %v5075_v57 = vpop.f32.mrb[67].mxu1 }
 0x289   :  { %v19672_v19 = vmax.f32 %v21346_v36, %v5075_v57 }
 0x28d   :  { %v15936_v25 = vpop.f32.mrb[68].mxu1 }
 0x28e   :  { %v19677_v37 = vmax.f32 %v21347_v42, %v15936_v25  ;;  %v5088_v5 = vpop.f32.mrb[69].mxu1 }
 0x28f   :  { %v19682_v16 = vmax.f32 %v21348_v43, %v5088_v5  ;;  %v15937_v10 = vpop.f32.mrb[70].mxu1 }
 0x290   :  { %v19687_v12 = vmax.f32 %v21349_v45, %v15937_v10  ;;  %v5091_v9 = vpop.f32.mrb[71].mxu1 }
 0x291   :  { %v19692_v53 = vmax.f32 %v21350_v47, %v5091_v9 }
 0x295   :  { %v15944_v49 = vpop.f32.mrb[72].mxu1 }
 0x296   :  { %v5379_v24 = vmax.f32 %v19545_v4, %v15944_v49  ;;  %v5282_v7 = vpop.f32.mrb[73].mxu1 }
 0x297   :  { %v5377_v6 = vmax.f32 %v19550_v15, %v5282_v7  ;;  %v15945_v14 = vpop.f32.mrb[74].mxu1 }
 0x298   :  { %v5409_v54 = vadd.f32 %v19697_v48, %v5379_v24  ;;  %v5380_v41 = vmax.f32 %v19555_v17, %v15945_v14  ;;  %v5285_v57 = vpop.f32.mrb[75].mxu1 }
 0x299   :  { %v5407_v34 = vadd.f32 %v19697_v48, %v5377_v6  ;;  %v5378_v62 = vmax.f32 %v19562_v13, %v5285_v57 }
 0x29a   :  { %v5410_v36 = vadd.f32 %v19697_v48, %v5380_v41  ;;  %v5433_v42 = vmax.f32 %v5409_v54, 0.0 }
 0x29b   :  { %v5408_v25 = vadd.f32 %v19697_v48, %v5378_v62  ;;  %v5431_v4 = vmax.f32 %v5407_v34, 0.0 }
 0x29c   :  { %v5434_v5 = vmax.f32 %v5410_v36, 0.0 }
 0x29d   :  { %v5432_v43 = vmax.f32 %v5408_v25, 0.0  ;;  %v15948_v10 = vpop.f32.mrb[76].mxu1 }
 0x29e   :  { %v5456_v15 = vpack.c.bf16 %v5434_v5, %v5433_v42  ;;  %v5383_v45 = vmax.f32 %v19573_v8, %v15948_v10  ;;  %v5298_v9 = vpop.f32.mrb[77].mxu1 }
 0x29f   :  { %v5455_v47 = vpack.c.bf16 %v5432_v43, %v5431_v4  ;;  %v5381_v17 = vmax.f32 %v19578_v44, %v5298_v9  ;;  %v15949_v49 = vpop.f32.mrb[78].mxu1 }
 0x2a0   :  { %5468 = vst.msk [vmem:[#allocation2 + $0x8] sm:$0xff] %vm4413_vm0, %v5456_v15  ;;  %v5413_v13 = vadd.f32 %v19697_v48, %v5383_v45  ;;  %v5384_v24 = vmax.f32 %v19583_v40, %v15949_v49  ;;  %v5301_v7 = vpop.f32.mrb[79].mxu1 }
 0x2a1   :  { %5467 = vst.msk [vmem:[#allocation2] sm:$0xff] %vm4413_vm0, %v5455_v47  ;;  %v5411_v6 = vadd.f32 %v19697_v48, %v5381_v17  ;;  %v5382_v14 = vmax.f32 %v19590_v52, %v5301_v7 }
 0x2a2   :  { %v5414_v8 = vadd.f32 %v19697_v48, %v5384_v24  ;;  %v5437_v41 = vmax.f32 %v5413_v13, 0.0 }
 0x2a3   :  { %v5412_v54 = vadd.f32 %v19697_v48, %v5382_v14  ;;  %v5435_v57 = vmax.f32 %v5411_v6, 0.0 }
 0x2a4   :  { %v5438_v44 = vmax.f32 %v5414_v8, 0.0 }
 0x2a5   :  { %v5436_v34 = vmax.f32 %v5412_v54, 0.0  ;;  %v15952_v62 = vpop.f32.mrb[80].mxu1 }
 0x2a6   :  { %v5458_v36 = vpack.c.bf16 %v5438_v44, %v5437_v41  ;;  %v5387_v25 = vmax.f32 %v19601_v58, %v15952_v62  ;;  %v5314_v40 = vpop.f32.mrb[81].mxu1  ;;  %v17074_v58 = vld [vmem:[%s21268_s3] sm:$0xff]  }
 0x2a7   :  { %v5457_v42 = vpack.c.bf16 %v5436_v34, %v5435_v57  ;;  %v5385_v5 = vmax.f32 %v19606_v1, %v5314_v40  ;;  %v15953_v4 = vpop.f32.mrb[82].mxu1  ;;  %16098 = vmatprep.subr.bf16.mxu0 %v17074_v58  ;;  %v19735_v34 = vld [vmem:[#allocation2 + $0x8] sm:$0xf] }
 0x2a8   :  { %5470 = vst.msk [vmem:[#allocation2 + $0x18] sm:$0xff] %vm4413_vm0, %v5458_v36  ;;  %v5417_v52 = vadd.f32 %v19697_v48, %v5387_v25  ;;  %v5388_v43 = vmax.f32 %v19611_v33, %v15953_v4  ;;  %v5317_v10 = vpop.f32.mrb[83].mxu1 }
 0x2a9   :  { %5469 = vst.msk [vmem:[#allocation2 + $0x10] sm:$0xff] %vm4413_vm0, %v5457_v42  ;;  %v5415_v15 = vadd.f32 %v19697_v48, %v5385_v5  ;;  %v5386_v45 = vmax.f32 %v19618_v60, %v5317_v10 }
 0x2aa   :  { %v5418_v1 = vadd.f32 %v19697_v48, %v5388_v43  ;;  %v5441_v47 = vmax.f32 %v5417_v52, 0.0 }
 0x2ab   :  { %v5416_v9 = vadd.f32 %v19697_v48, %v5386_v45  ;;  %v5439_v49 = vmax.f32 %v5415_v15, 0.0 }
 0x2ac   :  { %v5442_v17 = vmax.f32 %v5418_v1, 0.0 }
 0x2ad   :  { %v5440_v33 = vmax.f32 %v5416_v9, 0.0  ;;  %v15956_v13 = vpop.f32.mrb[84].mxu1 }
 0x2ae   :  { %v5460_v24 = vpack.c.bf16 %v5442_v17, %v5441_v47  ;;  %v5391_v7 = vmax.f32 %v19629_v63, %v15956_v13  ;;  %v5330_v6 = vpop.f32.mrb[85].mxu1 }
 0x2af   :  { %v5459_v14 = vpack.c.bf16 %v5440_v33, %v5439_v49  ;;  %v5389_v60 = vmax.f32 %v19634_v32, %v5330_v6  ;;  %v15957_v8 = vpop.f32.mrb[86].mxu1  ;;  %v6623_v54 = vld [vmem:[#allocation2 + $0x18] sm:$0xf] }
 0x2b0   :  { %5472 = vst.msk [vmem:[#allocation2 + $0x28] sm:$0xff] %vm4413_vm0, %v5460_v24  ;;  %v5421_v41 = vadd.f32 %v19697_v48, %v5391_v7  ;;  %v5392_v44 = vmax.f32 %v19639_v59, %v15957_v8  ;;  %v5333_v57 = vpop.f32.mrb[87].mxu1  ;;  %v6622_v62 = vld [vmem:[#allocation2 + $0x10] sm:$0xf] }
 0x2b1   :  { %5471 = vst.msk [vmem:[#allocation2 + $0x20] sm:$0xff] %vm4413_vm0, %v5459_v14  ;;  %v5419_v63 = vadd.f32 %v19697_v48, %v5389_v60  ;;  %v5390_v36 = vmax.f32 %v19646_v38, %v5333_v57  ;;  %v14720_v32 = vcombine.low %v19735_v34, %v6622_v62  ;;  %v19741_v25 = vcombine.low %v6622_v62, %v6623_v54 }
 0x2b2   :  { %v5422_v40 = vadd.f32 %v19697_v48, %v5392_v44  ;;  %v5445_v59 = vmax.f32 %v5421_v41, 0.0 }
 0x2b3   :  { %v5420_v42 = vadd.f32 %v19697_v48, %v5390_v36  ;;  %16082 = vmatprep.mubr.msk.bf16.mxu0 %vm4413_vm0, %v14720_v32  ;;  %v5443_v4 = vmax.f32 %v5419_v63, 0.0 }
 0x2b4   :  { %v5446_v5 = vmax.f32 %v5422_v40, 0.0 }
 0x2b5   :  { %v5444_v52 = vmax.f32 %v5420_v42, 0.0  ;;  %v15960_v43 = vpop.f32.mrb[88].mxu1 }
 0x2b6   :  { %v5462_v10 = vpack.c.bf16 %v5446_v5, %v5445_v59  ;;  %v5395_v15 = vmax.f32 %v19657_v39, %v15960_v43  ;;  %v5346_v45 = vpop.f32.mrb[89].mxu1 }
 0x2b7   :  { %v5461_v38 = vpack.c.bf16 %v5444_v52, %v5443_v4  ;;  %v5393_v1 = vmax.f32 %v19662_v23, %v5346_v45  ;;  %v15961_v9 = vpop.f32.mrb[90].mxu1  ;;  %v6625_v47 = vld [vmem:[#allocation2 + $0x28] sm:$0xf] }
 0x2b8   :  { %5474 = vst.msk [vmem:[#allocation2 + $0x38] sm:$0xff] %vm4413_vm0, %v5462_v10  ;;  %v6624_v17 = vld [vmem:[#allocation2 + $0x20] sm:$0xf]  ;;  %v5425_v49 = vadd.f32 %v19697_v48, %v5395_v15  ;;  %v5396_v33 = vmax.f32 %v19667_v35, %v15961_v9  ;;  %v5349_v13 = vpop.f32.mrb[91].mxu1  ;;  %v17077_v23 = vld [vmem:[%s21268_s3 + $0x8] sm:$0xff]  }
 0x2b9   :  { %5473 = vst.msk [vmem:[#allocation2 + $0x30] sm:$0xff] %vm4413_vm0, %v5461_v38  ;;  %v19752_v24 = vcombine.low %v6623_v54, %v6624_v17  ;;  %v5423_v39 = vadd.f32 %v19697_v48, %v5393_v1  ;;  %v5394_v7 = vmax.f32 %v19672_v19, %v5349_v13  ;;  %v19759_v6 = vcombine.low %v6624_v17, %v6625_v47 }
 0x2ba   :  { %v5426_v14 = vadd.f32 %v19697_v48, %v5396_v33  ;;  %v5449_v35 = vmax.f32 %v5425_v49, 0.0 }
 0x2bb   :  { %v5424_v60 = vadd.f32 %v19697_v48, %v5394_v7  ;;  %16083 = vmatmul.mubr.msk.bf16.vlgmr.msra.gmra.mrb[40].mxu0 %vm4413_vm0, %v19752_v24  ;;  %v5447_v54 = vmax.f32 %v5423_v39, 0.0 }
 0x2bc   :  { %v5450_v8 = vmax.f32 %v5426_v14, 0.0  ;;  %16099 = vmatpush3.bf16.msra.mxu0 %v17074_v58 }
 0x2bd   :  { %v5448_v41 = vmax.f32 %v5424_v60, 0.0  ;;  %v15964_v44 = vpop.f32.mrb[92].mxu1  ;;  %16100 = vmatprep.subr.bf16.mxu0 %v17077_v23 }
 0x2be   :  { %v5464_v19 = vpack.c.bf16 %v5450_v8, %v5449_v35  ;;  %v5399_v57 = vmax.f32 %v19677_v37, %v15964_v44  ;;  %v5362_v62 = vpop.f32.mrb[93].mxu1 }
 0x2bf   :  { %v5463_v63 = vpack.c.bf16 %v5448_v41, %v5447_v54  ;;  %v5397_v36 = vmax.f32 %v19682_v16, %v5362_v62  ;;  %v15965_v32 = vpop.f32.mrb[94].mxu1  ;;  %v6627_v40 = vld [vmem:[#allocation2 + $0x38] sm:$0xf] }
 0x2c0   :  { %5476 = vst.msk [vmem:[#allocation2 + $0x48] sm:$0xff] %vm4413_vm0, %v5464_v19  ;;  %v5429_v42 = vadd.f32 %v19697_v48, %v5399_v57  ;;  %v5400_v59 = vmax.f32 %v19687_v12, %v15965_v32  ;;  %v5365_v58 = vpop.f32.mrb[95].mxu1  ;;  %v6626_v5 = vld [vmem:[#allocation2 + $0x30] sm:$0xf]  ;;  %16101 = vmatpush3.bf16.msra.mxu0 %v17077_v23  ;;  %v19784_v12 = vld [vmem:[%s21268_s3 + $0xa0] sm:$0xff]  }
 0x2c1   :  { %5475 = vst.msk [vmem:[#allocation2 + $0x40] sm:$0xff] %vm4413_vm0, %v5463_v63  ;;  %v5427_v4 = vadd.f32 %v19697_v48, %v5397_v36  ;;  %v5398_v37 = vmax.f32 %v19692_v53, %v5365_v58  ;;  %v19773_v52 = vcombine.low %v6625_v47, %v6626_v5  ;;  %v19775_v16 = vcombine.low %v6626_v5, %v6627_v40  ;;  %v21351_v36 = vld [vmem:[#allocation58_spill] sm:$0xff] }
 0x2c2   :  { %v5430_v43 = vadd.f32 %v19697_v48, %v5400_v59  ;;  %v5453_v15 = vmax.f32 %v5429_v42, 0.0  ;;  %16118 = vmatprep.subr.bf16.mxu0 %v19784_v12  ;;  %v21353_v59 = vld [vmem:[#allocation60_spill] sm:$0xff] }
 0x2c3   :  { %v5428_v10 = vadd.f32 %v19697_v48, %v5398_v37  ;;  %16086 = vmatprep.mubr.msk.bf16.mxu0 %vm4413_vm0, %v19773_v52  ;;  %v5451_v38 = vmax.f32 %v5427_v4, 0.0 }
 0x2c4   :  { %v5454_v45 = vmax.f32 %v5430_v43, 0.0  ;;  %v21356_v43 = vld [vmem:[#allocation48_spill] sm:$0xff] }
 0x2c5   :  { %v5452_v53 = vmax.f32 %v5428_v10, 0.0  ;;  %v19786_v1 = vpop.f32.mrb[96].mxu1 }
 0x2c6   :  { %v5466_v9 = vpack.c.bf16 %v5454_v45, %v5453_v15  ;;  %v19789_v47 = vpop.f32.mrb[97].mxu1  ;;  %v21357_v15 = vld [vmem:[#allocation61_spill] sm:$0xff] }
 0x2c7   :  { %v5465_v17 = vpack.c.bf16 %v5452_v53, %v5451_v38  ;;  %v19791_v49 = vpop.f32.mrb[98].mxu1  ;;  %v21358_v38 = vld [vmem:[#allocation49_spill] sm:$0xff] }
 0x2c8   :  { %5478 = vst.msk [vmem:[#allocation2 + $0x58] sm:$0xff] %vm4413_vm0, %v5466_v9  ;;  %v19794_v33 = vpop.f32.mrb[99].mxu1  ;;  %v19796_v13 = vld [vmem:[#allocation2 + $0x40] sm:$0xf] }
 0x2c9   :  { %5477 = vst.msk [vmem:[#allocation2 + $0x50] sm:$0xff] %vm4413_vm0, %v5465_v17  ;;  %v19800_v39 = vcombine.low %v6627_v40, %v19796_v13  ;;  %v21352_v40 = vld [vmem:[#allocation59_spill] sm:$0xff]  ;;  %v21359_v9 = vld [vmem:[#allocation62_spill] sm:$0xff] }
 0x2cb   :  { %16087 = vmatmul.mubr.msk.bf16.gmra.mrb[44].mxu0 %vm4413_vm0, %v19800_v39 }
 0x2cd   :  { %v19804_v7 = vpop.f32.mrb[100].mxu1 }
 0x2ce   :  { %v19806_v23 = vpop.f32.mrb[101].mxu1 }
 0x2cf   :  { %v19808_v14 = vpop.f32.mrb[102].mxu1 }
 0x2d0   :  { %v19810_v60 = vpop.f32.mrb[103].mxu1 }
 0x2d5   :  { %v16000_v35 = vpop.f32.mrb[104].mxu1 }
 0x2d6   :  { %v5979_v8 = vmax.f32 %v19426_v46, %v16000_v35  ;;  %v5882_v54 = vpop.f32.mrb[105].mxu1  ;;  %v21360_v35 = vld [vmem:[#allocation63_spill] sm:$0xff] }
 0x2d7   :  { %v5977_v41 = vmax.f32 %v19432_v28, %v5882_v54  ;;  %v16001_v44 = vpop.f32.mrb[106].mxu1  ;;  %v21354_v28 = vld [vmem:[#allocation46_spill] sm:$0xff]  ;;  %v21361_v54 = vld [vmem:[#allocation64_spill] sm:$0xff] }
 0x2d8   :  { %v5980_v19 = vmax.f32 %v19436_v27, %v16001_v44  ;;  %v19816_v57 = vmax.f32 %v5979_v8, %v19507_v3  ;;  %v5885_v62 = vpop.f32.mrb[107].mxu1  ;;  %v21355_v27 = vld [vmem:[#allocation47_spill] sm:$0xff] }
 0x2d9   :  { %v5978_v63 = vmax.f32 %v19439_v29, %v5885_v62  ;;  %v19820_v32 = vmax.f32 %v5977_v41, %v21351_v36  ;;  %v21363_v36 = vld [vmem:[#allocation51_spill] sm:$0xff] }
 0x2da   :  { %v19823_v42 = vmax.f32 %v5980_v19, %v21352_v40  ;;  %v21362_v19 = vld [vmem:[#allocation50_spill] sm:$0xff] }
 0x2db   :  { %v19826_v46 = vmax.f32 %v5978_v63, %v21353_v59 }
 0x2dd   :  { %v16004_v58 = vpop.f32.mrb[108].mxu1 }
 0x2de   :  { %v5983_v5 = vmax.f32 %v21354_v28, %v16004_v58  ;;  %v5898_v4 = vpop.f32.mrb[109].mxu1  ;;  %v21364_v58 = vld [vmem:[#allocation52_spill] sm:$0xff] }
 0x2df   :  { %v5981_v37 = vmax.f32 %v21355_v27, %v5898_v4  ;;  %v16005_v3 = vpop.f32.mrb[110].mxu1  ;;  %v21365_v27 = vld [vmem:[#allocation53_spill] sm:$0xff] }
 0x2e0   :  { %v5984_v10 = vmax.f32 %v21356_v43, %v16005_v3  ;;  %v19832_v29 = vmax.f32 %v5983_v5, %v21357_v15  ;;  %v5901_v45 = vpop.f32.mrb[111].mxu1 }
 0x2e1   :  { %v5982_v53 = vmax.f32 %v21358_v38, %v5901_v45  ;;  %v19836_v17 = vmax.f32 %v5981_v37, %v21359_v9  ;;  %v21366_v45 = vld [vmem:[#allocation54_spill] sm:$0xff]  ;;  %v21367_v9 = vld [vmem:[#allocation55_spill] sm:$0xff] }
 0x2e2   :  { %v19839_v8 = vmax.f32 %v5984_v10, %v21360_v35 }
 0x2e3   :  { %v19842_v41 = vmax.f32 %v5982_v53, %v21361_v54  ;;  %v21368_v54 = vld [vmem:[#allocation56_spill] sm:$0xff] }
 0x2e5   :  { %v16008_v44 = vpop.f32.mrb[112].mxu1 }
 0x2e6   :  { %v5987_v62 = vmax.f32 %v21362_v19, %v16008_v44  ;;  %v5914_v63 = vpop.f32.mrb[113].mxu1 }
 0x2e7   :  { %v5985_v40 = vmax.f32 %v21363_v36, %v5914_v63  ;;  %v16009_v59 = vpop.f32.mrb[114].mxu1 }
 0x2e8   :  { %v5988_v28 = vmax.f32 %v21364_v58, %v16009_v59  ;;  %v19848_v5 = vmax.f32 %v5987_v62, %v19557_v26  ;;  %v5917_v4 = vpop.f32.mrb[115].mxu1  ;;  %v21369_v62 = vld [vmem:[#allocation57_spill] sm:$0xff] }
 0x2e9   :  { %v5986_v37 = vmax.f32 %v21365_v27, %v5917_v4  ;;  %v19852_v3 = vmax.f32 %v5985_v40, %v19564_v18 }
 0x2ea   :  { %v19855_v43 = vmax.f32 %v5988_v28, %v19566_v0 }
 0x2eb   :  { %v19858_v10 = vmax.f32 %v5986_v37, %v19568_v2 }
 0x2ed   :  { %v16012_v15 = vpop.f32.mrb[116].mxu1 }
 0x2ee   :  { %v5991_v38 = vmax.f32 %v21366_v45, %v16012_v15  ;;  %v5930_v53 = vpop.f32.mrb[117].mxu1 }
 0x2ef   :  { %v5989_v35 = vmax.f32 %v21367_v9, %v5930_v53  ;;  %v16013_v26 = vpop.f32.mrb[118].mxu1  ;;  %v21370_v9 = vld [vmem:[#allocation65_spill] sm:$0xff] }
 0x2f0   :  { %v5992_v44 = vmax.f32 %v21368_v54, %v16013_v26  ;;  %v19864_v19 = vmax.f32 %v5991_v38, %v19585_v50  ;;  %v5933_v18 = vpop.f32.mrb[119].mxu1 }
 0x2f1   :  { %v5990_v63 = vmax.f32 %v21369_v62, %v5933_v18  ;;  %v19868_v0 = vmax.f32 %v5989_v35, %v19592_v11 }
 0x2f2   :  { %v19871_v2 = vmax.f32 %v5992_v44, %v19594_v51 }
 0x2f3   :  { %v19874_v36 = vmax.f32 %v5990_v63, %v19596_v31 }
 0x2f5   :  { %v16016_v40 = vpop.f32.mrb[120].mxu1 }
 0x2f6   :  { %v5995_v59 = vmax.f32 %v19786_v1, %v16016_v40  ;;  %v5946_v58 = vpop.f32.mrb[121].mxu1 }
 0x2f7   :  { %v5993_v28 = vmax.f32 %v19789_v47, %v5946_v58  ;;  %v16017_v50 = vpop.f32.mrb[122].mxu1 }
 0x2f8   :  { %v5996_v4 = vmax.f32 %v19791_v49, %v16017_v50  ;;  %v19880_v27 = vmax.f32 %v5995_v59, %v19613_v55  ;;  %v5949_v11 = vpop.f32.mrb[123].mxu1 }
 0x2f9   :  { %v5994_v37 = vmax.f32 %v19794_v33, %v5949_v11  ;;  %v19884_v51 = vmax.f32 %v5993_v28, %v19620_v56 }
 0x2fa   :  { %v19887_v31 = vmax.f32 %v5996_v4, %v19622_v22 }
 0x2fb   :  { %v19890_v1 = vmax.f32 %v5994_v37, %v19624_v21 }
 0x2fd   :  { %v16020_v15 = vpop.f32.mrb[124].mxu1 }
 0x2fe   :  { %v5999_v47 = vmax.f32 %v19804_v7, %v16020_v15  ;;  %v5962_v45 = vpop.f32.mrb[125].mxu1 }
 0x2ff   :  { %v5997_v49 = vmax.f32 %v19806_v23, %v5962_v45  ;;  %v16021_v55 = vpop.f32.mrb[126].mxu1 }
 0x300   :  { %v6000_v38 = vmax.f32 %v19808_v14, %v16021_v55  ;;  %v19896_v33 = vmax.f32 %v5999_v47, %v19641_v30  ;;  %v5965_v56 = vpop.f32.mrb[127].mxu1 }
 0x301   :  { %v5998_v53 = vmax.f32 %v19810_v60, %v5965_v56  ;;  %v19900_v22 = vmax.f32 %v5997_v49, %v19648_v61 }
 0x302   :  { %v19903_v21 = vmax.f32 %v6000_v38, %v19650_v20 }
 0x303   :  { %v19906_v7 = vmax.f32 %v5998_v53, %v21370_v9 }
 0x305   :  { %v16056_v35 = vpop.f32.mrb[128].mxu1 }
 0x306   :  { %v6525_v23 = vmax.f32 %v19816_v57, %v16056_v35  ;;  %v6428_v26 = vpop.f32.mrb[129].mxu1 }
 0x307   :  { %v6523_v14 = vmax.f32 %v19820_v32, %v6428_v26  ;;  %v16057_v30 = vpop.f32.mrb[130].mxu1 }
 0x308   :  { %v6549_v54 = vadd.f32 %v19697_v48, %v6525_v23  ;;  %v6526_v60 = vmax.f32 %v19823_v42, %v16057_v30  ;;  %v6431_v44 = vpop.f32.mrb[131].mxu1 }
 0x309   :  { %v6547_v61 = vadd.f32 %v19697_v48, %v6523_v14  ;;  %v6524_v20 = vmax.f32 %v19826_v46, %v6431_v44 }
 0x30a   :  { %v6550_v18 = vadd.f32 %v19697_v48, %v6526_v60  ;;  %v6573_v63 = vmax.f32 %v6549_v54, 0.0 }
 0x30b   :  { %v6548_v62 = vadd.f32 %v19697_v48, %v6524_v20  ;;  %v6571_v57 = vmax.f32 %v6547_v61, 0.0 }
 0x30c   :  { %v6574_v40 = vmax.f32 %v6550_v18, 0.0 }
 0x30d   :  { %v6572_v59 = vmax.f32 %v6548_v62, 0.0  ;;  %v16060_v58 = vpop.f32.mrb[132].mxu1 }
 0x30e   :  { %v6596_v32 = vpack.c.bf16 %v6574_v40, %v6573_v63  ;;  %v6529_v28 = vmax.f32 %v19832_v29, %v16060_v58  ;;  %v6444_v50 = vpop.f32.mrb[133].mxu1 }
 0x30f   :  { %v6595_v4 = vpack.c.bf16 %v6572_v59, %v6571_v57  ;;  %v6527_v42 = vmax.f32 %v19836_v17, %v6444_v50  ;;  %v16061_v11 = vpop.f32.mrb[134].mxu1 }
 0x310   :  { %6609 = vst.msk [vmem:[#allocation2 + $0x68] sm:$0xff] %vm4413_vm0, %v6596_v32  ;;  %v6553_v46 = vadd.f32 %v19697_v48, %v6529_v28  ;;  %v6530_v37 = vmax.f32 %v19839_v8, %v16061_v11  ;;  %v6447_v15 = vpop.f32.mrb[135].mxu1 }
 0x311   :  { %6608 = vst.msk [vmem:[#allocation2 + $0x60] sm:$0xff] %vm4413_vm0, %v6595_v4  ;;  %v6551_v47 = vadd.f32 %v19697_v48, %v6527_v42  ;;  %v6528_v45 = vmax.f32 %v19842_v41, %v6447_v15 }
 0x312   :  { %v6554_v29 = vadd.f32 %v19697_v48, %v6530_v37  ;;  %v6577_v55 = vmax.f32 %v6553_v46, 0.0 }
 0x313   :  { %v6552_v49 = vadd.f32 %v19697_v48, %v6528_v45  ;;  %v6575_v38 = vmax.f32 %v6551_v47, 0.0 }
 0x314   :  { %v6578_v17 = vmax.f32 %v6554_v29, 0.0 }
 0x315   :  { %v6576_v56 = vmax.f32 %v6552_v49, 0.0  ;;  %v16064_v53 = vpop.f32.mrb[136].mxu1 }
 0x316   :  { %v6598_v9 = vpack.c.bf16 %v6578_v17, %v6577_v55  ;;  %v6533_v35 = vmax.f32 %v19848_v5, %v16064_v53  ;;  %v6460_v8 = vpop.f32.mrb[137].mxu1 }
 0x317   :  { %v6597_v23 = vpack.c.bf16 %v6576_v56, %v6575_v38  ;;  %v6531_v26 = vmax.f32 %v19852_v3, %v6460_v8  ;;  %v16065_v14 = vpop.f32.mrb[138].mxu1  ;;  %v19941_v4 = vld [vmem:[#allocation2 + $0x68] sm:$0xf] }
 0x318   :  { %6611 = vst.msk [vmem:[#allocation2 + $0x78] sm:$0xff] %vm4413_vm0, %v6598_v9  ;;  %v6557_v41 = vadd.f32 %v19697_v48, %v6533_v35  ;;  %v6534_v30 = vmax.f32 %v19855_v43, %v16065_v14  ;;  %v6463_v54 = vpop.f32.mrb[139].mxu1 }
 0x319   :  { %6610 = vst.msk [vmem:[#allocation2 + $0x70] sm:$0xff] %vm4413_vm0, %v6597_v23  ;;  %v6555_v60 = vadd.f32 %v19697_v48, %v6531_v26  ;;  %v6532_v44 = vmax.f32 %v19858_v10, %v6463_v54 }
 0x31a   :  { %v6558_v5 = vadd.f32 %v19697_v48, %v6534_v30  ;;  %v6581_v20 = vmax.f32 %v6557_v41, 0.0 }
 0x31b   :  { %v6556_v61 = vadd.f32 %v19697_v48, %v6532_v44  ;;  %v6579_v18 = vmax.f32 %v6555_v60, 0.0 }
 0x31c   :  { %v6582_v3 = vmax.f32 %v6558_v5, 0.0 }
 0x31d   :  { %v6580_v62 = vmax.f32 %v6556_v61, 0.0  ;;  %v16068_v63 = vpop.f32.mrb[140].mxu1 }
 0x31e   :  { %v6600_v40 = vpack.c.bf16 %v6582_v3, %v6581_v20  ;;  %v6537_v57 = vmax.f32 %v19864_v19, %v16068_v63  ;;  %v6476_v43 = vpop.f32.mrb[141].mxu1 }
 0x31f   :  { %v6599_v59 = vpack.c.bf16 %v6580_v62, %v6579_v18  ;;  %v6535_v58 = vmax.f32 %v19868_v0, %v6476_v43  ;;  %v16069_v32 = vpop.f32.mrb[142].mxu1  ;;  %v6635_v8 = vld [vmem:[#allocation2 + $0x78] sm:$0xf] }
 0x320   :  { %6613 = vst.msk [vmem:[#allocation2 + $0x88] sm:$0xff] %vm4413_vm0, %v6600_v40  ;;  %v6561_v10 = vadd.f32 %v19697_v48, %v6537_v57  ;;  %v6538_v28 = vmax.f32 %v19871_v2, %v16069_v32  ;;  %v6479_v50 = vpop.f32.mrb[143].mxu1  ;;  %v19943_v42 = vld [vmem:[#allocation2 + $0x70] sm:$0xf] }
 0x321   :  { %6612 = vst.msk [vmem:[#allocation2 + $0x80] sm:$0xff] %vm4413_vm0, %v6599_v59  ;;  %v6559_v19 = vadd.f32 %v19697_v48, %v6535_v58  ;;  %v6536_v11 = vmax.f32 %v19874_v36, %v6479_v50  ;;  %v14724_v0 = vcombine.low %v19941_v4, %v19943_v42 }
 0x322   :  { %v6562_v46 = vadd.f32 %v19697_v48, %v6538_v28  ;;  %v6585_v2 = vmax.f32 %v6561_v10, 0.0 }
 0x323   :  { %v6560_v37 = vadd.f32 %v19697_v48, %v6536_v11  ;;  %16090 = vmatprep.mubr.msk.bf16.mxu0 %vm4413_vm0, %v14724_v0  ;;  %v6583_v47 = vmax.f32 %v6559_v19, 0.0  ;;  %v6620_v0 = vld [vmem:[#allocation2] sm:$0xf] }
 0x324   :  { %v6586_v15 = vmax.f32 %v6562_v46, 0.0 }
 0x325   :  { %v6584_v45 = vmax.f32 %v6560_v37, 0.0  ;;  %v16072_v29 = vpop.f32.mrb[144].mxu1 }
 0x326   :  { %v6602_v49 = vpack.c.bf16 %v6586_v15, %v6585_v2  ;;  %v6541_v55 = vmax.f32 %v19880_v27, %v16072_v29  ;;  %v6492_v17 = vpop.f32.mrb[145].mxu1  ;;  %v14738_v2 = vcombine.low %v6620_v0, %v19735_v34  ;;  %v17082_v34 = vld [vmem:[%s21268_s3 + $0xf0] sm:$0xff]   ;;  %v6632_v15 = vld [vmem:[#allocation2 + $0x60] sm:$0xf]  ;;  %v20092_v0 = vld [vmem:[#allocation2 + $0x38] sm:$0x1f] }
 0x327   :  { %v6601_v38 = vpack.c.bf16 %v6584_v45, %v6583_v47  ;;  %v6539_v36 = vmax.f32 %v19884_v51, %v6492_v17  ;;  %v16073_v56 = vpop.f32.mrb[146].mxu1  ;;  %v6637_v57 = vld [vmem:[#allocation2 + $0x88] sm:$0xf]  ;;  %v14742_v47 = vcombine.low %v6632_v15, %v19941_v4  ;;  %v14743_v45 = vcombine.low %v19943_v42, %v6635_v8  ;;  %v17083_v4 = vld [vmem:[%s21268_s3 + $0xf8] sm:$0xff]   ;;  %v17085_v42 = vld [vmem:[%s21268_s3 + $0x140] sm:$0xff]  }
 0x328   :  { %6615 = vst.msk [vmem:[#allocation2 + $0x98] sm:$0xff] %vm4413_vm0, %v6602_v49  ;;  %v6565_v53 = vadd.f32 %v19697_v48, %v6541_v55  ;;  %v6542_v9 = vmax.f32 %v19887_v31, %v16073_v56  ;;  %v6495_v35 = vpop.f32.mrb[147].mxu1  ;;  %v6636_v23 = vld [vmem:[#allocation2 + $0x80] sm:$0xf]  ;;  %v6629_v49 = vld [vmem:[#allocation2 + $0x48] sm:$0xf] }
 0x329   :  { %6614 = vst.msk [vmem:[#allocation2 + $0x90] sm:$0xff] %vm4413_vm0, %v6601_v38  ;;  %v6563_v26 = vadd.f32 %v19697_v48, %v6539_v36  ;;  %v6540_v27 = vmax.f32 %v19890_v1, %v6495_v35  ;;  %v19961_v14 = vcombine.low %v6635_v8, %v6636_v23  ;;  %v20002_v29 = vcombine.low %v6636_v23, %v6637_v57  ;;  %v17089_v38 = vld [vmem:[%s21268_s3 + $0x10] sm:$0xff]   ;;  %v20061_v8 = vld [vmem:[#allocation2 + $0x18] sm:$0x1f] }
 0x32a   :  { %v6566_v51 = vadd.f32 %v19697_v48, %v6542_v9  ;;  %v6589_v30 = vmax.f32 %v6565_v53, 0.0  ;;  %v20046_v36 = vld [vmem:[#allocation2 + $0x50] sm:$0xf]  ;;  %v7398_v53 = vld [vmem:[#allocation2 + $0x8] sm:$0x1f] }
 0x32b   :  { %v6564_v41 = vadd.f32 %v19697_v48, %v6540_v27  ;;  %16091 = vmatmul.mubr.msk.bf16.gmra.mrb[48].mxu0 %vm4413_vm0, %v19961_v14  ;;  %v6587_v54 = vmax.f32 %v6563_v26, 0.0  ;;  %v20058_v35 = vld [vmem:[#allocation2 + $0x10] sm:$0x1f]  ;;  %v14806_v23 = vcombine.low %v7398_v53, %v7398_v53 }
 0x32c   :  { %v6590_v31 = vmax.f32 %v6566_v51, 0.0  ;;  %v14810_v51 = vcombine.low %v20061_v8, %v20061_v8 }
 0x32d   :  { %v6588_v60 = vmax.f32 %v6564_v41, 0.0  ;;  %v16076_v44 = vpop.f32.mrb[148].mxu1  ;;  %v7519_v41 = vshrl.u32 %v14806_v23, 16 }
 0x32e   :  { %v6604_v5 = vpack.c.bf16 %v6590_v31, %v6589_v30  ;;  %v6545_v61 = vmax.f32 %v19896_v33, %v16076_v44  ;;  %v6508_v20 = vpop.f32.mrb[149].mxu1  ;;  %v7522_v30 = vshll.u32 %v14806_v23, 16  ;;  %v17091_v31 = vld [vmem:[%s21268_s3 + $0x18] sm:$0xff]  }
 0x32f   :  { %v6603_v3 = vpack.c.bf16 %v6588_v60, %v6587_v54  ;;  %v6543_v1 = vmax.f32 %v19900_v22, %v6508_v20  ;;  %v16077_v18 = vpop.f32.mrb[150].mxu1  ;;  %v6639_v46 = vld [vmem:[#allocation2 + $0x98] sm:$0xf]  ;;  %v20072_v20 = vld [vmem:[#allocation2 + $0x20] sm:$0x1f] }
 0x330   :  { %6617 = vst.msk [vmem:[#allocation2 + $0xa8] sm:$0xff] %vm4413_vm0, %v6604_v5  ;;  %v6569_v62 = vadd.f32 %v19697_v48, %v6545_v61  ;;  %v6546_v63 = vmax.f32 %v19903_v21, %v16077_v18  ;;  %v6511_v40 = vpop.f32.mrb[151].mxu1  ;;  %v6638_v43 = vld [vmem:[#allocation2 + $0x90] sm:$0xf]  ;;  %v7550_v61 = vshll.u32 %v14810_v51, 16  ;;  %v14807_v18 = vcombine.high %v7398_v53, %v7398_v53 }
 0x331   :  { %6616 = vst.msk [vmem:[#allocation2 + $0xa0] sm:$0xff] %vm4413_vm0, %v6603_v3  ;;  %v6567_v59 = vadd.f32 %v19697_v48, %v6543_v1  ;;  %v6544_v33 = vmax.f32 %v19906_v7, %v6511_v40  ;;  %v19975_v58 = vcombine.low %v6637_v57, %v6638_v43  ;;  %v20076_v1 = vld [vmem:[#allocation2 + $0x28] sm:$0x1f]  ;;  %v20112_v53 = vld [vmem:[#allocation2 + $0x60] sm:$0x1f] }
 0x332   :  { %v6570_v22 = vadd.f32 %v19697_v48, %v6546_v63  ;;  %v6593_v10 = vmax.f32 %v6569_v62, 0.0  ;;  %v7521_v62 = vrot.slane %v7519_v41, 4  ;;  %v7524_v63 = vrot.slane %v7522_v30, 5 }
 0x333   :  { %v6568_v32 = vadd.f32 %v19697_v48, %v6544_v33  ;;  %16094 = vmatprep.mubr.msk.bf16.mxu0 %vm4413_vm0, %v19975_v58  ;;  %v6591_v28 = vmax.f32 %v6567_v59, 0.0  ;;  %v17080_v48 = vld [vmem:[%s21268_s3 + $0xa8] sm:$0xff]   ;;  %v6631_v59 = vld [vmem:[#allocation2 + $0x58] sm:$0xf] }
 0x334   :  { %v6594_v21 = vmax.f32 %v6570_v22, 0.0  ;;  %v7552_v22 = vrot.slane %v7550_v61, 5 }
 0x335   :  { %v6592_v50 = vmax.f32 %v6568_v32, 0.0  ;;  %v14814_v32 = vcombine.low %v20076_v1, %v20076_v1 }
 0x336   :  { %v6606_v19 = vpack.c.bf16 %v6594_v21, %v6593_v10  ;;  %v7525_v21 = vor.u32 %v7524_v63, %v7521_v62 }
 0x337   :  { %v6605_v11 = vpack.c.bf16 %v6592_v50, %v6591_v28  ;;  %v6641_v55 = vld [vmem:[#allocation2 + $0xa8] sm:$0xf]  ;;  %v7528_v28 = vshll.u32 %v14807_v18, 16  ;;  %v14809_v50 = vcombine.high %v20058_v35, %v20058_v35 }
 0x338   :  { %6619 = vst.msk [vmem:[#allocation2 + $0xb8] sm:$0xff] %vm4413_vm0, %v6606_v19  ;;  %v6640_v7 = vld [vmem:[#allocation2 + $0xa0] sm:$0xf]  ;;  %v14811_v19 = vcombine.high %v20061_v8, %v20061_v8 }
 0x339   :  { %6618 = vst.msk [vmem:[#allocation2 + $0xb0] sm:$0xff] %vm4413_vm0, %v6605_v11  ;;  %v14727_v37 = vcombine.low %v6639_v46, %v6640_v7  ;;  %v20030_v17 = vcombine.low %v6640_v7, %v6641_v55  ;;  %v7403_v11 = vld [vmem:[#allocation2 + $0x30] sm:$0x1f] }
 0x33b   :  { %16095 = vmatmul.mubr.msk.bf16.gmra.mrb[52].mxu0 %vm4413_vm0, %v14727_v37 }
 0x33c   :  { %16102 = vmatprep.mubr.msk.bf16.mxu0 %vm4413_vm0, %v14738_v2 }
 0x343   :  { %16103 = vmatmul.mubr.msk.bf16.vlgmr.msra.gmra.mrb[40].mxu0 %vm4413_vm0, %v19741_v25 }
 0x344   :  { %16106 = vmatprep.mubr.msk.bf16.mxu0 %vm4413_vm0, %v19759_v6  ;;  %16119 = vmatpush3.bf16.msra.mxu0 %v19784_v12  ;;  %v20007_v12 = vcombine.low %v6638_v43, %v6639_v46  ;;  %v20082_v43 = vld [vmem:[%s21268_s3 + $0x60] sm:$0xff]   ;;  %v14792_v46 = vcombine.low %v20046_v36, %v6631_v59 }
 0x345   :  { %16120 = vmatprep.subr.bf16.mxu0 %v17080_v48 }
 0x348   :  { %16121 = vmatpush3.bf16.msra.mxu0 %v17080_v48 }
 0x349   :  { %16138 = vmatprep.subr.bf16.mxu0 %v17082_v34 }
 0x34b   :  { %16107 = vmatmul.mubr.msk.bf16.gmra.mrb[44].mxu0 %vm4413_vm0, %v19775_v16 }
 0x34c   :  { %16110 = vmatprep.mubr.msk.bf16.mxu0 %vm4413_vm0, %v14742_v47  ;;  %v7575_v47 = vshrl.u32 %v14814_v32, 16 }
 0x353   :  { %16111 = vmatmul.mubr.msk.bf16.gmra.mrb[48].mxu0 %vm4413_vm0, %v14743_v45 }
 0x354   :  { %16114 = vmatprep.mubr.msk.bf16.mxu0 %vm4413_vm0, %v20002_v29 }
 0x35b   :  { %16115 = vmatmul.mubr.msk.bf16.gmra.mrb[52].mxu0 %vm4413_vm0, %v20007_v12 }
 0x35c   :  { %16122 = vmatprep.mubr.msk.bf16.mxu0 %vm4413_vm0, %v19741_v25  ;;  %v14760_v25 = vcombine.low %v19796_v13, %v6629_v49  ;;  %v17087_v13 = vld [vmem:[%s21268_s3 + $0x148] sm:$0xff]  }
 0x363   :  { %16123 = vmatmul.mubr.msk.bf16.vlgmr.msra.gmra.mrb[40].mxu0 %vm4413_vm0, %v19759_v6 }
 0x364   :  { %16126 = vmatprep.mubr.msk.bf16.mxu0 %vm4413_vm0, %v19775_v16  ;;  %16139 = vmatpush3.bf16.msra.mxu0 %v17082_v34 }
 0x365   :  { %16140 = vmatprep.subr.bf16.mxu0 %v17083_v4 }
 0x368   :  { %16141 = vmatpush3.bf16.msra.mxu0 %v17083_v4 }
 0x369   :  { %16158 = vmatprep.subr.bf16.mxu0 %v17085_v42 }
 0x36b   :  { %16127 = vmatmul.mubr.msk.bf16.gmra.mrb[44].mxu0 %vm4413_vm0, %v14760_v25 }
 0x36c   :  { %16130 = vmatprep.mubr.msk.bf16.mxu0 %vm4413_vm0, %v14743_v45  ;;  %v7578_v45 = vshll.u32 %v14814_v32, 16 }
 0x36e   :  { %v7580_v23 = vrot.slane %v7578_v45, 5 }
 0x373   :  { %16131 = vmatmul.mubr.msk.bf16.gmra.mrb[48].mxu0 %vm4413_vm0, %v20002_v29 }
 0x374   :  { %16134 = vmatprep.mubr.msk.bf16.mxu0 %vm4413_vm0, %v20007_v12 }
 0x37b   :  { %16135 = vmatmul.mubr.msk.bf16.gmra.mrb[52].mxu0 %vm4413_vm0, %v20030_v17 }
 0x37c   :  { %16142 = vmatprep.mubr.msk.bf16.mxu0 %vm4413_vm0, %v19752_v24  ;;  %v14776_v24 = vcombine.low %v6629_v49, %v20046_v36  ;;  %v14818_v49 = vcombine.low %v20092_v0, %v20092_v0 }
 0x383   :  { %16143 = vmatmul.mubr.msk.bf16.vlgmr.msra.gmra.mrb[40].mxu0 %vm4413_vm0, %v19773_v52  ;;  %v20055_v52 = vld [vmem:[#allocation2 + $0xb0] sm:$0xf] }
 0x384   :  { %16146 = vmatprep.mubr.msk.bf16.mxu0 %vm4413_vm0, %v19800_v39  ;;  %16159 = vmatpush3.bf16.msra.mxu0 %v17085_v42  ;;  %v7397_v39 = vld [vmem:[#allocation2] sm:$0x1f]  ;;  %v14777_v56 = vcombine.low %v6641_v55, %v20055_v52  ;;  %v14816_v42 = vcombine.low %v7403_v11, %v7403_v11  ;;  %v7530_v55 = vrot.slane %v7528_v28, 5 }
 0x385   :  { %16160 = vmatprep.subr.bf16.mxu0 %v17087_v13  ;;  %v14804_v9 = vcombine.low %v7397_v39, %v7397_v39  ;;  %v14805_v3 = vcombine.high %v7397_v39, %v7397_v39 }
 0x387   :  { %v7505_v26 = vshrl.u32 %v14804_v9, 16  ;;  %v7508_v27 = vshll.u32 %v14804_v9, 16  ;;  %v7514_v10 = vshll.u32 %v14805_v3, 16  ;;  %v20114_v9 = vld [vmem:[#allocation2 + $0x68] sm:$0x1f] }
 0x388   :  { %16161 = vmatpush3.bf16.msra.mxu0 %v17087_v13  ;;  %v7542_v13 = vshll.u32 %v14809_v50, 16  ;;  %v14819_v50 = vcombine.high %v20092_v0, %v20092_v0 }
 0x389   :  { %16178 = vmatprep.subr.bf16.mxu0 %v17089_v38  ;;  %v7507_v54 = vrot.slane %v7505_v26, 4  ;;  %v7510_v60 = vrot.slane %v7508_v27, 5  ;;  %v7516_v4 = vrot.slane %v7514_v10, 5  ;;  %v7589_v26 = vshrl.u32 %v14816_v42, 16 }
 0x38a   :  { %v7592_v27 = vshll.u32 %v14816_v42, 16  ;;  %v7544_v41 = vrot.slane %v7542_v13, 5  ;;  %v7612_v13 = vshll.u32 %v14819_v50, 16 }
 0x38b   :  { %16147 = vmatmul.mubr.msk.bf16.gmra.mrb[44].mxu0 %vm4413_vm0, %v14776_v24  ;;  %v7511_v40 = vor.u32 %v7510_v60, %v7507_v54  ;;  %v14813_v24 = vcombine.high %v20072_v20, %v20072_v20  ;;  %v14822_v54 = vcombine.low %v20114_v9, %v20114_v9  ;;  %v14815_v60 = vcombine.high %v20076_v1, %v20076_v1 }
 0x38c   :  { %16150 = vmatprep.mubr.msk.bf16.mxu0 %vm4413_vm0, %v19961_v14  ;;  %v14808_v14 = vcombine.low %v20058_v35, %v20058_v35  ;;  %v7591_v1 = vrot.slane %v7589_v26, 4  ;;  %v7594_v62 = vrot.slane %v7592_v27, 5 }
 0x38d   :  { %v7512_v7 = vrot.slane %v7511_v40, 4  ;;  %v7631_v59 = vshrl.u32 %v14822_v54, 16  ;;  %v7584_v32 = vshll.u32 %v14815_v60, 16 }
 0x38e   :  { %v7533_v44 = vshrl.u32 %v14808_v14, 16  ;;  %v7536_v5 = vshll.u32 %v14808_v14, 16  ;;  %v7603_v14 = vshrl.u32 %v14818_v49, 16 }
 0x38f   :  { %v20108_v36 = vsel %vm20097_vm3, %v7512_v7, %v7516_v4  ;;  %v20154_v4 = vld [vmem:[#allocation2 + $0x88] sm:$0x1f]  ;;  %v7586_v42 = vrot.slane %v7584_v32, 5 }
 0x390   :  { %v7535_v57 = vrot.slane %v7533_v44, 4  ;;  %v7538_v33 = vrot.slane %v7536_v5, 5  ;;  %v7570_v5 = vshll.u32 %v14813_v24, 16  ;;  %v7605_v63 = vrot.slane %v7603_v14, 4 }
 0x391   :  { %v7614_v14 = vrot.slane %v7612_v13, 5 }
 0x392   :  { %v7539_v34 = vor.u32 %v7538_v33, %v7535_v57  ;;  %v7634_v33 = vshll.u32 %v14822_v54, 16 }
 0x393   :  { %16151 = vmatmul.mubr.msk.bf16.gmra.mrb[48].mxu0 %vm4413_vm0, %v19975_v58 }
 0x394   :  { %16154 = vmatprep.mubr.msk.bf16.mxu0 %vm4413_vm0, %v14727_v37  ;;  %v7540_v35 = vrot.slane %v7539_v34, 4  ;;  %v7636_v45 = vrot.slane %v7634_v33, 5  ;;  %v17118_v33 = vld [vmem:[%s21268_s3 + $0x68] sm:$0xff]  }
 0x39b   :  { %16155 = vmatmul.mubr.msk.bf16.gmra.mrb[52].mxu0 %vm4413_vm0, %v14777_v56 }
 0x39c   :  { %16162 = vmatprep.mubr.msk.bf16.mxu0 %vm4413_vm0, %v19759_v6  ;;  %v7547_v6 = vshrl.u32 %v14810_v51, 16  ;;  %v7606_v51 = vshll.u32 %v14818_v49, 16 }
 0x39e   :  { %v7549_v58 = vrot.slane %v7547_v6, 4  ;;  %v14817_v6 = vcombine.high %v7403_v11, %v7403_v11  ;;  %v7608_v40 = vrot.slane %v7606_v51, 5 }
 0x3a0   :  { %v7553_v15 = vor.u32 %v7552_v22, %v7549_v58  ;;  %v7572_v22 = vrot.slane %v7570_v5, 5  ;;  %v7598_v10 = vshll.u32 %v14817_v6, 16  ;;  %v7609_v7 = vor.u32 %v7608_v40, %v7605_v63  ;;  %v20185_v5 = vld [vmem:[#allocation2 + $0x90] sm:$0x1f]  ;;  %v20187_v6 = vld [vmem:[#allocation2 + $0x98] sm:$0x1f] }
 0x3a1   :  { %v14832_v32 = vcombine.low %v20185_v5, %v20185_v5 }
 0x3a2   :  { %v7554_v8 = vrot.slane %v7553_v15, 4 }
 0x3a3   :  { %16163 = vmatmul.mubr.msk.bf16.vlgmr.msra.gmra.mrb[40].mxu0 %vm4413_vm0, %v19775_v16  ;;  %v14812_v16 = vcombine.low %v20072_v20, %v20072_v20  ;;  %v20128_v20 = vsel %vm20097_vm3, %v7540_v35, %v7544_v41 }
 0x3a4   :  { %16166 = vmatprep.mubr.msk.bf16.mxu0 %vm4413_vm0, %v14760_v25  ;;  %16179 = vmatpush3.bf16.msra.mxu0 %v17089_v38  ;;  %v7526_v25 = vrot.slane %v7525_v21, 4  ;;  %v7556_v38 = vshll.u32 %v14811_v19, 16  ;;  %v6643_v21 = vld [vmem:[#allocation2 + $0xb8] sm:$0xf] }
 0x3a5   :  { %16180 = vmatprep.subr.bf16.mxu0 %v17091_v31  ;;  %v7561_v37 = vshrl.u32 %v14812_v16, 16  ;;  %v7564_v2 = vshll.u32 %v14812_v16, 16  ;;  %v20148_v19 = vld [vmem:[#allocation2 + $0x78] sm:$0x1f]  ;;  %v14793_v0 = vcombine.low %v20055_v52, %v6643_v21 }
 0x3a6   :  { %v7558_v30 = vrot.slane %v7556_v38, 5  ;;  %v20124_v61 = vsel %vm20097_vm3, %v7526_v25, %v7530_v55  ;;  %v14826_v25 = vcombine.low %v20148_v19, %v20148_v19  ;;  %v14823_v38 = vcombine.high %v20114_v9, %v20114_v9 }
 0x3a7   :  { %v7563_v39 = vrot.slane %v7561_v37, 4  ;;  %v7566_v56 = vrot.slane %v7564_v2, 5  ;;  %v14840_v28 = vcombine.low %v20108_v36, %v20124_v61  ;;  %v14821_v37 = vcombine.high %v20112_v53, %v20112_v53  ;;  %v20152_v2 = vld [vmem:[#allocation2 + $0x80] sm:$0x1f] }
 0x3a8   :  { %16181 = vmatpush3.bf16.msra.mxu0 %v17091_v31  ;;  %v14820_v31 = vcombine.low %v20112_v53, %v20112_v53  ;;  %v20132_v3 = vsel %vm20097_vm3, %v7554_v8, %v7558_v30  ;;  %v14828_v36 = vcombine.low %v20152_v2, %v20152_v2  ;;  %v7610_v53 = vrot.slane %v7609_v7, 4 }
 0x3a9   :  { %16198 = vmatprep.subr.bf16.mxu0 %v20082_v43  ;;  %v7567_v44 = vor.u32 %v7566_v56, %v7563_v39  ;;  %v7600_v39 = vrot.slane %v7598_v10, 5  ;;  %v14830_v56 = vcombine.low %v20154_v4, %v20154_v4  ;;  %v7626_v8 = vshll.u32 %v14821_v37, 16 }
 0x3aa   :  { %v7617_v57 = vshrl.u32 %v14820_v31, 16  ;;  %v7620_v16 = vshll.u32 %v14820_v31, 16  ;;  %v7659_v26 = vshrl.u32 %v14826_v25, 16  ;;  %v7662_v27 = vshll.u32 %v14826_v25, 16 }
 0x3ab   :  { %16167 = vmatmul.mubr.msk.bf16.gmra.mrb[44].mxu0 %vm4413_vm0, %v14792_v46  ;;  %v7568_v58 = vrot.slane %v7567_v44, 4  ;;  %v7595_v46 = vor.u32 %v7594_v62, %v7591_v1  ;;  %v7640_v51 = vshll.u32 %v14823_v38, 16  ;;  %v7673_v41 = vshrl.u32 %v14828_v36, 16 }
 0x3ac   :  { %16170 = vmatprep.mubr.msk.bf16.mxu0 %vm4413_vm0, %v20002_v29  ;;  %v7577_v29 = vrot.slane %v7575_v47, 4  ;;  %v7619_v34 = vrot.slane %v7617_v57, 4  ;;  %v7622_v15 = vrot.slane %v7620_v16, 5  ;;  %v7633_v47 = vrot.slane %v7631_v59, 4 }
 0x3ad   :  { %v20163_v55 = vsel %vm20097_vm3, %v7568_v58, %v7572_v22  ;;  %v7596_v24 = vrot.slane %v7595_v46, 4  ;;  %v7676_v30 = vshll.u32 %v14828_v36, 16  ;;  %v7687_v60 = vshrl.u32 %v14830_v56, 16 }
 0x3ae   :  { %v7581_v18 = vor.u32 %v7580_v23, %v7577_v29  ;;  %v7623_v35 = vor.u32 %v7622_v15, %v7619_v34  ;;  %v7637_v9 = vor.u32 %v7636_v45, %v7633_v47  ;;  %v7690_v44 = vshll.u32 %v14830_v56, 16 }
 0x3af   :  { %v20183_v54 = vsel %vm20097_vm3, %v7596_v24, %v7600_v39  ;;  %v7628_v62 = vrot.slane %v7626_v8, 5  ;;  %v7661_v16 = vrot.slane %v7659_v26, 4  ;;  %v7664_v59 = vrot.slane %v7662_v27, 5 }
 0x3b0   :  { %v7582_v11 = vrot.slane %v7581_v18, 4  ;;  %v20191_v18 = vsel %vm20097_vm3, %v7610_v53, %v7614_v14  ;;  %v7624_v1 = vrot.slane %v7623_v35, 4  ;;  %v7638_v63 = vrot.slane %v7637_v9, 4 }
 0x3b1   :  { %v7642_v58 = vrot.slane %v7640_v51, 5  ;;  %v14834_v10 = vcombine.low %v20187_v6, %v20187_v6  ;;  %v7675_v21 = vrot.slane %v7673_v41, 4  ;;  %v7689_v50 = vrot.slane %v7687_v60, 4 }
 0x3b2   :  { %v20172_v52 = vsel %vm20097_vm3, %v7582_v11, %v7586_v42  ;;  %v7692_v11 = vrot.slane %v7690_v44, 5  ;;  %v14827_v7 = vcombine.high %v20148_v19, %v20148_v19  ;;  %v7665_v34 = vor.u32 %v7664_v59, %v7661_v16 }
 0x3b3   :  { %16171 = vmatmul.mubr.msk.bf16.gmra.mrb[48].mxu0 %vm4413_vm0, %v20007_v12  ;;  %v20142_v12 = vcombine.low %v20128_v20, %v20132_v3  ;;  %v20179_v31 = vcombine.low %v20163_v55, %v20172_v52  ;;  %v20211_v46 = vsel %vm20097_vm3, %v7638_v63, %v7642_v58  ;;  %v14829_v15 = vcombine.high %v20152_v2, %v20152_v2 }
 0x3b4   :  { %16174 = vmatprep.mubr.msk.bf16.mxu0 %vm4413_vm0, %v20030_v17  ;;  %v20146_v17 = vld [vmem:[#allocation2 + $0x70] sm:$0x1f]  ;;  %v14831_v47 = vcombine.high %v20154_v4, %v20154_v4  ;;  %v7701_v45 = vshrl.u32 %v14832_v32, 16  ;;  %v7715_v42 = vshrl.u32 %v14834_v10, 16  ;;  %v7693_v19 = vor.u32 %v7692_v11, %v7689_v50 }
 0x3b5   :  { %v14824_v49 = vcombine.low %v20146_v17, %v20146_v17  ;;  %v14825_v22 = vcombine.high %v20146_v17, %v20146_v17  ;;  %v7629_v17 = vsel %vm20097_vm3, %v7624_v1, %v7628_v62  ;;  %v20226_v13 = vcombine.low %v20183_v54, %v20191_v18 }
 0x3b6   :  { %v14844_v2 = vcombine.low %v7629_v17, %v20211_v46  ;;  %v7668_v36 = vshll.u32 %v14827_v7, 16  ;;  %v7666_v24 = vrot.slane %v7665_v34, 4  ;;  %v7682_v39 = vshll.u32 %v14829_v15, 16 }
 0x3b7   :  { %v7645_v29 = vshrl.u32 %v14824_v49, 16  ;;  %v7648_v23 = vshll.u32 %v14824_v49, 16  ;;  %v7718_v49 = vshll.u32 %v14834_v10, 16  ;;  %v7654_v38 = vshll.u32 %v14825_v22, 16 }
 0x3b8   :  { %v7696_v56 = vshll.u32 %v14831_v47, 16  ;;  %v7703_v53 = vrot.slane %v7701_v45, 4  ;;  %v7717_v8 = vrot.slane %v7715_v42, 4  ;;  %v7670_v27 = vrot.slane %v7668_v36, 5  ;;  %v7417_v45 = vld [vmem:[#allocation2 + $0xa0] sm:$0x1f] }
 0x3b9   :  { %v7647_v40 = vrot.slane %v7645_v29, 4  ;;  %v7650_v57 = vrot.slane %v7648_v23, 5  ;;  %v7720_v9 = vrot.slane %v7718_v49, 5  ;;  %v7694_v23 = vrot.slane %v7693_v19, 4  ;;  %v17130_v49 = vld [vmem:[%s21268_s3 + $0xb8] sm:$0xff]  }
 0x3ba   :  { %v7656_v26 = vrot.slane %v7654_v38, 5  ;;  %v14833_v14 = vcombine.high %v20185_v5, %v20185_v5  ;;  %v14835_v51 = vcombine.high %v20187_v6, %v20187_v6  ;;  %v7684_v41 = vrot.slane %v7682_v39, 5  ;;  %v7405_v5 = vld [vmem:[#allocation2 + $0x40] sm:$0x1f]  ;;  %v7406_v39 = vld [vmem:[#allocation2 + $0x48] sm:$0x1f] }
 0x3bb   :  { %16175 = vmatmul.mubr.msk.bf16.gmra.mrb[52].mxu0 %vm4413_vm0, %v14793_v0  ;;  %v7651_v37 = vor.u32 %v7650_v57, %v7647_v40  ;;  %v7704_v0 = vshll.u32 %v14832_v32, 16  ;;  %v7671_v44 = vsel %vm20097_vm3, %v7666_v24, %v7670_v27  ;;  %v7721_v62 = vor.u32 %v7720_v9, %v7717_v8 }
 0x3bc   :  { %16182 = vmatprep.mubr.msk.bf16.mxu0 %vm4413_vm0, %v14840_v28  ;;  %v7678_v28 = vrot.slane %v7676_v30, 5  ;;  %v7698_v30 = vrot.slane %v7696_v56, 5  ;;  %v7710_v57 = vshll.u32 %v14833_v14, 16  ;;  %v7724_v16 = vshll.u32 %v14835_v51, 16 }
 0x3bd   :  { %v7652_v4 = vrot.slane %v7651_v37, 4  ;;  %v7706_v35 = vrot.slane %v7704_v0, 5  ;;  %v7722_v58 = vrot.slane %v7721_v62, 4  ;;  %v14858_v22 = vcombine.low %v7405_v5, %v7405_v5 }
 0x3be   :  { %v7679_v25 = vor.u32 %v7678_v28, %v7675_v21  ;;  %v7699_v40 = vsel %vm20097_vm3, %v7694_v23, %v7698_v30  ;;  %v7712_v32 = vrot.slane %v7710_v57, 5  ;;  %v7726_v10 = vrot.slane %v7724_v16, 5  ;;  %v7418_v30 = vld [vmem:[#allocation2 + $0xa8] sm:$0x1f] }
 0x3bf   :  { %v7657_v60 = vsel %vm20097_vm3, %v7652_v4, %v7656_v26  ;;  %v7707_v1 = vor.u32 %v7706_v35, %v7703_v53  ;;  %v7917_v50 = vshrl.u32 %v14858_v22, 16  ;;  %v7920_v11 = vshll.u32 %v14858_v22, 16 }
 0x3c0   :  { %v7680_v29 = vrot.slane %v7679_v25, 4  ;;  %v20245_v6 = vcombine.low %v7657_v60, %v7671_v44  ;;  %v7727_v28 = vsel %vm20097_vm3, %v7722_v58, %v7726_v10  ;;  %v14866_v7 = vcombine.low %v20124_v61, %v20128_v20  ;;  %v7407_v10 = vld [vmem:[#allocation2 + $0x50] sm:$0x1f] }
 0x3c1   :  { %v7919_v37 = vrot.slane %v7917_v50, 4  ;;  %v7922_v34 = vrot.slane %v7920_v11, 5  ;;  %v14859_v15 = vcombine.high %v7405_v5, %v7405_v5  ;;  %v20266_v42 = vcombine.low %v20132_v3, %v20163_v55  ;;  %v17133_v55 = vld [vmem:[%s21268_s3 + $0x100] sm:$0xff]  }
 0x3c2   :  { %v7685_v63 = vsel %vm20097_vm3, %v7680_v29, %v7684_v41  ;;  %v20273_v61 = vcombine.low %v20172_v52, %v20183_v54  ;;  %v14860_v25 = vcombine.low %v7417_v45, %v7417_v45  ;;  %v14870_v38 = vcombine.low %v20211_v46, %v7657_v60 }
 0x3c3   :  { %16183 = vmatmul.mubr.msk.bf16.vlgmr.msra.gmra.mrb[40].mxu0 %vm4413_vm0, %v20142_v12  ;;  %v20247_v59 = vcombine.low %v7685_v63, %v7699_v40  ;;  %v7923_v47 = vor.u32 %v7922_v34, %v7919_v37  ;;  %v7926_v0 = vshll.u32 %v14859_v15, 16  ;;  %v14861_v4 = vcombine.high %v7417_v45, %v7417_v45 }
 0x3c4   :  { %16186 = vmatprep.mubr.msk.bf16.mxu0 %vm4413_vm0, %v20179_v31  ;;  %16199 = vmatpush3.bf16.msra.mxu0 %v20082_v43  ;;  %v20222_v43 = vld [vmem:[%s21268_s3 + $0xb0] sm:$0xff]   ;;  %v7931_v54 = vshrl.u32 %v14860_v25, 16  ;;  %v7934_v19 = vshll.u32 %v14860_v25, 16  ;;  %v20292_v53 = vcombine.low %v7671_v44, %v7685_v63  ;;  %v14884_v8 = vcombine.low %v7406_v39, %v7406_v39  ;;  %v17136_v44 = vld [vmem:[%s21268_s3 + $0x108] sm:$0xff]   ;;  %v17142_v25 = vld [vmem:[%s21268_s3 + $0x158] sm:$0xff]  }
 0x3c5   :  { %16200 = vmatprep.subr.bf16.mxu0 %v17118_v33  ;;  %v7924_v20 = vrot.slane %v7923_v47, 4  ;;  %v7928_v3 = vrot.slane %v7926_v0, 5  ;;  %v7940_v56 = vshll.u32 %v14861_v4, 16  ;;  %v14885_v51 = vcombine.high %v7406_v39, %v7406_v39 }
 0x3c6   :  { %v7933_v36 = vrot.slane %v7931_v54, 4  ;;  %v8119_v29 = vshrl.u32 %v14884_v8, 16  ;;  %v8122_v23 = vshll.u32 %v14884_v8, 16  ;;  %v14886_v62 = vcombine.low %v7418_v30, %v7418_v30 }
 0x3c7   :  { %v7929_v52 = vsel %vm20097_vm3, %v7924_v20, %v7928_v3  ;;  %v7942_v46 = vrot.slane %v7940_v56, 5  ;;  %v8128_v60 = vshll.u32 %v14885_v51, 16  ;;  %v14887_v22 = vcombine.high %v7418_v30, %v7418_v30  ;;  %v7420_v51 = vld [vmem:[#allocation2 + $0xb8] sm:$0x1f] }
 0x3c8   :  { %16201 = vmatpush3.bf16.msra.mxu0 %v17118_v33  ;;  %v7708_v33 = vrot.slane %v7707_v1, 4  ;;  %v8121_v27 = vrot.slane %v8119_v29, 4  ;;  %v8124_v14 = vrot.slane %v8122_v23, 5  ;;  %v8133_v5 = vshrl.u32 %v14886_v62, 16 }
 0x3c9   :  { %16218 = vmatprep.subr.bf16.mxu0 %v20222_v43  ;;  %v8130_v63 = vrot.slane %v8128_v60, 5  ;;  %v8136_v57 = vshll.u32 %v14886_v62, 16  ;;  %v14904_v50 = vcombine.low %v7407_v10, %v7407_v10  ;;  %v14905_v45 = vcombine.high %v7407_v10, %v7407_v10 }
 0x3ca   :  { %v7713_v21 = vsel %vm20097_vm3, %v7708_v33, %v7712_v32  ;;  %v8125_v41 = vor.u32 %v8124_v14, %v8121_v27  ;;  %v8135_v33 = vrot.slane %v8133_v5, 4  ;;  %v14926_v60 = vcombine.low %v7420_v51, %v7420_v51  ;;  %v8642_v5 = vld [vmem:[#allocation2] sm:$0x1e] }
 0x3cb   :  { %16187 = vmatmul.mubr.msk.bf16.gmra.mrb[44].mxu0 %vm4413_vm0, %v20226_v13  ;;  %v20257_v17 = vcombine.low %v7713_v21, %v7727_v28  ;;  %v20294_v35 = vcombine.low %v7699_v40, %v7713_v21  ;;  %v8138_v58 = vrot.slane %v8136_v57, 5  ;;  %v8142_v21 = vshll.u32 %v14887_v22, 16  ;;  %v8643_v57 = vld [vmem:[#allocation2 + $0x8] sm:$0x1e] }
 0x3cc   :  { %16190 = vmatprep.mubr.msk.bf16.mxu0 %vm4413_vm0, %v14844_v2  ;;  %v20286_v2 = vcombine.low %v20191_v18, %v7929_v52  ;;  %v8126_v1 = vrot.slane %v8125_v41, 4  ;;  %v8297_v37 = vshrl.u32 %v14904_v50, 16  ;;  %v8300_v34 = vshll.u32 %v14904_v50, 16  ;;  %v17148_v41 = vld [vmem:[%s21268_s3 + $0x28] sm:$0xff]   ;;  %v8645_v50 = vld [vmem:[#allocation2 + $0x18] sm:$0x1e] }
 0x3cd   :  { %v8139_v32 = vor.u32 %v8138_v58, %v8135_v33  ;;  %v8144_v11 = vrot.slane %v8142_v21, 5  ;;  %v8306_v20 = vshll.u32 %v14905_v45, 16  ;;  %v8489_v62 = vshrl.u32 %v14926_v60, 16 }
 0x3ce   :  { %v8131_v40 = vsel %vm20097_vm3, %v8126_v1, %v8130_v63  ;;  %v8302_v47 = vrot.slane %v8300_v34, 5  ;;  %v8492_v63 = vshll.u32 %v14926_v60, 16  ;;  %v14944_v58 = vcombine.low %v8642_v5, %v8642_v5 }
 0x3cf   :  { %v20320_v16 = vcombine.low %v7929_v52, %v8131_v40  ;;  %v8308_v52 = vrot.slane %v8306_v20, 5  ;;  %v14945_v22 = vcombine.high %v8642_v5, %v8642_v5  ;;  %v14947_v10 = vcombine.high %v8643_v57, %v8643_v57  ;;  %v17176_v5 = vld [vmem:[%s21268_s3 + $0x78] sm:$0xff]  }
 0x3d1   :  { %v8751_v34 = vrot.slane %v14945_v22, 5  ;;  %v8656_v22 = vld [vmem:[#allocation2 + $0x70] sm:$0x1e] }
 0x3d3   :  { %16191 = vmatmul.mubr.msk.bf16.gmra.mrb[48].mxu0 %vm4413_vm0, %v20245_v6 }
 0x3d4   :  { %16194 = vmatprep.mubr.msk.bf16.mxu0 %vm4413_vm0, %v20247_v59 }
 0x3db   :  { %16195 = vmatmul.mubr.msk.bf16.gmra.mrb[52].mxu0 %vm4413_vm0, %v20257_v17 }
 0x3dc   :  { %16202 = vmatprep.mubr.msk.bf16.mxu0 %vm4413_vm0, %v14866_v7 }
 0x3e3   :  { %16203 = vmatmul.mubr.msk.bf16.vlgmr.msra.gmra.mrb[40].mxu0 %vm4413_vm0, %v20266_v42 }
 0x3e4   :  { %16206 = vmatprep.mubr.msk.bf16.mxu0 %vm4413_vm0, %v20273_v61  ;;  %16219 = vmatpush3.bf16.msra.mxu0 %v20222_v43  ;;  %v7936_v43 = vrot.slane %v7934_v19, 5 }
 0x3e5   :  { %16220 = vmatprep.subr.bf16.mxu0 %v17130_v49 }
 0x3e6   :  { %v7937_v24 = vor.u32 %v7936_v43, %v7933_v36 }
 0x3e8   :  { %16221 = vmatpush3.bf16.msra.mxu0 %v17130_v49  ;;  %v7938_v18 = vrot.slane %v7937_v24, 4  ;;  %v7419_v49 = vld [vmem:[#allocation2 + $0xb0] sm:$0x1f]  ;;  %v7408_v24 = vld [vmem:[#allocation2 + $0x58] sm:$0x1f] }
 0x3e9   :  { %16238 = vmatprep.subr.bf16.mxu0 %v17133_v55 }
 0x3ea   :  { %v7943_v9 = vsel %vm20097_vm3, %v7938_v18, %v7942_v46  ;;  %v14924_v18 = vcombine.low %v7408_v24, %v7408_v24 }
 0x3eb   :  { %16207 = vmatmul.mubr.msk.bf16.gmra.mrb[44].mxu0 %vm4413_vm0, %v20286_v2  ;;  %v20302_v26 = vcombine.low %v7727_v28, %v7943_v9  ;;  %v8140_v28 = vrot.slane %v8139_v32, 4  ;;  %v14946_v32 = vcombine.low %v8643_v57, %v8643_v57 }
 0x3ec   :  { %16210 = vmatprep.mubr.msk.bf16.mxu0 %vm4413_vm0, %v14870_v38  ;;  %v8478_v29 = vshll.u32 %v14924_v18, 16 }
 0x3ed   :  { %v8145_v7 = vsel %vm20097_vm3, %v8140_v28, %v8144_v11  ;;  %v8644_v28 = vld [vmem:[#allocation2 + $0x10] sm:$0x1e]  ;;  %v8646_v11 = vld [vmem:[#allocation2 + $0x20] sm:$0x1e] }
 0x3ee   :  { %v20332_v15 = vcombine.low %v7943_v9, %v8145_v7  ;;  %v8475_v9 = vshrl.u32 %v14924_v18, 16  ;;  %v8480_v27 = vrot.slane %v8478_v29, 5  ;;  %v14948_v45 = vcombine.low %v8644_v28, %v8644_v28  ;;  %v8648_v18 = vld [vmem:[#allocation2 + $0x30] sm:$0x1e]  ;;  %v8655_v29 = vld [vmem:[#allocation2 + $0x68] sm:$0x1e] }
 0x3ef   :  { %v14962_v60 = vcombine.low %v8655_v29, %v8655_v29 }
 0x3f0   :  { %v8477_v23 = vrot.slane %v8475_v9, 4  ;;  %v8654_v9 = vld [vmem:[#allocation2 + $0x60] sm:$0x1e] }
 0x3f2   :  { %v8481_v14 = vor.u32 %v8480_v27, %v8477_v23  ;;  %v14956_v27 = vcombine.low %v8648_v18, %v8648_v18 }
 0x3f3   :  { %16211 = vmatmul.mubr.msk.bf16.gmra.mrb[48].mxu0 %vm4413_vm0, %v20292_v53 }
 0x3f4   :  { %16214 = vmatprep.mubr.msk.bf16.mxu0 %vm4413_vm0, %v20294_v35  ;;  %v8482_v30 = vrot.slane %v8481_v14, 4  ;;  %v14957_v14 = vcombine.high %v8648_v18, %v8648_v18 }
 0x3fb   :  { %16215 = vmatmul.mubr.msk.bf16.gmra.mrb[52].mxu0 %vm4413_vm0, %v20302_v26 }
 0x3fc   :  { %16222 = vmatprep.mubr.msk.bf16.mxu0 %vm4413_vm0, %v20142_v12  ;;  %v17139_v12 = vld [vmem:[%s21268_s3 + $0x150] sm:$0xff]  }
 0x403   :  { %16223 = vmatmul.mubr.msk.bf16.vlgmr.msra.gmra.mrb[40].mxu0 %vm4413_vm0, %v20179_v31 }
 0x404   :  { %16226 = vmatprep.mubr.msk.bf16.mxu0 %vm4413_vm0, %v20226_v13  ;;  %16239 = vmatpush3.bf16.msra.mxu0 %v17133_v55  ;;  %v14906_v55 = vcombine.low %v7419_v49, %v7419_v49 }
 0x405   :  { %16240 = vmatprep.subr.bf16.mxu0 %v17136_v44 }
 0x406   :  { %v8311_v19 = vshrl.u32 %v14906_v55, 16  ;;  %v8314_v38 = vshll.u32 %v14906_v55, 16  ;;  %v14952_v55 = vcombine.low %v8646_v11, %v8646_v11 }
 0x408   :  { %16241 = vmatpush3.bf16.msra.mxu0 %v17136_v44  ;;  %v8313_v43 = vrot.slane %v8311_v19, 4 }
 0x409   :  { %16258 = vmatprep.subr.bf16.mxu0 %v17139_v12 }
 0x40b   :  { %16227 = vmatmul.mubr.msk.bf16.gmra.mrb[44].mxu0 %vm4413_vm0, %v20320_v16 }
 0x40c   :  { %16230 = vmatprep.mubr.msk.bf16.mxu0 %vm4413_vm0, %v20245_v6  ;;  %v8299_v6 = vrot.slane %v8297_v37, 4  ;;  %v14976_v37 = vrot.slane %v14944_v58, 9 }
 0x40e   :  { %v8303_v0 = vor.u32 %v8302_v47, %v8299_v6  ;;  %v14977_v6 = vrot.slane %v14946_v32, 9  ;;  %v8647_v47 = vld [vmem:[#allocation2 + $0x28] sm:$0x1e]  ;;  %v8752_v19 = vsel %vm20388_vm6, %v14976_v37, %v8751_v34  ;;  %v8657_v32 = vld [vmem:[#allocation2 + $0x78] sm:$0x1e]  ;;  %v17185_v37 = vld [vmem:[%s21268_s3 + $0xc0] sm:$0xff]  }
 0x410   :  { %v8304_v3 = vrot.slane %v8303_v0, 4  ;;  %v14949_v0 = vcombine.high %v8644_v28, %v8644_v28 }
 0x412   :  { %v8309_v54 = vsel %vm20097_vm3, %v8304_v3, %v8308_v52  ;;  %v14951_v3 = vcombine.high %v8645_v50, %v8645_v50  ;;  %v14953_v52 = vcombine.high %v8646_v11, %v8646_v11  ;;  %v14964_v11 = vcombine.low %v8656_v22, %v8656_v22 }
 0x413   :  { %16231 = vmatmul.mubr.msk.bf16.gmra.mrb[48].mxu0 %vm4413_vm0, %v20247_v59  ;;  %v14912_v36 = vcombine.low %v8131_v40, %v8309_v54  ;;  %v8494_v40 = vrot.slane %v8492_v63, 5  ;;  %v14982_v63 = vrot.slane %v14956_v27, 9 }
 0x414   :  { %16234 = vmatprep.mubr.msk.bf16.mxu0 %vm4413_vm0, %v20257_v17 }
 0x41b   :  { %16235 = vmatmul.mubr.msk.bf16.gmra.mrb[52].mxu0 %vm4413_vm0, %v20332_v15 }
 0x41c   :  { %16242 = vmatprep.mubr.msk.bf16.mxu0 %vm4413_vm0, %v20266_v42  ;;  %v17145_v42 = vld [vmem:[%s21268_s3 + $0x20] sm:$0xff]  }
 0x423   :  { %16243 = vmatmul.mubr.msk.bf16.vlgmr.msra.gmra.mrb[40].mxu0 %vm4413_vm0, %v20273_v61  ;;  %v8316_v61 = vrot.slane %v8314_v38, 5  ;;  %v14978_v38 = vrot.slane %v14948_v45, 9 }
 0x424   :  { %16246 = vmatprep.mubr.msk.bf16.mxu0 %vm4413_vm0, %v20286_v2  ;;  %16259 = vmatpush3.bf16.msra.mxu0 %v17139_v12  ;;  %v14907_v2 = vcombine.high %v7419_v49, %v7419_v49  ;;  %v14950_v49 = vcombine.low %v8645_v50, %v8645_v50 }
 0x425   :  { %16260 = vmatprep.subr.bf16.mxu0 %v17142_v25  ;;  %v8317_v4 = vor.u32 %v8316_v61, %v8313_v43  ;;  %v8763_v61 = vrot.slane %v14951_v3, 5  ;;  %v14986_v3 = vrot.slane %v14964_v11, 9 }
 0x426   :  { %v8320_v39 = vshll.u32 %v14907_v2, 16  ;;  %v14979_v43 = vrot.slane %v14950_v49, 9  ;;  %v14980_v2 = vrot.slane %v14952_v55, 9 }
 0x427   :  { %v8318_v56 = vrot.slane %v8317_v4, 4  ;;  %v8767_v4 = vrot.slane %v14953_v52, 5 }
 0x428   :  { %16261 = vmatpush3.bf16.msra.mxu0 %v17142_v25  ;;  %v8322_v8 = vrot.slane %v8320_v39, 5  ;;  %v20410_v23 = vsel %vm20388_vm6, %v14979_v43, %v8763_v61  ;;  %v8661_v61 = vld [vmem:[#allocation2 + $0x98] sm:$0x1e] }
 0x429   :  { %16278 = vmatprep.subr.bf16.mxu0 %v17145_v42  ;;  %v14975_v18 = vcombine.high %v8661_v61, %v8661_v61 }
 0x42a   :  { %v20359_v46 = vsel %vm20097_vm3, %v8318_v56, %v8322_v8  ;;  %v8649_v8 = vld [vmem:[#allocation2 + $0x38] sm:$0x1e] }
 0x42b   :  { %16247 = vmatmul.mubr.msk.bf16.gmra.mrb[44].mxu0 %vm4413_vm0, %v14912_v36  ;;  %v8759_v36 = vrot.slane %v14949_v0, 5 }
 0x42c   :  { %16250 = vmatprep.mubr.msk.bf16.mxu0 %vm4413_vm0, %v20292_v53  ;;  %v14913_v53 = vcombine.low %v8145_v7, %v20359_v46 }
 0x433   :  { %16251 = vmatmul.mubr.msk.bf16.gmra.mrb[48].mxu0 %vm4413_vm0, %v20294_v35  ;;  %v14925_v35 = vcombine.high %v7408_v24, %v7408_v24 }
 0x434   :  { %16254 = vmatprep.mubr.msk.bf16.mxu0 %vm4413_vm0, %v20302_v26 }
 0x435   :  { %v8484_v26 = vshll.u32 %v14925_v35, 16 }
 0x437   :  { %v8486_v44 = vrot.slane %v8484_v26, 5  ;;  %v14959_v26 = vcombine.high %v8649_v8, %v8649_v8 }
 0x439   :  { %v8487_v1 = vsel %vm20097_vm3, %v8482_v30, %v8486_v44  ;;  %v14961_v30 = vcombine.high %v8654_v9, %v8654_v9  ;;  %v14963_v44 = vcombine.high %v8655_v29, %v8655_v29 }
 0x43a   :  { %v14932_v12 = vcombine.low %v8309_v54, %v8487_v1  ;;  %v14955_v54 = vcombine.high %v8647_v47, %v8647_v47 }
 0x43b   :  { %16255 = vmatmul.mubr.msk.bf16.gmra.mrb[52].mxu0 %vm4413_vm0, %v14913_v53  ;;  %v20406_v53 = vsel %vm20388_vm6, %v14978_v38, %v8759_v36  ;;  %v8787_v58 = vrot.slane %v14963_v44, 5 }
 0x43c   :  { %16262 = vmatprep.mubr.msk.bf16.mxu0 %vm4413_vm0, %v20179_v31  ;;  %v20375_v31 = vld [vmem:[%s21268_s3 + $0x70] sm:$0xff]   ;;  %v8771_v56 = vrot.slane %v14955_v54, 5  ;;  %v20422_v1 = vcombine.low %v20406_v53, %v20410_v23 }
 0x443   :  { %16263 = vmatmul.mubr.msk.bf16.vlgmr.msra.gmra.mrb[40].mxu0 %vm4413_vm0, %v20226_v13  ;;  %v8491_v13 = vrot.slane %v8489_v62, 4 }
 0x444   :  { %16266 = vmatprep.mubr.msk.bf16.mxu0 %vm4413_vm0, %v20320_v16  ;;  %16279 = vmatpush3.bf16.msra.mxu0 %v17145_v42  ;;  %v14927_v16 = vcombine.high %v7420_v51, %v7420_v51  ;;  %v14954_v42 = vcombine.low %v8647_v47, %v8647_v47  ;;  %v14958_v51 = vcombine.low %v8649_v8, %v8649_v8 }
 0x445   :  { %16280 = vmatprep.subr.bf16.mxu0 %v17148_v41  ;;  %v8495_v33 = vor.u32 %v8494_v40, %v8491_v13  ;;  %v8779_v40 = vrot.slane %v14959_v26, 5  ;;  %v14967_v47 = vcombine.high %v8657_v32, %v8657_v32  ;;  %v8811_v26 = vrot.slane %v14975_v18, 5  ;;  %v9648_v18 = vld [vmem:[#allocation2 + $0x8] sm:$0x3e] }
 0x446   :  { %v8498_v21 = vshll.u32 %v14927_v16, 16  ;;  %v14981_v39 = vrot.slane %v14954_v42, 9  ;;  %v14983_v13 = vrot.slane %v14958_v51, 9  ;;  %v8783_v16 = vrot.slane %v14961_v30, 5 }
 0x447   :  { %v8496_v7 = vrot.slane %v8495_v33, 4  ;;  %v14985_v33 = vrot.slane %v14962_v60, 9  ;;  %v8795_v54 = vrot.slane %v14967_v47, 5 }
 0x448   :  { %16281 = vmatpush3.bf16.msra.mxu0 %v17148_v41  ;;  %v8500_v20 = vrot.slane %v8498_v21, 5  ;;  %v20418_v35 = vsel %vm20388_vm6, %v14981_v39, %v8771_v56  ;;  %v14960_v41 = vcombine.low %v8654_v9, %v8654_v9  ;;  %v8659_v21 = vld [vmem:[#allocation2 + $0x88] sm:$0x1e]  ;;  %v20440_v50 = vsel %vm20388_vm6, %v14983_v13, %v8779_v40 }
 0x449   :  { %16298 = vmatprep.subr.bf16.mxu0 %v20375_v31  ;;  %v14970_v0 = vcombine.low %v8659_v21, %v8659_v21  ;;  %v14971_v49 = vcombine.high %v8659_v21, %v8659_v21  ;;  %v14974_v56 = vcombine.low %v8661_v61, %v8661_v61 }
 0x44a   :  { %v14984_v57 = vrot.slane %v14960_v41, 9 }
 0x44b   :  { %16267 = vmatmul.mubr.msk.bf16.gmra.mrb[44].mxu0 %vm4413_vm0, %v14932_v12  ;;  %v8775_v12 = vrot.slane %v14957_v14, 5  ;;  %v14989_v36 = vrot.slane %v14970_v0, 9  ;;  %v8803_v43 = vrot.slane %v14971_v49, 5  ;;  %v14991_v51 = vrot.slane %v14974_v56, 9  ;;  %v8663_v0 = vld [vmem:[#allocation2 + $0xa8] sm:$0x1e] }
 0x44c   :  { %16270 = vmatprep.mubr.msk.bf16.mxu0 %vm4413_vm0, %v20247_v59  ;;  %v8755_v59 = vrot.slane %v14947_v10, 5  ;;  %v8658_v10 = vld [vmem:[#allocation2 + $0x80] sm:$0x1e]  ;;  %v8784_v34 = vsel %vm20388_vm6, %v14984_v57, %v8783_v16  ;;  %v15044_v49 = vcombine.low %v8663_v0, %v8663_v0 }
 0x44d   :  { %v8776_v28 = vsel %vm20388_vm6, %v14982_v63, %v8775_v12  ;;  %v14969_v45 = vcombine.high %v8658_v10, %v8658_v10  ;;  %v8804_v8 = vsel %vm20388_vm6, %v14989_v36, %v8803_v43  ;;  %v8812_v30 = vsel %vm20388_vm6, %v14991_v51, %v8811_v26  ;;  %v8650_v63 = vld [vmem:[#allocation2 + $0x40] sm:$0x1e]  ;;  %v17200_v36 = vld [vmem:[%s21268_s3 + $0x168] sm:$0xff]   ;;  %v9649_v26 = vld [vmem:[#allocation2 + $0x10] sm:$0x3e] }
 0x44e   :  { %v15014_v12 = vcombine.low %v8650_v63, %v8650_v63  ;;  %v15015_v13 = vcombine.high %v8650_v63, %v8650_v63  ;;  %v15026_v57 = vcombine.low %v20418_v35, %v8776_v28  ;;  %v9647_v56 = vld [vmem:[#allocation2] sm:$0x3e]  ;;  %v9650_v63 = vld [vmem:[#allocation2 + $0x18] sm:$0x3e] }
 0x44f   :  { %v8799_v38 = vrot.slane %v14969_v45, 5 }
 0x450   :  { %v15018_v16 = vrot.slane %v15014_v12, 9  ;;  %v15111_v12 = vcombine.high %v9648_v18, %v9648_v18 }
 0x453   :  { %16271 = vmatmul.mubr.msk.bf16.gmra.mrb[48].mxu0 %vm4413_vm0, %v20257_v17  ;;  %v8501_v17 = vsel %vm20097_vm3, %v8496_v7, %v8500_v20  ;;  %v14965_v7 = vcombine.high %v8656_v22, %v8656_v22  ;;  %v20452_v20 = vcombine.low %v8776_v28, %v20440_v50 }
 0x454   :  { %16274 = vmatprep.mubr.msk.bf16.mxu0 %vm4413_vm0, %v20332_v15  ;;  %v20398_v15 = vsel %vm20388_vm6, %v14977_v6, %v8755_v59  ;;  %v14933_v24 = vcombine.low %v20359_v46, %v8501_v17  ;;  %v20414_v46 = vsel %vm20388_vm6, %v14980_v2, %v8767_v4  ;;  %v14966_v6 = vcombine.low %v8657_v32, %v8657_v32  ;;  %v8660_v17 = vld [vmem:[#allocation2 + $0x90] sm:$0x1e] }
 0x455   :  { %v14996_v48 = vcombine.low %v8752_v19, %v20398_v15  ;;  %v20426_v62 = vcombine.low %v20414_v46, %v20418_v35  ;;  %v14968_v59 = vcombine.low %v8658_v10, %v8658_v10  ;;  %v8791_v55 = vrot.slane %v14965_v7, 5  ;;  %v8662_v35 = vld [vmem:[#allocation2 + $0xa0] sm:$0x1e]  ;;  %v8651_v7 = vld [vmem:[#allocation2 + $0x48] sm:$0x1e] }
 0x456   :  { %v14987_v42 = vrot.slane %v14966_v6, 9  ;;  %v14972_v4 = vcombine.low %v8660_v17, %v8660_v17  ;;  %v14973_v39 = vcombine.high %v8660_v17, %v8660_v17  ;;  %v15024_v44 = vcombine.low %v20398_v15, %v20406_v53  ;;  %v17191_v15 = vld [vmem:[%s21268_s3 + $0x110] sm:$0xff]  }
 0x457   :  { %v14988_v19 = vrot.slane %v14968_v59, 9  ;;  %v8792_v2 = vsel %vm20388_vm6, %v14986_v3, %v8791_v55  ;;  %v15025_v40 = vcombine.low %v20410_v23, %v20414_v46  ;;  %v15017_v22 = vcombine.high %v8662_v35, %v8662_v35  ;;  %v8652_v17 = vld [vmem:[#allocation2 + $0x50] sm:$0x1e] }
 0x458   :  { %v14990_v29 = vrot.slane %v14972_v4, 9  ;;  %v8807_v14 = vrot.slane %v14973_v39, 5  ;;  %v15045_v3 = vcombine.high %v8663_v0, %v8663_v0  ;;  %v15047_v55 = vrot.slane %v15044_v49, 9  ;;  %v8664_v39 = vld [vmem:[#allocation2 + $0xb0] sm:$0x1e] }
 0x459   :  { %v9007_v28 = vrot.slane %v15017_v22, 5  ;;  %v9782_v22 = vshrl.u32 %v15111_v12, 16  ;;  %v15115_v49 = vcombine.high %v9650_v63, %v9650_v63 }
 0x45a   :  { %v8808_v41 = vsel %vm20388_vm6, %v14990_v29, %v8807_v14  ;;  %v15110_v29 = vcombine.low %v9648_v18, %v9648_v18 }
 0x45b   :  { %16275 = vmatmul.mubr.msk.bf16.gmra.mrb[52].mxu0 %vm4413_vm0, %v14933_v24  ;;  %v8796_v24 = vsel %vm20388_vm6, %v14987_v42, %v8795_v54  ;;  %v20478_v60 = vcombine.low %v8808_v41, %v8812_v30  ;;  %v20502_v10 = vcombine.low %v8804_v8, %v8808_v41  ;;  %v15109_v41 = vcombine.high %v9647_v56, %v9647_v56 }
 0x45c   :  { %16282 = vmatprep.mubr.msk.bf16.mxu0 %vm4413_vm0, %v14996_v48  ;;  %v8800_v48 = vsel %vm20388_vm6, %v14988_v19, %v8799_v38  ;;  %v20466_v9 = vcombine.low %v8792_v2, %v8796_v24  ;;  %v15064_v19 = vcombine.low %v8652_v17, %v8652_v17  ;;  %v15065_v38 = vcombine.high %v8652_v17, %v8652_v17  ;;  %v9652_v17 = vld [vmem:[#allocation2 + $0x28] sm:$0x3e] }
 0x45d   :  { %v20468_v27 = vcombine.low %v8800_v48, %v8804_v8  ;;  %v15029_v32 = vcombine.low %v8796_v24, %v8800_v48  ;;  %v15066_v48 = vcombine.low %v8664_v39, %v8664_v39  ;;  %v15067_v8 = vcombine.high %v8664_v39, %v8664_v39 }
 0x45e   :  { %v15068_v43 = vrot.slane %v15064_v19, 9  ;;  %v9343_v61 = vrot.slane %v15065_v38, 5  ;;  %v9784_v0 = vrot.slane %v9782_v22, 5 }
 0x45f   :  { %v15069_v14 = vrot.slane %v15066_v48, 9  ;;  %v9347_v51 = vrot.slane %v15067_v8, 5  ;;  %v9818_v48 = vshrl.u32 %v15115_v49, 16  ;;  %v15118_v8 = vcombine.low %v9652_v17, %v9652_v17 }
 0x460   :  { %v20556_v4 = vsel %vm20388_vm6, %v15068_v43, %v9343_v61 }
 0x463   :  { %16283 = vmatmul.mubr.msk.bf16.vlgmr.msra.gmra.mrb[40].mxu0 %vm4413_vm0, %v20422_v1 }
 0x464   :  { %16286 = vmatprep.mubr.msk.bf16.mxu0 %vm4413_vm0, %v20426_v62  ;;  %16299 = vmatpush3.bf16.msra.mxu0 %v20375_v31  ;;  %v20449_v31 = vsel %vm20388_vm6, %v14985_v33, %v8787_v58  ;;  %v9003_v33 = vrot.slane %v15015_v13, 5  ;;  %v15016_v58 = vcombine.low %v8662_v35, %v8662_v35  ;;  %v9773_v13 = vshrl.u32 %v15110_v29, 16 }
 0x465   :  { %16300 = vmatprep.subr.bf16.mxu0 %v17176_v5  ;;  %v15000_v52 = vcombine.low %v8784_v34, %v20449_v31  ;;  %v15028_v46 = vcombine.low %v20449_v31, %v8792_v2  ;;  %v15043_v34 = vcombine.high %v8651_v7, %v8651_v7  ;;  %v17194_v31 = vld [vmem:[%s21268_s3 + $0x118] sm:$0xff]   ;;  %v20552_v2 = vld [vmem:[%s21268_s3 + $0x30] sm:$0xff]   ;;  %v9767_v35 = vshll.u32 %v15109_v41, 16 }
 0x466   :  { %v9004_v53 = vsel %vm20388_vm6, %v15018_v16, %v9003_v33  ;;  %v15019_v21 = vrot.slane %v15016_v58, 9  ;;  %v15114_v16 = vcombine.low %v9650_v63, %v9650_v63  ;;  %v9775_v58 = vrot.slane %v9773_v13, 5  ;;  %v9653_v13 = vld [vmem:[#allocation2 + $0x30] sm:$0x3e] }
 0x467   :  { %v15027_v23 = vcombine.low %v20440_v50, %v9004_v53  ;;  %v9185_v47 = vrot.slane %v15043_v34, 5 }
 0x468   :  { %16301 = vmatpush3.bf16.msra.mxu0 %v17176_v5  ;;  %v17188_v5 = vld [vmem:[%s21268_s3 + $0xc8] sm:$0xff]   ;;  %v9008_v50 = vsel %vm20388_vm6, %v15019_v21, %v9007_v28 }
 0x469   :  { %16318 = vmatprep.subr.bf16.mxu0 %v17185_v37  ;;  %v20509_v11 = vcombine.low %v8812_v30, %v9008_v50 }
 0x46b   :  { %16287 = vmatmul.mubr.msk.bf16.gmra.mrb[44].mxu0 %vm4413_vm0, %v20452_v20 }
 0x46c   :  { %16290 = vmatprep.mubr.msk.bf16.mxu0 %vm4413_vm0, %v15000_v52  ;;  %v9189_v52 = vrot.slane %v15045_v3, 5 }
 0x46e   :  { %v9190_v42 = vsel %vm20388_vm6, %v15047_v55, %v9189_v52 }
 0x46f   :  { %v20539_v54 = vcombine.low %v9008_v50, %v9190_v42 }
 0x473   :  { %16291 = vmatmul.mubr.msk.bf16.gmra.mrb[48].mxu0 %vm4413_vm0, %v20466_v9 }
 0x474   :  { %16294 = vmatprep.mubr.msk.bf16.mxu0 %vm4413_vm0, %v20468_v27 }
 0x47b   :  { %16295 = vmatmul.mubr.msk.bf16.gmra.mrb[52].mxu0 %vm4413_vm0, %v20478_v60 }
 0x47c   :  { %16302 = vmatprep.mubr.msk.bf16.mxu0 %vm4413_vm0, %v15024_v44 }
 0x483   :  { %16303 = vmatmul.mubr.msk.bf16.vlgmr.msra.gmra.mrb[40].mxu0 %vm4413_vm0, %v15025_v40 }
 0x484   :  { %16306 = vmatprep.mubr.msk.bf16.mxu0 %vm4413_vm0, %v15026_v57  ;;  %16319 = vmatpush3.bf16.msra.mxu0 %v17185_v37  ;;  %v15042_v37 = vcombine.low %v8651_v7, %v8651_v7  ;;  %v9809_v7 = vshrl.u32 %v15114_v16, 16 }
 0x485   :  { %16320 = vmatprep.subr.bf16.mxu0 %v17188_v5 }
 0x486   :  { %v15046_v6 = vrot.slane %v15042_v37, 9  ;;  %v9812_v37 = vshll.u32 %v15114_v16, 16 }
 0x488   :  { %16321 = vmatpush3.bf16.msra.mxu0 %v17188_v5  ;;  %v9186_v59 = vsel %vm20388_vm6, %v15046_v6, %v9185_v47  ;;  %v15112_v5 = vcombine.low %v9649_v26, %v9649_v26  ;;  %v9814_v43 = vrot.slane %v9812_v37, 6 }
 0x489   :  { %16338 = vmatprep.subr.bf16.mxu0 %v17191_v15  ;;  %v20527_v45 = vcombine.low %v9004_v53, %v9186_v59  ;;  %v15074_v24 = vcombine.low %v9186_v59, %v20556_v4  ;;  %v9764_v53 = vshrl.u32 %v15109_v41, 16  ;;  %v9769_v59 = vrot.slane %v9767_v35, 6 }
 0x48a   :  { %v9791_v28 = vshrl.u32 %v15112_v5, 16  ;;  %v9794_v50 = vshll.u32 %v15112_v5, 16  ;;  %v9848_v35 = vshll.u32 %v15118_v8, 16 }
 0x48b   :  { %16307 = vmatmul.mubr.msk.bf16.gmra.mrb[44].mxu0 %vm4413_vm0, %v15027_v23  ;;  %v9766_v6 = vrot.slane %v9764_v53, 5  ;;  %v9820_v53 = vrot.slane %v9818_v48, 5 }
 0x48c   :  { %16310 = vmatprep.mubr.msk.bf16.mxu0 %vm4413_vm0, %v15028_v46  ;;  %v8653_v46 = vld [vmem:[#allocation2 + $0x58] sm:$0x1e]  ;;  %v9793_v52 = vrot.slane %v9791_v28, 5 }
 0x48d   :  { %v15086_v34 = vcombine.low %v8653_v46, %v8653_v46 }
 0x48f   :  { %v15090_v61 = vrot.slane %v15086_v34, 9  ;;  %v9659_v34 = vld [vmem:[#allocation2 + $0x60] sm:$0x3e] }
 0x493   :  { %16311 = vmatmul.mubr.msk.bf16.gmra.mrb[48].mxu0 %vm4413_vm0, %v15029_v32 }
 0x494   :  { %16314 = vmatprep.mubr.msk.bf16.mxu0 %vm4413_vm0, %v20502_v10 }
 0x49b   :  { %16315 = vmatmul.mubr.msk.bf16.gmra.mrb[52].mxu0 %vm4413_vm0, %v20509_v11 }
 0x49c   :  { %16322 = vmatprep.mubr.msk.bf16.mxu0 %vm4413_vm0, %v20422_v1  ;;  %v17197_v1 = vld [vmem:[%s21268_s3 + $0x160] sm:$0xff]  }
 0x4a3   :  { %16323 = vmatmul.mubr.msk.bf16.vlgmr.msra.gmra.mrb[40].mxu0 %vm4413_vm0, %v20426_v62 }
 0x4a4   :  { %16326 = vmatprep.mubr.msk.bf16.mxu0 %vm4413_vm0, %v20452_v20  ;;  %16339 = vmatpush3.bf16.msra.mxu0 %v17191_v15 }
 0x4a5   :  { %16340 = vmatprep.subr.bf16.mxu0 %v17194_v31 }
 0x4a8   :  { %16341 = vmatpush3.bf16.msra.mxu0 %v17194_v31  ;;  %v15087_v31 = vcombine.high %v8653_v46, %v8653_v46  ;;  %v9845_v46 = vshrl.u32 %v15118_v8, 16 }
 0x4a9   :  { %16358 = vmatprep.subr.bf16.mxu0 %v17197_v1 }
 0x4aa   :  { %v9501_v18 = vrot.slane %v15087_v31, 5 }
 0x4ab   :  { %16327 = vmatmul.mubr.msk.bf16.gmra.mrb[44].mxu0 %vm4413_vm0, %v20527_v45 }
 0x4ac   :  { %16330 = vmatprep.mubr.msk.bf16.mxu0 %vm4413_vm0, %v20466_v9  ;;  %v15108_v9 = vcombine.low %v9647_v56, %v9647_v56 }
 0x4ae   :  { %v9755_v30 = vshrl.u32 %v15108_v9, 16  ;;  %v9758_v44 = vshll.u32 %v15108_v9, 16  ;;  %v17206_v9 = vld [vmem:[%s21268_s3 + $0x38] sm:$0xff]  }
 0x4b0   :  { %v9757_v33 = vrot.slane %v9755_v30, 5  ;;  %v9760_v15 = vrot.slane %v9758_v44, 6 }
 0x4b3   :  { %16331 = vmatmul.mubr.msk.bf16.gmra.mrb[48].mxu0 %vm4413_vm0, %v20468_v27 }
 0x4b4   :  { %16334 = vmatprep.mubr.msk.bf16.mxu0 %vm4413_vm0, %v20478_v60 }
 0x4bb   :  { %16335 = vmatmul.mubr.msk.bf16.gmra.mrb[52].mxu0 %vm4413_vm0, %v20539_v54 }
 0x4bc   :  { %16342 = vmatprep.mubr.msk.bf16.mxu0 %vm4413_vm0, %v15025_v40  ;;  %v9776_v40 = vshll.u32 %v15110_v29, 16 }
 0x4be   :  { %v9778_v21 = vrot.slane %v9776_v40, 6 }
 0x4c0   :  { %v9779_v3 = vor.u32 %v9778_v21, %v9775_v58  ;;  %v9502_v58 = vsel %vm20388_vm6, %v15090_v61, %v9501_v18  ;;  %v15121_v61 = vcombine.high %v9653_v13, %v9653_v13 }
 0x4c1   :  { %v15096_v31 = vcombine.low %v20556_v4, %v9502_v58 }
 0x4c2   :  { %v9780_v30 = vrot.slane %v9779_v3, 4 }
 0x4c3   :  { %16343 = vmatmul.mubr.msk.bf16.vlgmr.msra.gmra.mrb[40].mxu0 %vm4413_vm0, %v15026_v57  ;;  %v20568_v57 = vsel %vm20388_vm6, %v15069_v14, %v9347_v51  ;;  %v9770_v14 = vor.u32 %v9769_v59, %v9766_v6  ;;  %v8665_v59 = vld [vmem:[#allocation2 + $0xb8] sm:$0x1e] }
 0x4c4   :  { %16346 = vmatprep.mubr.msk.bf16.mxu0 %vm4413_vm0, %v15027_v23  ;;  %16359 = vmatpush3.bf16.msra.mxu0 %v17197_v1  ;;  %v9651_v23 = vld [vmem:[#allocation2 + $0x20] sm:$0x3e]  ;;  %v9761_v1 = vor.u32 %v9760_v15, %v9757_v33  ;;  %v9654_v15 = vld [vmem:[#allocation2 + $0x38] sm:$0x3e]  ;;  %v15089_v48 = vcombine.high %v8665_v59, %v8665_v59 }
 0x4c5   :  { %16360 = vmatprep.subr.bf16.mxu0 %v17200_v36  ;;  %v15116_v47 = vcombine.low %v9651_v23, %v9651_v23  ;;  %v15122_v28 = vcombine.low %v9654_v15, %v9654_v15  ;;  %v15123_v18 = vcombine.high %v9654_v15, %v9654_v15 }
 0x4c6   :  { %v9762_v29 = vrot.slane %v9761_v1, 4  ;;  %v9850_v1 = vrot.slane %v9848_v35, 6 }
 0x4c7   :  { %v9827_v39 = vshrl.u32 %v15116_v47, 16  ;;  %v9830_v56 = vshll.u32 %v15116_v47, 16  ;;  %v9847_v47 = vrot.slane %v9845_v46, 5  ;;  %v9881_v4 = vshrl.u32 %v15122_v28, 16 }
 0x4c8   :  { %16361 = vmatpush3.bf16.msra.mxu0 %v17200_v36  ;;  %v9811_v36 = vrot.slane %v9809_v7, 5 }
 0x4c9   :  { %16378 = vmatprep.subr.bf16.mxu0 %v20552_v2  ;;  %v9829_v40 = vrot.slane %v9827_v39, 5  ;;  %v9832_v5 = vrot.slane %v9830_v56, 6  ;;  %v9851_v39 = vor.u32 %v9850_v1, %v9847_v47  ;;  %v9661_v1 = vld [vmem:[#allocation2 + $0x70] sm:$0x3e] }
 0x4cb   :  { %16347 = vmatmul.mubr.msk.bf16.gmra.mrb[44].mxu0 %vm4413_vm0, %v15074_v24  ;;  %v15117_v24 = vcombine.high %v9651_v23, %v9651_v23 }
 0x4cc   :  { %16350 = vmatprep.mubr.msk.bf16.mxu0 %vm4413_vm0, %v15029_v32  ;;  %v9785_v32 = vshll.u32 %v15111_v12, 16  ;;  %v9815_v12 = vor.u32 %v9814_v43, %v9811_v36 }
 0x4cd   :  { %v9836_v16 = vshrl.u32 %v15117_v24, 16  ;;  %v9839_v33 = vshll.u32 %v15117_v24, 16  ;;  %v15088_v24 = vcombine.low %v8665_v59, %v8665_v59 }
 0x4ce   :  { %v9787_v55 = vrot.slane %v9785_v32, 6  ;;  %v20597_v32 = vld [vmem:[%s21268_s3 + $0x80] sm:$0xff]   ;;  %v9816_v21 = vrot.slane %v9815_v12, 4  ;;  %v15125_v12 = vcombine.high %v9659_v34, %v9659_v34 }
 0x4cf   :  { %v20603_v7 = vrot.slane %v9836_v16, 5  ;;  %v20605_v37 = vrot.slane %v9839_v33, 6  ;;  %v9505_v16 = vrot.slane %v15089_v48, 5 }
 0x4d0   :  { %v9788_v51 = vor.u32 %v9787_v55, %v9784_v0 }
 0x4d1   :  { %v9842_v36 = vor.u32 %v20605_v37, %v20603_v7  ;;  %v9662_v37 = vld [vmem:[#allocation2 + $0x78] sm:$0x3e] }
 0x4d3   :  { %16351 = vmatmul.mubr.msk.bf16.gmra.mrb[48].mxu0 %vm4413_vm0, %v20502_v10  ;;  %v15075_v10 = vcombine.low %v9190_v42, %v20568_v57  ;;  %v9796_v42 = vrot.slane %v9794_v50, 6  ;;  %v15119_v50 = vcombine.high %v9652_v17, %v9652_v17  ;;  %v9660_v17 = vld [vmem:[#allocation2 + $0x68] sm:$0x3e] }
 0x4d4   :  { %16354 = vmatprep.mubr.msk.bf16.mxu0 %vm4413_vm0, %v20509_v11  ;;  %v15113_v11 = vcombine.high %v9649_v26, %v9649_v26  ;;  %v15127_v46 = vcombine.high %v9660_v17, %v9660_v17 }
 0x4d5   :  { %v9797_v26 = vor.u32 %v9796_v42, %v9793_v52  ;;  %v9884_v42 = vshll.u32 %v15122_v28, 16  ;;  %v9854_v43 = vshrl.u32 %v15119_v50, 16  ;;  %v9857_v56 = vshll.u32 %v15119_v50, 16 }
 0x4d6   :  { %v9800_v19 = vshrl.u32 %v15113_v11, 16  ;;  %v9803_v38 = vshll.u32 %v15113_v11, 16  ;;  %v9833_v11 = vor.u32 %v9832_v5, %v9829_v40  ;;  %v9890_v5 = vshrl.u32 %v15123_v18, 16 }
 0x4d7   :  { %v9798_v22 = vrot.slane %v9797_v26, 4  ;;  %v9859_v40 = vrot.slane %v9857_v56, 6  ;;  %v9852_v28 = vrot.slane %v9851_v39, 4  ;;  %v9664_v39 = vld [vmem:[#allocation2 + $0x88] sm:$0x3e] }
 0x4d8   :  { %v9802_v44 = vrot.slane %v9800_v19, 5  ;;  %v9805_v63 = vrot.slane %v9803_v38, 6  ;;  %v15124_v19 = vcombine.low %v9659_v34, %v9659_v34  ;;  %v9834_v38 = vrot.slane %v9833_v11, 4 }
 0x4d9   :  { %v9892_v11 = vrot.slane %v9890_v5, 5 }
 0x4da   :  { %v9902_v26 = vshll.u32 %v15124_v19, 16 }
 0x4db   :  { %16355 = vmatmul.mubr.msk.bf16.gmra.mrb[52].mxu0 %vm4413_vm0, %v15075_v10  ;;  %v9806_v10 = vor.u32 %v9805_v63, %v9802_v44  ;;  %v9872_v44 = vshrl.u32 %v15121_v61, 16  ;;  %v9875_v63 = vshll.u32 %v15121_v61, 16  ;;  %v15130_v61 = vcombine.low %v9662_v37, %v9662_v37 }
 0x4dc   :  { %16362 = vmatprep.mubr.msk.bf16.mxu0 %vm4413_vm0, %v20426_v62  ;;  %v9821_v62 = vshll.u32 %v15115_v49, 16  ;;  %v9904_v58 = vrot.slane %v9902_v26, 6 }
 0x4dd   :  { %v20612_v49 = vsel %vm20579_vm9, %v9798_v22, %v9806_v10  ;;  %v9874_v22 = vrot.slane %v9872_v44, 5  ;;  %v9908_v10 = vshrl.u32 %v15125_v12, 16  ;;  %v9953_v44 = vshrl.u32 %v15130_v61, 16 }
 0x4de   :  { %v9823_v23 = vrot.slane %v9821_v62, 6 }
 0x4e0   :  { %v9824_v6 = vor.u32 %v9823_v23, %v9820_v53 }
 0x4e2   :  { %v20617_v52 = vsel %vm20579_vm9, %v9816_v21, %v9824_v6  ;;  %v9911_v21 = vshll.u32 %v15125_v12, 16 }
 0x4e3   :  { %16363 = vmatmul.mubr.msk.bf16.vlgmr.msra.gmra.mrb[40].mxu0 %vm4413_vm0, %v20452_v20  ;;  %v20592_v20 = vsel %vm20579_vm9, %v9762_v29, %v9770_v14  ;;  %v9883_v29 = vrot.slane %v9881_v4, 5  ;;  %v9886_v14 = vrot.slane %v9884_v42, 6  ;;  %v20632_v4 = vsel %vm20579_vm9, %v9834_v38, %v9842_v36 }
 0x4e4   :  { %16366 = vmatprep.mubr.msk.bf16.mxu0 %vm4413_vm0, %v20527_v45  ;;  %16379 = vmatpush3.bf16.msra.mxu0 %v20552_v2  ;;  %v15120_v45 = vcombine.low %v9653_v13, %v9653_v13  ;;  %v20601_v2 = vsel %vm20579_vm9, %v9780_v30, %v9788_v51  ;;  %v9899_v51 = vshrl.u32 %v15124_v19, 16  ;;  %v9856_v30 = vrot.slane %v9854_v43, 5 }
 0x4e5   :  { %16380 = vmatprep.subr.bf16.mxu0 %v17206_v9  ;;  %v15144_v0 = vcombine.low %v20592_v20, %v20601_v2  ;;  %v15091_v13 = vrot.slane %v15088_v24, 9  ;;  %v9887_v23 = vor.u32 %v9886_v14, %v9883_v29  ;;  %v9910_v42 = vrot.slane %v9908_v10, 5  ;;  %v9663_v24 = vld [vmem:[#allocation2 + $0x80] sm:$0x3e] }
 0x4e6   :  { %v9863_v3 = vshrl.u32 %v15120_v45, 16  ;;  %v9866_v55 = vshll.u32 %v15120_v45, 16  ;;  %v9901_v35 = vrot.slane %v9899_v51, 5  ;;  %v9877_v45 = vrot.slane %v9875_v63, 6 }
 0x4e7   :  { %v9860_v50 = vor.u32 %v9859_v40, %v9856_v30  ;;  %v9506_v34 = vsel %vm20388_vm6, %v15091_v13, %v9505_v16  ;;  %v15128_v43 = vcombine.low %v9661_v1, %v9661_v1  ;;  %v15129_v36 = vcombine.high %v9661_v1, %v9661_v1 }
 0x4e8   :  { %16381 = vmatpush3.bf16.msra.mxu0 %v17206_v9  ;;  %v9865_v62 = vrot.slane %v9863_v3, 5  ;;  %v9868_v8 = vrot.slane %v9866_v55, 6  ;;  %v15126_v9 = vcombine.low %v9660_v17, %v9660_v17  ;;  %v9905_v59 = vor.u32 %v9904_v58, %v9901_v35  ;;  %v9665_v35 = vld [vmem:[#allocation2 + $0x90] sm:$0x3e] }
 0x4e9   :  { %16398 = vmatprep.subr.bf16.mxu0 %v20597_v32  ;;  %v9926_v3 = vshrl.u32 %v15127_v46, 16  ;;  %v9929_v55 = vshll.u32 %v15127_v46, 16  ;;  %v9913_v17 = vrot.slane %v9911_v21, 6  ;;  %v20636_v19 = vsel %vm20579_vm9, %v9852_v28, %v9860_v50  ;;  %v17234_v50 = vld [vmem:[%s21268_s3 + $0x88] sm:$0xff]  }
 0x4ea   :  { %v9869_v33 = vor.u32 %v9868_v8, %v9865_v62  ;;  %v9917_v53 = vshrl.u32 %v15126_v9, 16  ;;  %v9920_v15 = vshll.u32 %v15126_v9, 16  ;;  %v15097_v56 = vcombine.low %v20568_v57, %v9506_v34 }
 0x4eb   :  { %16367 = vmatmul.mubr.msk.bf16.gmra.mrb[44].mxu0 %vm4413_vm0, %v15096_v31  ;;  %v9906_v62 = vrot.slane %v9905_v59, 4  ;;  %v9928_v8 = vrot.slane %v9926_v3, 5  ;;  %v9931_v9 = vrot.slane %v9929_v55, 6  ;;  %v20650_v29 = vcombine.low %v20612_v49, %v20617_v52 }
 0x4ec   :  { %16370 = vmatprep.mubr.msk.bf16.mxu0 %vm4413_vm0, %v20468_v27  ;;  %v9893_v27 = vshll.u32 %v15123_v18, 16  ;;  %v9870_v31 = vrot.slane %v9869_v33, 4  ;;  %v9919_v6 = vrot.slane %v9917_v53, 5  ;;  %v9922_v47 = vrot.slane %v9920_v15, 6  ;;  %v9666_v33 = vld [vmem:[#allocation2 + $0x98] sm:$0x3e] }
 0x4ed   :  { %v9914_v57 = vor.u32 %v9913_v17, %v9910_v42  ;;  %v15132_v14 = vcombine.low %v9663_v24, %v9663_v24  ;;  %v15134_v51 = vcombine.low %v9664_v39, %v9664_v39  ;;  %v9935_v26 = vshrl.u32 %v15128_v43, 16 }
 0x4ee   :  { %v9895_v7 = vrot.slane %v9893_v27, 6  ;;  %v9923_v38 = vor.u32 %v9922_v47, %v9919_v6  ;;  %v9938_v30 = vshll.u32 %v15128_v43, 16  ;;  %v9956_v63 = vshll.u32 %v15130_v61, 16 }
 0x4ef   :  { %v20658_v12 = vcombine.low %v20632_v4, %v20636_v19  ;;  %v9944_v5 = vshrl.u32 %v15129_v36, 16  ;;  %v20666_v27 = vsel %vm20579_vm9, %v9906_v62, %v9914_v57  ;;  %v9932_v20 = vor.u32 %v9931_v9, %v9928_v8 }
 0x4f0   :  { %v9896_v25 = vor.u32 %v9895_v7, %v9892_v11  ;;  %v9924_v40 = vrot.slane %v9923_v38, 4  ;;  %v9947_v16 = vshll.u32 %v15129_v36, 16  ;;  %v9971_v53 = vshrl.u32 %v15132_v14, 16 }
 0x4f1   :  { %v9974_v15 = vshll.u32 %v15132_v14, 16  ;;  %v9992_v46 = vshll.u32 %v15134_v51, 16  ;;  %v9937_v58 = vrot.slane %v9935_v26, 5  ;;  %v9958_v10 = vrot.slane %v9956_v63, 6 }
 0x4f2   :  { %v20670_v21 = vsel %vm20579_vm9, %v9924_v40, %v9932_v20  ;;  %v9946_v28 = vrot.slane %v9944_v5, 5  ;;  %v15133_v11 = vcombine.high %v9663_v24, %v9663_v24  ;;  %v15135_v7 = vcombine.high %v9664_v39, %v9664_v39  ;;  %v20685_v24 = vld [vmem:[%s21268_s3 + $0xd0] sm:$0xff]  }
 0x4f3   :  { %16371 = vmatmul.mubr.msk.bf16.gmra.mrb[48].mxu0 %vm4413_vm0, %v20478_v60  ;;  %v9888_v60 = vrot.slane %v9887_v23, 4  ;;  %v9989_v23 = vshrl.u32 %v15134_v51, 16  ;;  %v15138_v6 = vcombine.low %v9666_v33, %v9666_v33  ;;  %v9973_v47 = vrot.slane %v9971_v53, 5 }
 0x4f4   :  { %16374 = vmatprep.mubr.msk.bf16.mxu0 %vm4413_vm0, %v20539_v54  ;;  %v9878_v54 = vor.u32 %v9877_v45, %v9874_v22  ;;  %v9940_v22 = vrot.slane %v9938_v30, 6  ;;  %v9955_v45 = vrot.slane %v9953_v44, 5  ;;  %v9976_v1 = vrot.slane %v9974_v15, 6 }
 0x4f5   :  { %v20645_v48 = vsel %vm20579_vm9, %v9888_v60, %v9896_v25  ;;  %v9991_v60 = vrot.slane %v9989_v23, 5  ;;  %v9994_v59 = vrot.slane %v9992_v46, 6  ;;  %v15148_v3 = vcombine.low %v20666_v27, %v20670_v21 }
 0x4f6   :  { %v20641_v18 = vsel %vm20579_vm9, %v9870_v31, %v9878_v54  ;;  %v15136_v31 = vcombine.low %v9665_v35, %v9665_v35  ;;  %v9941_v55 = vor.u32 %v9940_v22, %v9937_v58  ;;  %v9949_v54 = vrot.slane %v9947_v16, 6 }
 0x4f7   :  { %v20662_v13 = vcombine.low %v20641_v18, %v20645_v48  ;;  %v9959_v42 = vor.u32 %v9958_v10, %v9955_v45  ;;  %v9980_v17 = vshrl.u32 %v15133_v11, 16  ;;  %v9983_v25 = vshll.u32 %v15133_v11, 16 }
 0x4f8   :  { %v9998_v43 = vshrl.u32 %v15135_v7, 16  ;;  %v10001_v61 = vshll.u32 %v15135_v7, 16  ;;  %v10007_v39 = vshrl.u32 %v15136_v31, 16  ;;  %v10025_v38 = vshrl.u32 %v15138_v6, 16 }
 0x4f9   :  { %v9977_v8 = vor.u32 %v9976_v1, %v9973_v47  ;;  %v9995_v9 = vor.u32 %v9994_v59, %v9991_v60  ;;  %v9942_v57 = vrot.slane %v9941_v55, 4  ;;  %v9960_v14 = vrot.slane %v9959_v42, 4 }
 0x4fa   :  { %v15137_v51 = vcombine.high %v9665_v35, %v9665_v35  ;;  %v15139_v26 = vcombine.high %v9666_v33, %v9666_v33  ;;  %v9982_v30 = vrot.slane %v9980_v17, 5  ;;  %v9985_v44 = vrot.slane %v9983_v25, 6 }
 0x4fb   :  { %16375 = vmatmul.mubr.msk.bf16.gmra.mrb[52].mxu0 %vm4413_vm0, %v15097_v56  ;;  %v10010_v56 = vshll.u32 %v15136_v31, 16  ;;  %v10000_v63 = vrot.slane %v9998_v43, 5  ;;  %v10003_v40 = vrot.slane %v10001_v61, 6  ;;  %v10009_v5 = vrot.slane %v10007_v39, 5 }
 0x4fc   :  { %16382 = vmatprep.mubr.msk.bf16.mxu0 %vm4413_vm0, %v15144_v0  ;;  %v15131_v0 = vcombine.high %v9662_v37, %v9662_v37  ;;  %v10027_v20 = vrot.slane %v10025_v38, 5  ;;  %v9950_v16 = vor.u32 %v9949_v54, %v9946_v28  ;;  %v9978_v15 = vrot.slane %v9977_v8, 4 }
 0x4fd   :  { %v10012_v27 = vrot.slane %v10010_v56, 6  ;;  %v9996_v23 = vrot.slane %v9995_v9, 4  ;;  %v10016_v33 = vshrl.u32 %v15137_v51, 16  ;;  %v10019_v46 = vshll.u32 %v15137_v51, 16 }
 0x4fe   :  { %v9962_v37 = vshrl.u32 %v15131_v0, 16  ;;  %v9965_v34 = vshll.u32 %v15131_v0, 16  ;;  %v10034_v35 = vshrl.u32 %v15139_v26, 16  ;;  %v10037_v58 = vshll.u32 %v15139_v26, 16 }
 0x4ff   :  { %v9986_v22 = vor.u32 %v9985_v44, %v9982_v30  ;;  %v10004_v45 = vor.u32 %v10003_v40, %v10000_v63  ;;  %v9951_v10 = vsel %vm20579_vm9, %v9942_v57, %v9950_v16  ;;  %v10013_v11 = vor.u32 %v10012_v27, %v10009_v5 }
 0x500   :  { %v9964_v36 = vrot.slane %v9962_v37, 5  ;;  %v9967_v62 = vrot.slane %v9965_v34, 6  ;;  %v9655_v34 = vld [vmem:[#allocation2 + $0x40] sm:$0x3e]  ;;  %v10018_v31 = vrot.slane %v10016_v33, 5  ;;  %v10036_v47 = vrot.slane %v10034_v35, 5 }
 0x501   :  { %v9987_v7 = vsel %vm20579_vm9, %v9978_v15, %v9986_v22  ;;  %v10005_v37 = vsel %vm20579_vm9, %v9996_v23, %v10004_v45  ;;  %v10039_v1 = vrot.slane %v10037_v58, 6  ;;  %v15162_v54 = vcombine.low %v9655_v34, %v9655_v34  ;;  %v9656_v23 = vld [vmem:[#allocation2 + $0x48] sm:$0x3e] }
 0x502   :  { %v9968_v53 = vor.u32 %v9967_v62, %v9964_v36  ;;  %v20704_v59 = vcombine.low %v9987_v7, %v10005_v37  ;;  %v15163_v56 = vcombine.high %v9655_v34, %v9655_v34  ;;  %v20723_v30 = vcombine.low %v20617_v52, %v20632_v4  ;;  %v17249_v4 = vld [vmem:[%s21268_s3 + $0x120] sm:$0xff]  }
 0x503   :  { %16383 = vmatmul.mubr.msk.bf16.vlgmr.msra.gmra.mrb[40].mxu0 %vm4413_vm0, %v20650_v29  ;;  %v10040_v17 = vor.u32 %v10039_v1, %v10036_v47  ;;  %v10231_v61 = vshrl.u32 %v15162_v54, 16  ;;  %v10234_v39 = vshll.u32 %v15162_v54, 16  ;;  %v9668_v47 = vld [vmem:[#allocation2 + $0xa8] sm:$0x3e] }
 0x504   :  { %16386 = vmatprep.mubr.msk.bf16.mxu0 %vm4413_vm0, %v20658_v12  ;;  %16399 = vmatpush3.bf16.msra.mxu0 %v20597_v32  ;;  %v10028_v32 = vshll.u32 %v15138_v6, 16  ;;  %v10021_v6 = vrot.slane %v10019_v46, 6  ;;  %v10240_v8 = vshrl.u32 %v15163_v56, 16  ;;  %v10243_v9 = vshll.u32 %v15163_v56, 16 }
 0x505   :  { %16400 = vmatprep.subr.bf16.mxu0 %v17234_v50  ;;  %v10233_v36 = vrot.slane %v10231_v61, 5  ;;  %v10236_v62 = vrot.slane %v10234_v39, 6  ;;  %v15191_v39 = vcombine.high %v9668_v47, %v9668_v47 }
 0x506   :  { %v10030_v0 = vrot.slane %v10028_v32, 6  ;;  %v10022_v42 = vor.u32 %v10021_v6, %v10018_v31  ;;  %v15170_v32 = vcombine.low %v20601_v2, %v20612_v49  ;;  %v10242_v51 = vrot.slane %v10240_v8, 5  ;;  %v17246_v2 = vld [vmem:[%s21268_s3 + $0xd8] sm:$0xff]  }
 0x507   :  { %v10237_v57 = vor.u32 %v10236_v62, %v10233_v36  ;;  %v10245_v26 = vrot.slane %v10243_v9, 6  ;;  %v20730_v49 = vcombine.low %v20636_v19, %v20641_v18  ;;  %v10468_v62 = vshrl.u32 %v15191_v39, 16 }
 0x508   :  { %16401 = vmatpush3.bf16.msra.mxu0 %v17234_v50  ;;  %v20695_v50 = vsel %vm20579_vm9, %v9960_v14, %v9968_v53  ;;  %v10031_v28 = vor.u32 %v10030_v0, %v10027_v20  ;;  %v9667_v14 = vld [vmem:[#allocation2 + $0xa0] sm:$0x3e]  ;;  %v15174_v20 = vcombine.low %v20670_v21, %v9951_v10  ;;  %v15188_v21 = vcombine.low %v9656_v23, %v9656_v23 }
 0x509   :  { %16418 = vmatprep.subr.bf16.mxu0 %v20685_v24  ;;  %v20702_v60 = vcombine.low %v9951_v10, %v20695_v50  ;;  %v10238_v44 = vrot.slane %v10237_v57, 4  ;;  %v15164_v63 = vcombine.low %v9667_v14, %v9667_v14  ;;  %v10246_v52 = vor.u32 %v10245_v26, %v10242_v51  ;;  %v9657_v57 = vld [vmem:[#allocation2 + $0x50] sm:$0x3e] }
 0x50a   :  { %v10032_v55 = vrot.slane %v10031_v28, 4  ;;  %v15165_v5 = vcombine.high %v9667_v14, %v9667_v14  ;;  %v20750_v35 = vcombine.low %v20695_v50, %v9987_v7  ;;  %v10441_v10 = vshrl.u32 %v15188_v21, 16 }
 0x50b   :  { %16387 = vmatmul.mubr.msk.bf16.gmra.mrb[44].mxu0 %vm4413_vm0, %v20662_v13  ;;  %v10247_v19 = vsel %vm20579_vm9, %v10238_v44, %v10246_v52  ;;  %v10249_v18 = vshrl.u32 %v15164_v63, 16  ;;  %v10252_v40 = vshll.u32 %v15164_v63, 16  ;;  %v15189_v28 = vcombine.high %v9656_v23, %v9656_v23 }
 0x50c   :  { %16390 = vmatprep.mubr.msk.bf16.mxu0 %vm4413_vm0, %v15148_v3  ;;  %v10014_v3 = vrot.slane %v10013_v11, 4  ;;  %v10041_v43 = vsel %vm20579_vm9, %v10032_v55, %v10040_v17  ;;  %v20743_v27 = vcombine.low %v20645_v48, %v10247_v19  ;;  %v10258_v16 = vshrl.u32 %v15165_v5, 16  ;;  %v17252_v55 = vld [vmem:[%s21268_s3 + $0x128] sm:$0xff]   ;;  %v17255_v17 = vld [vmem:[%s21268_s3 + $0x170] sm:$0xff]  }
 0x50d   :  { %v10254_v0 = vrot.slane %v10252_v40, 6  ;;  %v10261_v53 = vshll.u32 %v15165_v5, 16  ;;  %v10444_v11 = vshll.u32 %v15188_v21, 16  ;;  %v10443_v50 = vrot.slane %v10441_v10, 5 }
 0x50e   :  { %v10023_v25 = vsel %vm20579_vm9, %v10014_v3, %v10022_v42  ;;  %v10260_v33 = vrot.slane %v10258_v16, 5  ;;  %v10453_v31 = vshll.u32 %v15189_v28, 16  ;;  %v15190_v42 = vcombine.low %v9668_v47, %v9668_v47 }
 0x50f   :  { %v20714_v38 = vcombine.low %v10023_v25, %v10041_v43  ;;  %v10263_v46 = vrot.slane %v10261_v53, 6  ;;  %v20752_v48 = vcombine.low %v10005_v37, %v10023_v25  ;;  %v10446_v7 = vrot.slane %v10444_v11, 6 }
 0x510   :  { %v10450_v37 = vshrl.u32 %v15189_v28, 16  ;;  %v10455_v3 = vrot.slane %v10453_v31, 6  ;;  %v10462_v61 = vshll.u32 %v15190_v42, 16  ;;  %v10471_v8 = vshll.u32 %v15191_v39, 16 }
 0x511   :  { %v10264_v22 = vor.u32 %v10263_v46, %v10260_v33  ;;  %v10447_v6 = vor.u32 %v10446_v7, %v10443_v50  ;;  %v10470_v14 = vrot.slane %v10468_v62, 5  ;;  %v17261_v46 = vld [vmem:[%s21268_s3 + $0x40] sm:$0xff]   ;;  %v9658_v7 = vld [vmem:[#allocation2 + $0x58] sm:$0x3e] }
 0x512   :  { %v10452_v1 = vrot.slane %v10450_v37, 5  ;;  %v10464_v36 = vrot.slane %v10462_v61, 6  ;;  %v10473_v51 = vrot.slane %v10471_v8, 6  ;;  %v15228_v47 = vcombine.low %v9658_v7, %v9658_v7 }
 0x513   :  { %16391 = vmatmul.mubr.msk.bf16.gmra.mrb[48].mxu0 %vm4413_vm0, %v20702_v60  ;;  %v10448_v54 = vrot.slane %v10447_v6, 4 }
 0x514   :  { %16394 = vmatprep.mubr.msk.bf16.mxu0 %vm4413_vm0, %v20704_v59  ;;  %v10474_v44 = vor.u32 %v10473_v51, %v10470_v14 }
 0x51b   :  { %16395 = vmatmul.mubr.msk.bf16.gmra.mrb[52].mxu0 %vm4413_vm0, %v20714_v38 }
 0x51c   :  { %16402 = vmatprep.mubr.msk.bf16.mxu0 %vm4413_vm0, %v15170_v32 }
 0x523   :  { %16403 = vmatmul.mubr.msk.bf16.vlgmr.msra.gmra.mrb[40].mxu0 %vm4413_vm0, %v20723_v30 }
 0x524   :  { %16406 = vmatprep.mubr.msk.bf16.mxu0 %vm4413_vm0, %v20730_v49  ;;  %16419 = vmatpush3.bf16.msra.mxu0 %v20685_v24  ;;  %v10251_v24 = vrot.slane %v10249_v18, 5 }
 0x525   :  { %16420 = vmatprep.subr.bf16.mxu0 %v17246_v2 }
 0x526   :  { %v10255_v15 = vor.u32 %v10254_v0, %v10251_v24  ;;  %v9669_v0 = vld [vmem:[#allocation2 + $0xb0] sm:$0x3e] }
 0x527   :  { %v15210_v33 = vcombine.low %v9669_v0, %v9669_v0 }
 0x528   :  { %16421 = vmatpush3.bf16.msra.mxu0 %v17246_v2  ;;  %v10256_v58 = vrot.slane %v10255_v15, 4  ;;  %v15208_v2 = vcombine.low %v9657_v57, %v9657_v57  ;;  %v17258_v15 = vld [vmem:[%s21268_s3 + $0x178] sm:$0xff]  }
 0x529   :  { %16438 = vmatprep.subr.bf16.mxu0 %v17249_v4  ;;  %v10645_v21 = vshrl.u32 %v15210_v33, 16 }
 0x52a   :  { %v10265_v45 = vsel %vm20579_vm9, %v10256_v58, %v10264_v22  ;;  %v10627_v52 = vshrl.u32 %v15208_v2, 16  ;;  %v10648_v22 = vshll.u32 %v15210_v33, 16  ;;  %v10992_v33 = vld [vmem:[#allocation2 + $0x20] sm:$0x3c] }
 0x52b   :  { %16407 = vmatmul.mubr.msk.bf16.gmra.mrb[44].mxu0 %vm4413_vm0, %v20743_v27  ;;  %v20760_v34 = vcombine.low %v10041_v43, %v10265_v45  ;;  %v10459_v43 = vshrl.u32 %v15190_v42, 16 }
 0x52c   :  { %16410 = vmatprep.mubr.msk.bf16.mxu0 %vm4413_vm0, %v15174_v20  ;;  %v10629_v18 = vrot.slane %v10627_v52, 5  ;;  %v10650_v11 = vrot.slane %v10648_v22, 6 }
 0x52d   :  { %v10461_v32 = vrot.slane %v10459_v43, 5 }
 0x52f   :  { %v10465_v9 = vor.u32 %v10464_v36, %v10461_v32  ;;  %v17264_v36 = vld [vmem:[%s21268_s3 + $0x48] sm:$0xff]  }
 0x531   :  { %v10466_v26 = vrot.slane %v10465_v9, 4 }
 0x533   :  { %16411 = vmatmul.mubr.msk.bf16.gmra.mrb[48].mxu0 %vm4413_vm0, %v20750_v35  ;;  %v10475_v63 = vsel %vm20579_vm9, %v10466_v26, %v10474_v44 }
 0x534   :  { %16414 = vmatprep.mubr.msk.bf16.mxu0 %vm4413_vm0, %v20752_v48 }
 0x53b   :  { %16415 = vmatmul.mubr.msk.bf16.gmra.mrb[52].mxu0 %vm4413_vm0, %v20760_v34 }
 0x53c   :  { %16422 = vmatprep.mubr.msk.bf16.mxu0 %vm4413_vm0, %v20650_v29  ;;  %v10456_v29 = vor.u32 %v10455_v3, %v10452_v1 }
 0x53e   :  { %v10457_v25 = vsel %vm20579_vm9, %v10448_v54, %v10456_v29  ;;  %v15229_v54 = vcombine.high %v9658_v7, %v9658_v7 }
 0x53f   :  { %v20778_v56 = vcombine.low %v10247_v19, %v10457_v25  ;;  %v20790_v19 = vcombine.low %v10265_v45, %v10475_v63  ;;  %v15211_v45 = vcombine.high %v9669_v0, %v9669_v0 }
 0x541   :  { %v10657_v28 = vshll.u32 %v15211_v45, 16 }
 0x543   :  { %16423 = vmatmul.mubr.msk.bf16.vlgmr.msra.gmra.mrb[40].mxu0 %vm4413_vm0, %v20658_v12  ;;  %v10659_v31 = vrot.slane %v10657_v28, 6 }
 0x544   :  { %16426 = vmatprep.mubr.msk.bf16.mxu0 %vm4413_vm0, %v20662_v13  ;;  %16439 = vmatpush3.bf16.msra.mxu0 %v17249_v4  ;;  %v15209_v4 = vcombine.high %v9657_v57, %v9657_v57  ;;  %v20833_v57 = vld [vmem:[%s21268_s3 + $0x90] sm:$0xff]  }
 0x545   :  { %16440 = vmatprep.subr.bf16.mxu0 %v17252_v55 }
 0x546   :  { %v10636_v5 = vshrl.u32 %v15209_v4, 16  ;;  %v10639_v20 = vshll.u32 %v15209_v4, 16 }
 0x548   :  { %16441 = vmatpush3.bf16.msra.mxu0 %v17252_v55  ;;  %v10638_v16 = vrot.slane %v10636_v5, 5  ;;  %v10641_v53 = vrot.slane %v10639_v20, 6  ;;  %v10816_v55 = vshll.u32 %v15228_v47, 16 }
 0x549   :  { %16458 = vmatprep.subr.bf16.mxu0 %v17255_v17 }
 0x54b   :  { %16427 = vmatmul.mubr.msk.bf16.gmra.mrb[44].mxu0 %vm4413_vm0, %v20778_v56 }
 0x54c   :  { %16430 = vmatprep.mubr.msk.bf16.mxu0 %vm4413_vm0, %v20702_v60  ;;  %v10630_v60 = vshll.u32 %v15208_v2, 16 }
 0x54e   :  { %v10632_v40 = vrot.slane %v10630_v60, 6  ;;  %v10989_v60 = vld [vmem:[#allocation2 + $0x8] sm:$0x3c] }
 0x54f   :  { %v15250_v20 = vcombine.low %v10989_v60, %v10989_v60 }
 0x550   :  { %v10633_v24 = vor.u32 %v10632_v40, %v10629_v18 }
 0x552   :  { %v10634_v23 = vrot.slane %v10633_v24, 4  ;;  %v15251_v24 = vcombine.high %v10989_v60, %v10989_v60 }
 0x553   :  { %16431 = vmatmul.mubr.msk.bf16.gmra.mrb[48].mxu0 %vm4413_vm0, %v20704_v59 }
 0x554   :  { %16434 = vmatprep.mubr.msk.bf16.mxu0 %vm4413_vm0, %v20714_v38 }
 0x55b   :  { %16435 = vmatmul.mubr.msk.bf16.gmra.mrb[52].mxu0 %vm4413_vm0, %v20790_v19 }
 0x55c   :  { %16442 = vmatprep.mubr.msk.bf16.mxu0 %vm4413_vm0, %v20723_v30  ;;  %v10642_v30 = vor.u32 %v10641_v53, %v10638_v16  ;;  %v10990_v16 = vld [vmem:[#allocation2 + $0x10] sm:$0x3c]  ;;  %v10991_v53 = vld [vmem:[#allocation2 + $0x18] sm:$0x3c] }
 0x55e   :  { %v10643_v58 = vsel %vm20579_vm9, %v10634_v23, %v10642_v30  ;;  %v10993_v30 = vld [vmem:[#allocation2 + $0x28] sm:$0x3c] }
 0x55f   :  { %v15216_v10 = vcombine.low %v10457_v25, %v10643_v58  ;;  %v10825_v25 = vshll.u32 %v15229_v54, 16  ;;  %v15258_v28 = vcombine.low %v10993_v30, %v10993_v30 }
 0x561   :  { %v10827_v39 = vrot.slane %v10825_v25, 6 }
 0x563   :  { %16443 = vmatmul.mubr.msk.bf16.vlgmr.msra.gmra.mrb[40].mxu0 %vm4413_vm0, %v20730_v49  ;;  %v10647_v49 = vrot.slane %v10645_v21, 5  ;;  %v15252_v21 = vcombine.low %v10990_v16, %v10990_v16 }
 0x564   :  { %16446 = vmatprep.mubr.msk.bf16.mxu0 %vm4413_vm0, %v20743_v27  ;;  %16459 = vmatpush3.bf16.msra.mxu0 %v17255_v17  ;;  %v10654_v27 = vshrl.u32 %v15211_v45, 16  ;;  %v10818_v17 = vrot.slane %v10816_v55, 6  ;;  %v15285_v55 = vrot.slane %v15258_v28, 10 }
 0x565   :  { %16460 = vmatprep.subr.bf16.mxu0 %v17258_v15  ;;  %v10651_v50 = vor.u32 %v10650_v11, %v10647_v49  ;;  %v15254_v49 = vcombine.low %v10991_v53, %v10991_v53  ;;  %v15255_v11 = vcombine.high %v10991_v53, %v10991_v53 }
 0x566   :  { %v10656_v37 = vrot.slane %v10654_v27, 5  ;;  %v15256_v27 = vcombine.low %v10992_v33, %v10992_v33 }
 0x567   :  { %v10652_v6 = vrot.slane %v10651_v50, 4  ;;  %v15259_v50 = vcombine.high %v10993_v30, %v10993_v30 }
 0x568   :  { %16461 = vmatpush3.bf16.msra.mxu0 %v17258_v15  ;;  %v10660_v1 = vor.u32 %v10659_v31, %v10656_v37  ;;  %v15282_v37 = vrot.slane %v15252_v21, 10 }
 0x569   :  { %16478 = vmatprep.subr.bf16.mxu0 %v17261_v46 }
 0x56a   :  { %v20817_v3 = vsel %vm20579_vm9, %v10652_v6, %v10660_v1  ;;  %v15283_v6 = vrot.slane %v15254_v49, 10  ;;  %v15284_v1 = vrot.slane %v15256_v27, 10 }
 0x56b   :  { %16447 = vmatmul.mubr.msk.bf16.gmra.mrb[44].mxu0 %vm4413_vm0, %v15216_v10  ;;  %v15217_v42 = vcombine.low %v10475_v63, %v20817_v3  ;;  %v10988_v63 = vld [vmem:[#allocation2] sm:$0x3c]  ;;  %v15253_v10 = vcombine.high %v10990_v16, %v10990_v16 }
 0x56c   :  { %16450 = vmatprep.mubr.msk.bf16.mxu0 %vm4413_vm0, %v20750_v35  ;;  %v10813_v35 = vshrl.u32 %v15228_v47, 16  ;;  %v15248_v40 = vcombine.low %v10988_v63, %v10988_v63  ;;  %v15249_v5 = vcombine.high %v10988_v63, %v10988_v63  ;;  %v11109_v47 = vrot.slane %v15255_v11, 6  ;;  %v11003_v63 = vld [vmem:[#allocation2 + $0x78] sm:$0x3c] }
 0x56d   :  { %v11105_v31 = vrot.slane %v15253_v10, 6 }
 0x56e   :  { %v10815_v29 = vrot.slane %v10813_v35, 5  ;;  %v15280_v23 = vrot.slane %v15248_v40, 10 }
 0x56f   :  { %v20864_v25 = vsel %vm20848_vm12, %v15282_v37, %v11105_v31 }
 0x570   :  { %v10819_v43 = vor.u32 %v10818_v17, %v10815_v29  ;;  %v10995_v17 = vld [vmem:[#allocation2 + $0x38] sm:$0x3c] }
 0x572   :  { %v10820_v62 = vrot.slane %v10819_v43, 4 }
 0x573   :  { %16451 = vmatmul.mubr.msk.bf16.gmra.mrb[48].mxu0 %vm4413_vm0, %v20752_v48  ;;  %v10822_v48 = vshrl.u32 %v15229_v54, 16  ;;  %v11117_v54 = vrot.slane %v15259_v50, 6  ;;  %v11006_v50 = vld [vmem:[#allocation2 + $0x90] sm:$0x3c] }
 0x574   :  { %16454 = vmatprep.mubr.msk.bf16.mxu0 %vm4413_vm0, %v20760_v34  ;;  %v9670_v34 = vld [vmem:[#allocation2 + $0xb8] sm:$0x3e] }
 0x575   :  { %v10824_v61 = vrot.slane %v10822_v48, 5  ;;  %v15230_v32 = vcombine.low %v9670_v34, %v9670_v34  ;;  %v15231_v51 = vcombine.high %v9670_v34, %v9670_v34  ;;  %v11001_v48 = vld [vmem:[#allocation2 + $0x68] sm:$0x3c]  ;;  %v20868_v34 = vsel %vm20848_vm12, %v15283_v6, %v11109_v47  ;;  %v11007_v6 = vld [vmem:[#allocation2 + $0x98] sm:$0x3c] }
 0x577   :  { %v10831_v8 = vshrl.u32 %v15230_v32, 16  ;;  %v10834_v9 = vshll.u32 %v15230_v32, 16  ;;  %v10843_v44 = vshll.u32 %v15231_v51, 16  ;;  %v20876_v32 = vsel %vm20848_vm12, %v15285_v55, %v11117_v54 }
 0x578   :  { %v15277_v55 = vcombine.high %v11006_v50, %v11006_v50  ;;  %v15278_v54 = vcombine.low %v11007_v6, %v11007_v6 }
 0x579   :  { %v10833_v26 = vrot.slane %v10831_v8, 5  ;;  %v10845_v18 = vrot.slane %v10843_v44, 6 }
 0x57b   :  { %16455 = vmatmul.mubr.msk.bf16.gmra.mrb[52].mxu0 %vm4413_vm0, %v15217_v42  ;;  %v10994_v42 = vld [vmem:[#allocation2 + $0x30] sm:$0x3c] }
 0x57c   :  { %16462 = vmatprep.mubr.msk.bf16.mxu0 %vm4413_vm0, %v20658_v12  ;;  %v10828_v12 = vor.u32 %v10827_v39, %v10824_v61  ;;  %v15260_v43 = vcombine.low %v10994_v42, %v10994_v42  ;;  %v15261_v61 = vcombine.high %v10994_v42, %v10994_v42  ;;  %v15279_v42 = vcombine.high %v11007_v6, %v11007_v6 }
 0x57e   :  { %v10829_v14 = vsel %vm20579_vm9, %v10820_v62, %v10828_v12  ;;  %v15263_v62 = vcombine.high %v10995_v17, %v10995_v17 }
 0x57f   :  { %v15236_v2 = vcombine.low %v10643_v58, %v10829_v14  ;;  %v11101_v58 = vrot.slane %v15251_v24, 6  ;;  %v15267_v14 = vcombine.high %v11001_v48, %v11001_v48  ;;  %v11005_v24 = vld [vmem:[#allocation2 + $0x88] sm:$0x3c] }
 0x580   :  { %v11125_v44 = vrot.slane %v15263_v62, 6  ;;  %v15274_v21 = vcombine.low %v11005_v24, %v11005_v24  ;;  %v11157_v62 = vrot.slane %v15279_v42, 6 }
 0x581   :  { %v11133_v40 = vrot.slane %v15267_v14, 6 }
 0x582   :  { %v15293_v37 = vrot.slane %v15274_v21, 10  ;;  %v11009_v21 = vld [vmem:[#allocation2 + $0xa8] sm:$0x3c] }
 0x583   :  { %16463 = vmatmul.mubr.msk.bf16.vlgmr.msra.gmra.mrb[40].mxu0 %vm4413_vm0, %v20662_v13  ;;  %v10836_v13 = vrot.slane %v10834_v9, 6  ;;  %v15266_v9 = vcombine.low %v11001_v48, %v11001_v48 }
 0x584   :  { %16466 = vmatprep.mubr.msk.bf16.mxu0 %vm4413_vm0, %v20778_v56  ;;  %16479 = vmatpush3.bf16.msra.mxu0 %v17261_v46  ;;  %v10840_v56 = vshrl.u32 %v15231_v51, 16  ;;  %v15281_v46 = vrot.slane %v15250_v20, 10  ;;  %v20880_v51 = vcombine.low %v20864_v25, %v20868_v34  ;;  %v11004_v20 = vld [vmem:[#allocation2 + $0x80] sm:$0x3c] }
 0x585   :  { %16480 = vmatprep.subr.bf16.mxu0 %v17264_v36  ;;  %v10837_v52 = vor.u32 %v10836_v13, %v10833_v26  ;;  %v15286_v26 = vrot.slane %v15260_v43, 10 }
 0x586   :  { %v10842_v4 = vrot.slane %v10840_v56, 5  ;;  %v20857_v41 = vsel %vm20848_vm12, %v15281_v46, %v11101_v58  ;;  %v15272_v46 = vcombine.low %v11004_v20, %v11004_v20  ;;  %v15273_v58 = vcombine.high %v11004_v20, %v11004_v20 }
 0x587   :  { %v10838_v0 = vrot.slane %v10837_v52, 4  ;;  %v17292_v52 = vld [vmem:[%s21268_s3 + $0x98] sm:$0xff]   ;;  %v15328_v14 = vcombine.low %v20857_v41, %v20864_v25 }
 0x588   :  { %16481 = vmatpush3.bf16.msra.mxu0 %v17264_v36  ;;  %v10846_v15 = vor.u32 %v10845_v18, %v10842_v4  ;;  %v15262_v36 = vcombine.low %v10995_v17, %v10995_v17  ;;  %v15289_v18 = vrot.slane %v15266_v9, 10 }
 0x589   :  { %16498 = vmatprep.subr.bf16.mxu0 %v20833_v57 }
 0x58a   :  { %v10847_v22 = vsel %vm20579_vm9, %v10838_v0, %v10846_v15  ;;  %v15287_v56 = vrot.slane %v15262_v36, 10  ;;  %v15270_v15 = vcombine.low %v11003_v63, %v11003_v63  ;;  %v15295_v36 = vrot.slane %v15278_v54, 10 }
 0x58b   :  { %16467 = vmatmul.mubr.msk.bf16.gmra.mrb[44].mxu0 %vm4413_vm0, %v15236_v2  ;;  %v15237_v7 = vcombine.low %v20817_v3, %v10847_v22  ;;  %v11000_v3 = vld [vmem:[#allocation2 + $0x60] sm:$0x3c]  ;;  %v11121_v2 = vrot.slane %v15261_v61, 6  ;;  %v15275_v22 = vcombine.high %v11005_v24, %v11005_v24  ;;  %v11153_v61 = vrot.slane %v15277_v55, 6 }
 0x58c   :  { %16470 = vmatprep.mubr.msk.bf16.mxu0 %vm4413_vm0, %v20704_v59  ;;  %v11097_v59 = vrot.slane %v15249_v5, 6  ;;  %v15264_v12 = vcombine.low %v11000_v3, %v11000_v3  ;;  %v15265_v8 = vcombine.high %v11000_v3, %v11000_v3  ;;  %v11002_v5 = vld [vmem:[#allocation2 + $0x70] sm:$0x3c] }
 0x58d   :  { %v11122_v0 = vsel %vm20848_vm12, %v15286_v26, %v11121_v2  ;;  %v15268_v16 = vcombine.low %v11002_v5, %v11002_v5  ;;  %v15269_v53 = vcombine.high %v11002_v5, %v11002_v5  ;;  %v11149_v31 = vrot.slane %v15275_v22, 6  ;;  %v10996_v26 = vld [vmem:[#allocation2 + $0x40] sm:$0x3c] }
 0x58e   :  { %v15288_v60 = vrot.slane %v15264_v12, 10  ;;  %v11129_v4 = vrot.slane %v15265_v8, 6  ;;  %v11158_v8 = vsel %vm20848_vm12, %v15295_v36, %v11157_v62  ;;  %v15318_v2 = vcombine.low %v10996_v26, %v10996_v26 }
 0x58f   :  { %v15290_v49 = vrot.slane %v15268_v16, 10  ;;  %v11137_v11 = vrot.slane %v15269_v53, 6  ;;  %v11150_v17 = vsel %vm20848_vm12, %v15293_v37, %v11149_v31  ;;  %v15348_v22 = vcombine.low %v11009_v21, %v11009_v21  ;;  %v17316_v37 = vld [vmem:[%s21268_s3 + $0x188] sm:$0xff]  }
 0x590   :  { %v11130_v30 = vsel %vm20848_vm12, %v15288_v60, %v11129_v4  ;;  %v15322_v60 = vrot.slane %v15318_v2, 10 }
 0x591   :  { %v11138_v47 = vsel %vm20848_vm12, %v15290_v49, %v11137_v11  ;;  %v15349_v49 = vcombine.high %v11009_v21, %v11009_v21  ;;  %v15351_v11 = vrot.slane %v15348_v22, 10 }
 0x593   :  { %16471 = vmatmul.mubr.msk.bf16.gmra.mrb[48].mxu0 %vm4413_vm0, %v20714_v38  ;;  %v15257_v38 = vcombine.high %v10992_v33, %v10992_v33  ;;  %v11126_v33 = vsel %vm20848_vm12, %v15287_v56, %v11125_v44  ;;  %v15319_v56 = vcombine.high %v10996_v26, %v10996_v26  ;;  %v11011_v26 = vld [vmem:[#allocation2 + $0xb8] sm:$0x3c] }
 0x594   :  { %16474 = vmatprep.mubr.msk.bf16.mxu0 %vm4413_vm0, %v20790_v19  ;;  %v11098_v19 = vsel %vm20848_vm12, %v15280_v23, %v11097_v59  ;;  %v17301_v23 = vld [vmem:[%s21268_s3 + $0xe0] sm:$0xff]   ;;  %v15271_v59 = vcombine.high %v11003_v63, %v11003_v63  ;;  %v20907_v10 = vcombine.low %v11122_v0, %v11126_v33  ;;  %v17304_v63 = vld [vmem:[%s21268_s3 + $0xe8] sm:$0xff]   ;;  %v15393_v2 = vcombine.high %v11011_v26, %v11011_v26 }
 0x595   :  { %v11113_v35 = vrot.slane %v15257_v38, 6  ;;  %v15300_v29 = vcombine.low %v11098_v19, %v20857_v41  ;;  %v15291_v38 = vrot.slane %v15270_v15, 10  ;;  %v11145_v19 = vrot.slane %v15273_v58, 6  ;;  %v17307_v41 = vld [vmem:[%s21268_s3 + $0x130] sm:$0xff]   ;;  %v10997_v15 = vld [vmem:[#allocation2 + $0x48] sm:$0x3c] }
 0x596   :  { %v11141_v28 = vrot.slane %v15271_v59, 6  ;;  %v11349_v4 = vrot.slane %v15319_v56, 6 }
 0x597   :  { %v20872_v39 = vsel %vm20848_vm12, %v15284_v1, %v11113_v35  ;;  %v15276_v1 = vcombine.low %v11006_v50, %v11006_v50  ;;  %v10998_v50 = vld [vmem:[#allocation2 + $0x50] sm:$0x3c] }
 0x598   :  { %v20884_v13 = vcombine.low %v20872_v39, %v20876_v32  ;;  %v11142_v35 = vsel %vm20848_vm12, %v15291_v38, %v11141_v28  ;;  %v15329_v44 = vcombine.low %v20868_v34, %v20872_v39  ;;  %v11350_v25 = vsel %vm20848_vm12, %v15322_v60, %v11349_v4 }
 0x599   :  { %v20921_v3 = vcombine.low %v11138_v47, %v11142_v35  ;;  %v15294_v48 = vrot.slane %v15276_v1, 10  ;;  %v15331_v34 = vcombine.low %v11126_v33, %v11350_v25  ;;  %v15347_v33 = vcombine.high %v10997_v15, %v10997_v15 }
 0x59b   :  { %16475 = vmatmul.mubr.msk.bf16.gmra.mrb[52].mxu0 %vm4413_vm0, %v15237_v7  ;;  %v15292_v7 = vrot.slane %v15272_v46, 10  ;;  %v11154_v12 = vsel %vm20848_vm12, %v15294_v48, %v11153_v61  ;;  %v11531_v59 = vrot.slane %v15347_v33, 6  ;;  %v10999_v48 = vld [vmem:[#allocation2 + $0x58] sm:$0x3c] }
 0x59c   :  { %16482 = vmatprep.mubr.msk.bf16.mxu0 %vm4413_vm0, %v15300_v29  ;;  %v20933_v9 = vcombine.low %v11154_v12, %v11158_v8  ;;  %v15334_v20 = vcombine.low %v11150_v17, %v11154_v12  ;;  %v15390_v61 = vcombine.low %v10999_v48, %v10999_v48  ;;  %v15391_v36 = vcombine.high %v10999_v48, %v10999_v48 }
 0x59d   :  { %v11146_v29 = vsel %vm20848_vm12, %v15292_v7, %v11145_v19  ;;  %v15368_v7 = vcombine.low %v10998_v50, %v10998_v50  ;;  %v15369_v19 = vcombine.high %v10998_v50, %v10998_v50 }
 0x59e   :  { %v20923_v43 = vcombine.low %v11146_v29, %v11150_v17  ;;  %v15333_v5 = vcombine.low %v11142_v35, %v11146_v29  ;;  %v11010_v35 = vld [vmem:[#allocation2 + $0xb0] sm:$0x3c]  ;;  %v15394_v62 = vrot.slane %v15390_v61, 10  ;;  %v11847_v12 = vrot.slane %v15391_v36, 6 }
 0x59f   :  { %v15372_v31 = vrot.slane %v15368_v7, 10  ;;  %v11689_v6 = vrot.slane %v15369_v19, 6  ;;  %v15370_v55 = vcombine.low %v11010_v35, %v11010_v35  ;;  %v15371_v54 = vcombine.high %v11010_v35, %v11010_v35 }
 0x5a1   :  { %v15373_v42 = vrot.slane %v15370_v55, 10  ;;  %v11693_v29 = vrot.slane %v15371_v54, 6 }
 0x5a3   :  { %16483 = vmatmul.mubr.msk.bf16.vlgmr.msra.gmra.mrb[40].mxu0 %vm4413_vm0, %v20880_v51  ;;  %v11694_v17 = vsel %vm20848_vm12, %v15373_v42, %v11693_v29 }
 0x5a4   :  { %16486 = vmatprep.mubr.msk.bf16.mxu0 %vm4413_vm0, %v20884_v13  ;;  %16499 = vmatpush3.bf16.msra.mxu0 %v20833_v57  ;;  %v20905_v57 = vsel %vm20848_vm12, %v15289_v18, %v11133_v40 }
 0x5a5   :  { %16500 = vmatprep.subr.bf16.mxu0 %v17292_v52  ;;  %v15304_v27 = vcombine.low %v11130_v30, %v20905_v57  ;;  %v15332_v39 = vcombine.low %v20905_v57, %v11138_v47  ;;  %v17310_v30 = vld [vmem:[%s21268_s3 + $0x138] sm:$0xff]   ;;  %v11690_v47 = vsel %vm20848_vm12, %v15372_v31, %v11689_v6 }
 0x5a8   :  { %16501 = vmatpush3.bf16.msra.mxu0 %v17292_v52  ;;  %v15330_v52 = vcombine.low %v20876_v32, %v11122_v0  ;;  %v11008_v32 = vld [vmem:[#allocation2 + $0xa0] sm:$0x3c] }
 0x5a9   :  { %16518 = vmatprep.subr.bf16.mxu0 %v17301_v23  ;;  %v15320_v18 = vcombine.low %v11008_v32, %v11008_v32  ;;  %v15321_v40 = vcombine.high %v11008_v32, %v11008_v32 }
 0x5ab   :  { %16487 = vmatmul.mubr.msk.bf16.gmra.mrb[44].mxu0 %vm4413_vm0, %v20907_v10  ;;  %v15323_v24 = vrot.slane %v15320_v18, 10  ;;  %v11353_v0 = vrot.slane %v15321_v40, 6 }
 0x5ac   :  { %16490 = vmatprep.mubr.msk.bf16.mxu0 %vm4413_vm0, %v15304_v27  ;;  %v11535_v27 = vrot.slane %v15349_v49, 6 }
 0x5ad   :  { %v11354_v16 = vsel %vm20848_vm12, %v15323_v24, %v11353_v0 }
 0x5ae   :  { %v15335_v53 = vcombine.low %v11158_v8, %v11354_v16  ;;  %v11536_v38 = vsel %vm20848_vm12, %v15351_v11, %v11535_v27  ;;  %v11848_v8 = vsel %vm20848_vm12, %v15394_v62, %v11847_v12 }
 0x5af   :  { %v15357_v28 = vcombine.low %v11354_v16, %v11536_v38 }
 0x5b3   :  { %16491 = vmatmul.mubr.msk.bf16.gmra.mrb[48].mxu0 %vm4413_vm0, %v20921_v3 }
 0x5b4   :  { %16494 = vmatprep.mubr.msk.bf16.mxu0 %vm4413_vm0, %v20923_v43 }
 0x5bb   :  { %16495 = vmatmul.mubr.msk.bf16.gmra.mrb[52].mxu0 %vm4413_vm0, %v20933_v9 }
 0x5bc   :  { %16502 = vmatprep.mubr.msk.bf16.mxu0 %vm4413_vm0, %v15328_v14  ;;  %v15400_v14 = vcombine.low %v11690_v47, %v11848_v8 }
 0x5c3   :  { %16503 = vmatmul.mubr.msk.bf16.vlgmr.msra.gmra.mrb[40].mxu0 %vm4413_vm0, %v15329_v44 }
 0x5c4   :  { %16506 = vmatprep.mubr.msk.bf16.mxu0 %vm4413_vm0, %v15330_v52  ;;  %16519 = vmatpush3.bf16.msra.mxu0 %v17301_v23  ;;  %v15346_v23 = vcombine.low %v10997_v15, %v10997_v15 }
 0x5c5   :  { %16520 = vmatprep.subr.bf16.mxu0 %v17304_v63 }
 0x5c6   :  { %v15350_v57 = vrot.slane %v15346_v23, 10 }
 0x5c8   :  { %16521 = vmatpush3.bf16.msra.mxu0 %v17304_v63  ;;  %v11532_v46 = vsel %vm20848_vm12, %v15350_v57, %v11531_v59 }
 0x5c9   :  { %16538 = vmatprep.subr.bf16.mxu0 %v17307_v41  ;;  %v15356_v58 = vcombine.low %v11350_v25, %v11532_v46  ;;  %v15378_v1 = vcombine.low %v11532_v46, %v11690_v47 }
 0x5cb   :  { %16507 = vmatmul.mubr.msk.bf16.gmra.mrb[44].mxu0 %vm4413_vm0, %v15331_v34 }
 0x5cc   :  { %16510 = vmatprep.mubr.msk.bf16.mxu0 %vm4413_vm0, %v15332_v39 }
 0x5d3   :  { %16511 = vmatmul.mubr.msk.bf16.gmra.mrb[48].mxu0 %vm4413_vm0, %v15333_v5 }
 0x5d4   :  { %16514 = vmatprep.mubr.msk.bf16.mxu0 %vm4413_vm0, %v15334_v20 }
 0x5db   :  { %16515 = vmatmul.mubr.msk.bf16.gmra.mrb[52].mxu0 %vm4413_vm0, %v15335_v53 }
 0x5dc   :  { %16522 = vmatprep.mubr.msk.bf16.mxu0 %vm4413_vm0, %v20880_v51  ;;  %v17313_v51 = vld [vmem:[%s21268_s3 + $0x180] sm:$0xff]  }
 0x5e3   :  { %16523 = vmatmul.mubr.msk.bf16.vlgmr.msra.gmra.mrb[40].mxu0 %vm4413_vm0, %v20884_v13 }
 0x5e4   :  { %16526 = vmatprep.mubr.msk.bf16.mxu0 %vm4413_vm0, %v20907_v10  ;;  %16539 = vmatpush3.bf16.msra.mxu0 %v17307_v41 }
 0x5e5   :  { %16540 = vmatprep.subr.bf16.mxu0 %v17310_v30 }
 0x5e8   :  { %16541 = vmatpush3.bf16.msra.mxu0 %v17310_v30 }
 0x5e9   :  { %16558 = vmatprep.subr.bf16.mxu0 %v17313_v51 }
 0x5eb   :  { %16527 = vmatmul.mubr.msk.bf16.gmra.mrb[44].mxu0 %vm4413_vm0, %v15356_v58 }
 0x5ec   :  { %16530 = vmatprep.mubr.msk.bf16.mxu0 %vm4413_vm0, %v20921_v3  ;;  %v15379_v3 = vcombine.low %v11536_v38, %v11694_v17 }
 0x5f3   :  { %16531 = vmatmul.mubr.msk.bf16.gmra.mrb[48].mxu0 %vm4413_vm0, %v20923_v43 }
 0x5f4   :  { %16534 = vmatprep.mubr.msk.bf16.mxu0 %vm4413_vm0, %v20933_v9 }
 0x5fb   :  { %16535 = vmatmul.mubr.msk.bf16.gmra.mrb[52].mxu0 %vm4413_vm0, %v15357_v28 }
 0x5fc   :  { %16542 = vmatprep.mubr.msk.bf16.mxu0 %vm4413_vm0, %v15329_v44  ;;  %v11851_v44 = vrot.slane %v15393_v2, 6 }
 0x603   :  { %16543 = vmatmul.mubr.msk.bf16.vlgmr.msra.gmra.mrb[40].mxu0 %vm4413_vm0, %v15330_v52  ;;  %v15412_v52 = vld [vmem:[%s21269_s4] ss:$0 sm:$0xff] }
 0x604   :  { %16546 = vmatprep.mubr.msk.bf16.mxu0 %vm4413_vm0, %v15331_v34  ;;  %16559 = vmatpush3.bf16.msra.mxu0 %v17313_v51 }
 0x605   :  { %16560 = vmatprep.subr.bf16.mxu0 %v17316_v37 }
 0x608   :  { %16561 = vmatpush3.bf16.msra.mxu0 %v17316_v37 }
 0x60b   :  { %16547 = vmatmul.mubr.msk.bf16.gmra.mrb[44].mxu0 %vm4413_vm0, %v15378_v1 }
 0x60c   :  { %16550 = vmatprep.mubr.msk.bf16.mxu0 %vm4413_vm0, %v15333_v5 }
 0x613   :  { %16551 = vmatmul.mubr.msk.bf16.gmra.mrb[48].mxu0 %vm4413_vm0, %v15334_v20 }
 0x614   :  { %16554 = vmatprep.mubr.msk.bf16.mxu0 %vm4413_vm0, %v15335_v53 }
 0x61b   :  { %16555 = vmatmul.mubr.msk.bf16.gmra.mrb[52].mxu0 %vm4413_vm0, %v15379_v3 }
 0x61c   :  { %16562 = vmatprep.mubr.msk.bf16.mxu0 %vm4413_vm0, %v20884_v13  ;;  %v15392_v13 = vcombine.low %v11011_v26, %v11011_v26 }
 0x61e   :  { %v15395_v56 = vrot.slane %v15392_v13, 10 }
 0x623   :  { %16563 = vmatmul.mubr.msk.bf16.vlgmr.msra.gmra.mrb[40].mxu0 %vm4413_vm0, %v20907_v10  ;;  %v11852_v10 = vsel %vm20848_vm12, %v15395_v56, %v11851_v44 }
 0x624   :  { %16566 = vmatprep.mubr.msk.bf16.mxu0 %vm4413_vm0, %v15356_v58  ;;  %v15401_v63 = vcombine.low %v11694_v17, %v11852_v10 }
 0x62b   :  { %16567 = vmatmul.mubr.msk.bf16.gmra.mrb[44].mxu0 %vm4413_vm0, %v15400_v14 }
 0x62c   :  { %16570 = vmatprep.mubr.msk.bf16.mxu0 %vm4413_vm0, %v20923_v43 }
 0x633   :  { %16571 = vmatmul.mubr.msk.bf16.gmra.mrb[48].mxu0 %vm4413_vm0, %v20933_v9 }
 0x634   :  { %16574 = vmatprep.mubr.msk.bf16.mxu0 %vm4413_vm0, %v15357_v28 }
 0x63b   :  { %16575 = vmatmul.mubr.msk.bf16.gmra.mrb[52].mxu0 %vm4413_vm0, %v15401_v63 }
 0x6f6   :  { %v16564_v43 = vpop.f32.mrb[40].mxu0 }
 0x6f7   :  { %v12002_v60 = vadd.f32 %v16564_v43, %v15412_v52  ;;  %v11914_v4 = vpop.f32.mrb[41].mxu0 }
 0x6f8   :  { %v12000_v41 = vadd.f32 %v15412_v52, %v11914_v4  ;;  %v16565_v25 = vpop.f32.mrb[42].mxu0 }
 0x6f9   :  { %v12018_v34 = vmax.f32 %v12002_v60, 0.0  ;;  %v12003_v9 = vadd.f32 %v16565_v25, %v15412_v52  ;;  %v11917_v39 = vpop.f32.mrb[43].mxu0 }
 0x6fa   :  { %v12016_v32 = vmax.f32 %v12000_v41, 0.0  ;;  %v12001_v18 = vadd.f32 %v15412_v52, %v11917_v39 }
 0x6fb   :  { %12035 = vst.msk [vmem:[#allocation3 + $0x10] sm:$0xff] %vm12032_vm13, %v12018_v34  ;;  %v12019_v45 = vmax.f32 %v12003_v9, 0.0 }
 0x6fc   :  { %12033 = vst.msk [vmem:[#allocation3] sm:$0xff] %vm12032_vm13, %v12016_v32  ;;  %v12017_v40 = vmax.f32 %v12001_v18, 0.0 }
 0x6fd   :  { %12036 = vst.msk [vmem:[#allocation3 + $0x18] sm:$0xff] %vm12032_vm13, %v12019_v45 }
 0x6fe   :  { %12034 = vst.msk [vmem:[#allocation3 + $0x8] sm:$0xff] %vm12032_vm13, %v12017_v40  ;;  %v16568_v5 = vpop.f32.mrb[44].mxu0 }
 0x6ff   :  { %v12006_v20 = vadd.f32 %v16568_v5, %v15412_v52  ;;  %v11930_v24 = vpop.f32.mrb[45].mxu0 }
 0x700   :  { %v12004_v0 = vadd.f32 %v15412_v52, %v11930_v24  ;;  %v16569_v16 = vpop.f32.mrb[46].mxu0 }
 0x701   :  { %v12022_v53 = vmax.f32 %v12006_v20, 0.0  ;;  %v12007_v15 = vadd.f32 %v16569_v16, %v15412_v52  ;;  %v11933_v23 = vpop.f32.mrb[47].mxu0 }
 0x702   :  { %v12020_v33 = vmax.f32 %v12004_v0, 0.0  ;;  %v12005_v30 = vadd.f32 %v15412_v52, %v11933_v23 }
 0x703   :  { %12039 = vst.msk [vmem:[#allocation3 + $0x30] sm:$0xff] %vm12032_vm13, %v12022_v53  ;;  %v12023_v57 = vmax.f32 %v12007_v15, 0.0 }
 0x704   :  { %12037 = vst.msk [vmem:[#allocation3 + $0x20] sm:$0xff] %vm12032_vm13, %v12020_v33  ;;  %v12021_v59 = vmax.f32 %v12005_v30, 0.0 }
 0x705   :  { %12040 = vst.msk [vmem:[#allocation3 + $0x38] sm:$0xff] %vm12032_vm13, %v12023_v57 }
 0x706   :  { %12038 = vst.msk [vmem:[#allocation3 + $0x28] sm:$0xff] %vm12032_vm13, %v12021_v59  ;;  %v16572_v51 = vpop.f32.mrb[48].mxu0 }
 0x707   :  { %v12010_v46 = vadd.f32 %v16572_v51, %v15412_v52  ;;  %v11946_v58 = vpop.f32.mrb[49].mxu0 }
 0x708   :  { %v12008_v21 = vadd.f32 %v15412_v52, %v11946_v58  ;;  %v16573_v22 = vpop.f32.mrb[50].mxu0 }
 0x709   :  { %v12026_v49 = vmax.f32 %v12010_v46, 0.0  ;;  %v12011_v11 = vadd.f32 %v16573_v22, %v15412_v52  ;;  %v11949_v27 = vpop.f32.mrb[51].mxu0 }
 0x70a   :  { %v12024_v38 = vmax.f32 %v12008_v21, 0.0  ;;  %v12009_v28 = vadd.f32 %v15412_v52, %v11949_v27 }
 0x70b   :  { %12043 = vst.msk [vmem:[#allocation3 + $0x50] sm:$0xff] %vm12032_vm13, %v12026_v49  ;;  %v12027_v50 = vmax.f32 %v12011_v11, 0.0 }
 0x70c   :  { %12041 = vst.msk [vmem:[#allocation3 + $0x40] sm:$0xff] %vm12032_vm13, %v12024_v38  ;;  %v12025_v7 = vmax.f32 %v12009_v28, 0.0 }
 0x70d   :  { %12044 = vst.msk [vmem:[#allocation3 + $0x58] sm:$0xff] %vm12032_vm13, %v12027_v50 }
 0x70e   :  { %12042 = vst.msk [vmem:[#allocation3 + $0x48] sm:$0xff] %vm12032_vm13, %v12025_v7  ;;  %v16576_v19 = vpop.f32.mrb[52].mxu0 }
 0x70f   :  { %v12014_v37 = vadd.f32 %v16576_v19, %v15412_v52  ;;  %v11962_v31 = vpop.f32.mrb[53].mxu0 }
 0x710   :  { %v12012_v6 = vadd.f32 %v15412_v52, %v11962_v31  ;;  %v16577_v47 = vpop.f32.mrb[54].mxu0 }
 0x711   :  { %v12030_v1 = vmax.f32 %v12014_v37, 0.0  ;;  %v12015_v35 = vadd.f32 %v16577_v47, %v15412_v52  ;;  %v11965_v55 = vpop.f32.mrb[55].mxu0 }
 0x712   :  { %v12028_v54 = vmax.f32 %v12012_v6, 0.0  ;;  %v12013_v42 = vadd.f32 %v15412_v52, %v11965_v55 }
 0x713   :  { %12047 = vst.msk [vmem:[#allocation3 + $0x70] sm:$0xff] %vm12032_vm13, %v12030_v1  ;;  %v12031_v29 = vmax.f32 %v12015_v35, 0.0 }
 0x714   :  { %12045 = vst.msk [vmem:[#allocation3 + $0x60] sm:$0xff] %vm12032_vm13, %v12028_v54  ;;  %v12029_v17 = vmax.f32 %v12013_v42, 0.0 }
 0x715   :  { %12048 = vst.msk [vmem:[#allocation3 + $0x78] sm:$0xff] %vm12032_vm13, %v12031_v29 }
 0x716   :  { %12046 = vst.msk [vmem:[#allocation3 + $0x68] sm:$0xff] %vm12032_vm13, %v12029_v17 }
 0x717   :  { %17349 = dma.done.wait [#allocation6], 32768 }
 0x718   :  { %17350 = vsyncadd [#allocation6], 4294934528  ;;  %v17355_v3 = vmov 0   ;;  %v12105_v48 = vld [vmem:[#allocation4 + $0x88] sm:$0xff]  ;;  %v12104_v61 = vld [vmem:[#allocation4 + $0x80] sm:$0xff]  ;;  %vm12125_vm14 = vcmask 1041409  }
 0x719   :  { %12163 = vmatprep.mubr.bf16.mxu1 %v17355_v3  ;;  %v12109_v36 = vld [vmem:[#allocation4 + $0xa8] sm:$0xff]  ;;  %12131 = vmatprep.subr.bf16.mxu1 %v12105_v48  ;;  %v12108_v62 = vld [vmem:[#allocation4 + $0xa0] sm:$0xff]  ;;  %v12107_v40 = vld [vmem:[#allocation4 + $0x98] sm:$0xff] }
 0x71a   :  { %12132 = vmatpush1.bf16.msra.mxu1 %v12104_v61  ;;  %v12113_v12 = vld [vmem:[#allocation4 + $0xc8] sm:$0xff]  ;;  %v12087_v8 = vld [vmem:[#allocation3 + $0x2] sm:$0x1]  ;;  %v12089_v26 = vld [vmem:[#allocation3 + $0x3] sm:$0x1] }
 0x71b   :  { %12133 = vmatprep.subr.bf16.mxu1 %v12109_v36  ;;  %v12088_v14 = vld [vmem:[#allocation3 + $0x42] sm:$0x1]  ;;  %v12090_v13 = vld [vmem:[#allocation3 + $0x43] sm:$0x1]  ;;  %v12091_v2 = vld [vmem:[#allocation3 + $0xa] sm:$0x1]  ;;  %v12095_v10 = vmax.f32 %v12087_v8, %v12089_v26 }
 0x71c   :  { %v12092_v56 = vld [vmem:[#allocation3 + $0x4a] sm:$0x1]  ;;  %v12093_v44 = vld [vmem:[#allocation3 + $0xb] sm:$0x1]  ;;  %v12096_v63 = vmax.f32 %v12088_v14, %v12090_v13  ;;  %v12112_v4 = vld [vmem:[#allocation4 + $0xc0] sm:$0xff] }
 0x71d   :  { %v12094_v52 = vld [vmem:[#allocation3 + $0x4b] sm:$0x1]  ;;  %v12097_v43 = vmax.f32 %v12091_v2, %v12093_v44  ;;  %v12116_v32 = vld [vmem:[#allocation4 + $0xe0] sm:$0xff]  ;;  %v12106_v0 = vld [vmem:[#allocation4 + $0x90] sm:$0xff] }
 0x71e   :  { %12134 = vmatpush1.bf16.msra.mxu1 %v12108_v62  ;;  %v12098_v60 = vmax.f32 %v12092_v56, %v12094_v52  ;;  %v12117_v25 = vld [vmem:[#allocation4 + $0xe8] sm:$0xff]  ;;  %v12111_v16 = vld [vmem:[#allocation4 + $0xb8] sm:$0xff]  ;;  %v12110_v53 = vld [vmem:[#allocation4 + $0xb0] sm:$0xff] }
 0x71f   :  { %12135 = vmatprep.subr.bf16.mxu1 %v12113_v12  ;;  %v12099_v41 = vmax.f32 %v12095_v10, %v12097_v43  ;;  %v12055_v15 = vld [vmem:[#allocation3 + $0x40] sm:$0x1]  ;;  %v12057_v23 = vld [vmem:[#allocation3 + $0x41] sm:$0x1]  ;;  %v12060_v33 = vld [vmem:[#allocation3 + $0x48] sm:$0x1] }
 0x720   :  { %v12100_v34 = vmax.f32 %v12096_v63, %v12098_v60  ;;  %v12062_v30 = vld [vmem:[#allocation3 + $0x49] sm:$0x1]  ;;  %v12115_v57 = vld [vmem:[#allocation4 + $0xd8] sm:$0xff]  ;;  %v12114_v59 = vld [vmem:[#allocation4 + $0xd0] sm:$0xff]  ;;  %v12064_v46 = vmax.f32 %v12055_v15, %v12057_v23 }
 0x721   :  { %v12101_v9 = vpack.c.bf16 %v12099_v41, %v12099_v41  ;;  %v12054_v51 = vld [vmem:[#allocation3] sm:$0x1]  ;;  %v12066_v58 = vmax.f32 %v12060_v33, %v12062_v30  ;;  %v12056_v21 = vld [vmem:[#allocation3 + $0x1] sm:$0x1]  ;;  %v12059_v22 = vld [vmem:[#allocation3 + $0x8] sm:$0x1] }
 0x722   :  { %12136 = vmatpush1.bf16.msra.mxu1 %v12112_v4  ;;  %v12102_v39 = vpack.c.bf16 %v12100_v34, %v12100_v34  ;;  %v12061_v49 = vld [vmem:[#allocation3 + $0x9] sm:$0x1]  ;;  %v12119_v11 = vld [vmem:[#allocation4 + $0xf8] sm:$0xff]  ;;  %v12063_v27 = vmax.f32 %v12054_v51, %v12056_v21  ;;  %v12118_v50 = vld [vmem:[#allocation4 + $0xf0] sm:$0xff] }
 0x723   :  { %12137 = vmatprep.subr.bf16.mxu1 %v12117_v25  ;;  %v12122_v18 = vunpack.c.l.b16 %v12101_v9  ;;  %v12065_v38 = vmax.f32 %v12059_v22, %v12061_v49  ;;  %v12068_v28 = vmax.f32 %v12064_v46, %v12066_v58  ;;  %v12072_v7 = vld [vmem:[#allocation4 + $0x8] sm:$0xff]  ;;  %v12071_v31 = vld [vmem:[#allocation4] sm:$0xff]  ;;  %v12074_v36 = vld [vmem:[#allocation4 + $0x18] sm:$0xff] }
 0x724   :  { %v12123_v45 = vunpack.c.l.b16 %v12102_v39  ;;  %v12076_v6 = vld [vmem:[#allocation4 + $0x28] sm:$0xff]  ;;  %v12075_v35 = vld [vmem:[#allocation4 + $0x20] sm:$0xff]  ;;  %v12073_v12 = vld [vmem:[#allocation4 + $0x10] sm:$0xff] }
 0x725   :  { %v12067_v19 = vmax.f32 %v12063_v27, %v12065_v38  ;;  %v12070_v37 = vpack.c.bf16 %v12068_v28, %v12068_v28  ;;  %v12080_v55 = vld [vmem:[#allocation4 + $0x48] sm:$0xff]  ;;  %v12079_v29 = vld [vmem:[#allocation4 + $0x40] sm:$0xff]  ;;  %v12078_v8 = vld [vmem:[#allocation4 + $0x38] sm:$0xff] }
 0x726   :  { %12138 = vmatpush1.bf16.msra.mxu1 %v12116_v32  ;;  %v12124_v5 = vrot.slane %v12123_v45, 7  ;;  %v12084_v17 = vld [vmem:[#allocation4 + $0x68] sm:$0xff]  ;;  %v12083_v61 = vld [vmem:[#allocation4 + $0x60] sm:$0xff]  ;;  %v12077_v14 = vld [vmem:[#allocation4 + $0x30] sm:$0xff] }
 0x727   :  { %12172 = vmatprep.subr.bf16.mxu1 %v12107_v40  ;;  %v12069_v47 = vpack.c.bf16 %v12067_v19, %v12067_v19  ;;  %v12216_v1 = vunpack.c.l.b16 %v12070_v37  ;;  %v12306_v26 = vld [vmem:[#allocation3 + $0x44] sm:$0x1]  ;;  %v12308_v13 = vld [vmem:[#allocation3 + $0x45] sm:$0x1]  ;;  %v12310_v2 = vld [vmem:[#allocation3 + $0x4c] sm:$0x1] }
 0x728   :  { %v12126_v20 = vsel %vm12125_vm14, %v12124_v5, %v12122_v18  ;;  %v12312_v56 = vld [vmem:[#allocation3 + $0x4d] sm:$0x1]  ;;  %v12082_v44 = vld [vmem:[#allocation4 + $0x58] sm:$0xff]  ;;  %v12081_v10 = vld [vmem:[#allocation4 + $0x50] sm:$0xff]  ;;  %v12314_v52 = vmax.f32 %v12306_v26, %v12308_v13 }
 0x729   :  { %v12127_v24 = vpack.c.b16 %v12126_v20, %v12126_v20  ;;  %v12215_v54 = vunpack.c.l.b16 %v12069_v47  ;;  %v12217_v42 = vrot.slane %v12216_v1, 7  ;;  %v12305_v63 = vld [vmem:[#allocation3 + $0x4] sm:$0x1]  ;;  %v12316_v43 = vmax.f32 %v12310_v2, %v12312_v56  ;;  %v12307_v60 = vld [vmem:[#allocation3 + $0x5] sm:$0x1]  ;;  %v12086_v25 = vld [vmem:[#allocation4 + $0x78] sm:$0xff] }
 0x72a   :  { %v12309_v4 = vld [vmem:[#allocation3 + $0xc] sm:$0x1]  ;;  %v12311_v41 = vld [vmem:[#allocation3 + $0xd] sm:$0x1]  ;;  %v12313_v34 = vmax.f32 %v12305_v63, %v12307_v60  ;;  %v12085_v32 = vld [vmem:[#allocation4 + $0x70] sm:$0xff] }
 0x72b   :  { %15413 = vmatmul.mubr.msk.bf16.vlgmr.msra.gmra.mrb[152].mxu1 %vm12032_vm13, %v12127_v24  ;;  %v12218_v48 = vsel %vm12125_vm14, %v12217_v42, %v12215_v54  ;;  %v12315_v9 = vmax.f32 %v12309_v4, %v12311_v41  ;;  %v12318_v39 = vmax.f32 %v12314_v52, %v12316_v43  ;;  %v12323_v18 = vld [vmem:[#allocation4 + $0x108] sm:$0xff]  ;;  %v12322_v5 = vld [vmem:[#allocation4 + $0x100] sm:$0xff]  ;;  %v12325_v51 = vld [vmem:[#allocation4 + $0x118] sm:$0xff] }
 0x72c   :  { %12173 = vmatpush1.bf16.msra.mxu1 %v12106_v0  ;;  %12204 = vmatprep.mubr.bf16.mxu1 %v17355_v3  ;;  %v12219_v62 = vpack.c.b16 %v12218_v48, %v12218_v48  ;;  %v12327_v20 = vld [vmem:[#allocation4 + $0x128] sm:$0xff]  ;;  %v12330_v33 = vld [vmem:[#allocation4 + $0x140] sm:$0xff]  ;;  %v12324_v58 = vld [vmem:[#allocation4 + $0x110] sm:$0xff] }
 0x72d   :  { %12174 = vmatprep.subr.bf16.mxu1 %v12111_v16  ;;  %v12317_v45 = vmax.f32 %v12313_v34, %v12315_v9  ;;  %v12320_v40 = vpack.c.bf16 %v12318_v39, %v12318_v39  ;;  %v12326_v16 = vld [vmem:[#allocation4 + $0x120] sm:$0xff]  ;;  %v12335_v30 = vld [vmem:[#allocation4 + $0x168] sm:$0xff]  ;;  %v12329_v21 = vld [vmem:[#allocation4 + $0x138] sm:$0xff] }
 0x72e   :  { %v12328_v22 = vld [vmem:[#allocation4 + $0x130] sm:$0xff]  ;;  %v12435_v49 = vld [vmem:[#allocation3 + $0x46] sm:$0x1]  ;;  %v12439_v27 = vld [vmem:[#allocation3 + $0x4e] sm:$0x1] }
 0x72f   :  { %v12341_v0 = vunpack.c.l.b16 %v12320_v40  ;;  %v12441_v38 = vld [vmem:[#allocation3 + $0x4f] sm:$0x1]  ;;  %v12333_v28 = vld [vmem:[#allocation4 + $0x158] sm:$0xff]  ;;  %v12336_v42 = vld [vmem:[#allocation4 + $0x170] sm:$0xff] }
 0x730   :  { %12175 = vmatpush1.bf16.msra.mxu1 %v12110_v53  ;;  %v12331_v53 = vld [vmem:[#allocation4 + $0x148] sm:$0xff]  ;;  %v12445_v37 = vmax.f32 %v12439_v27, %v12441_v38  ;;  %v12337_v1 = vld [vmem:[#allocation4 + $0x178] sm:$0xff]  ;;  %v12459_v2 = vld [vmem:[#allocation4 + $0x1c0] sm:$0xff] }
 0x731   :  { %12176 = vmatprep.subr.bf16.mxu1 %v12115_v57  ;;  %v12342_v23 = vrot.slane %v12341_v0, 7  ;;  %v12440_v47 = vld [vmem:[#allocation3 + $0xf] sm:$0x1]  ;;  %v12454_v63 = vld [vmem:[#allocation4 + $0x198] sm:$0xff]  ;;  %v12453_v43 = vld [vmem:[#allocation4 + $0x190] sm:$0xff] }
 0x732   :  { %v12464_v56 = vld [vmem:[#allocation4 + $0x1e8] sm:$0xff]  ;;  %v12458_v60 = vld [vmem:[#allocation4 + $0x1b8] sm:$0xff]  ;;  %v12457_v4 = vld [vmem:[#allocation4 + $0x1b0] sm:$0xff] }
 0x733   :  { %v12565_v41 = vld [vmem:[#allocation3 + $0x50] sm:$0x1]  ;;  %v12570_v34 = vld [vmem:[#allocation3 + $0x58] sm:$0x1]  ;;  %v12572_v9 = vld [vmem:[#allocation3 + $0x59] sm:$0x1] }
 0x734   :  { %12177 = vmatpush1.bf16.msra.mxu1 %v12114_v59  ;;  %v12334_v59 = vld [vmem:[#allocation4 + $0x160] sm:$0xff]  ;;  %v12462_v39 = vld [vmem:[#allocation4 + $0x1d8] sm:$0xff]  ;;  %v12576_v40 = vmax.f32 %v12570_v34, %v12572_v9  ;;  %v12595_v38 = vld [vmem:[#allocation4 + $0x268] sm:$0xff] }
 0x735   :  { %12178 = vmatprep.subr.bf16.mxu1 %v12119_v11  ;;  %v12437_v11 = vld [vmem:[#allocation3 + $0x47] sm:$0x1]  ;;  %v12466_v0 = vld [vmem:[#allocation4 + $0x1f8] sm:$0xff]  ;;  %v12724_v9 = vld [vmem:[#allocation4 + $0x2e8] sm:$0xff] }
 0x736   :  { %v12443_v19 = vmax.f32 %v12435_v49, %v12437_v11  ;;  %v12590_v27 = vld [vmem:[#allocation4 + $0x240] sm:$0xff] }
 0x737   :  { %v12719_v34 = vld [vmem:[#allocation4 + $0x2c0] sm:$0xff] }
 0x738   :  { %12179 = vmatpush1.bf16.msra.mxu1 %v12118_v50  ;;  %v12332_v50 = vld [vmem:[#allocation4 + $0x150] sm:$0xff]  ;;  %v12447_v54 = vmax.f32 %v12443_v19, %v12445_v37 }
 0x739   :  { %12223 = vmatprep.subr.bf16.mxu1 %v12072_v7  ;;  %v12434_v7 = vld [vmem:[#allocation3 + $0x6] sm:$0x1]  ;;  %v12584_v37 = vld [vmem:[#allocation4 + $0x210] sm:$0xff] }
 0x73a   :  { %v12449_v48 = vpack.c.bf16 %v12447_v54, %v12447_v54  ;;  %v12593_v54 = vld [vmem:[#allocation4 + $0x258] sm:$0xff] }
 0x73b   :  { %15414 = vmatmul.mubr.msk.bf16.vlgmr.msra.gmra.mrb[156].mxu1 %vm12032_vm13, %v12127_v24  ;;  %v12319_v24 = vpack.c.bf16 %v12317_v45, %v12317_v45 }
 0x73c   :  { %12224 = vmatpush1.bf16.msra.mxu1 %v12071_v31  ;;  %12255 = vmatprep.mubr.bf16.mxu1 %v17355_v3  ;;  %v12436_v31 = vld [vmem:[#allocation3 + $0x7] sm:$0x1] }
 0x73d   :  { %12225 = vmatprep.subr.bf16.mxu1 %v12076_v6  ;;  %v12340_v15 = vunpack.c.l.b16 %v12319_v24  ;;  %v12438_v6 = vld [vmem:[#allocation3 + $0xe] sm:$0x1]  ;;  %v12571_v24 = vld [vmem:[#allocation3 + $0x19] sm:$0x1] }
 0x73f   :  { %v12343_v57 = vsel %vm12125_vm14, %v12342_v23, %v12340_v15  ;;  %v12465_v23 = vld [vmem:[#allocation4 + $0x1f0] sm:$0xff] }
 0x740   :  { %12226 = vmatpush1.bf16.msra.mxu1 %v12075_v35  ;;  %v12344_v46 = vpack.c.b16 %v12343_v57, %v12343_v57  ;;  %v12442_v35 = vmax.f32 %v12434_v7, %v12436_v31  ;;  %v12585_v7 = vld [vmem:[#allocation4 + $0x218] sm:$0xff] }
 0x741   :  { %12227 = vmatprep.subr.bf16.mxu1 %v12080_v55  ;;  %v12444_v55 = vmax.f32 %v12438_v6, %v12440_v47  ;;  %v12589_v31 = vld [vmem:[#allocation4 + $0x238] sm:$0xff]  ;;  %v12588_v6 = vld [vmem:[#allocation4 + $0x230] sm:$0xff] }
 0x742   :  { %v12695_v47 = vld [vmem:[#allocation3 + $0x52] sm:$0x1] }
 0x744   :  { %12228 = vmatpush1.bf16.msra.mxu1 %v12079_v29  ;;  %v12452_v29 = vld [vmem:[#allocation4 + $0x188] sm:$0xff] }
 0x745   :  { %12229 = vmatprep.subr.bf16.mxu1 %v12084_v17  ;;  %v12446_v17 = vmax.f32 %v12442_v35, %v12444_v55  ;;  %v12699_v35 = vld [vmem:[#allocation3 + $0x5a] sm:$0x1]  ;;  %v12701_v55 = vld [vmem:[#allocation3 + $0x5b] sm:$0x1] }
 0x748   :  { %12230 = vmatpush1.bf16.msra.mxu1 %v12083_v61  ;;  %v12451_v61 = vld [vmem:[#allocation4 + $0x180] sm:$0xff] }
 0x749   :  { %12264 = vmatprep.subr.bf16.mxu1 %v12074_v36  ;;  %v12456_v36 = vld [vmem:[#allocation4 + $0x1a8] sm:$0xff] }
 0x74b   :  { %15415 = vmatmul.mubr.msk.bf16.vlgmr.msra.gmra.mrb[160].mxu1 %vm12032_vm13, %v12219_v62 }
 0x74c   :  { %12265 = vmatpush1.bf16.msra.mxu1 %v12073_v12  ;;  %12296 = vmatprep.mubr.bf16.mxu1 %v17355_v3  ;;  %v12470_v12 = vunpack.c.l.b16 %v12449_v48  ;;  %v12705_v48 = vmax.f32 %v12699_v35, %v12701_v55  ;;  %v12848_v35 = vld [vmem:[#allocation4 + $0x340] sm:$0xff]  ;;  %v12853_v55 = vld [vmem:[#allocation4 + $0x368] sm:$0xff] }
 0x74d   :  { %12266 = vmatprep.subr.bf16.mxu1 %v12078_v8  ;;  %v12455_v8 = vld [vmem:[#allocation4 + $0x1a0] sm:$0xff] }
 0x74e   :  { %v12471_v13 = vrot.slane %v12470_v12, 7  ;;  %v12597_v12 = vld [vmem:[#allocation4 + $0x278] sm:$0xff] }
 0x750   :  { %12267 = vmatpush1.bf16.msra.mxu1 %v12077_v14  ;;  %v12460_v14 = vld [vmem:[#allocation4 + $0x1c8] sm:$0xff] }
 0x751   :  { %12268 = vmatprep.subr.bf16.mxu1 %v12082_v44 }
 0x754   :  { %12269 = vmatpush1.bf16.msra.mxu1 %v12081_v10  ;;  %v12463_v10 = vld [vmem:[#allocation4 + $0x1e0] sm:$0xff] }
 0x755   :  { %12270 = vmatprep.subr.bf16.mxu1 %v12086_v25  ;;  %v12567_v25 = vld [vmem:[#allocation3 + $0x51] sm:$0x1] }
 0x756   :  { %v12574_v45 = vmax.f32 %v12565_v41, %v12567_v25 }
 0x758   :  { %12271 = vmatpush1.bf16.msra.mxu1 %v12085_v32  ;;  %v12461_v32 = vld [vmem:[#allocation4 + $0x1d0] sm:$0xff]  ;;  %v12578_v15 = vmax.f32 %v12574_v45, %v12576_v40 }
 0x759   :  { %12348 = vmatprep.subr.bf16.mxu1 %v12323_v18  ;;  %v12564_v18 = vld [vmem:[#allocation3 + $0x10] sm:$0x1] }
 0x75a   :  { %v12580_v57 = vpack.c.bf16 %v12578_v15, %v12578_v15  ;;  %v12713_v40 = vld [vmem:[#allocation4 + $0x290] sm:$0xff]  ;;  %v12722_v15 = vld [vmem:[#allocation4 + $0x2d8] sm:$0xff] }
 0x75b   :  { %15416 = vmatmul.mubr.msk.bf16.vlgmr.msra.gmra.mrb[164].mxu1 %vm12032_vm13, %v12219_v62  ;;  %v12448_v62 = vpack.c.bf16 %v12446_v17, %v12446_v17 }
 0x75c   :  { %12349 = vmatpush1.bf16.msra.mxu1 %v12322_v5  ;;  %12380 = vmatprep.mubr.bf16.mxu1 %v17355_v3  ;;  %v12566_v5 = vld [vmem:[#allocation3 + $0x11] sm:$0x1] }
 0x75d   :  { %12350 = vmatprep.subr.bf16.mxu1 %v12327_v20  ;;  %v12469_v26 = vunpack.c.l.b16 %v12448_v62  ;;  %v12569_v20 = vld [vmem:[#allocation3 + $0x18] sm:$0x1]  ;;  %v12700_v62 = vld [vmem:[#allocation3 + $0x1b] sm:$0x1] }
 0x75f   :  { %v12472_v44 = vsel %vm12125_vm14, %v12471_v13, %v12469_v26  ;;  %v12596_v13 = vld [vmem:[#allocation4 + $0x270] sm:$0xff] }
 0x760   :  { %12351 = vmatpush1.bf16.msra.mxu1 %v12326_v16  ;;  %v12473_v52 = vpack.c.b16 %v12472_v44, %v12472_v44  ;;  %v12573_v16 = vmax.f32 %v12564_v18, %v12566_v5  ;;  %v12714_v18 = vld [vmem:[#allocation4 + $0x298] sm:$0xff] }
 0x761   :  { %12352 = vmatprep.subr.bf16.mxu1 %v12331_v53  ;;  %v12575_v53 = vmax.f32 %v12569_v20, %v12571_v24  ;;  %v12718_v5 = vld [vmem:[#allocation4 + $0x2b8] sm:$0xff]  ;;  %v12717_v20 = vld [vmem:[#allocation4 + $0x2b0] sm:$0xff] }
 0x762   :  { %v12824_v24 = vld [vmem:[#allocation3 + $0x54] sm:$0x1] }
 0x764   :  { %12353 = vmatpush1.bf16.msra.mxu1 %v12330_v33  ;;  %v12583_v33 = vld [vmem:[#allocation4 + $0x208] sm:$0xff] }
 0x765   :  { %12354 = vmatprep.subr.bf16.mxu1 %v12335_v30  ;;  %v12577_v30 = vmax.f32 %v12573_v16, %v12575_v53  ;;  %v12828_v16 = vld [vmem:[#allocation3 + $0x5c] sm:$0x1]  ;;  %v12830_v53 = vld [vmem:[#allocation3 + $0x5d] sm:$0x1] }
 0x768   :  { %12355 = vmatpush1.bf16.msra.mxu1 %v12334_v59  ;;  %v12582_v59 = vld [vmem:[#allocation4 + $0x200] sm:$0xff] }
 0x769   :  { %12389 = vmatprep.subr.bf16.mxu1 %v12325_v51  ;;  %v12587_v51 = vld [vmem:[#allocation4 + $0x228] sm:$0xff] }
 0x76b   :  { %15417 = vmatmul.mubr.msk.bf16.vlgmr.msra.gmra.mrb[168].mxu1 %vm12032_vm13, %v12344_v46 }
 0x76c   :  { %12390 = vmatpush1.bf16.msra.mxu1 %v12324_v58  ;;  %12421 = vmatprep.mubr.bf16.mxu1 %v17355_v3  ;;  %v12601_v58 = vunpack.c.l.b16 %v12580_v57  ;;  %v12834_v57 = vmax.f32 %v12828_v16, %v12830_v53 }
 0x76d   :  { %12391 = vmatprep.subr.bf16.mxu1 %v12329_v21  ;;  %v12586_v21 = vld [vmem:[#allocation4 + $0x220] sm:$0xff] }
 0x76e   :  { %v12602_v11 = vrot.slane %v12601_v58, 7  ;;  %v12726_v58 = vld [vmem:[#allocation4 + $0x2f8] sm:$0xff] }
 0x770   :  { %12392 = vmatpush1.bf16.msra.mxu1 %v12328_v22  ;;  %v12591_v22 = vld [vmem:[#allocation4 + $0x248] sm:$0xff] }
 0x771   :  { %12393 = vmatprep.subr.bf16.mxu1 %v12333_v28 }
 0x774   :  { %12394 = vmatpush1.bf16.msra.mxu1 %v12332_v50  ;;  %v12594_v50 = vld [vmem:[#allocation4 + $0x260] sm:$0xff] }
 0x775   :  { %12395 = vmatprep.subr.bf16.mxu1 %v12337_v1  ;;  %v12697_v1 = vld [vmem:[#allocation3 + $0x53] sm:$0x1] }
 0x776   :  { %v12703_v17 = vmax.f32 %v12695_v47, %v12697_v1 }
 0x778   :  { %12396 = vmatpush1.bf16.msra.mxu1 %v12336_v42  ;;  %v12592_v42 = vld [vmem:[#allocation4 + $0x250] sm:$0xff]  ;;  %v12707_v26 = vmax.f32 %v12703_v17, %v12705_v48 }
 0x779   :  { %12477 = vmatprep.subr.bf16.mxu1 %v12452_v29  ;;  %v12694_v29 = vld [vmem:[#allocation3 + $0x12] sm:$0x1] }
 0x77a   :  { %v12709_v44 = vpack.c.bf16 %v12707_v26, %v12707_v26  ;;  %v12842_v48 = vld [vmem:[#allocation4 + $0x310] sm:$0xff]  ;;  %v12851_v26 = vld [vmem:[#allocation4 + $0x358] sm:$0xff] }
 0x77b   :  { %15418 = vmatmul.mubr.msk.bf16.vlgmr.msra.gmra.mrb[172].mxu1 %vm12032_vm13, %v12344_v46  ;;  %v12579_v46 = vpack.c.bf16 %v12577_v30, %v12577_v30 }
 0x77c   :  { %12478 = vmatpush1.bf16.msra.mxu1 %v12451_v61  ;;  %12509 = vmatprep.mubr.bf16.mxu1 %v17355_v3  ;;  %v12696_v61 = vld [vmem:[#allocation3 + $0x13] sm:$0x1] }
 0x77d   :  { %12479 = vmatprep.subr.bf16.mxu1 %v12456_v36  ;;  %v12600_v49 = vunpack.c.l.b16 %v12579_v46  ;;  %v12698_v36 = vld [vmem:[#allocation3 + $0x1a] sm:$0x1]  ;;  %v12829_v46 = vld [vmem:[#allocation3 + $0x1d] sm:$0x1] }
 0x77f   :  { %v12603_v28 = vsel %vm12125_vm14, %v12602_v11, %v12600_v49  ;;  %v12725_v11 = vld [vmem:[#allocation4 + $0x2f0] sm:$0xff] }
 0x780   :  { %12480 = vmatpush1.bf16.msra.mxu1 %v12455_v8  ;;  %v12604_v19 = vpack.c.b16 %v12603_v28, %v12603_v28  ;;  %v12702_v8 = vmax.f32 %v12694_v29, %v12696_v61  ;;  %v12843_v29 = vld [vmem:[#allocation4 + $0x318] sm:$0xff] }
 0x781   :  { %12481 = vmatprep.subr.bf16.mxu1 %v12460_v14  ;;  %v12704_v14 = vmax.f32 %v12698_v36, %v12700_v62  ;;  %v12847_v61 = vld [vmem:[#allocation4 + $0x338] sm:$0xff]  ;;  %v12846_v36 = vld [vmem:[#allocation4 + $0x330] sm:$0xff] }
 0x782   :  { %v12953_v62 = vld [vmem:[#allocation3 + $0x56] sm:$0x1] }
 0x784   :  { %12482 = vmatpush1.bf16.msra.mxu1 %v12459_v2  ;;  %v12712_v2 = vld [vmem:[#allocation4 + $0x288] sm:$0xff] }
 0x785   :  { %12483 = vmatprep.subr.bf16.mxu1 %v12464_v56  ;;  %v12706_v56 = vmax.f32 %v12702_v8, %v12704_v14  ;;  %v12957_v8 = vld [vmem:[#allocation3 + $0x5e] sm:$0x1]  ;;  %v12959_v14 = vld [vmem:[#allocation3 + $0x5f] sm:$0x1] }
 0x788   :  { %12484 = vmatpush1.bf16.msra.mxu1 %v12463_v10  ;;  %v12711_v10 = vld [vmem:[#allocation4 + $0x280] sm:$0xff] }
 0x789   :  { %12518 = vmatprep.subr.bf16.mxu1 %v12454_v63  ;;  %v12716_v63 = vld [vmem:[#allocation4 + $0x2a8] sm:$0xff] }
 0x78b   :  { %15419 = vmatmul.mubr.msk.bf16.vlgmr.msra.gmra.mrb[176].mxu1 %vm12032_vm13, %v12473_v52 }
 0x78c   :  { %12519 = vmatpush1.bf16.msra.mxu1 %v12453_v43  ;;  %12550 = vmatprep.mubr.bf16.mxu1 %v17355_v3  ;;  %v12730_v43 = vunpack.c.l.b16 %v12709_v44  ;;  %v12963_v44 = vmax.f32 %v12957_v8, %v12959_v14  ;;  %v13100_v8 = vld [vmem:[#allocation4 + $0x400] sm:$0xff]  ;;  %v13105_v14 = vld [vmem:[#allocation4 + $0x428] sm:$0xff] }
 0x78d   :  { %12520 = vmatprep.subr.bf16.mxu1 %v12458_v60  ;;  %v12715_v60 = vld [vmem:[#allocation4 + $0x2a0] sm:$0xff] }
 0x78e   :  { %v12731_v25 = vrot.slane %v12730_v43, 7  ;;  %v12855_v43 = vld [vmem:[#allocation4 + $0x378] sm:$0xff] }
 0x790   :  { %12521 = vmatpush1.bf16.msra.mxu1 %v12457_v4  ;;  %v12720_v4 = vld [vmem:[#allocation4 + $0x2c8] sm:$0xff] }
 0x791   :  { %12522 = vmatprep.subr.bf16.mxu1 %v12462_v39 }
 0x794   :  { %12523 = vmatpush1.bf16.msra.mxu1 %v12461_v32  ;;  %v12723_v32 = vld [vmem:[#allocation4 + $0x2e0] sm:$0xff] }
 0x795   :  { %12524 = vmatprep.subr.bf16.mxu1 %v12466_v0  ;;  %v12826_v0 = vld [vmem:[#allocation3 + $0x55] sm:$0x1] }
 0x796   :  { %v12832_v30 = vmax.f32 %v12824_v24, %v12826_v0  ;;  %v12978_v24 = vld [vmem:[#allocation4 + $0x3c8] sm:$0xff] }
 0x798   :  { %12525 = vmatpush1.bf16.msra.mxu1 %v12465_v23  ;;  %v12721_v23 = vld [vmem:[#allocation4 + $0x2d0] sm:$0xff]  ;;  %v12836_v49 = vmax.f32 %v12832_v30, %v12834_v57  ;;  %v12982_v30 = vld [vmem:[#allocation4 + $0x3e8] sm:$0xff] }
 0x799   :  { %12608 = vmatprep.subr.bf16.mxu1 %v12583_v33  ;;  %v12823_v33 = vld [vmem:[#allocation3 + $0x14] sm:$0x1] }
 0x79a   :  { %v12838_v28 = vpack.c.bf16 %v12836_v49, %v12836_v49  ;;  %v13083_v49 = vld [vmem:[#allocation3 + $0x60] sm:$0x1] }
 0x79b   :  { %15420 = vmatmul.mubr.msk.bf16.vlgmr.msra.gmra.mrb[180].mxu1 %vm12032_vm13, %v12473_v52  ;;  %v12708_v52 = vpack.c.bf16 %v12706_v56, %v12706_v56 }
 0x79c   :  { %12609 = vmatpush1.bf16.msra.mxu1 %v12582_v59  ;;  %12640 = vmatprep.mubr.bf16.mxu1 %v17355_v3  ;;  %v12825_v59 = vld [vmem:[#allocation3 + $0x15] sm:$0x1] }
 0x79d   :  { %12610 = vmatprep.subr.bf16.mxu1 %v12587_v51  ;;  %v12729_v41 = vunpack.c.l.b16 %v12708_v52  ;;  %v12827_v51 = vld [vmem:[#allocation3 + $0x1c] sm:$0x1]  ;;  %v12958_v52 = vld [vmem:[#allocation3 + $0x1f] sm:$0x1] }
 0x79f   :  { %v12732_v39 = vsel %vm12125_vm14, %v12731_v25, %v12729_v41  ;;  %v12854_v25 = vld [vmem:[#allocation4 + $0x370] sm:$0xff] }
 0x7a0   :  { %12611 = vmatpush1.bf16.msra.mxu1 %v12586_v21  ;;  %v12733_v45 = vpack.c.b16 %v12732_v39, %v12732_v39  ;;  %v12831_v21 = vmax.f32 %v12823_v33, %v12825_v59  ;;  %v12977_v33 = vld [vmem:[#allocation4 + $0x3c0] sm:$0xff] }
 0x7a1   :  { %12612 = vmatprep.subr.bf16.mxu1 %v12591_v22  ;;  %v12833_v22 = vmax.f32 %v12827_v51, %v12829_v46  ;;  %v12981_v59 = vld [vmem:[#allocation4 + $0x3e0] sm:$0xff]  ;;  %v12972_v51 = vld [vmem:[#allocation4 + $0x398] sm:$0xff] }
 0x7a4   :  { %12613 = vmatpush1.bf16.msra.mxu1 %v12590_v27  ;;  %v12841_v27 = vld [vmem:[#allocation4 + $0x308] sm:$0xff] }
 0x7a5   :  { %12614 = vmatprep.subr.bf16.mxu1 %v12595_v38  ;;  %v12835_v38 = vmax.f32 %v12831_v21, %v12833_v22  ;;  %v12976_v21 = vld [vmem:[#allocation4 + $0x3b8] sm:$0xff]  ;;  %v12975_v22 = vld [vmem:[#allocation4 + $0x3b0] sm:$0xff] }
 0x7a8   :  { %12615 = vmatpush1.bf16.msra.mxu1 %v12594_v50  ;;  %v12840_v50 = vld [vmem:[#allocation4 + $0x300] sm:$0xff] }
 0x7a9   :  { %12649 = vmatprep.subr.bf16.mxu1 %v12585_v7  ;;  %v12845_v7 = vld [vmem:[#allocation4 + $0x328] sm:$0xff] }
 0x7ab   :  { %15421 = vmatmul.mubr.msk.bf16.vlgmr.msra.gmra.mrb[184].mxu1 %vm12032_vm13, %v12604_v19 }
 0x7ac   :  { %12650 = vmatpush1.bf16.msra.mxu1 %v12584_v37  ;;  %12681 = vmatprep.mubr.bf16.mxu1 %v17355_v3  ;;  %v12859_v37 = vunpack.c.l.b16 %v12838_v28 }
 0x7ad   :  { %12651 = vmatprep.subr.bf16.mxu1 %v12589_v31  ;;  %v12844_v31 = vld [vmem:[#allocation4 + $0x320] sm:$0xff] }
 0x7ae   :  { %v12860_v1 = vrot.slane %v12859_v37, 7  ;;  %v13082_v37 = vld [vmem:[#allocation3 + $0x20] sm:$0x1] }
 0x7b0   :  { %12652 = vmatpush1.bf16.msra.mxu1 %v12588_v6  ;;  %v12849_v6 = vld [vmem:[#allocation4 + $0x348] sm:$0xff] }
 0x7b1   :  { %12653 = vmatprep.subr.bf16.mxu1 %v12593_v54 }
 0x7b4   :  { %12654 = vmatpush1.bf16.msra.mxu1 %v12592_v42  ;;  %v12852_v42 = vld [vmem:[#allocation4 + $0x360] sm:$0xff] }
 0x7b5   :  { %12655 = vmatprep.subr.bf16.mxu1 %v12597_v12  ;;  %v12955_v12 = vld [vmem:[#allocation3 + $0x57] sm:$0x1] }
 0x7b6   :  { %v12961_v56 = vmax.f32 %v12953_v62, %v12955_v12 }
 0x7b8   :  { %12656 = vmatpush1.bf16.msra.mxu1 %v12596_v13  ;;  %v12850_v13 = vld [vmem:[#allocation4 + $0x350] sm:$0xff]  ;;  %v12965_v41 = vmax.f32 %v12961_v56, %v12963_v44  ;;  %v13109_v44 = vld [vmem:[#allocation4 + $0x448] sm:$0xff] }
 0x7b9   :  { %12737 = vmatprep.subr.bf16.mxu1 %v12712_v2  ;;  %v12952_v2 = vld [vmem:[#allocation3 + $0x16] sm:$0x1] }
 0x7ba   :  { %v12967_v39 = vpack.c.bf16 %v12965_v41, %v12965_v41 }
 0x7bb   :  { %15422 = vmatmul.mubr.msk.bf16.vlgmr.msra.gmra.mrb[188].mxu1 %vm12032_vm13, %v12604_v19  ;;  %v12837_v19 = vpack.c.bf16 %v12835_v38, %v12835_v38  ;;  %v13090_v38 = vld [vmem:[#allocation3 + $0x69] sm:$0x1] }
 0x7bc   :  { %12738 = vmatpush1.bf16.msra.mxu1 %v12711_v10  ;;  %12769 = vmatprep.mubr.bf16.mxu1 %v17355_v3  ;;  %v12954_v10 = vld [vmem:[#allocation3 + $0x17] sm:$0x1] }
 0x7bd   :  { %12739 = vmatprep.subr.bf16.mxu1 %v12716_v63  ;;  %v12858_v47 = vunpack.c.l.b16 %v12837_v19  ;;  %v12956_v63 = vld [vmem:[#allocation3 + $0x1e] sm:$0x1] }
 0x7bf   :  { %v12861_v54 = vsel %vm12125_vm14, %v12860_v1, %v12858_v47 }
 0x7c0   :  { %12740 = vmatpush1.bf16.msra.mxu1 %v12715_v60  ;;  %v12862_v17 = vpack.c.b16 %v12861_v54, %v12861_v54  ;;  %v12960_v60 = vmax.f32 %v12952_v2, %v12954_v10  ;;  %v13089_v54 = vld [vmem:[#allocation3 + $0x29] sm:$0x1]  ;;  %v13104_v2 = vld [vmem:[#allocation4 + $0x420] sm:$0xff] }
 0x7c1   :  { %12741 = vmatprep.subr.bf16.mxu1 %v12720_v4  ;;  %v12962_v4 = vmax.f32 %v12956_v63, %v12958_v52 }
 0x7c4   :  { %12742 = vmatpush1.bf16.msra.mxu1 %v12719_v34  ;;  %v12970_v34 = vld [vmem:[#allocation4 + $0x388] sm:$0xff] }
 0x7c5   :  { %12743 = vmatprep.subr.bf16.mxu1 %v12724_v9  ;;  %v12964_v9 = vmax.f32 %v12960_v60, %v12962_v4 }
 0x7c8   :  { %12744 = vmatpush1.bf16.msra.mxu1 %v12723_v32  ;;  %v12969_v32 = vld [vmem:[#allocation4 + $0x380] sm:$0xff] }
 0x7c9   :  { %12778 = vmatprep.subr.bf16.mxu1 %v12714_v18  ;;  %v12974_v18 = vld [vmem:[#allocation4 + $0x3a8] sm:$0xff] }
 0x7cb   :  { %15423 = vmatmul.mubr.msk.bf16.vlgmr.msra.gmra.mrb[192].mxu1 %vm12032_vm13, %v12733_v45 }
 0x7cc   :  { %12779 = vmatpush1.bf16.msra.mxu1 %v12713_v40  ;;  %12810 = vmatprep.mubr.bf16.mxu1 %v17355_v3  ;;  %v12988_v40 = vunpack.c.l.b16 %v12967_v39  ;;  %v13112_v39 = vld [vmem:[#allocation4 + $0x460] sm:$0xff] }
 0x7cd   :  { %12780 = vmatprep.subr.bf16.mxu1 %v12718_v5  ;;  %v12973_v5 = vld [vmem:[#allocation4 + $0x3a0] sm:$0xff] }
 0x7d0   :  { %12781 = vmatpush1.bf16.msra.mxu1 %v12717_v20 }
 0x7d1   :  { %12782 = vmatprep.subr.bf16.mxu1 %v12722_v15  ;;  %v12989_v15 = vrot.slane %v12988_v40, 7  ;;  %v13107_v40 = vld [vmem:[#allocation4 + $0x438] sm:$0xff] }
 0x7d4   :  { %12783 = vmatpush1.bf16.msra.mxu1 %v12721_v23 }
 0x7d5   :  { %12784 = vmatprep.subr.bf16.mxu1 %v12726_v58  ;;  %v12971_v58 = vld [vmem:[#allocation4 + $0x390] sm:$0xff] }
 0x7d8   :  { %12785 = vmatpush1.bf16.msra.mxu1 %v12725_v11  ;;  %v13085_v11 = vld [vmem:[#allocation3 + $0x61] sm:$0x1] }
 0x7d9   :  { %12866 = vmatprep.subr.bf16.mxu1 %v12841_v27  ;;  %v13088_v27 = vld [vmem:[#allocation3 + $0x68] sm:$0x1] }
 0x7da   :  { %v13094_v47 = vmax.f32 %v13088_v27, %v13090_v38  ;;  %v13115_v27 = vld [vmem:[#allocation4 + $0x478] sm:$0xff] }
 0x7db   :  { %15424 = vmatmul.mubr.msk.bf16.vlgmr.msra.gmra.mrb[196].mxu1 %vm12032_vm13, %v12733_v45  ;;  %v12966_v45 = vpack.c.bf16 %v12964_v9, %v12964_v9 }
 0x7dc   :  { %12867 = vmatpush1.bf16.msra.mxu1 %v12840_v50  ;;  %12898 = vmatprep.mubr.bf16.mxu1 %v17355_v3  ;;  %v12980_v50 = vld [vmem:[#allocation4 + $0x3d8] sm:$0xff] }
 0x7dd   :  { %12868 = vmatprep.subr.bf16.mxu1 %v12845_v7  ;;  %v12987_v53 = vunpack.c.l.b16 %v12966_v45  ;;  %v13102_v45 = vld [vmem:[#allocation4 + $0x410] sm:$0xff] }
 0x7df   :  { %v12990_v57 = vsel %vm12125_vm14, %v12989_v15, %v12987_v53  ;;  %v13111_v15 = vld [vmem:[#allocation4 + $0x458] sm:$0xff] }
 0x7e0   :  { %12869 = vmatpush1.bf16.msra.mxu1 %v12844_v31  ;;  %v12991_v46 = vpack.c.b16 %v12990_v57, %v12990_v57  ;;  %v13084_v31 = vld [vmem:[#allocation3 + $0x21] sm:$0x1] }
 0x7e1   :  { %12870 = vmatprep.subr.bf16.mxu1 %v12849_v6  ;;  %v13092_v6 = vmax.f32 %v13083_v49, %v13085_v11  ;;  %v13216_v49 = vld [vmem:[#allocation3 + $0x2a] sm:$0x1]  ;;  %v13218_v11 = vld [vmem:[#allocation3 + $0x2b] sm:$0x1] }
 0x7e4   :  { %12871 = vmatpush1.bf16.msra.mxu1 %v12848_v35  ;;  %v12979_v35 = vld [vmem:[#allocation4 + $0x3d0] sm:$0xff] }
 0x7e5   :  { %12872 = vmatprep.subr.bf16.mxu1 %v12853_v55  ;;  %v13087_v55 = vld [vmem:[#allocation3 + $0x28] sm:$0x1] }
 0x7e8   :  { %12873 = vmatpush1.bf16.msra.mxu1 %v12852_v42  ;;  %v12984_v42 = vld [vmem:[#allocation4 + $0x3f8] sm:$0xff] }
 0x7e9   :  { %12907 = vmatprep.subr.bf16.mxu1 %v12843_v29  ;;  %v13091_v29 = vmax.f32 %v13082_v37, %v13084_v31 }
 0x7eb   :  { %15425 = vmatmul.mubr.msk.bf16.vlgmr.msra.gmra.mrb[200].mxu1 %vm12032_vm13, %v12862_v17 }
 0x7ec   :  { %12908 = vmatpush1.bf16.msra.mxu1 %v12842_v48  ;;  %12939 = vmatprep.mubr.bf16.mxu1 %v17355_v3  ;;  %v13096_v48 = vmax.f32 %v13092_v6, %v13094_v47  ;;  %v13229_v6 = vld [vmem:[#allocation4 + $0x480] sm:$0xff]  ;;  %v13234_v47 = vld [vmem:[#allocation4 + $0x4a8] sm:$0xff] }
 0x7ed   :  { %12909 = vmatprep.subr.bf16.mxu1 %v12847_v61  ;;  %v12983_v61 = vld [vmem:[#allocation4 + $0x3f0] sm:$0xff] }
 0x7ee   :  { %v13098_v12 = vpack.c.bf16 %v13096_v48, %v13096_v48 }
 0x7f0   :  { %12910 = vmatpush1.bf16.msra.mxu1 %v12846_v36  ;;  %v13101_v36 = vld [vmem:[#allocation4 + $0x408] sm:$0xff] }
 0x7f1   :  { %12911 = vmatprep.subr.bf16.mxu1 %v12851_v26 }
 0x7f4   :  { %12912 = vmatpush1.bf16.msra.mxu1 %v12850_v13  ;;  %v13119_v13 = vunpack.c.l.b16 %v13098_v12 }
 0x7f5   :  { %12913 = vmatprep.subr.bf16.mxu1 %v12855_v43 }
 0x7f6   :  { %v13120_v4 = vrot.slane %v13119_v13, 7  ;;  %v13241_v13 = vld [vmem:[#allocation4 + $0x4e0] sm:$0xff] }
 0x7f8   :  { %12914 = vmatpush1.bf16.msra.mxu1 %v12854_v25  ;;  %v13108_v25 = vld [vmem:[#allocation4 + $0x440] sm:$0xff] }
 0x7f9   :  { %12995 = vmatprep.subr.bf16.mxu1 %v12970_v34  ;;  %v13113_v34 = vld [vmem:[#allocation4 + $0x468] sm:$0xff] }
 0x7fb   :  { %15426 = vmatmul.mubr.msk.bf16.vlgmr.msra.gmra.mrb[204].mxu1 %vm12032_vm13, %v12862_v17  ;;  %v13093_v17 = vmax.f32 %v13087_v55, %v13089_v54  ;;  %v13233_v55 = vld [vmem:[#allocation4 + $0x4a0] sm:$0xff] }
 0x7fc   :  { %12996 = vmatpush1.bf16.msra.mxu1 %v12969_v32  ;;  %13027 = vmatprep.mubr.bf16.mxu1 %v17355_v3  ;;  %v13103_v32 = vld [vmem:[#allocation4 + $0x418] sm:$0xff] }
 0x7fd   :  { %12997 = vmatprep.subr.bf16.mxu1 %v12974_v18  ;;  %v13095_v62 = vmax.f32 %v13091_v29, %v13093_v17 }
 0x7fe   :  { %v21071_v20 = vpop.f32.mrb[152].mxu1 }
 0x7ff   :  { %v21073_v0 = vpop.f32.mrb[153].mxu1  ;;  %v13097_v26 = vpack.c.bf16 %v13095_v62, %v13095_v62 }
 0x800   :  { %v12169_v16 = vpop.f32.mrb[154].mxu1  ;;  %12998 = vmatpush1.bf16.msra.mxu1 %v12973_v5  ;;  %v13106_v5 = vld [vmem:[#allocation4 + $0x430] sm:$0xff] }
 0x801   :  { %v12170_v23 = vpop.f32.mrb[155].mxu1  ;;  %12999 = vmatprep.subr.bf16.mxu1 %v12978_v24  ;;  %v13118_v60 = vunpack.c.l.b16 %v13097_v26  ;;  %v13215_v24 = vld [vmem:[#allocation3 + $0x63] sm:$0x1]  ;;  %v13219_v16 = vld [vmem:[#allocation3 + $0x6b] sm:$0x1] }
 0x803   :  { %v13121_v9 = vsel %vm12125_vm14, %v13120_v4, %v13118_v60  ;;  %v13346_v60 = vld [vmem:[#allocation3 + $0x6c] sm:$0x1]  ;;  %v13348_v4 = vld [vmem:[#allocation3 + $0x6d] sm:$0x1] }
 0x804   :  { %13000 = vmatpush1.bf16.msra.mxu1 %v12977_v33  ;;  %v13122_v18 = vpack.c.b16 %v13121_v9, %v13121_v9 }
 0x805   :  { %13001 = vmatprep.subr.bf16.mxu1 %v12982_v30 }
 0x808   :  { %13002 = vmatpush1.bf16.msra.mxu1 %v12981_v59  ;;  %v13212_v59 = vld [vmem:[#allocation3 + $0x22] sm:$0x1] }
 0x809   :  { %13036 = vmatprep.subr.bf16.mxu1 %v12972_v51  ;;  %v13214_v51 = vld [vmem:[#allocation3 + $0x23] sm:$0x1] }
 0x80a   :  { %v13220_v38 = vmax.f32 %v13212_v59, %v13214_v51 }
 0x80b   :  { %15427 = vmatmul.mubr.msk.bf16.vlgmr.msra.gmra.mrb[208].mxu1 %vm12032_vm13, %v12991_v46 }
 0x80c   :  { %13037 = vmatpush1.bf16.msra.mxu1 %v12971_v58  ;;  %13068 = vmatprep.mubr.bf16.mxu1 %v17355_v3 }
 0x80d   :  { %13038 = vmatprep.subr.bf16.mxu1 %v12976_v21 }
 0x80e   :  { %v21078_v28 = vpop.f32.mrb[156].mxu1 }
 0x80f   :  { %v21080_v7 = vpop.f32.mrb[157].mxu1 }
 0x810   :  { %v12210_v19 = vpop.f32.mrb[158].mxu1  ;;  %13039 = vmatpush1.bf16.msra.mxu1 %v12975_v22  ;;  %v13110_v22 = vld [vmem:[#allocation4 + $0x450] sm:$0xff] }
 0x811   :  { %v12211_v1 = vpop.f32.mrb[159].mxu1  ;;  %13040 = vmatprep.subr.bf16.mxu1 %v12980_v50  ;;  %v13114_v19 = vld [vmem:[#allocation4 + $0x470] sm:$0xff] }
 0x814   :  { %13041 = vmatpush1.bf16.msra.mxu1 %v12979_v35 }
 0x815   :  { %13042 = vmatprep.subr.bf16.mxu1 %v12984_v42  ;;  %v13238_v42 = vld [vmem:[#allocation4 + $0x4c8] sm:$0xff] }
 0x818   :  { %13043 = vmatpush1.bf16.msra.mxu1 %v12983_v61 }
 0x819   :  { %13126 = vmatprep.subr.bf16.mxu1 %v13101_v36 }
 0x81b   :  { %15428 = vmatmul.mubr.msk.bf16.vlgmr.msra.gmra.mrb[212].mxu1 %vm12032_vm13, %v12991_v46 }
 0x81c   :  { %13127 = vmatpush1.bf16.msra.mxu1 %v13100_v8  ;;  %13158 = vmatprep.mubr.bf16.mxu1 %v17355_v3  ;;  %v13237_v8 = vld [vmem:[#allocation4 + $0x4c0] sm:$0xff] }
 0x81d   :  { %13128 = vmatprep.subr.bf16.mxu1 %v13105_v14  ;;  %v13242_v14 = vld [vmem:[#allocation4 + $0x4e8] sm:$0xff] }
 0x81e   :  { %v12257_v56 = vpop.f32.mrb[160].mxu1 }
 0x81f   :  { %v21085_v10 = vadd.f32 %v12257_v56, %v21071_v20  ;;  %v12259_v63 = vpop.f32.mrb[161].mxu1  ;;  %v13213_v20 = vld [vmem:[#allocation3 + $0x62] sm:$0x1] }
 0x820   :  { %v21088_v52 = vadd.f32 %v12259_v63, %v21073_v0  ;;  %v12261_v43 = vpop.f32.mrb[162].mxu1  ;;  %13129 = vmatpush1.bf16.msra.mxu1 %v13104_v2  ;;  %v13217_v0 = vld [vmem:[#allocation3 + $0x6a] sm:$0x1]  ;;  %v13221_v46 = vmax.f32 %v13213_v20, %v13215_v24  ;;  %v13232_v2 = vld [vmem:[#allocation4 + $0x498] sm:$0xff]  ;;  %v13235_v63 = vld [vmem:[#allocation4 + $0x4b0] sm:$0xff] }
 0x821   :  { %v12262_v41 = vpop.f32.mrb[163].mxu1  ;;  %13130 = vmatprep.subr.bf16.mxu1 %v13109_v44  ;;  %v13223_v58 = vmax.f32 %v13217_v0, %v13219_v16  ;;  %v13231_v44 = vld [vmem:[#allocation4 + $0x490] sm:$0xff]  ;;  %v13344_v43 = vld [vmem:[#allocation3 + $0x65] sm:$0x1]  ;;  %v13345_v0 = vld [vmem:[#allocation3 + $0x2c] sm:$0x1] }
 0x822   :  { %v13239_v24 = vld [vmem:[#allocation4 + $0x4d0] sm:$0xff]  ;;  %v13347_v16 = vld [vmem:[#allocation3 + $0x2d] sm:$0x1] }
 0x823   :  { %v13225_v50 = vmax.f32 %v13221_v46, %v13223_v58  ;;  %v13358_v46 = vld [vmem:[#allocation4 + $0x500] sm:$0xff]  ;;  %v13363_v58 = vld [vmem:[#allocation4 + $0x528] sm:$0xff] }
 0x824   :  { %13131 = vmatpush1.bf16.msra.mxu1 %v13108_v25  ;;  %v13240_v25 = vld [vmem:[#allocation4 + $0x4d8] sm:$0xff] }
 0x825   :  { %13132 = vmatprep.subr.bf16.mxu1 %v13113_v34  ;;  %v13227_v31 = vpack.c.bf16 %v13225_v50, %v13225_v50 }
 0x827   :  { %v13248_v35 = vunpack.c.l.b16 %v13227_v31 }
 0x828   :  { %13133 = vmatpush1.bf16.msra.mxu1 %v13112_v39 }
 0x829   :  { %13167 = vmatprep.subr.bf16.mxu1 %v13103_v32  ;;  %v13249_v62 = vrot.slane %v13248_v35, 7  ;;  %v13370_v35 = vld [vmem:[#allocation4 + $0x560] sm:$0xff] }
 0x82b   :  { %15429 = vmatmul.mubr.msk.bf16.vlgmr.msra.gmra.mrb[216].mxu1 %vm12032_vm13, %v13122_v18 }
 0x82c   :  { %13168 = vmatpush1.bf16.msra.mxu1 %v13102_v45  ;;  %13199 = vmatprep.mubr.bf16.mxu1 %v17355_v3  ;;  %v13343_v45 = vld [vmem:[#allocation3 + $0x25] sm:$0x1] }
 0x82d   :  { %13169 = vmatprep.subr.bf16.mxu1 %v13107_v40 }
 0x82e   :  { %v12298_v53 = vpop.f32.mrb[164].mxu1 }
 0x82f   :  { %v21094_v23 = vadd.f32 %v12298_v53, %v21078_v28  ;;  %v12300_v33 = vpop.f32.mrb[165].mxu1  ;;  %v13222_v28 = vmax.f32 %v13216_v49, %v13218_v11  ;;  %v13244_v53 = vld [vmem:[#allocation4 + $0x4f8] sm:$0xff]  ;;  %v13362_v49 = vld [vmem:[#allocation4 + $0x520] sm:$0xff] }
 0x830   :  { %v21097_v30 = vadd.f32 %v12300_v33, %v21080_v7  ;;  %v12302_v57 = vpop.f32.mrb[166].mxu1  ;;  %13170 = vmatpush1.bf16.msra.mxu1 %v13106_v5  ;;  %v13230_v7 = vld [vmem:[#allocation4 + $0x488] sm:$0xff]  ;;  %v13352_v5 = vmax.f32 %v13346_v60, %v13348_v4 }
 0x831   :  { %v12303_v21 = vpop.f32.mrb[167].mxu1  ;;  %13171 = vmatprep.subr.bf16.mxu1 %v13111_v15  ;;  %v13224_v37 = vmax.f32 %v13220_v38, %v13222_v28  ;;  %v13243_v57 = vld [vmem:[#allocation4 + $0x4f0] sm:$0xff]  ;;  %v13474_v60 = vld [vmem:[#allocation3 + $0x2e] sm:$0x1]  ;;  %v13476_v4 = vld [vmem:[#allocation3 + $0x2f] sm:$0x1] }
 0x833   :  { %v13226_v1 = vpack.c.bf16 %v13224_v37, %v13224_v37 }
 0x834   :  { %13172 = vmatpush1.bf16.msra.mxu1 %v13110_v22 }
 0x835   :  { %13173 = vmatprep.subr.bf16.mxu1 %v13115_v27  ;;  %v13247_v36 = vunpack.c.l.b16 %v13226_v1  ;;  %v13367_v27 = vld [vmem:[#allocation4 + $0x548] sm:$0xff] }
 0x837   :  { %v13250_v26 = vsel %vm12125_vm14, %v13249_v62, %v13247_v36  ;;  %v13475_v36 = vld [vmem:[#allocation3 + $0x6e] sm:$0x1]  ;;  %v13477_v62 = vld [vmem:[#allocation3 + $0x6f] sm:$0x1] }
 0x838   :  { %13174 = vmatpush1.bf16.msra.mxu1 %v13114_v19  ;;  %v13251_v56 = vpack.c.b16 %v13250_v26, %v13250_v26 }
 0x839   :  { %13255 = vmatprep.subr.bf16.mxu1 %v13230_v7 }
 0x83b   :  { %15430 = vmatmul.mubr.msk.bf16.vlgmr.msra.gmra.mrb[220].mxu1 %vm12032_vm13, %v13122_v18  ;;  %v13341_v18 = vld [vmem:[#allocation3 + $0x24] sm:$0x1] }
 0x83c   :  { %13256 = vmatpush1.bf16.msra.mxu1 %v13229_v6  ;;  %13287 = vmatprep.mubr.bf16.mxu1 %v17355_v3  ;;  %v13349_v15 = vmax.f32 %v13341_v18, %v13343_v45  ;;  %v13366_v6 = vld [vmem:[#allocation4 + $0x540] sm:$0xff] }
 0x83d   :  { %13257 = vmatprep.subr.bf16.mxu1 %v13234_v47  ;;  %v13371_v47 = vld [vmem:[#allocation4 + $0x568] sm:$0xff] }
 0x83e   :  { %v12382_v54 = vpop.f32.mrb[168].mxu1 }
 0x83f   :  { %v21102_v29 = vadd.f32 %v12382_v54, %v21085_v10  ;;  %v12384_v17 = vpop.f32.mrb[169].mxu1  ;;  %v13236_v10 = vld [vmem:[#allocation4 + $0x4b8] sm:$0xff] }
 0x840   :  { %v21105_v48 = vadd.f32 %v12384_v17, %v21088_v52  ;;  %v12386_v61 = vpop.f32.mrb[170].mxu1  ;;  %13258 = vmatpush1.bf16.msra.mxu1 %v13233_v55  ;;  %v13342_v52 = vld [vmem:[#allocation3 + $0x64] sm:$0x1]  ;;  %v13361_v55 = vld [vmem:[#allocation4 + $0x518] sm:$0xff]  ;;  %v13364_v17 = vld [vmem:[#allocation4 + $0x530] sm:$0xff] }
 0x841   :  { %v12387_v12 = vpop.f32.mrb[171].mxu1  ;;  %13259 = vmatprep.subr.bf16.mxu1 %v13238_v42  ;;  %v13350_v40 = vmax.f32 %v13342_v52, %v13344_v43  ;;  %v13360_v42 = vld [vmem:[#allocation4 + $0x510] sm:$0xff]  ;;  %v13473_v61 = vld [vmem:[#allocation3 + $0x67] sm:$0x1] }
 0x842   :  { %v13368_v43 = vld [vmem:[#allocation4 + $0x550] sm:$0xff] }
 0x843   :  { %v13354_v33 = vmax.f32 %v13350_v40, %v13352_v5  ;;  %v13487_v40 = vld [vmem:[#allocation4 + $0x580] sm:$0xff]  ;;  %v13492_v5 = vld [vmem:[#allocation4 + $0x5a8] sm:$0xff] }
 0x844   :  { %13260 = vmatpush1.bf16.msra.mxu1 %v13237_v8  ;;  %v13369_v8 = vld [vmem:[#allocation4 + $0x558] sm:$0xff] }
 0x845   :  { %13261 = vmatprep.subr.bf16.mxu1 %v13242_v14  ;;  %v13356_v51 = vpack.c.bf16 %v13354_v33, %v13354_v33 }
 0x847   :  { %v13377_v22 = vunpack.c.l.b16 %v13356_v51 }
 0x848   :  { %13262 = vmatpush1.bf16.msra.mxu1 %v13241_v13 }
 0x849   :  { %13296 = vmatprep.subr.bf16.mxu1 %v13232_v2  ;;  %v13378_v37 = vrot.slane %v13377_v22, 7  ;;  %v13499_v22 = vld [vmem:[#allocation4 + $0x5e0] sm:$0xff] }
 0x84b   :  { %15431 = vmatmul.mubr.msk.bf16.vlgmr.msra.gmra.mrb[224].mxu1 %vm12032_vm13, %v13251_v56 }
 0x84c   :  { %13297 = vmatpush1.bf16.msra.mxu1 %v13231_v44  ;;  %13328 = vmatprep.mubr.bf16.mxu1 %v17355_v3  ;;  %v13472_v44 = vld [vmem:[#allocation3 + $0x27] sm:$0x1] }
 0x84d   :  { %13298 = vmatprep.subr.bf16.mxu1 %v13236_v10 }
 0x84e   :  { %v12423_v41 = vpop.f32.mrb[172].mxu1 }
 0x84f   :  { %v21111_v34 = vadd.f32 %v12423_v41, %v21094_v23  ;;  %v12425_v9 = vpop.f32.mrb[173].mxu1  ;;  %v13351_v23 = vmax.f32 %v13345_v0, %v13347_v16  ;;  %v13373_v41 = vld [vmem:[#allocation4 + $0x578] sm:$0xff]  ;;  %v13491_v0 = vld [vmem:[#allocation4 + $0x5a0] sm:$0xff] }
 0x850   :  { %v21114_v39 = vadd.f32 %v12425_v9, %v21097_v30  ;;  %v12427_v32 = vpop.f32.mrb[174].mxu1  ;;  %13299 = vmatpush1.bf16.msra.mxu1 %v13235_v63  ;;  %v13359_v30 = vld [vmem:[#allocation4 + $0x508] sm:$0xff]  ;;  %v13481_v63 = vmax.f32 %v13475_v36, %v13477_v62  ;;  %v13605_v36 = vld [vmem:[#allocation3 + $0x38] sm:$0x1]  ;;  %v13607_v62 = vld [vmem:[#allocation3 + $0x39] sm:$0x1] }
 0x851   :  { %v12428_v20 = vpop.f32.mrb[175].mxu1  ;;  %13300 = vmatprep.subr.bf16.mxu1 %v13240_v25  ;;  %v13353_v59 = vmax.f32 %v13349_v15, %v13351_v23  ;;  %v13372_v32 = vld [vmem:[#allocation4 + $0x570] sm:$0xff] }
 0x853   :  { %v13355_v21 = vpack.c.bf16 %v13353_v59, %v13353_v59 }
 0x854   :  { %13301 = vmatpush1.bf16.msra.mxu1 %v13239_v24 }
 0x855   :  { %13302 = vmatprep.subr.bf16.mxu1 %v13244_v53  ;;  %v13376_v7 = vunpack.c.l.b16 %v13355_v21  ;;  %v13496_v53 = vld [vmem:[#allocation4 + $0x5c8] sm:$0xff] }
 0x857   :  { %v13379_v1 = vsel %vm12125_vm14, %v13378_v37, %v13376_v7  ;;  %v13606_v7 = vld [vmem:[#allocation3 + $0x78] sm:$0x1]  ;;  %v13608_v37 = vld [vmem:[#allocation3 + $0x79] sm:$0x1] }
 0x858   :  { %13303 = vmatpush1.bf16.msra.mxu1 %v13243_v57  ;;  %v13380_v54 = vpack.c.b16 %v13379_v1, %v13379_v1 }
 0x859   :  { %13384 = vmatprep.subr.bf16.mxu1 %v13359_v30 }
 0x85b   :  { %15432 = vmatmul.mubr.msk.bf16.vlgmr.msra.gmra.mrb[228].mxu1 %vm12032_vm13, %v13251_v56  ;;  %v13470_v56 = vld [vmem:[#allocation3 + $0x26] sm:$0x1] }
 0x85c   :  { %13385 = vmatpush1.bf16.msra.mxu1 %v13358_v46  ;;  %13416 = vmatprep.mubr.bf16.mxu1 %v17355_v3  ;;  %v13478_v25 = vmax.f32 %v13470_v56, %v13472_v44  ;;  %v13495_v46 = vld [vmem:[#allocation4 + $0x5c0] sm:$0xff] }
 0x85d   :  { %13386 = vmatprep.subr.bf16.mxu1 %v13363_v58  ;;  %v13500_v58 = vld [vmem:[#allocation4 + $0x5e8] sm:$0xff] }
 0x85e   :  { %v12511_v11 = vpop.f32.mrb[176].mxu1 }
 0x85f   :  { %v21119_v38 = vadd.f32 %v12511_v11, %v21102_v29  ;;  %v12513_v28 = vpop.f32.mrb[177].mxu1  ;;  %v13365_v29 = vld [vmem:[#allocation4 + $0x538] sm:$0xff] }
 0x860   :  { %v21122_v50 = vadd.f32 %v12513_v28, %v21105_v48  ;;  %v12515_v19 = vpop.f32.mrb[178].mxu1  ;;  %13387 = vmatpush1.bf16.msra.mxu1 %v13362_v49  ;;  %v13471_v48 = vld [vmem:[#allocation3 + $0x66] sm:$0x1]  ;;  %v13490_v49 = vld [vmem:[#allocation4 + $0x598] sm:$0xff]  ;;  %v13493_v28 = vld [vmem:[#allocation4 + $0x5b0] sm:$0xff] }
 0x861   :  { %v12516_v31 = vpop.f32.mrb[179].mxu1  ;;  %13388 = vmatprep.subr.bf16.mxu1 %v13367_v27  ;;  %v13479_v10 = vmax.f32 %v13471_v48, %v13473_v61  ;;  %v13489_v27 = vld [vmem:[#allocation4 + $0x590] sm:$0xff] }
 0x862   :  { %v13603_v19 = vld [vmem:[#allocation3 + $0x71] sm:$0x1] }
 0x863   :  { %v13483_v9 = vmax.f32 %v13479_v10, %v13481_v63  ;;  %v13497_v61 = vld [vmem:[#allocation4 + $0x5d0] sm:$0xff]  ;;  %v13618_v10 = vld [vmem:[#allocation4 + $0x600] sm:$0xff]  ;;  %v13623_v63 = vld [vmem:[#allocation4 + $0x628] sm:$0xff] }
 0x864   :  { %13389 = vmatpush1.bf16.msra.mxu1 %v13366_v6  ;;  %v13498_v6 = vld [vmem:[#allocation4 + $0x5d8] sm:$0xff] }
 0x865   :  { %13390 = vmatprep.subr.bf16.mxu1 %v13371_v47  ;;  %v13485_v45 = vpack.c.bf16 %v13483_v9, %v13483_v9 }
 0x867   :  { %v13506_v24 = vunpack.c.l.b16 %v13485_v45 }
 0x868   :  { %13391 = vmatpush1.bf16.msra.mxu1 %v13370_v35 }
 0x869   :  { %13425 = vmatprep.subr.bf16.mxu1 %v13361_v55  ;;  %v13507_v59 = vrot.slane %v13506_v24, 7  ;;  %v13630_v24 = vld [vmem:[#allocation4 + $0x660] sm:$0xff] }
 0x86b   :  { %15433 = vmatmul.mubr.msk.bf16.vlgmr.msra.gmra.mrb[232].mxu1 %vm12032_vm13, %v13380_v54 }
 0x86c   :  { %13426 = vmatpush1.bf16.msra.mxu1 %v13360_v42  ;;  %13457 = vmatprep.mubr.bf16.mxu1 %v17355_v3  ;;  %v13602_v42 = vld [vmem:[#allocation3 + $0x31] sm:$0x1] }
 0x86d   :  { %13427 = vmatprep.subr.bf16.mxu1 %v13365_v29 }
 0x86e   :  { %v12552_v12 = vpop.f32.mrb[180].mxu1 }
 0x86f   :  { %v21128_v14 = vadd.f32 %v12552_v12, %v21111_v34  ;;  %v12554_v26 = vpop.f32.mrb[181].mxu1  ;;  %v13480_v34 = vmax.f32 %v13474_v60, %v13476_v4  ;;  %v13502_v12 = vld [vmem:[#allocation4 + $0x5f8] sm:$0xff]  ;;  %v13622_v60 = vld [vmem:[#allocation4 + $0x620] sm:$0xff] }
 0x870   :  { %v21131_v13 = vadd.f32 %v12554_v26, %v21114_v39  ;;  %v12556_v2 = vpop.f32.mrb[182].mxu1  ;;  %13428 = vmatpush1.bf16.msra.mxu1 %v13364_v17  ;;  %v13488_v39 = vld [vmem:[#allocation4 + $0x588] sm:$0xff]  ;;  %v13612_v17 = vmax.f32 %v13606_v7, %v13608_v37  ;;  %v13734_v7 = vld [vmem:[#allocation3 + $0x3a] sm:$0x1]  ;;  %v13736_v37 = vld [vmem:[#allocation3 + $0x3b] sm:$0x1] }
 0x871   :  { %v12557_v52 = vpop.f32.mrb[183].mxu1  ;;  %13429 = vmatprep.subr.bf16.mxu1 %v13369_v8  ;;  %v13482_v18 = vmax.f32 %v13478_v25, %v13480_v34  ;;  %v13501_v2 = vld [vmem:[#allocation4 + $0x5f0] sm:$0xff] }
 0x873   :  { %v13484_v20 = vpack.c.bf16 %v13482_v18, %v13482_v18 }
 0x874   :  { %13430 = vmatpush1.bf16.msra.mxu1 %v13368_v43 }
 0x875   :  { %13431 = vmatprep.subr.bf16.mxu1 %v13373_v41  ;;  %v13505_v30 = vunpack.c.l.b16 %v13484_v20  ;;  %v13627_v41 = vld [vmem:[#allocation4 + $0x648] sm:$0xff] }
 0x877   :  { %v13508_v21 = vsel %vm12125_vm14, %v13507_v59, %v13505_v30  ;;  %v13735_v30 = vld [vmem:[#allocation3 + $0x7a] sm:$0x1]  ;;  %v13737_v59 = vld [vmem:[#allocation3 + $0x7b] sm:$0x1] }
 0x878   :  { %13432 = vmatpush1.bf16.msra.mxu1 %v13372_v32  ;;  %v13509_v11 = vpack.c.b16 %v13508_v21, %v13508_v21 }
 0x879   :  { %13513 = vmatprep.subr.bf16.mxu1 %v13488_v39 }
 0x87b   :  { %15434 = vmatmul.mubr.msk.bf16.vlgmr.msra.gmra.mrb[236].mxu1 %vm12032_vm13, %v13380_v54  ;;  %v13600_v54 = vld [vmem:[#allocation3 + $0x30] sm:$0x1] }
 0x87c   :  { %13514 = vmatpush1.bf16.msra.mxu1 %v13487_v40  ;;  %13545 = vmatprep.mubr.bf16.mxu1 %v17355_v3  ;;  %v13609_v8 = vmax.f32 %v13600_v54, %v13602_v42  ;;  %v13626_v40 = vld [vmem:[#allocation4 + $0x640] sm:$0xff] }
 0x87d   :  { %13515 = vmatprep.subr.bf16.mxu1 %v13492_v5  ;;  %v13631_v5 = vld [vmem:[#allocation4 + $0x668] sm:$0xff] }
 0x87e   :  { %v12642_v16 = vpop.f32.mrb[184].mxu1 }
 0x87f   :  { %v21136_v15 = vadd.f32 %v12642_v16, %v21119_v38  ;;  %v12644_v23 = vpop.f32.mrb[185].mxu1  ;;  %v13494_v38 = vld [vmem:[#allocation4 + $0x5b8] sm:$0xff] }
 0x880   :  { %v21139_v33 = vadd.f32 %v12644_v23, %v21122_v50  ;;  %v12646_v57 = vpop.f32.mrb[186].mxu1  ;;  %13516 = vmatpush1.bf16.msra.mxu1 %v13491_v0  ;;  %v13601_v50 = vld [vmem:[#allocation3 + $0x70] sm:$0x1]  ;;  %v13621_v0 = vld [vmem:[#allocation4 + $0x618] sm:$0xff] }
 0x881   :  { %v12647_v51 = vpop.f32.mrb[187].mxu1  ;;  %13517 = vmatprep.subr.bf16.mxu1 %v13496_v53  ;;  %v13610_v29 = vmax.f32 %v13601_v50, %v13603_v19  ;;  %v13620_v53 = vld [vmem:[#allocation4 + $0x610] sm:$0xff] }
 0x882   :  { %v13624_v23 = vld [vmem:[#allocation4 + $0x630] sm:$0xff] }
 0x883   :  { %v13614_v26 = vmax.f32 %v13610_v29, %v13612_v17  ;;  %v13733_v57 = vld [vmem:[#allocation3 + $0x73] sm:$0x1]  ;;  %v13747_v29 = vld [vmem:[#allocation4 + $0x680] sm:$0xff]  ;;  %v13752_v17 = vld [vmem:[#allocation4 + $0x6a8] sm:$0xff] }
 0x884   :  { %13518 = vmatpush1.bf16.msra.mxu1 %v13495_v46  ;;  %v13629_v46 = vld [vmem:[#allocation4 + $0x658] sm:$0xff]  ;;  %v13628_v19 = vld [vmem:[#allocation4 + $0x650] sm:$0xff] }
 0x885   :  { %13519 = vmatprep.subr.bf16.mxu1 %v13500_v58  ;;  %v13616_v44 = vpack.c.bf16 %v13614_v26, %v13614_v26 }
 0x887   :  { %v13637_v43 = vunpack.c.l.b16 %v13616_v44 }
 0x888   :  { %13520 = vmatpush1.bf16.msra.mxu1 %v13499_v22 }
 0x889   :  { %13554 = vmatprep.subr.bf16.mxu1 %v13490_v49  ;;  %v13638_v18 = vrot.slane %v13637_v43, 7  ;;  %v13759_v43 = vld [vmem:[#allocation4 + $0x6e0] sm:$0xff] }
 0x88b   :  { %15435 = vmatmul.mubr.msk.bf16.vlgmr.msra.gmra.mrb[240].mxu1 %vm12032_vm13, %v13509_v11 }
 0x88c   :  { %13555 = vmatpush1.bf16.msra.mxu1 %v13489_v27  ;;  %13586 = vmatprep.mubr.bf16.mxu1 %v17355_v3  ;;  %v13732_v27 = vld [vmem:[#allocation3 + $0x33] sm:$0x1] }
 0x88d   :  { %13556 = vmatprep.subr.bf16.mxu1 %v13494_v38 }
 0x88e   :  { %v12683_v31 = vpop.f32.mrb[188].mxu1 }
 0x88f   :  { %v21145_v47 = vadd.f32 %v12683_v31, %v21128_v14  ;;  %v12685_v1 = vpop.f32.mrb[189].mxu1  ;;  %v13611_v14 = vmax.f32 %v13605_v36, %v13607_v62  ;;  %v13633_v31 = vld [vmem:[#allocation4 + $0x678] sm:$0xff]  ;;  %v13751_v36 = vld [vmem:[#allocation4 + $0x6a0] sm:$0xff] }
 0x890   :  { %v21148_v35 = vadd.f32 %v12685_v1, %v21131_v13  ;;  %v12687_v55 = vpop.f32.mrb[190].mxu1  ;;  %13557 = vmatpush1.bf16.msra.mxu1 %v13493_v28  ;;  %v13619_v13 = vld [vmem:[#allocation4 + $0x608] sm:$0xff]  ;;  %v13741_v28 = vmax.f32 %v13735_v30, %v13737_v59  ;;  %v13863_v30 = vld [vmem:[#allocation3 + $0x3c] sm:$0x1]  ;;  %v13865_v59 = vld [vmem:[#allocation3 + $0x3d] sm:$0x1] }
 0x891   :  { %v12688_v48 = vpop.f32.mrb[191].mxu1  ;;  %13558 = vmatprep.subr.bf16.mxu1 %v13498_v6  ;;  %v13613_v56 = vmax.f32 %v13609_v8, %v13611_v14  ;;  %v13632_v55 = vld [vmem:[#allocation4 + $0x670] sm:$0xff] }
 0x893   :  { %v13615_v52 = vpack.c.bf16 %v13613_v56, %v13613_v56 }
 0x894   :  { %13559 = vmatpush1.bf16.msra.mxu1 %v13497_v61 }
 0x895   :  { %13560 = vmatprep.subr.bf16.mxu1 %v13502_v12  ;;  %v13636_v39 = vunpack.c.l.b16 %v13615_v52  ;;  %v13756_v12 = vld [vmem:[#allocation4 + $0x6c8] sm:$0xff] }
 0x897   :  { %v13639_v20 = vsel %vm12125_vm14, %v13638_v18, %v13636_v39  ;;  %v13864_v39 = vld [vmem:[#allocation3 + $0x7c] sm:$0x1]  ;;  %v13866_v18 = vld [vmem:[#allocation3 + $0x7d] sm:$0x1] }
 0x898   :  { %13561 = vmatpush1.bf16.msra.mxu1 %v13501_v2  ;;  %v13640_v16 = vpack.c.b16 %v13639_v20, %v13639_v20 }
 0x899   :  { %13644 = vmatprep.subr.bf16.mxu1 %v13619_v13 }
 0x89b   :  { %15436 = vmatmul.mubr.msk.bf16.vlgmr.msra.gmra.mrb[244].mxu1 %vm12032_vm13, %v13509_v11  ;;  %v13730_v11 = vld [vmem:[#allocation3 + $0x32] sm:$0x1] }
 0x89c   :  { %13645 = vmatpush1.bf16.msra.mxu1 %v13618_v10  ;;  %13676 = vmatprep.mubr.bf16.mxu1 %v17355_v3  ;;  %v13738_v6 = vmax.f32 %v13730_v11, %v13732_v27  ;;  %v13755_v10 = vld [vmem:[#allocation4 + $0x6c0] sm:$0xff] }
 0x89d   :  { %13646 = vmatprep.subr.bf16.mxu1 %v13623_v63  ;;  %v13760_v63 = vld [vmem:[#allocation4 + $0x6e8] sm:$0xff] }
 0x89e   :  { %v12771_v4 = vpop.f32.mrb[192].mxu1 }
 0x89f   :  { %v21153_v25 = vadd.f32 %v12771_v4, %v21136_v15  ;;  %v12773_v34 = vpop.f32.mrb[193].mxu1  ;;  %v13625_v15 = vld [vmem:[#allocation4 + $0x638] sm:$0xff] }
 0x8a0   :  { %v21156_v9 = vadd.f32 %v12773_v34, %v21139_v33  ;;  %v12775_v32 = vpop.f32.mrb[194].mxu1  ;;  %13647 = vmatpush1.bf16.msra.mxu1 %v13622_v60  ;;  %v13731_v33 = vld [vmem:[#allocation3 + $0x72] sm:$0x1]  ;;  %v13750_v60 = vld [vmem:[#allocation4 + $0x698] sm:$0xff] }
 0x8a1   :  { %v12776_v45 = vpop.f32.mrb[195].mxu1  ;;  %13648 = vmatprep.subr.bf16.mxu1 %v13627_v41  ;;  %v13739_v38 = vmax.f32 %v13731_v33, %v13733_v57  ;;  %v13749_v41 = vld [vmem:[#allocation4 + $0x690] sm:$0xff] }
 0x8a2   :  { %v13753_v34 = vld [vmem:[#allocation4 + $0x6b0] sm:$0xff] }
 0x8a3   :  { %v13743_v1 = vmax.f32 %v13739_v38, %v13741_v28  ;;  %v13862_v32 = vld [vmem:[#allocation3 + $0x75] sm:$0x1]  ;;  %v13876_v38 = vld [vmem:[#allocation4 + $0x700] sm:$0xff]  ;;  %v13881_v28 = vld [vmem:[#allocation4 + $0x728] sm:$0xff] }
 0x8a4   :  { %13649 = vmatpush1.bf16.msra.mxu1 %v13626_v40  ;;  %v13758_v40 = vld [vmem:[#allocation4 + $0x6d8] sm:$0xff]  ;;  %v13757_v57 = vld [vmem:[#allocation4 + $0x6d0] sm:$0xff] }
 0x8a5   :  { %13650 = vmatprep.subr.bf16.mxu1 %v13631_v5  ;;  %v13745_v42 = vpack.c.bf16 %v13743_v1, %v13743_v1 }
 0x8a7   :  { %v13766_v61 = vunpack.c.l.b16 %v13745_v42 }
 0x8a8   :  { %13651 = vmatpush1.bf16.msra.mxu1 %v13630_v24 }
 0x8a9   :  { %13685 = vmatprep.subr.bf16.mxu1 %v13621_v0  ;;  %v13767_v56 = vrot.slane %v13766_v61, 7  ;;  %v13888_v61 = vld [vmem:[#allocation4 + $0x760] sm:$0xff] }
 0x8ab   :  { %15437 = vmatmul.mubr.msk.bf16.vlgmr.msra.gmra.mrb[248].mxu1 %vm12032_vm13, %v13640_v16 }
 0x8ac   :  { %13686 = vmatpush1.bf16.msra.mxu1 %v13620_v53  ;;  %13717 = vmatprep.mubr.bf16.mxu1 %v17355_v3  ;;  %v13861_v53 = vld [vmem:[#allocation3 + $0x35] sm:$0x1] }
 0x8ad   :  { %13687 = vmatprep.subr.bf16.mxu1 %v13625_v15 }
 0x8ae   :  { %v12812_v51 = vpop.f32.mrb[196].mxu1 }
 0x8af   :  { %v21162_v58 = vadd.f32 %v12812_v51, %v21145_v47  ;;  %v12814_v21 = vpop.f32.mrb[197].mxu1  ;;  %v13740_v47 = vmax.f32 %v13734_v7, %v13736_v37  ;;  %v13762_v51 = vld [vmem:[#allocation4 + $0x6f8] sm:$0xff]  ;;  %v13880_v7 = vld [vmem:[#allocation4 + $0x720] sm:$0xff] }
 0x8b0   :  { %v21165_v22 = vadd.f32 %v12814_v21, %v21148_v35  ;;  %v12816_v49 = vpop.f32.mrb[198].mxu1  ;;  %13688 = vmatpush1.bf16.msra.mxu1 %v13624_v23  ;;  %v13748_v35 = vld [vmem:[#allocation4 + $0x688] sm:$0xff]  ;;  %v13870_v23 = vmax.f32 %v13864_v39, %v13866_v18  ;;  %v13992_v39 = vld [vmem:[#allocation3 + $0x3e] sm:$0x1]  ;;  %v13994_v18 = vld [vmem:[#allocation3 + $0x3f] sm:$0x1] }
 0x8b1   :  { %v12817_v50 = vpop.f32.mrb[199].mxu1  ;;  %13689 = vmatprep.subr.bf16.mxu1 %v13629_v46  ;;  %v13742_v54 = vmax.f32 %v13738_v6, %v13740_v47  ;;  %v13761_v49 = vld [vmem:[#allocation4 + $0x6f0] sm:$0xff] }
 0x8b3   :  { %v13744_v48 = vpack.c.bf16 %v13742_v54, %v13742_v54 }
 0x8b4   :  { %13690 = vmatpush1.bf16.msra.mxu1 %v13628_v19 }
 0x8b5   :  { %13691 = vmatprep.subr.bf16.mxu1 %v13633_v31  ;;  %v13765_v13 = vunpack.c.l.b16 %v13744_v48  ;;  %v13885_v31 = vld [vmem:[#allocation4 + $0x748] sm:$0xff] }
 0x8b7   :  { %v13768_v52 = vsel %vm12125_vm14, %v13767_v56, %v13765_v13  ;;  %v13993_v13 = vld [vmem:[#allocation3 + $0x7e] sm:$0x1]  ;;  %v13995_v56 = vld [vmem:[#allocation3 + $0x7f] sm:$0x1] }
 0x8b8   :  { %13692 = vmatpush1.bf16.msra.mxu1 %v13632_v55  ;;  %v13769_v4 = vpack.c.b16 %v13768_v52, %v13768_v52 }
 0x8b9   :  { %13773 = vmatprep.subr.bf16.mxu1 %v13748_v35 }
 0x8bb   :  { %15438 = vmatmul.mubr.msk.bf16.vlgmr.msra.gmra.mrb[252].mxu1 %vm12032_vm13, %v13640_v16  ;;  %v13859_v16 = vld [vmem:[#allocation3 + $0x34] sm:$0x1] }
 0x8bc   :  { %13774 = vmatpush1.bf16.msra.mxu1 %v13747_v29  ;;  %13805 = vmatprep.mubr.bf16.mxu1 %v17355_v3  ;;  %v13867_v46 = vmax.f32 %v13859_v16, %v13861_v53  ;;  %v13884_v29 = vld [vmem:[#allocation4 + $0x740] sm:$0xff] }
 0x8bd   :  { %13775 = vmatprep.subr.bf16.mxu1 %v13752_v17  ;;  %v13889_v17 = vld [vmem:[#allocation4 + $0x768] sm:$0xff] }
 0x8be   :  { %v12900_v62 = vpop.f32.mrb[200].mxu1 }
 0x8bf   :  { %v21170_v8 = vadd.f32 %v12900_v62, %v21153_v25  ;;  %v12902_v14 = vpop.f32.mrb[201].mxu1  ;;  %v13754_v25 = vld [vmem:[#allocation4 + $0x6b8] sm:$0xff] }
 0x8c0   :  { %v21173_v26 = vadd.f32 %v12902_v14, %v21156_v9  ;;  %v12904_v2 = vpop.f32.mrb[202].mxu1  ;;  %13776 = vmatpush1.bf16.msra.mxu1 %v13751_v36  ;;  %v13860_v9 = vld [vmem:[#allocation3 + $0x74] sm:$0x1]  ;;  %v13879_v36 = vld [vmem:[#allocation4 + $0x718] sm:$0xff] }
 0x8c1   :  { %v12905_v44 = vpop.f32.mrb[203].mxu1  ;;  %13777 = vmatprep.subr.bf16.mxu1 %v13756_v12  ;;  %v13868_v15 = vmax.f32 %v13860_v9, %v13862_v32  ;;  %v13878_v12 = vld [vmem:[#allocation4 + $0x710] sm:$0xff] }
 0x8c2   :  { %v13882_v14 = vld [vmem:[#allocation4 + $0x730] sm:$0xff] }
 0x8c3   :  { %v13872_v21 = vmax.f32 %v13868_v15, %v13870_v23  ;;  %v13991_v2 = vld [vmem:[#allocation3 + $0x77] sm:$0x1]  ;;  %v14005_v15 = vld [vmem:[#allocation4 + $0x780] sm:$0xff]  ;;  %v14010_v23 = vld [vmem:[#allocation4 + $0x7a8] sm:$0xff] }
 0x8c4   :  { %13778 = vmatpush1.bf16.msra.mxu1 %v13755_v10  ;;  %v13887_v10 = vld [vmem:[#allocation4 + $0x758] sm:$0xff]  ;;  %v13886_v32 = vld [vmem:[#allocation4 + $0x750] sm:$0xff] }
 0x8c5   :  { %13779 = vmatprep.subr.bf16.mxu1 %v13760_v63  ;;  %v13874_v27 = vpack.c.bf16 %v13872_v21, %v13872_v21 }
 0x8c7   :  { %v13895_v19 = vunpack.c.l.b16 %v13874_v27 }
 0x8c8   :  { %13780 = vmatpush1.bf16.msra.mxu1 %v13759_v43 }
 0x8c9   :  { %13814 = vmatprep.subr.bf16.mxu1 %v13750_v60  ;;  %v13896_v54 = vrot.slane %v13895_v19, 7  ;;  %v14017_v19 = vld [vmem:[#allocation4 + $0x7e0] sm:$0xff] }
 0x8cb   :  { %15439 = vmatmul.mubr.msk.bf16.vlgmr.msra.gmra.mrb[0].mxu1 %vm12032_vm13, %v13769_v4 }
 0x8cc   :  { %13815 = vmatpush1.bf16.msra.mxu1 %v13749_v41  ;;  %13846 = vmatprep.mubr.bf16.mxu1 %v17355_v3  ;;  %v13990_v41 = vld [vmem:[#allocation3 + $0x37] sm:$0x1] }
 0x8cd   :  { %13816 = vmatprep.subr.bf16.mxu1 %v13754_v25 }
 0x8ce   :  { %v12941_v45 = vpop.f32.mrb[204].mxu1 }
 0x8cf   :  { %v21179_v5 = vadd.f32 %v12941_v45, %v21162_v58  ;;  %v12943_v20 = vpop.f32.mrb[205].mxu1  ;;  %v13869_v58 = vmax.f32 %v13863_v30, %v13865_v59  ;;  %v13891_v45 = vld [vmem:[#allocation4 + $0x778] sm:$0xff]  ;;  %v14009_v30 = vld [vmem:[#allocation4 + $0x7a0] sm:$0xff] }
 0x8d0   :  { %v21182_v24 = vadd.f32 %v12943_v20, %v21165_v22  ;;  %v12945_v0 = vpop.f32.mrb[206].mxu1  ;;  %13817 = vmatpush1.bf16.msra.mxu1 %v13753_v34  ;;  %v13877_v22 = vld [vmem:[#allocation4 + $0x708] sm:$0xff]  ;;  %v13999_v34 = vmax.f32 %v13993_v13, %v13995_v56 }
 0x8d1   :  { %v12946_v33 = vpop.f32.mrb[207].mxu1  ;;  %13818 = vmatprep.subr.bf16.mxu1 %v13758_v40  ;;  %v13871_v11 = vmax.f32 %v13867_v46, %v13869_v58  ;;  %v13890_v0 = vld [vmem:[#allocation4 + $0x770] sm:$0xff] }
 0x8d3   :  { %v13873_v50 = vpack.c.bf16 %v13871_v11, %v13871_v11 }
 0x8d4   :  { %13819 = vmatpush1.bf16.msra.mxu1 %v13757_v57 }
 0x8d5   :  { %13820 = vmatprep.subr.bf16.mxu1 %v13762_v51  ;;  %v13894_v35 = vunpack.c.l.b16 %v13873_v50  ;;  %v14014_v51 = vld [vmem:[#allocation4 + $0x7c8] sm:$0xff] }
 0x8d7   :  { %v13897_v48 = vsel %vm12125_vm14, %v13896_v54, %v13894_v35 }
 0x8d8   :  { %13821 = vmatpush1.bf16.msra.mxu1 %v13761_v49  ;;  %v13898_v62 = vpack.c.b16 %v13897_v48, %v13897_v48  ;;  %v14015_v48 = vld [vmem:[#allocation4 + $0x7d0] sm:$0xff] }
 0x8d9   :  { %13902 = vmatprep.subr.bf16.mxu1 %v13877_v22 }
 0x8db   :  { %15440 = vmatmul.mubr.msk.bf16.vlgmr.msra.gmra.mrb[4].mxu1 %vm12032_vm13, %v13769_v4  ;;  %v13988_v4 = vld [vmem:[#allocation3 + $0x36] sm:$0x1] }
 0x8dc   :  { %13903 = vmatpush1.bf16.msra.mxu1 %v13876_v38  ;;  %13934 = vmatprep.mubr.bf16.mxu1 %v17355_v3  ;;  %v13996_v40 = vmax.f32 %v13988_v4, %v13990_v41  ;;  %v14013_v38 = vld [vmem:[#allocation4 + $0x7c0] sm:$0xff] }
 0x8dd   :  { %13904 = vmatprep.subr.bf16.mxu1 %v13881_v28  ;;  %v14018_v28 = vld [vmem:[#allocation4 + $0x7e8] sm:$0xff] }
 0x8de   :  { %v13029_v37 = vpop.f32.mrb[208].mxu1 }
 0x8df   :  { %v21187_v6 = vadd.f32 %v13029_v37, %v21170_v8  ;;  %v13031_v47 = vpop.f32.mrb[209].mxu1  ;;  %v13883_v8 = vld [vmem:[#allocation4 + $0x738] sm:$0xff] }
 0x8e0   :  { %v21190_v1 = vadd.f32 %v13031_v47, %v21173_v26  ;;  %v13033_v55 = vpop.f32.mrb[210].mxu1  ;;  %13905 = vmatpush1.bf16.msra.mxu1 %v13880_v7  ;;  %v13989_v26 = vld [vmem:[#allocation3 + $0x76] sm:$0x1]  ;;  %v14008_v7 = vld [vmem:[#allocation4 + $0x798] sm:$0xff] }
 0x8e1   :  { %v13034_v42 = vpop.f32.mrb[211].mxu1  ;;  %13906 = vmatprep.subr.bf16.mxu1 %v13885_v31  ;;  %v13997_v25 = vmax.f32 %v13989_v26, %v13991_v2  ;;  %v14007_v31 = vld [vmem:[#allocation4 + $0x790] sm:$0xff]  ;;  %v14016_v55 = vld [vmem:[#allocation4 + $0x7d8] sm:$0xff] }
 0x8e2   :  { %v14011_v47 = vld [vmem:[#allocation4 + $0x7b0] sm:$0xff] }
 0x8e3   :  { %v14001_v20 = vmax.f32 %v13997_v25, %v13999_v34 }
 0x8e4   :  { %13907 = vmatpush1.bf16.msra.mxu1 %v13884_v29 }
 0x8e5   :  { %13908 = vmatprep.subr.bf16.mxu1 %v13889_v17  ;;  %v14003_v53 = vpack.c.bf16 %v14001_v20, %v14001_v20 }
 0x8e7   :  { %v14024_v57 = vunpack.c.l.b16 %v14003_v53 }
 0x8e8   :  { %13909 = vmatpush1.bf16.msra.mxu1 %v13888_v61  ;;  %v14020_v61 = vld [vmem:[#allocation4 + $0x7f8] sm:$0xff] }
 0x8e9   :  { %13943 = vmatprep.subr.bf16.mxu1 %v13879_v36  ;;  %v14025_v11 = vrot.slane %v14024_v57, 7  ;;  %v14019_v36 = vld [vmem:[#allocation4 + $0x7f0] sm:$0xff] }
 0x8eb   :  { %15441 = vmatmul.mubr.msk.bf16.vlgmr.msra.gmra.mrb[8].mxu1 %vm12032_vm13, %v13898_v62 }
 0x8ec   :  { %13944 = vmatpush1.bf16.msra.mxu1 %v13878_v12  ;;  %13975 = vmatprep.mubr.bf16.mxu1 %v17355_v3 }
 0x8ed   :  { %13945 = vmatprep.subr.bf16.mxu1 %v13883_v8 }
 0x8ee   :  { %v13070_v44 = vpop.f32.mrb[212].mxu1 }
 0x8ef   :  { %v21196_v63 = vadd.f32 %v13070_v44, %v21179_v5  ;;  %v13072_v52 = vpop.f32.mrb[213].mxu1  ;;  %v13998_v5 = vmax.f32 %v13992_v39, %v13994_v18 }
 0x8f0   :  { %v21199_v43 = vadd.f32 %v13072_v52, %v21182_v24  ;;  %v13074_v60 = vpop.f32.mrb[214].mxu1  ;;  %13946 = vmatpush1.bf16.msra.mxu1 %v13882_v14  ;;  %v14006_v24 = vld [vmem:[#allocation4 + $0x788] sm:$0xff] }
 0x8f1   :  { %v13075_v9 = vpop.f32.mrb[215].mxu1  ;;  %13947 = vmatprep.subr.bf16.mxu1 %v13887_v10  ;;  %v14000_v16 = vmax.f32 %v13996_v40, %v13998_v5 }
 0x8f3   :  { %v14002_v33 = vpack.c.bf16 %v14000_v16, %v14000_v16 }
 0x8f4   :  { %13948 = vmatpush1.bf16.msra.mxu1 %v13886_v32 }
 0x8f5   :  { %13949 = vmatprep.subr.bf16.mxu1 %v13891_v45  ;;  %v14023_v22 = vunpack.c.l.b16 %v14002_v33 }
 0x8f7   :  { %v14026_v50 = vsel %vm12125_vm14, %v14025_v11, %v14023_v22 }
 0x8f8   :  { %13950 = vmatpush1.bf16.msra.mxu1 %v13890_v0  ;;  %v14027_v37 = vpack.c.b16 %v14026_v50, %v14026_v50 }
 0x8f9   :  { %14031 = vmatprep.subr.bf16.mxu1 %v14006_v24 }
 0x8fb   :  { %15442 = vmatmul.mubr.msk.bf16.vlgmr.msra.gmra.mrb[12].mxu1 %vm12032_vm13, %v13898_v62 }
 0x8fc   :  { %14032 = vmatpush1.bf16.msra.mxu1 %v14005_v15  ;;  %14063 = vmatprep.mubr.bf16.mxu1 %v17355_v3 }
 0x8fd   :  { %14033 = vmatprep.subr.bf16.mxu1 %v14010_v23 }
 0x8fe   :  { %v13160_v59 = vpop.f32.mrb[216].mxu1 }
 0x8ff   :  { %v13208_v46 = vadd.f32 %v13160_v59, %v21187_v6  ;;  %v13162_v58 = vpop.f32.mrb[217].mxu1  ;;  %v14012_v6 = vld [vmem:[#allocation4 + $0x7b8] sm:$0xff] }
 0x900   :  { %v13209_v21 = vadd.f32 %v13162_v58, %v21190_v1  ;;  %v13164_v49 = vpop.f32.mrb[218].mxu1  ;;  %14034 = vmatpush1.bf16.msra.mxu1 %v14009_v30 }
 0x901   :  { %v13165_v27 = vpop.f32.mrb[219].mxu1  ;;  %14035 = vmatprep.subr.bf16.mxu1 %v14014_v51 }
 0x904   :  { %14036 = vmatpush1.bf16.msra.mxu1 %v14013_v38 }
 0x905   :  { %14037 = vmatprep.subr.bf16.mxu1 %v14018_v28 }
 0x908   :  { %14038 = vmatpush1.bf16.msra.mxu1 %v14017_v19 }
 0x909   :  { %14072 = vmatprep.subr.bf16.mxu1 %v14008_v7 }
 0x90b   :  { %15443 = vmatmul.mubr.msk.bf16.vlgmr.msra.gmra.mrb[16].mxu1 %vm12032_vm13, %v14027_v37 }
 0x90c   :  { %14073 = vmatpush1.bf16.msra.mxu1 %v14007_v31  ;;  %14104 = vmatprep.mubr.bf16.mxu1 %v17355_v3 }
 0x90d   :  { %14074 = vmatprep.subr.bf16.mxu1 %v14012_v6 }
 0x90e   :  { %v13201_v1 = vpop.f32.mrb[220].mxu1 }
 0x90f   :  { %v13210_v35 = vadd.f32 %v13201_v1, %v21196_v63  ;;  %v13203_v54 = vpop.f32.mrb[221].mxu1 }
 0x910   :  { %v13211_v42 = vadd.f32 %v13203_v54, %v21199_v43  ;;  %v13205_v29 = vpop.f32.mrb[222].mxu1  ;;  %14075 = vmatpush1.bf16.msra.mxu1 %v14011_v47 }
 0x911   :  { %v13206_v17 = vpop.f32.mrb[223].mxu1  ;;  %14076 = vmatprep.subr.bf16.mxu1 %v14016_v55 }
 0x914   :  { %14077 = vmatpush1.bf16.msra.mxu1 %v14015_v48 }
 0x915   :  { %14078 = vmatprep.subr.bf16.mxu1 %v14020_v61 }
 0x918   :  { %14079 = vmatpush1.bf16.msra.mxu1 %v14019_v36 }
 0x91b   :  { %15444 = vmatmul.mubr.msk.bf16.vlgmr.msra.gmra.mrb[20].mxu1 %vm12032_vm13, %v14027_v37 }
 0x91e   :  { %v13289_v3 = vpop.f32.mrb[224].mxu1 }
 0x91f   :  { %v13337_v62 = vadd.f32 %v13289_v3, %v13208_v46  ;;  %v13291_v12 = vpop.f32.mrb[225].mxu1 }
 0x920   :  { %v13338_v8 = vadd.f32 %v13291_v12, %v13209_v21  ;;  %v13293_v14 = vpop.f32.mrb[226].mxu1 }
 0x921   :  { %v13294_v26 = vpop.f32.mrb[227].mxu1 }
 0x92e   :  { %v13330_v2 = vpop.f32.mrb[228].mxu1 }
 0x92f   :  { %v13339_v13 = vadd.f32 %v13330_v2, %v13210_v35  ;;  %v13332_v56 = vpop.f32.mrb[229].mxu1 }
 0x930   :  { %v13340_v44 = vadd.f32 %v13332_v56, %v13211_v42  ;;  %v13334_v10 = vpop.f32.mrb[230].mxu1  ;;  %v14119_v56 = vlaneseq }
 0x931   :  { %v13335_v63 = vpop.f32.mrb[231].mxu1 }
 0x932   :  { %v14117_v63 = vld [vmem:[%s21271_s6] sm:$0xf] }
 0x93e   :  { %v13418_v52 = vpop.f32.mrb[232].mxu1 }
 0x93f   :  { %v13466_v43 = vadd.f32 %v13418_v52, %v13337_v62  ;;  %v13420_v60 = vpop.f32.mrb[233].mxu1 }
 0x940   :  { %v13467_v4 = vadd.f32 %v13420_v60, %v13338_v8  ;;  %v13422_v41 = vpop.f32.mrb[234].mxu1 }
 0x941   :  { %v13423_v25 = vpop.f32.mrb[235].mxu1 }
 0x94e   :  { %v13459_v34 = vpop.f32.mrb[236].mxu1 }
 0x94f   :  { %v13468_v9 = vadd.f32 %v13459_v34, %v13339_v13  ;;  %v13461_v32 = vpop.f32.mrb[237].mxu1 }
 0x950   :  { %v13469_v39 = vadd.f32 %v13461_v32, %v13340_v44  ;;  %v13463_v18 = vpop.f32.mrb[238].mxu1  ;;  %v14120_v44 = vshrl.u32 %v14119_v56, 7 }
 0x951   :  { %v13464_v45 = vpop.f32.mrb[239].mxu1 }
 0x952   :  { %v14121_v10 = vsub.s32 0, %v14120_v44  ;;  %v14125_v52 = vsub.s32 1, %v14120_v44 }
 0x95e   :  { %v13547_v40 = vpop.f32.mrb[240].mxu1 }
 0x95f   :  { %v13595_v5 = vadd.f32 %v13547_v40, %v13466_v43  ;;  %v13549_v20 = vpop.f32.mrb[241].mxu1  ;;  %v14122_v43 = vrot.slane %v14117_v63, %v14121_v10 }
 0x960   :  { %v13596_v0 = vadd.f32 %v13549_v20, %v13467_v4  ;;  %v13551_v24 = vpop.f32.mrb[242].mxu1  ;;  %v14126_v4 = vrot.slane %v14117_v63, %v14125_v52  ;;  %v14133_v20 = vsub.s32 3, %v14120_v44 }
 0x961   :  { %v13552_v16 = vpop.f32.mrb[243].mxu1 }
 0x962   :  { %v14134_v16 = vrot.slane %v14117_v63, %v14133_v20 }
 0x96e   :  { %v13588_v53 = vpop.f32.mrb[244].mxu1 }
 0x96f   :  { %v13597_v15 = vadd.f32 %v13588_v53, %v13468_v9  ;;  %v13590_v23 = vpop.f32.mrb[245].mxu1 }
 0x970   :  { %v13598_v33 = vadd.f32 %v13590_v23, %v13469_v39  ;;  %v13592_v57 = vpop.f32.mrb[246].mxu1 }
 0x971   :  { %v13593_v30 = vpop.f32.mrb[247].mxu1 }
 0x97e   :  { %v13678_v59 = vpop.f32.mrb[248].mxu1 }
 0x97f   :  { %v13726_v51 = vadd.f32 %v13678_v59, %v13595_v5  ;;  %v13680_v46 = vpop.f32.mrb[249].mxu1  ;;  %v14129_v5 = vsub.s32 2, %v14120_v44 }
 0x980   :  { %v13727_v58 = vadd.f32 %v13680_v46, %v13596_v0  ;;  %v13682_v21 = vpop.f32.mrb[250].mxu1 }
 0x981   :  { %v13683_v49 = vpop.f32.mrb[251].mxu1  ;;  %v14130_v0 = vrot.slane %v14117_v63, %v14129_v5 }
 0x98e   :  { %v13719_v22 = vpop.f32.mrb[252].mxu1 }
 0x98f   :  { %v13728_v11 = vadd.f32 %v13719_v22, %v13597_v15  ;;  %v13721_v27 = vpop.f32.mrb[253].mxu1 }
 0x990   :  { %v13729_v38 = vadd.f32 %v13721_v27, %v13598_v33  ;;  %v13723_v28 = vpop.f32.mrb[254].mxu1 }
 0x991   :  { %v13724_v50 = vpop.f32.mrb[255].mxu1 }
 0x99e   :  { %v13807_v19 = vpop.f32.mrb[0].mxu1 }
 0x99f   :  { %v13855_v7 = vadd.f32 %v13807_v19, %v13726_v51  ;;  %v13809_v37 = vpop.f32.mrb[1].mxu1 }
 0x9a0   :  { %v13856_v31 = vadd.f32 %v13809_v37, %v13727_v58  ;;  %v13811_v6 = vpop.f32.mrb[2].mxu1  ;;  %v21379_v58 = vld [vmem:[#allocation22_spill] sm:$0xff] }
 0x9a1   :  { %v13812_v47 = vpop.f32.mrb[3].mxu1  ;;  %15810 = vmatprep.subr.bf16.mxu1 %v21379_v58 }
 0x9ae   :  { %v13848_v1 = vpop.f32.mrb[4].mxu1 }
 0x9af   :  { %v13857_v55 = vadd.f32 %v13848_v1, %v13728_v11  ;;  %v13850_v35 = vpop.f32.mrb[5].mxu1 }
 0x9b0   :  { %v13858_v54 = vadd.f32 %v13850_v35, %v13729_v38  ;;  %v13852_v42 = vpop.f32.mrb[6].mxu1 }
 0x9b1   :  { %v13853_v29 = vpop.f32.mrb[7].mxu1 }
 0x9be   :  { %v13936_v17 = vpop.f32.mrb[8].mxu1 }
 0x9bf   :  { %v13984_v48 = vadd.f32 %v13936_v17, %v13855_v7  ;;  %v13938_v61 = vpop.f32.mrb[9].mxu1 }
 0x9c0   :  { %v13985_v36 = vadd.f32 %v13938_v61, %v13856_v31  ;;  %v13940_v3 = vpop.f32.mrb[10].mxu1 }
 0x9c1   :  { %v13941_v62 = vpop.f32.mrb[11].mxu1 }
 0x9ce   :  { %v13977_v12 = vpop.f32.mrb[12].mxu1 }
 0x9cf   :  { %v13986_v8 = vadd.f32 %v13977_v12, %v13857_v55  ;;  %v13979_v14 = vpop.f32.mrb[13].mxu1 }
 0x9d0   :  { %v13987_v26 = vadd.f32 %v13979_v14, %v13858_v54  ;;  %v13981_v2 = vpop.f32.mrb[14].mxu1 }
 0x9d1   :  { %v13982_v13 = vpop.f32.mrb[15].mxu1 }
 0x9de   :  { %v14065_v60 = vpop.f32.mrb[16].mxu1 }
 0x9df   :  { %v14113_v41 = vadd.f32 %v14065_v60, %v13984_v48  ;;  %v14067_v25 = vpop.f32.mrb[17].mxu1 }
 0x9e0   :  { %v14114_v34 = vadd.f32 %v14067_v25, %v13985_v36  ;;  %v14069_v9 = vpop.f32.mrb[18].mxu1 }
 0x9e1   :  { %v14139_v32 = vadd.f32 %v14122_v43, %v14113_v41  ;;  %v14070_v39 = vpop.f32.mrb[19].mxu1 }
 0x9e2   :  { %v14140_v18 = vadd.f32 %v14126_v4, %v14114_v34 }
 0x9e3   :  { %v14143_v45 = vmax.f32 %v14139_v32, 0.0 }
 0x9e4   :  { %v14144_v40 = vmax.f32 %v14140_v18, 0.0 }
 0x9e6   :  { %v14152_v21 = vpack.c.bf16 %v14144_v40, %v14144_v40 }
 0x9ee   :  { %v14106_v24 = vpop.f32.mrb[20].mxu1 }
 0x9ef   :  { %v14115_v53 = vadd.f32 %v14106_v24, %v13986_v8  ;;  %v14108_v15 = vpop.f32.mrb[21].mxu1 }
 0x9f0   :  { %v14116_v23 = vadd.f32 %v14108_v15, %v13987_v26  ;;  %v14110_v33 = vpop.f32.mrb[22].mxu1 }
 0x9f1   :  { %v14141_v57 = vadd.f32 %v14130_v0, %v14115_v53  ;;  %v14111_v30 = vpop.f32.mrb[23].mxu1 }
 0x9f2   :  { %v14142_v59 = vadd.f32 %v14134_v16, %v14116_v23 }
 0x9f3   :  { %v14145_v51 = vmax.f32 %v14141_v57, 0.0 }
 0x9f4   :  { %v14146_v46 = vmax.f32 %v14142_v59, 0.0 }
 0x9f5   :  { %17351 = dma.done.wait [#allocation6 + $0x1], 4096 }
 0x9f6   :  { %17352 = vsyncadd [#allocation6 + $0x1], 4294963200  ;;  %v21380_v49 = vld [vmem:[#allocation14_spill] sm:$0xff]  ;;  %v21381_v22 = vld [vmem:[#allocation23_spill] sm:$0xff]  ;;  %14226 = vmatprep.mubr.bf16.mxu1 %v14152_v21  ;;  %v14151_v55 = vpack.c.bf16 %v14143_v45, %v14143_v45  ;;  %v14154_v54 = vpack.c.bf16 %v14146_v46, %v14146_v46  ;;  %v14153_v10 = vpack.c.bf16 %v14145_v51, %v14145_v51  ;;  %v14275_v34 = vand.u32 127, %v14119_v56 }
 0x9f7   :  { %15811 = vmatpush3.bf16.msra.mxu1 %v21380_v49  ;;  %v21382_v11 = vld [vmem:[#allocation15_spill] sm:$0xff]  ;;  %v21383_v27 = vld [vmem:[#allocation24_spill] sm:$0xff]  ;;  %v21385_v28 = vld [vmem:[#allocation25_spill] sm:$0xff] }
 0x9f8   :  { %15812 = vmatprep.subr.bf16.mxu1 %v21381_v22  ;;  %v21384_v38 = vld [vmem:[#allocation16_spill] sm:$0xff]  ;;  %v21386_v50 = vld [vmem:[#allocation17_spill] sm:$0xff]  ;;  %v21387_v19 = vld [vmem:[#allocation26_spill] sm:$0xff]  ;;  %vm14276_vm15 = vcmp.lt.s32.totalorder %v14275_v34, 10 }
 0x9f9   :  { %v21388_v7 = vld [vmem:[#allocation18_spill] sm:$0xff]  ;;  %v21389_v37 = vld [vmem:[#allocation27_spill] sm:$0xff]  ;;  %v21391_v6 = vld [vmem:[#allocation28_spill] sm:$0xff] }
 0x9fa   :  { %v21390_v31 = vld [vmem:[#allocation19_spill] sm:$0xff]  ;;  %v21392_v47 = vld [vmem:[#allocation20_spill] sm:$0xff]  ;;  %v21393_v1 = vld [vmem:[#allocation29_spill] sm:$0xff] }
 0x9fb   :  { %15813 = vmatpush3.bf16.msra.mxu1 %v21382_v11  ;;  %v21394_v35 = vld [vmem:[#allocation21_spill] sm:$0xff]  ;;  %v21395_v42 = vld [vmem:[#allocation38_spill] sm:$0xff]  ;;  %v21397_v17 = vld [vmem:[#allocation39_spill] sm:$0xff] }
 0x9fc   :  { %15814 = vmatprep.subr.bf16.mxu1 %v21383_v27  ;;  %v21396_v29 = vld [vmem:[#allocation30_spill] sm:$0xff]  ;;  %v21398_v48 = vld [vmem:[#allocation31_spill] sm:$0xff]  ;;  %v21399_v61 = vld [vmem:[#allocation40_spill] sm:$0xff] }
 0x9fd   :  { %v21400_v36 = vld [vmem:[#allocation32_spill] sm:$0xff]  ;;  %v21401_v3 = vld [vmem:[#allocation41_spill] sm:$0xff]  ;;  %v21403_v12 = vld [vmem:[#allocation42_spill] sm:$0xff] }
 0x9fe   :  { %v21402_v62 = vld [vmem:[#allocation33_spill] sm:$0xff]  ;;  %v21404_v8 = vld [vmem:[#allocation34_spill] sm:$0xff]  ;;  %v21405_v14 = vld [vmem:[#allocation43_spill] sm:$0xff] }
 0x9ff   :  { %15815 = vmatpush3.bf16.msra.mxu1 %v21384_v38  ;;  %v21406_v26 = vld [vmem:[#allocation35_spill] sm:$0xff]  ;;  %v21407_v2 = vld [vmem:[#allocation44_spill] sm:$0xff]  ;;  %v21409_v44 = vld [vmem:[#allocation45_spill] sm:$0xff] }
 0xa00   :  { %15816 = vmatprep.subr.bf16.mxu1 %v21385_v28  ;;  %v21408_v13 = vld [vmem:[#allocation36_spill] sm:$0xff]  ;;  %v21410_v63 = vld [vmem:[#allocation37_spill] sm:$0xff] }
 0xa01   :  { %v15445_v25 = vld [vmem:[%s21273_s8] ss:$0 sm:$0xff]  ;;  %s17356_s8 = smov [#allocation7]  }
 0xa02   :  { %s14298_s28 = sshll.u32 %s17356_s8, 4  ;;  %s14299_s28 = int_to_ptr.vmem [resolvable:$true] %s14298_s28 }
 0xa03   :  { %15817 = vmatpush3.bf16.msra.mxu1 %v21386_v50  ;;  %s17327_s1 = scalar_lea.vmem %s14299_s28, 32  ;;  %p17332_p1 = scmp.lt.s32.totalorder %s14299_s28, %s14299_s28 }
 0xa04   :  { %15818 = vmatprep.subr.bf16.mxu1 %v21387_v19  ;;  %p17328_p0 = scmp.ne.s32.totalorder %s14299_s28, %s17327_s1  ;;  %p17333_p2 = scmp.lt.s32.totalorder %s17327_s1, %s17327_s1 }
 0xa06   :  { %p17334_p3 = por %p17333_p2, %p17332_p1 }
 0xa07   :  { %15819 = vmatpush3.bf16.msra.mxu1 %v21388_v7 }
 0xa08   :  { %15820 = vmatprep.subr.bf16.mxu1 %v21389_v37  ;;  %p17335_p4 = pnand %p17334_p3, %p17328_p0 }
 0xa0b   :  { %15821 = vmatpush3.bf16.msra.mxu1 %v21390_v31 }
 0xa0c   :  { %15822 = vmatprep.subr.bf16.mxu1 %v21391_v6 }
 0xa0f   :  { %15823 = vmatpush3.bf16.msra.mxu1 %v21392_v47 }
 0xa10   :  { %15824 = vmatprep.subr.bf16.mxu1 %v21393_v1 }
 0xa13   :  { %15825 = vmatpush3.bf16.msra.mxu1 %v21394_v35 }
 0xa14   :  { %15832 = vmatprep.subr.bf16.mxu1 %v21395_v42 }
 0xa16   :  { %14227 = vmatmul.mubr.bf16.vlgmr.msra.gmra.mrb[24].mxu1 %v14151_v55 }
 0xa17   :  { %15833 = vmatpush3.bf16.msra.mxu1 %v21396_v29  ;;  %14266 = vmatprep.mubr.bf16.mxu1 %v14154_v54 }
 0xa18   :  { %15834 = vmatprep.subr.bf16.mxu1 %v21397_v17 }
 0xa1b   :  { %15835 = vmatpush3.bf16.msra.mxu1 %v21398_v48 }
 0xa1c   :  { %15836 = vmatprep.subr.bf16.mxu1 %v21399_v61 }
 0xa1f   :  { %15837 = vmatpush3.bf16.msra.mxu1 %v21400_v36 }
 0xa20   :  { %15838 = vmatprep.subr.bf16.mxu1 %v21401_v3 }
 0xa23   :  { %15839 = vmatpush3.bf16.msra.mxu1 %v21402_v62 }
 0xa24   :  { %15840 = vmatprep.subr.bf16.mxu1 %v21403_v12 }
 0xa27   :  { %15841 = vmatpush3.bf16.msra.mxu1 %v21404_v8 }
 0xa28   :  { %15842 = vmatprep.subr.bf16.mxu1 %v21405_v14 }
 0xa2b   :  { %15843 = vmatpush3.bf16.msra.mxu1 %v21406_v26 }
 0xa2c   :  { %15844 = vmatprep.subr.bf16.mxu1 %v21407_v2 }
 0xa2f   :  { %15845 = vmatpush3.bf16.msra.mxu1 %v21408_v13 }
 0xa30   :  { %15846 = vmatprep.subr.bf16.mxu1 %v21409_v44 }
 0xa33   :  { %15847 = vmatpush3.bf16.msra.mxu1 %v21410_v63 }
 0xa36   :  { %14267 = vmatmul.mubr.bf16.vlgmr.msra.gmra.mrb[28].mxu1 %v14153_v10 }
 0xae9   :  { %v15826_v52 = vpop.f32.mrb[24].mxu1 }
 0xaea   :  { %v15827_v43 = vpop.f32.mrb[25].mxu1 }
 0xaeb   :  { %v15828_v60 = vadd.f32 %v15827_v43, %v15826_v52  ;;  %v15829_v4 = vpop.f32.mrb[26].mxu1 }
 0xaec   :  { %v15830_v41 = vpop.f32.mrb[27].mxu1 }
 0xaed   :  { %v14229_v39 = vadd.f32 %v15828_v60, %v15445_v25 }
 0xb09   :  { %v15848_v9 = vpop.f32.mrb[28].mxu1 }
 0xb0a   :  { %v15849_v32 = vpop.f32.mrb[29].mxu1 }
 0xb0b   :  { %v15850_v18 = vadd.f32 %v15849_v32, %v15848_v9  ;;  %v15851_v45 = vpop.f32.mrb[30].mxu1 }
 0xb0c   :  { %v15852_v40 = vpop.f32.mrb[31].mxu1 }
 0xb0d   :  { %v14269_v5 = vadd.f32 %v15850_v18, %v14229_v39 }
 0xb0f   :  { %v14277_v20 = vsel %vm14276_vm15, %v14269_v5, -3.4028235e+38 }
 0xb10   :  { %v14279_v0 = vsel %vm11092_vm10, %v14277_v20, -inf }
 0xb11   :  { %14280 = vmax.xlane.f32.xlu0 %v14279_v0 }
 0xb9e   :  { %v14281_v24 = vpop.xlane.xlu0 %14280 }
 0xb9f   :  { %v14282_v16 = vsub.f32 %v14277_v20, %v14281_v24 }
 0xba1   :  { %v14283_v53 = vmul.f32 1.442695, %v14282_v16 }
 0xba3   :  { %17323 = vpow2.f32 %v14283_v53 }
 0xbad   :  { %v17324_v15 = vpop.eup %17323 }
 0xbae   :  { %v14285_v23 = vsel %vm11092_vm10, %v17324_v15, 0.0 }
 0xbaf   :  { %14286 = vadd.xlane.f32.xlu0 %v14285_v23 }
 0xc3c   :  { %v14287_v56 = vpop.xlane.xlu0 %14286 }
 0xc3d   :  { %17325 = vlog2.f32 %v14287_v56 }
 0xc47   :  { %v17326_v33 = vpop.eup %17325 }
 0xc48   :  { %v14289_v57 = vmul.f32 0.6931472, %v17326_v33 }
 0xc4a   :  { %v14290_v30 = vsub.f32 %v14282_v16, %v14289_v57 }
 0xc4c   :  { %14291 = vst [vmem:[#allocation7] sm:$0x3] %v14290_v30 }
 0xc4d   :  { %17338 = shalt.err (!%p17335_p4)
}
 0xc4e   :  { %s17339_s29 = scalar_lea.hbm %s21274_s9, 32 }
 0xc4f   :  { %p17340_p5 = scmp.ne.s32.totalorder %s21274_s9, %s17339_s29  ;;  %p17343_p6 = scmp.lt.u32.totalorder %s17339_s29, %s21274_s9 }
 0xc51   :  { %p17345_p7 = pnand %p17343_p6, %p17340_p5 }
 0xc53   :  { %17348 = shalt.err (!%p17345_p7)
}
 0xc54   :  { %14301 = dma.vmem_to_hbm [thread:$0]  %s14299_s28, 32, %s21274_s9, [#allocation8]  }
 0xc55   :  { %17353 = dma.done.wait [#allocation8], 32  }
 0xc56   :  { %17354 = vsyncadd [#allocation8], 4294967264 }
 0xc57   :  { %14305 = vsyncpa [#allocation8], 1 }
 0xc58   :  { %14306 = vsyncmov [#allocation6] }
 0xc5b   :  { %s14307_s13 = vpop.sfrf %14306 }
 0xc5c   :  { %p15446_p8 = scmp.ne.s32.totalorder %s14307_s13, 0 }
 0xc5e   :  { %14311 = shalt.err (%p15446_p8)  }
 0xc5f   :  { %14313 = vsyncmov [#allocation6 + $0x1] }
 0xc62   :  { %s14314_s14 = vpop.sfrf %14313 }
 0xc63   :  { %p15447_p9 = scmp.ne.s32.totalorder %s14314_s14, 0 }
 0xc65   :  { %14318 = shalt.err (%p15447_p9)  }

</bundles_post_ra>
